<compile_context>
chip_gen: v7x
topology: tpu7x:2x2x1
jax: 0.10.0
libtpu: 0.0.40
codegen_flags: <defaults>
</compile_context>

<pallas_src>
import functools

import jax
import jax.numpy as jnp
from jax.experimental import pallas as pl
from jax.experimental.pallas import tpu as pltpu


# ---------------------------------------------------------------------------
# Fused conv (tap-accumulated matmuls) + bias + ReLU + 2x2 max-pool kernel.
#
# The input is a row-flattened image (1, NROWS, K) where row index = h*W_pad + w.
# Tap t reads the contiguous row slice [offsets[t], offsets[t] + OH*W_pad) and
# multiplies it by w_ref[t] (K, C).  Output columns ow >= OW of the full-width
# result are wrap-around garbage and are discarded by the pooling selection.
# ---------------------------------------------------------------------------
def _conv_relu_pool_kernel(x_ref, w_ref, b_ref, o_ref, rowbuf_ref, *,
                           offsets, out_h, out_w, w_pad):
    m = out_h * w_pad
    acc = jnp.dot(x_ref[0, offsets[0]:offsets[0] + m, :], w_ref[0],
                  preferred_element_type=jnp.float32)
    for t in range(1, len(offsets)):
        off = offsets[t]
        acc = acc + jnp.dot(x_ref[0, off:off + m, :], w_ref[t],
                            preferred_element_type=jnp.float32)

    bias = b_ref[...]                                  # (1, C) f32
    ph, pw = out_h // 2, out_w // 2
    # Vertical 2x1 pool + bias + ReLU (monotone ops commute with max), written
    # row-by-row into a VMEM scratch so the horizontal pool can use strided
    # sublane reads.
    for r in range(ph):
        top = acc[(2 * r) * w_pad:(2 * r + 1) * w_pad, :]
        bot = acc[(2 * r + 1) * w_pad:(2 * r + 2) * w_pad, :]
        rowbuf_ref[r] = jnp.maximum(jnp.maximum(top, bot) + bias, 0.0)
    # Horizontal 1x2 pool: even/odd column selection via strided ref reads.
    even = rowbuf_ref[:, pl.ds(0, pw, stride=2), :]
    odd = rowbuf_ref[:, pl.ds(1, pw, stride=2), :]
    o_ref[0] = jnp.maximum(even, odd).astype(o_ref.dtype)


def conv_relu_pool(x, w_taps, b, *, offsets, out_h, out_w, w_pad):
    """x: (B, NROWS, K) bf16 row-flattened NHWC, w_taps: (T, K, C) bf16,
    b: (1, C) f32 -> pooled (B, out_h//2, out_w//2, C) bf16."""
    B, nrows, kin = x.shape
    n_taps, _, c = w_taps.shape
    ph, pw = out_h // 2, out_w // 2
    kernel = functools.partial(_conv_relu_pool_kernel, offsets=tuple(offsets),
                               out_h=out_h, out_w=out_w, w_pad=w_pad)
    return pl.pallas_call(
        kernel,
        out_shape=jax.ShapeDtypeStruct((B, ph, pw, c), jnp.bfloat16),
        grid=(B,),
        in_specs=[
            pl.BlockSpec((1, nrows, kin), lambda i: (i, 0, 0)),
            pl.BlockSpec((n_taps, kin, c), lambda i: (0, 0, 0)),
            pl.BlockSpec((1, c), lambda i: (0, 0)),
        ],
        out_specs=pl.BlockSpec((1, ph, pw, c), lambda i: (i, 0, 0, 0)),
        scratch_shapes=[pltpu.VMEM((ph, w_pad, c), jnp.float32)],
        compiler_params=pltpu.CompilerParams(
            dimension_semantics=("parallel",),
            vmem_limit_bytes=32 * 1024 * 1024,
        ),
    )(x, w_taps, b)


# ---------------------------------------------------------------------------
# Fused fc1 -> ReLU -> fc2 -> ReLU -> fc3 kernel (lane-dense, padded to 128).
# ---------------------------------------------------------------------------
def _fc_kernel(x_ref, w1_ref, b1_ref, w2_ref, b2_ref, w3_ref, b3_ref, o_ref):
    h = jnp.dot(x_ref[...], w1_ref[...], preferred_element_type=jnp.float32)
    h = jnp.maximum(h + b1_ref[...], 0.0).astype(jnp.bfloat16)
    h = jnp.dot(h, w2_ref[...], preferred_element_type=jnp.float32)
    h = jnp.maximum(h + b2_ref[...], 0.0).astype(jnp.bfloat16)
    h = jnp.dot(h, w3_ref[...], preferred_element_type=jnp.float32)
    o_ref[...] = h + b3_ref[...]


def fc_forward(x, params):
    B, _ = x.shape
    args = (x, params["fc1_w"], params["fc1_b"], params["fc2_w"],
            params["fc2_b"], params["fc3_w"], params["fc3_b"])
    return pl.pallas_call(
        _fc_kernel,
        out_shape=jax.ShapeDtypeStruct((B, 128), jnp.float32),
        grid=(1,),
        in_specs=[pl.BlockSpec(a.shape, lambda i: (0, 0)) for a in args],
        out_specs=pl.BlockSpec((B, 128), lambda i: (0, 0)),
        compiler_params=pltpu.CompilerParams(vmem_limit_bytes=32 * 1024 * 1024),
    )(*args)


# ---------------------------------------------------------------------------
# Full network forward.
# ---------------------------------------------------------------------------
def net_forward(x_nchw, params):
    B = x_nchw.shape[0]
    x = jnp.transpose(x_nchw, (0, 2, 3, 1))                     # (B, 32, 32, 3)

    # conv1 input prep (tiny wrapper glue): unfold (kw, c) into the lane axis so
    # each kernel-row tap has K=15, then flatten spatial rows.  Valid outputs
    # (ow < 28) never read the zero-padded columns.
    parts = []
    for kw in range(5):
        s = x[:, :, kw:, :]
        parts.append(jnp.pad(s, ((0, 0), (0, 0), (0, kw), (0, 0))))
    xu = jnp.concatenate(parts, axis=-1)                         # (B, 32, 32, 15)
    xu = xu.reshape(B, 32 * 32, 15).astype(jnp.bfloat16)

    p1 = conv_relu_pool(xu, params["conv1_w"], params["conv1_b"],
                        offsets=[kh * 32 for kh in range(5)],
                        out_h=28, out_w=28, w_pad=32)            # (B, 14, 14, 128)

    # conv2 input prep: pad spatial to 15 x 16 (width multiple of 8, and enough
    # rows: last tap offset 4*16+4 + 10*16 = 228 <= 240), then flatten rows.
    x2 = jnp.pad(p1, ((0, 0), (0, 1), (0, 2), (0, 0))).reshape(B, 15 * 16, 128)

    p2 = conv_relu_pool(x2, params["conv2_w"], params["conv2_b"],
                        offsets=[kh * 16 + kw for kh in range(5) for kw in range(5)],
                        out_h=10, out_w=10, w_pad=16)            # (B, 5, 5, 64)

    flat = p2.reshape(B, 5 * 5 * 64)   # NHWC flatten; permutation folded into fc1_w
    logits = fc_forward(flat, params)  # (B, 128) lane-dense, f32
    return logits[:, :10]


# ---------------------------------------------------------------------------
# Deterministic synthetic parameters (PyTorch shapes, converted to kernel layout)
# ---------------------------------------------------------------------------
def _pad2(a, rows, cols):
    r, c = a.shape
    return jnp.pad(a, ((0, rows - r), (0, cols - c)))


def init_params(key):
    ks = jax.random.split(key, 10)

    def nrm(k, shape, scale):
        return scale * jax.random.normal(k, shape, dtype=jnp.float32)

    # PyTorch shapes: conv weight (OC, IC, KH, KW), linear weight (out, in).
    conv1_w = nrm(ks[0], (128, 3, 5, 5), 0.05)
    conv1_b = nrm(ks[1], (128,), 0.05)
    conv2_w = nrm(ks[2], (64, 128, 5, 5), 0.02)
    conv2_b = nrm(ks[3], (64,), 0.02)
    fc1_w = nrm(ks[4], (120, 64 * 5 * 5), 0.02)
    fc1_b = nrm(ks[5], (120,), 0.02)
    fc2_w = nrm(ks[6], (84, 120), 0.05)
    fc2_b = nrm(ks[7], (84,), 0.05)
    fc3_w = nrm(ks[8], (10, 84), 0.05)
    fc3_b = nrm(ks[9], (10,), 0.05)

    # conv1: (OC, IC, 5, 5) -> (KH, KW*IC, OC); lane index kw*3 + c matches the
    # width-unfolded input.
    w1 = jnp.transpose(conv1_w, (2, 3, 1, 0)).reshape(5, 5 * 3, 128)
    # conv2: (OC, IC, 5, 5) -> (KH*KW, IC, OC); one tap per (kh, kw).
    w2 = jnp.transpose(conv2_w, (2, 3, 1, 0)).reshape(25, 128, 64)
    # fc1: fold torch's (c, h, w) flatten order into a row permutation so the
    # kernel consumes NHWC-flatten (h, w, c) directly (no runtime transpose).
    f1 = jnp.transpose(fc1_w.reshape(120, 64, 5, 5), (2, 3, 1, 0)).reshape(1600, 120)

    return {
        "conv1_w": w1.astype(jnp.bfloat16),
        "conv1_b": conv1_b.reshape(1, 128),
        "conv2_w": w2.astype(jnp.bfloat16),
        "conv2_b": conv2_b.reshape(1, 64),
        "fc1_w": _pad2(f1, 1600, 128).astype(jnp.bfloat16),
        "fc1_b": _pad2(fc1_b.reshape(1, 120), 1, 128),
        "fc2_w": _pad2(fc2_w.T, 128, 128).astype(jnp.bfloat16),
        "fc2_b": _pad2(fc2_b.reshape(1, 84), 1, 128),
        "fc3_w": _pad2(fc3_w.T, 128, 128).astype(jnp.bfloat16),
        "fc3_b": _pad2(fc3_b.reshape(1, 10), 1, 128),
    }


if __name__ == "__main__":
    key = jax.random.PRNGKey(0)
    k_x, k_p = jax.random.split(key)
    # CIFAR-sized input: the fc(64*5*5) constraint forces 32x32 spatial; batch=2.
    x = jax.random.normal(k_x, (2, 3, 32, 32), dtype=jnp.float32)
    params = init_params(k_p)

    out = jax.jit(net_forward)(x, params)
    out = jax.block_until_ready(out)
    assert out.shape == (2, 10), out.shape
    assert bool(jnp.all(jnp.isfinite(out)))
    print("KERNEL_OK")
</pallas_src>

<mosaic_0001>
module attributes {stable_mosaic.version = 11 : i64} {
  func.func @_conv_relu_pool_kernel(%arg0: i32, %arg1: memref<1x1024x15xbf16, #tpu.memory_space<vmem>>, %arg2: memref<5x15x128xbf16, #tpu.memory_space<vmem>>, %arg3: memref<1x128xf32, #tpu.memory_space<vmem>>, %arg4: memref<1x14x14x128xbf16, #tpu.memory_space<vmem>>, %arg5: memref<14x32x128xf32, #tpu.memory_space<vmem>>) attributes {dimension_semantics = [#tpu.dimension_semantics<parallel>], iteration_bounds = array<i64: 2>, scalar_prefetch = 0 : i64, scratch_operands = 1 : i64, tpu.core_type = #tpu.core_type<tc>, window_params = [{transform_indices = @transform_0, window_bounds = array<i64: 1, 1024, 15>}, {pipeline_mode = #tpu.pipeline_mode<synchronous>, transform_indices = @transform_1, window_bounds = array<i64: 5, 15, 128>}, {pipeline_mode = #tpu.pipeline_mode<synchronous>, transform_indices = @transform_2, window_bounds = array<i64: 1, 128>}, {transform_indices = @transform_3, window_bounds = array<i64: 1, 14, 14, 128>}]} {
    %c0 = arith.constant 0 : index
    %c0_0 = arith.constant 0 : index
    %c0_1 = arith.constant 0 : index
    %0 = vector.load %arg1[%c0, %c0_0, %c0_1] : memref<1x1024x15xbf16, #tpu.memory_space<vmem>>, vector<1x896x15xbf16>
    %1 = vector.shape_cast %0 : vector<1x896x15xbf16> to vector<896x15xbf16>
    %c0_2 = arith.constant 0 : index
    %c0_3 = arith.constant 0 : index
    %c0_4 = arith.constant 0 : index
    %2 = vector.load %arg2[%c0_2, %c0_3, %c0_4] : memref<5x15x128xbf16, #tpu.memory_space<vmem>>, vector<1x15x128xbf16>
    %3 = vector.shape_cast %2 : vector<1x15x128xbf16> to vector<15x128xbf16>
    %cst = arith.constant dense<0.000000e+00> : vector<896x128xf32>
    %4 = tpu.matmul %1, %3, %cst {dimension_numbers = #tpu.dot_dimension_numbers<[1], [0], [0], [1], [0, 0, 1, 1], [], []>} : vector<896x15xbf16>, vector<15x128xbf16>, vector<896x128xf32> -> vector<896x128xf32>
    %c0_5 = arith.constant 0 : index
    %c32 = arith.constant 32 : index
    %c0_6 = arith.constant 0 : index
    %5 = vector.load %arg1[%c0_5, %c32, %c0_6] : memref<1x1024x15xbf16, #tpu.memory_space<vmem>>, vector<1x896x15xbf16>
    %6 = vector.shape_cast %5 : vector<1x896x15xbf16> to vector<896x15xbf16>
    %c1 = arith.constant 1 : index
    %c0_7 = arith.constant 0 : index
    %c0_8 = arith.constant 0 : index
    %7 = vector.load %arg2[%c1, %c0_7, %c0_8] : memref<5x15x128xbf16, #tpu.memory_space<vmem>>, vector<1x15x128xbf16>
    %8 = vector.shape_cast %7 : vector<1x15x128xbf16> to vector<15x128xbf16>
    %cst_9 = arith.constant dense<0.000000e+00> : vector<896x128xf32>
    %9 = tpu.matmul %6, %8, %cst_9 {dimension_numbers = #tpu.dot_dimension_numbers<[1], [0], [0], [1], [0, 0, 1, 1], [], []>} : vector<896x15xbf16>, vector<15x128xbf16>, vector<896x128xf32> -> vector<896x128xf32>
    %10 = arith.addf %4, %9 : vector<896x128xf32>
    %c0_10 = arith.constant 0 : index
    %c64 = arith.constant 64 : index
    %c0_11 = arith.constant 0 : index
    %11 = vector.load %arg1[%c0_10, %c64, %c0_11] : memref<1x1024x15xbf16, #tpu.memory_space<vmem>>, vector<1x896x15xbf16>
    %12 = vector.shape_cast %11 : vector<1x896x15xbf16> to vector<896x15xbf16>
    %c2 = arith.constant 2 : index
    %c0_12 = arith.constant 0 : index
    %c0_13 = arith.constant 0 : index
    %13 = vector.load %arg2[%c2, %c0_12, %c0_13] : memref<5x15x128xbf16, #tpu.memory_space<vmem>>, vector<1x15x128xbf16>
    %14 = vector.shape_cast %13 : vector<1x15x128xbf16> to vector<15x128xbf16>
    %cst_14 = arith.constant dense<0.000000e+00> : vector<896x128xf32>
    %15 = tpu.matmul %12, %14, %cst_14 {dimension_numbers = #tpu.dot_dimension_numbers<[1], [0], [0], [1], [0, 0, 1, 1], [], []>} : vector<896x15xbf16>, vector<15x128xbf16>, vector<896x128xf32> -> vector<896x128xf32>
    %16 = arith.addf %10, %15 : vector<896x128xf32>
    %c0_15 = arith.constant 0 : index
    %c96 = arith.constant 96 : index
    %c0_16 = arith.constant 0 : index
    %17 = vector.load %arg1[%c0_15, %c96, %c0_16] : memref<1x1024x15xbf16, #tpu.memory_space<vmem>>, vector<1x896x15xbf16>
    %18 = vector.shape_cast %17 : vector<1x896x15xbf16> to vector<896x15xbf16>
    %c3 = arith.constant 3 : index
    %c0_17 = arith.constant 0 : index
    %c0_18 = arith.constant 0 : index
    %19 = vector.load %arg2[%c3, %c0_17, %c0_18] : memref<5x15x128xbf16, #tpu.memory_space<vmem>>, vector<1x15x128xbf16>
    %20 = vector.shape_cast %19 : vector<1x15x128xbf16> to vector<15x128xbf16>
    %cst_19 = arith.constant dense<0.000000e+00> : vector<896x128xf32>
    %21 = tpu.matmul %18, %20, %cst_19 {dimension_numbers = #tpu.dot_dimension_numbers<[1], [0], [0], [1], [0, 0, 1, 1], [], []>} : vector<896x15xbf16>, vector<15x128xbf16>, vector<896x128xf32> -> vector<896x128xf32>
    %22 = arith.addf %16, %21 : vector<896x128xf32>
    %c0_20 = arith.constant 0 : index
    %c128 = arith.constant 128 : index
    %c0_21 = arith.constant 0 : index
    %23 = vector.load %arg1[%c0_20, %c128, %c0_21] : memref<1x1024x15xbf16, #tpu.memory_space<vmem>>, vector<1x896x15xbf16>
    %24 = vector.shape_cast %23 : vector<1x896x15xbf16> to vector<896x15xbf16>
    %c4 = arith.constant 4 : index
    %c0_22 = arith.constant 0 : index
    %c0_23 = arith.constant 0 : index
    %25 = vector.load %arg2[%c4, %c0_22, %c0_23] : memref<5x15x128xbf16, #tpu.memory_space<vmem>>, vector<1x15x128xbf16>
    %26 = vector.shape_cast %25 : vector<1x15x128xbf16> to vector<15x128xbf16>
    %cst_24 = arith.constant dense<0.000000e+00> : vector<896x128xf32>
    %27 = tpu.matmul %24, %26, %cst_24 {dimension_numbers = #tpu.dot_dimension_numbers<[1], [0], [0], [1], [0, 0, 1, 1], [], []>} : vector<896x15xbf16>, vector<15x128xbf16>, vector<896x128xf32> -> vector<896x128xf32>
    %28 = arith.addf %22, %27 : vector<896x128xf32>
    %c0_25 = arith.constant 0 : index
    %c0_26 = arith.constant 0 : index
    %29 = vector.load %arg3[%c0_25, %c0_26] : memref<1x128xf32, #tpu.memory_space<vmem>>, vector<1x128xf32>
    %30 = vector.extract_strided_slice %28 {offsets = [0, 0], sizes = [32, 128], strides = [1, 1]} : vector<896x128xf32> to vector<32x128xf32>
    %31 = vector.extract_strided_slice %28 {offsets = [32, 0], sizes = [32, 128], strides = [1, 1]} : vector<896x128xf32> to vector<32x128xf32>
    %32 = arith.maximumf %30, %31 : vector<32x128xf32>
    %33 = vector.broadcast %29 : vector<1x128xf32> to vector<32x128xf32>
    %34 = arith.addf %32, %33 : vector<32x128xf32>
    %cst_27 = arith.constant 0.000000e+00 : f32
    %35 = vector.broadcast %cst_27 : f32 to vector<32x128xf32>
    %36 = arith.maximumf %34, %35 : vector<32x128xf32>
    %c0_28 = arith.constant 0 : index
    %c0_29 = arith.constant 0 : index
    %c0_30 = arith.constant 0 : index
    %37 = vector.load %arg5[%c0_28, %c0_29, %c0_30] : memref<14x32x128xf32, #tpu.memory_space<vmem>>, vector<1x32x128xf32>
    %38 = vector.shape_cast %37 : vector<1x32x128xf32> to vector<32x128xf32>
    %39 = vector.shape_cast %36 : vector<32x128xf32> to vector<1x32x128xf32>
    tpu.vector_store %arg5[%c0_28, %c0_29, %c0_30], %39 {strides = array<i32>} : memref<14x32x128xf32, #tpu.memory_space<vmem>>, vector<1x32x128xf32>,
    %40 = vector.extract_strided_slice %28 {offsets = [64, 0], sizes = [32, 128], strides = [1, 1]} : vector<896x128xf32> to vector<32x128xf32>
    %41 = vector.extract_strided_slice %28 {offsets = [96, 0], sizes = [32, 128], strides = [1, 1]} : vector<896x128xf32> to vector<32x128xf32>
    %42 = arith.maximumf %40, %41 : vector<32x128xf32>
    %43 = vector.broadcast %29 : vector<1x128xf32> to vector<32x128xf32>
    %44 = arith.addf %42, %43 : vector<32x128xf32>
    %cst_31 = arith.constant 0.000000e+00 : f32
    %45 = vector.broadcast %cst_31 : f32 to vector<32x128xf32>
    %46 = arith.maximumf %44, %45 : vector<32x128xf32>
    %c1_32 = arith.constant 1 : index
    %c0_33 = arith.constant 0 : index
    %c0_34 = arith.constant 0 : index
    %47 = vector.load %arg5[%c1_32, %c0_33, %c0_34] : memref<14x32x128xf32, #tpu.memory_space<vmem>>, vector<1x32x128xf32>
    %48 = vector.shape_cast %47 : vector<1x32x128xf32> to vector<32x128xf32>
    %49 = vector.shape_cast %46 : vector<32x128xf32> to vector<1x32x128xf32>
    tpu.vector_store %arg5[%c1_32, %c0_33, %c0_34], %49 {strides = array<i32>} : memref<14x32x128xf32, #tpu.memory_space<vmem>>, vector<1x32x128xf32>,
    %50 = vector.extract_strided_slice %28 {offsets = [128, 0], sizes = [32, 128], strides = [1, 1]} : vector<896x128xf32> to vector<32x128xf32>
    %51 = vector.extract_strided_slice %28 {offsets = [160, 0], sizes = [32, 128], strides = [1, 1]} : vector<896x128xf32> to vector<32x128xf32>
    %52 = arith.maximumf %50, %51 : vector<32x128xf32>
    %53 = vector.broadcast %29 : vector<1x128xf32> to vector<32x128xf32>
    %54 = arith.addf %52, %53 : vector<32x128xf32>
    %cst_35 = arith.constant 0.000000e+00 : f32
    %55 = vector.broadcast %cst_35 : f32 to vector<32x128xf32>
    %56 = arith.maximumf %54, %55 : vector<32x128xf32>
    %c2_36 = arith.constant 2 : index
    %c0_37 = arith.constant 0 : index
    %c0_38 = arith.constant 0 : index
    %57 = vector.load %arg5[%c2_36, %c0_37, %c0_38] : memref<14x32x128xf32, #tpu.memory_space<vmem>>, vector<1x32x128xf32>
    %58 = vector.shape_cast %57 : vector<1x32x128xf32> to vector<32x128xf32>
    %59 = vector.shape_cast %56 : vector<32x128xf32> to vector<1x32x128xf32>
    tpu.vector_store %arg5[%c2_36, %c0_37, %c0_38], %59 {strides = array<i32>} : memref<14x32x128xf32, #tpu.memory_space<vmem>>, vector<1x32x128xf32>,
    %60 = vector.extract_strided_slice %28 {offsets = [192, 0], sizes = [32, 128], strides = [1, 1]} : vector<896x128xf32> to vector<32x128xf32>
    %61 = vector.extract_strided_slice %28 {offsets = [224, 0], sizes = [32, 128], strides = [1, 1]} : vector<896x128xf32> to vector<32x128xf32>
    %62 = arith.maximumf %60, %61 : vector<32x128xf32>
    %63 = vector.broadcast %29 : vector<1x128xf32> to vector<32x128xf32>
    %64 = arith.addf %62, %63 : vector<32x128xf32>
    %cst_39 = arith.constant 0.000000e+00 : f32
    %65 = vector.broadcast %cst_39 : f32 to vector<32x128xf32>
    %66 = arith.maximumf %64, %65 : vector<32x128xf32>
    %c3_40 = arith.constant 3 : index
    %c0_41 = arith.constant 0 : index
    %c0_42 = arith.constant 0 : index
    %67 = vector.load %arg5[%c3_40, %c0_41, %c0_42] : memref<14x32x128xf32, #tpu.memory_space<vmem>>, vector<1x32x128xf32>
    %68 = vector.shape_cast %67 : vector<1x32x128xf32> to vector<32x128xf32>
    %69 = vector.shape_cast %66 : vector<32x128xf32> to vector<1x32x128xf32>
    tpu.vector_store %arg5[%c3_40, %c0_41, %c0_42], %69 {strides = array<i32>} : memref<14x32x128xf32, #tpu.memory_space<vmem>>, vector<1x32x128xf32>,
    %70 = vector.extract_strided_slice %28 {offsets = [256, 0], sizes = [32, 128], strides = [1, 1]} : vector<896x128xf32> to vector<32x128xf32>
    %71 = vector.extract_strided_slice %28 {offsets = [288, 0], sizes = [32, 128], strides = [1, 1]} : vector<896x128xf32> to vector<32x128xf32>
    %72 = arith.maximumf %70, %71 : vector<32x128xf32>
    %73 = vector.broadcast %29 : vector<1x128xf32> to vector<32x128xf32>
    %74 = arith.addf %72, %73 : vector<32x128xf32>
    %cst_43 = arith.constant 0.000000e+00 : f32
    %75 = vector.broadcast %cst_43 : f32 to vector<32x128xf32>
    %76 = arith.maximumf %74, %75 : vector<32x128xf32>
    %c4_44 = arith.constant 4 : index
    %c0_45 = arith.constant 0 : index
    %c0_46 = arith.constant 0 : index
    %77 = vector.load %arg5[%c4_44, %c0_45, %c0_46] : memref<14x32x128xf32, #tpu.memory_space<vmem>>, vector<1x32x128xf32>
    %78 = vector.shape_cast %77 : vector<1x32x128xf32> to vector<32x128xf32>
    %79 = vector.shape_cast %76 : vector<32x128xf32> to vector<1x32x128xf32>
    tpu.vector_store %arg5[%c4_44, %c0_45, %c0_46], %79 {strides = array<i32>} : memref<14x32x128xf32, #tpu.memory_space<vmem>>, vector<1x32x128xf32>,
    %80 = vector.extract_strided_slice %28 {offsets = [320, 0], sizes = [32, 128], strides = [1, 1]} : vector<896x128xf32> to vector<32x128xf32>
    %81 = vector.extract_strided_slice %28 {offsets = [352, 0], sizes = [32, 128], strides = [1, 1]} : vector<896x128xf32> to vector<32x128xf32>
    %82 = arith.maximumf %80, %81 : vector<32x128xf32>
    %83 = vector.broadcast %29 : vector<1x128xf32> to vector<32x128xf32>
    %84 = arith.addf %82, %83 : vector<32x128xf32>
    %cst_47 = arith.constant 0.000000e+00 : f32
    %85 = vector.broadcast %cst_47 : f32 to vector<32x128xf32>
    %86 = arith.maximumf %84, %85 : vector<32x128xf32>
    %c5 = arith.constant 5 : index
    %c0_48 = arith.constant 0 : index
    %c0_49 = arith.constant 0 : index
    %87 = vector.load %arg5[%c5, %c0_48, %c0_49] : memref<14x32x128xf32, #tpu.memory_space<vmem>>, vector<1x32x128xf32>
    %88 = vector.shape_cast %87 : vector<1x32x128xf32> to vector<32x128xf32>
    %89 = vector.shape_cast %86 : vector<32x128xf32> to vector<1x32x128xf32>
    tpu.vector_store %arg5[%c5, %c0_48, %c0_49], %89 {strides = array<i32>} : memref<14x32x128xf32, #tpu.memory_space<vmem>>, vector<1x32x128xf32>,
    %90 = vector.extract_strided_slice %28 {offsets = [384, 0], sizes = [32, 128], strides = [1, 1]} : vector<896x128xf32> to vector<32x128xf32>
    %91 = vector.extract_strided_slice %28 {offsets = [416, 0], sizes = [32, 128], strides = [1, 1]} : vector<896x128xf32> to vector<32x128xf32>
    %92 = arith.maximumf %90, %91 : vector<32x128xf32>
    %93 = vector.broadcast %29 : vector<1x128xf32> to vector<32x128xf32>
    %94 = arith.addf %92, %93 : vector<32x128xf32>
    %cst_50 = arith.constant 0.000000e+00 : f32
    %95 = vector.broadcast %cst_50 : f32 to vector<32x128xf32>
    %96 = arith.maximumf %94, %95 : vector<32x128xf32>
    %c6 = arith.constant 6 : index
    %c0_51 = arith.constant 0 : index
    %c0_52 = arith.constant 0 : index
    %97 = vector.load %arg5[%c6, %c0_51, %c0_52] : memref<14x32x128xf32, #tpu.memory_space<vmem>>, vector<1x32x128xf32>
    %98 = vector.shape_cast %97 : vector<1x32x128xf32> to vector<32x128xf32>
    %99 = vector.shape_cast %96 : vector<32x128xf32> to vector<1x32x128xf32>
    tpu.vector_store %arg5[%c6, %c0_51, %c0_52], %99 {strides = array<i32>} : memref<14x32x128xf32, #tpu.memory_space<vmem>>, vector<1x32x128xf32>,
    %100 = vector.extract_strided_slice %28 {offsets = [448, 0], sizes = [32, 128], strides = [1, 1]} : vector<896x128xf32> to vector<32x128xf32>
    %101 = vector.extract_strided_slice %28 {offsets = [480, 0], sizes = [32, 128], strides = [1, 1]} : vector<896x128xf32> to vector<32x128xf32>
    %102 = arith.maximumf %100, %101 : vector<32x128xf32>
    %103 = vector.broadcast %29 : vector<1x128xf32> to vector<32x128xf32>
    %104 = arith.addf %102, %103 : vector<32x128xf32>
    %cst_53 = arith.constant 0.000000e+00 : f32
    %105 = vector.broadcast %cst_53 : f32 to vector<32x128xf32>
    %106 = arith.maximumf %104, %105 : vector<32x128xf32>
    %c7 = arith.constant 7 : index
    %c0_54 = arith.constant 0 : index
    %c0_55 = arith.constant 0 : index
    %107 = vector.load %arg5[%c7, %c0_54, %c0_55] : memref<14x32x128xf32, #tpu.memory_space<vmem>>, vector<1x32x128xf32>
    %108 = vector.shape_cast %107 : vector<1x32x128xf32> to vector<32x128xf32>
    %109 = vector.shape_cast %106 : vector<32x128xf32> to vector<1x32x128xf32>
    tpu.vector_store %arg5[%c7, %c0_54, %c0_55], %109 {strides = array<i32>} : memref<14x32x128xf32, #tpu.memory_space<vmem>>, vector<1x32x128xf32>,
    %110 = vector.extract_strided_slice %28 {offsets = [512, 0], sizes = [32, 128], strides = [1, 1]} : vector<896x128xf32> to vector<32x128xf32>
    %111 = vector.extract_strided_slice %28 {offsets = [544, 0], sizes = [32, 128], strides = [1, 1]} : vector<896x128xf32> to vector<32x128xf32>
    %112 = arith.maximumf %110, %111 : vector<32x128xf32>
    %113 = vector.broadcast %29 : vector<1x128xf32> to vector<32x128xf32>
    %114 = arith.addf %112, %113 : vector<32x128xf32>
    %cst_56 = arith.constant 0.000000e+00 : f32
    %115 = vector.broadcast %cst_56 : f32 to vector<32x128xf32>
    %116 = arith.maximumf %114, %115 : vector<32x128xf32>
    %c8 = arith.constant 8 : index
    %c0_57 = arith.constant 0 : index
    %c0_58 = arith.constant 0 : index
    %117 = vector.load %arg5[%c8, %c0_57, %c0_58] : memref<14x32x128xf32, #tpu.memory_space<vmem>>, vector<1x32x128xf32>
    %118 = vector.shape_cast %117 : vector<1x32x128xf32> to vector<32x128xf32>
    %119 = vector.shape_cast %116 : vector<32x128xf32> to vector<1x32x128xf32>
    tpu.vector_store %arg5[%c8, %c0_57, %c0_58], %119 {strides = array<i32>} : memref<14x32x128xf32, #tpu.memory_space<vmem>>, vector<1x32x128xf32>,
    %120 = vector.extract_strided_slice %28 {offsets = [576, 0], sizes = [32, 128], strides = [1, 1]} : vector<896x128xf32> to vector<32x128xf32>
    %121 = vector.extract_strided_slice %28 {offsets = [608, 0], sizes = [32, 128], strides = [1, 1]} : vector<896x128xf32> to vector<32x128xf32>
    %122 = arith.maximumf %120, %121 : vector<32x128xf32>
    %123 = vector.broadcast %29 : vector<1x128xf32> to vector<32x128xf32>
    %124 = arith.addf %122, %123 : vector<32x128xf32>
    %cst_59 = arith.constant 0.000000e+00 : f32
    %125 = vector.broadcast %cst_59 : f32 to vector<32x128xf32>
    %126 = arith.maximumf %124, %125 : vector<32x128xf32>
    %c9 = arith.constant 9 : index
    %c0_60 = arith.constant 0 : index
    %c0_61 = arith.constant 0 : index
    %127 = vector.load %arg5[%c9, %c0_60, %c0_61] : memref<14x32x128xf32, #tpu.memory_space<vmem>>, vector<1x32x128xf32>
    %128 = vector.shape_cast %127 : vector<1x32x128xf32> to vector<32x128xf32>
    %129 = vector.shape_cast %126 : vector<32x128xf32> to vector<1x32x128xf32>
    tpu.vector_store %arg5[%c9, %c0_60, %c0_61], %129 {strides = array<i32>} : memref<14x32x128xf32, #tpu.memory_space<vmem>>, vector<1x32x128xf32>,
    %130 = vector.extract_strided_slice %28 {offsets = [640, 0], sizes = [32, 128], strides = [1, 1]} : vector<896x128xf32> to vector<32x128xf32>
    %131 = vector.extract_strided_slice %28 {offsets = [672, 0], sizes = [32, 128], strides = [1, 1]} : vector<896x128xf32> to vector<32x128xf32>
    %132 = arith.maximumf %130, %131 : vector<32x128xf32>
    %133 = vector.broadcast %29 : vector<1x128xf32> to vector<32x128xf32>
    %134 = arith.addf %132, %133 : vector<32x128xf32>
    %cst_62 = arith.constant 0.000000e+00 : f32
    %135 = vector.broadcast %cst_62 : f32 to vector<32x128xf32>
    %136 = arith.maximumf %134, %135 : vector<32x128xf32>
    %c10 = arith.constant 10 : index
    %c0_63 = arith.constant 0 : index
    %c0_64 = arith.constant 0 : index
    %137 = vector.load %arg5[%c10, %c0_63, %c0_64] : memref<14x32x128xf32, #tpu.memory_space<vmem>>, vector<1x32x128xf32>
    %138 = vector.shape_cast %137 : vector<1x32x128xf32> to vector<32x128xf32>
    %139 = vector.shape_cast %136 : vector<32x128xf32> to vector<1x32x128xf32>
    tpu.vector_store %arg5[%c10, %c0_63, %c0_64], %139 {strides = array<i32>} : memref<14x32x128xf32, #tpu.memory_space<vmem>>, vector<1x32x128xf32>,
    %140 = vector.extract_strided_slice %28 {offsets = [704, 0], sizes = [32, 128], strides = [1, 1]} : vector<896x128xf32> to vector<32x128xf32>
    %141 = vector.extract_strided_slice %28 {offsets = [736, 0], sizes = [32, 128], strides = [1, 1]} : vector<896x128xf32> to vector<32x128xf32>
    %142 = arith.maximumf %140, %141 : vector<32x128xf32>
    %143 = vector.broadcast %29 : vector<1x128xf32> to vector<32x128xf32>
    %144 = arith.addf %142, %143 : vector<32x128xf32>
    %cst_65 = arith.constant 0.000000e+00 : f32
    %145 = vector.broadcast %cst_65 : f32 to vector<32x128xf32>
    %146 = arith.maximumf %144, %145 : vector<32x128xf32>
    %c11 = arith.constant 11 : index
    %c0_66 = arith.constant 0 : index
    %c0_67 = arith.constant 0 : index
    %147 = vector.load %arg5[%c11, %c0_66, %c0_67] : memref<14x32x128xf32, #tpu.memory_space<vmem>>, vector<1x32x128xf32>
    %148 = vector.shape_cast %147 : vector<1x32x128xf32> to vector<32x128xf32>
    %149 = vector.shape_cast %146 : vector<32x128xf32> to vector<1x32x128xf32>
    tpu.vector_store %arg5[%c11, %c0_66, %c0_67], %149 {strides = array<i32>} : memref<14x32x128xf32, #tpu.memory_space<vmem>>, vector<1x32x128xf32>,
    %150 = vector.extract_strided_slice %28 {offsets = [768, 0], sizes = [32, 128], strides = [1, 1]} : vector<896x128xf32> to vector<32x128xf32>
    %151 = vector.extract_strided_slice %28 {offsets = [800, 0], sizes = [32, 128], strides = [1, 1]} : vector<896x128xf32> to vector<32x128xf32>
    %152 = arith.maximumf %150, %151 : vector<32x128xf32>
    %153 = vector.broadcast %29 : vector<1x128xf32> to vector<32x128xf32>
    %154 = arith.addf %152, %153 : vector<32x128xf32>
    %cst_68 = arith.constant 0.000000e+00 : f32
    %155 = vector.broadcast %cst_68 : f32 to vector<32x128xf32>
    %156 = arith.maximumf %154, %155 : vector<32x128xf32>
    %c12 = arith.constant 12 : index
    %c0_69 = arith.constant 0 : index
    %c0_70 = arith.constant 0 : index
    %157 = vector.load %arg5[%c12, %c0_69, %c0_70] : memref<14x32x128xf32, #tpu.memory_space<vmem>>, vector<1x32x128xf32>
    %158 = vector.shape_cast %157 : vector<1x32x128xf32> to vector<32x128xf32>
    %159 = vector.shape_cast %156 : vector<32x128xf32> to vector<1x32x128xf32>
    tpu.vector_store %arg5[%c12, %c0_69, %c0_70], %159 {strides = array<i32>} : memref<14x32x128xf32, #tpu.memory_space<vmem>>, vector<1x32x128xf32>,
    %160 = vector.extract_strided_slice %28 {offsets = [832, 0], sizes = [32, 128], strides = [1, 1]} : vector<896x128xf32> to vector<32x128xf32>
    %161 = vector.extract_strided_slice %28 {offsets = [864, 0], sizes = [32, 128], strides = [1, 1]} : vector<896x128xf32> to vector<32x128xf32>
    %162 = arith.maximumf %160, %161 : vector<32x128xf32>
    %163 = vector.broadcast %29 : vector<1x128xf32> to vector<32x128xf32>
    %164 = arith.addf %162, %163 : vector<32x128xf32>
    %cst_71 = arith.constant 0.000000e+00 : f32
    %165 = vector.broadcast %cst_71 : f32 to vector<32x128xf32>
    %166 = arith.maximumf %164, %165 : vector<32x128xf32>
    %c13 = arith.constant 13 : index
    %c0_72 = arith.constant 0 : index
    %c0_73 = arith.constant 0 : index
    %167 = vector.load %arg5[%c13, %c0_72, %c0_73] : memref<14x32x128xf32, #tpu.memory_space<vmem>>, vector<1x32x128xf32>
    %168 = vector.shape_cast %167 : vector<1x32x128xf32> to vector<32x128xf32>
    %169 = vector.shape_cast %166 : vector<32x128xf32> to vector<1x32x128xf32>
    tpu.vector_store %arg5[%c13, %c0_72, %c0_73], %169 {strides = array<i32>} : memref<14x32x128xf32, #tpu.memory_space<vmem>>, vector<1x32x128xf32>,
    %c0_74 = arith.constant 0 : index
    %c0_75 = arith.constant 0 : index
    %c0_76 = arith.constant 0 : index
    %170 = tpu.strided_load %arg5[%c0_74, %c0_75, %c0_76] {strides = array<i32: 1, 2, 1>} : memref<14x32x128xf32, #tpu.memory_space<vmem>>, vector<14x14x128xf32>
    %c0_77 = arith.constant 0 : index
    %c1_78 = arith.constant 1 : index
    %c0_79 = arith.constant 0 : index
    %171 = tpu.strided_load %arg5[%c0_77, %c1_78, %c0_79] {strides = array<i32: 1, 2, 1>} : memref<14x32x128xf32, #tpu.memory_space<vmem>>, vector<14x14x128xf32>
    %172 = arith.maximumf %170, %171 : vector<14x14x128xf32>
    %173 = arith.truncf %172 : vector<14x14x128xf32> to vector<14x14x128xbf16>
    %c0_80 = arith.constant 0 : index
    %c0_81 = arith.constant 0 : index
    %c0_82 = arith.constant 0 : index
    %c0_83 = arith.constant 0 : index
    %174 = vector.load %arg4[%c0_80, %c0_81, %c0_82, %c0_83] : memref<1x14x14x128xbf16, #tpu.memory_space<vmem>>, vector<1x14x14x128xbf16>
    %175 = vector.shape_cast %174 : vector<1x14x14x128xbf16> to vector<14x14x128xbf16>
    %176 = vector.shape_cast %173 : vector<14x14x128xbf16> to vector<1x14x14x128xbf16>
    tpu.vector_store %arg4[%c0_80, %c0_81, %c0_82, %c0_83], %176 {strides = array<i32>} : memref<1x14x14x128xbf16, #tpu.memory_space<vmem>>, vector<1x14x14x128xbf16>,
    return
  }
  func.func @transform_0(%arg0: i32) -> (i32, i32, i32) {
    %c0_i32 = arith.constant 0 : i32
    %c0_i32_0 = arith.constant 0 : i32
    %c0_i32_1 = arith.constant 0 : i32
    return %arg0, %c0_i32, %c0_i32_0 : i32, i32, i32
  }
  func.func @transform_1(%arg0: i32) -> (i32, i32, i32) {
    %c0_i32 = arith.constant 0 : i32
    %c0_i32_0 = arith.constant 0 : i32
    %c0_i32_1 = arith.constant 0 : i32
    %c0_i32_2 = arith.constant 0 : i32
    return %c0_i32, %c0_i32_0, %c0_i32_1 : i32, i32, i32
  }
  func.func @transform_2(%arg0: i32) -> (i32, i32) {
    %c0_i32 = arith.constant 0 : i32
    %c0_i32_0 = arith.constant 0 : i32
    %c0_i32_1 = arith.constant 0 : i32
    return %c0_i32, %c0_i32_0 : i32, i32
  }
  func.func @transform_3(%arg0: i32) -> (i32, i32, i32, i32) {
    %c0_i32 = arith.constant 0 : i32
    %c0_i32_0 = arith.constant 0 : i32
    %c0_i32_1 = arith.constant 0 : i32
    %c0_i32_2 = arith.constant 0 : i32
    return %arg0, %c0_i32, %c0_i32_0, %c0_i32_1 : i32, i32, i32, i32
  }
}

module attributes {stable_mosaic.version = 11 : i64} {
  func.func @_conv_relu_pool_kernel(%arg0: i32, %arg1: memref<1x240x128xbf16, #tpu.memory_space<vmem>>, %arg2: memref<25x128x64xbf16, #tpu.memory_space<vmem>>, %arg3: memref<1x64xf32, #tpu.memory_space<vmem>>, %arg4: memref<1x5x5x64xbf16, #tpu.memory_space<vmem>>, %arg5: memref<5x16x64xf32, #tpu.memory_space<vmem>>) attributes {dimension_semantics = [#tpu.dimension_semantics<parallel>], iteration_bounds = array<i64: 2>, scalar_prefetch = 0 : i64, scratch_operands = 1 : i64, tpu.core_type = #tpu.core_type<tc>, window_params = [{transform_indices = @transform_0, window_bounds = array<i64: 1, 240, 128>}, {pipeline_mode = #tpu.pipeline_mode<synchronous>, transform_indices = @transform_1, window_bounds = array<i64: 25, 128, 64>}, {pipeline_mode = #tpu.pipeline_mode<synchronous>, transform_indices = @transform_2, window_bounds = array<i64: 1, 64>}, {transform_indices = @transform_3, window_bounds = array<i64: 1, 5, 5, 64>}]} {
    %c0 = arith.constant 0 : index
    %c0_0 = arith.constant 0 : index
    %c0_1 = arith.constant 0 : index
    %0 = vector.load %arg1[%c0, %c0_0, %c0_1] : memref<1x240x128xbf16, #tpu.memory_space<vmem>>, vector<1x160x128xbf16>
    %1 = vector.shape_cast %0 : vector<1x160x128xbf16> to vector<160x128xbf16>
    %c0_2 = arith.constant 0 : index
    %c0_3 = arith.constant 0 : index
    %c0_4 = arith.constant 0 : index
    %2 = vector.load %arg2[%c0_2, %c0_3, %c0_4] : memref<25x128x64xbf16, #tpu.memory_space<vmem>>, vector<1x128x64xbf16>
    %3 = vector.shape_cast %2 : vector<1x128x64xbf16> to vector<128x64xbf16>
    %cst = arith.constant dense<0.000000e+00> : vector<160x64xf32>
    %4 = tpu.matmul %1, %3, %cst {dimension_numbers = #tpu.dot_dimension_numbers<[1], [0], [0], [1], [0, 0, 1, 1], [], []>} : vector<160x128xbf16>, vector<128x64xbf16>, vector<160x64xf32> -> vector<160x64xf32>
    %c0_5 = arith.constant 0 : index
    %c1 = arith.constant 1 : index
    %c0_6 = arith.constant 0 : index
    %5 = vector.load %arg1[%c0_5, %c1, %c0_6] : memref<1x240x128xbf16, #tpu.memory_space<vmem>>, vector<1x160x128xbf16>
    %6 = vector.shape_cast %5 : vector<1x160x128xbf16> to vector<160x128xbf16>
    %c1_7 = arith.constant 1 : index
    %c0_8 = arith.constant 0 : index
    %c0_9 = arith.constant 0 : index
    %7 = vector.load %arg2[%c1_7, %c0_8, %c0_9] : memref<25x128x64xbf16, #tpu.memory_space<vmem>>, vector<1x128x64xbf16>
    %8 = vector.shape_cast %7 : vector<1x128x64xbf16> to vector<128x64xbf16>
    %cst_10 = arith.constant dense<0.000000e+00> : vector<160x64xf32>
    %9 = tpu.matmul %6, %8, %cst_10 {dimension_numbers = #tpu.dot_dimension_numbers<[1], [0], [0], [1], [0, 0, 1, 1], [], []>} : vector<160x128xbf16>, vector<128x64xbf16>, vector<160x64xf32> -> vector<160x64xf32>
    %10 = arith.addf %4, %9 : vector<160x64xf32>
    %c0_11 = arith.constant 0 : index
    %c2 = arith.constant 2 : index
    %c0_12 = arith.constant 0 : index
    %11 = vector.load %arg1[%c0_11, %c2, %c0_12] : memref<1x240x128xbf16, #tpu.memory_space<vmem>>, vector<1x160x128xbf16>
    %12 = vector.shape_cast %11 : vector<1x160x128xbf16> to vector<160x128xbf16>
    %c2_13 = arith.constant 2 : index
    %c0_14 = arith.constant 0 : index
    %c0_15 = arith.constant 0 : index
    %13 = vector.load %arg2[%c2_13, %c0_14, %c0_15] : memref<25x128x64xbf16, #tpu.memory_space<vmem>>, vector<1x128x64xbf16>
    %14 = vector.shape_cast %13 : vector<1x128x64xbf16> to vector<128x64xbf16>
    %cst_16 = arith.constant dense<0.000000e+00> : vector<160x64xf32>
    %15 = tpu.matmul %12, %14, %cst_16 {dimension_numbers = #tpu.dot_dimension_numbers<[1], [0], [0], [1], [0, 0, 1, 1], [], []>} : vector<160x128xbf16>, vector<128x64xbf16>, vector<160x64xf32> -> vector<160x64xf32>
    %16 = arith.addf %10, %15 : vector<160x64xf32>
    %c0_17 = arith.constant 0 : index
    %c3 = arith.constant 3 : index
    %c0_18 = arith.constant 0 : index
    %17 = vector.load %arg1[%c0_17, %c3, %c0_18] : memref<1x240x128xbf16, #tpu.memory_space<vmem>>, vector<1x160x128xbf16>
    %18 = vector.shape_cast %17 : vector<1x160x128xbf16> to vector<160x128xbf16>
    %c3_19 = arith.constant 3 : index
    %c0_20 = arith.constant 0 : index
    %c0_21 = arith.constant 0 : index
    %19 = vector.load %arg2[%c3_19, %c0_20, %c0_21] : memref<25x128x64xbf16, #tpu.memory_space<vmem>>, vector<1x128x64xbf16>
    %20 = vector.shape_cast %19 : vector<1x128x64xbf16> to vector<128x64xbf16>
    %cst_22 = arith.constant dense<0.000000e+00> : vector<160x64xf32>
    %21 = tpu.matmul %18, %20, %cst_22 {dimension_numbers = #tpu.dot_dimension_numbers<[1], [0], [0], [1], [0, 0, 1, 1], [], []>} : vector<160x128xbf16>, vector<128x64xbf16>, vector<160x64xf32> -> vector<160x64xf32>
    %22 = arith.addf %16, %21 : vector<160x64xf32>
    %c0_23 = arith.constant 0 : index
    %c4 = arith.constant 4 : index
    %c0_24 = arith.constant 0 : index
    %23 = vector.load %arg1[%c0_23, %c4, %c0_24] : memref<1x240x128xbf16, #tpu.memory_space<vmem>>, vector<1x160x128xbf16>
    %24 = vector.shape_cast %23 : vector<1x160x128xbf16> to vector<160x128xbf16>
    %c4_25 = arith.constant 4 : index
    %c0_26 = arith.constant 0 : index
    %c0_27 = arith.constant 0 : index
    %25 = vector.load %arg2[%c4_25, %c0_26, %c0_27] : memref<25x128x64xbf16, #tpu.memory_space<vmem>>, vector<1x128x64xbf16>
    %26 = vector.shape_cast %25 : vector<1x128x64xbf16> to vector<128x64xbf16>
    %cst_28 = arith.constant dense<0.000000e+00> : vector<160x64xf32>
    %27 = tpu.matmul %24, %26, %cst_28 {dimension_numbers = #tpu.dot_dimension_numbers<[1], [0], [0], [1], [0, 0, 1, 1], [], []>} : vector<160x128xbf16>, vector<128x64xbf16>, vector<160x64xf32> -> vector<160x64xf32>
    %28 = arith.addf %22, %27 : vector<160x64xf32>
    %c0_29 = arith.constant 0 : index
    %c16 = arith.constant 16 : index
    %c0_30 = arith.constant 0 : index
    %29 = vector.load %arg1[%c0_29, %c16, %c0_30] : memref<1x240x128xbf16, #tpu.memory_space<vmem>>, vector<1x160x128xbf16>
    %30 = vector.shape_cast %29 : vector<1x160x128xbf16> to vector<160x128xbf16>
    %c5 = arith.constant 5 : index
    %c0_31 = arith.constant 0 : index
    %c0_32 = arith.constant 0 : index
    %31 = vector.load %arg2[%c5, %c0_31, %c0_32] : memref<25x128x64xbf16, #tpu.memory_space<vmem>>, vector<1x128x64xbf16>
    %32 = vector.shape_cast %31 : vector<1x128x64xbf16> to vector<128x64xbf16>
    %cst_33 = arith.constant dense<0.000000e+00> : vector<160x64xf32>
    %33 = tpu.matmul %30, %32, %cst_33 {dimension_numbers = #tpu.dot_dimension_numbers<[1], [0], [0], [1], [0, 0, 1, 1], [], []>} : vector<160x128xbf16>, vector<128x64xbf16>, vector<160x64xf32> -> vector<160x64xf32>
    %34 = arith.addf %28, %33 : vector<160x64xf32>
    %c0_34 = arith.constant 0 : index
    %c17 = arith.constant 17 : index
    %c0_35 = arith.constant 0 : index
    %35 = vector.load %arg1[%c0_34, %c17, %c0_35] : memref<1x240x128xbf16, #tpu.memory_space<vmem>>, vector<1x160x128xbf16>
    %36 = vector.shape_cast %35 : vector<1x160x128xbf16> to vector<160x128xbf16>
    %c6 = arith.constant 6 : index
    %c0_36 = arith.constant 0 : index
    %c0_37 = arith.constant 0 : index
    %37 = vector.load %arg2[%c6, %c0_36, %c0_37] : memref<25x128x64xbf16, #tpu.memory_space<vmem>>, vector<1x128x64xbf16>
    %38 = vector.shape_cast %37 : vector<1x128x64xbf16> to vector<128x64xbf16>
    %cst_38 = arith.constant dense<0.000000e+00> : vector<160x64xf32>
    %39 = tpu.matmul %36, %38, %cst_38 {dimension_numbers = #tpu.dot_dimension_numbers<[1], [0], [0], [1], [0, 0, 1, 1], [], []>} : vector<160x128xbf16>, vector<128x64xbf16>, vector<160x64xf32> -> vector<160x64xf32>
    %40 = arith.addf %34, %39 : vector<160x64xf32>
    %c0_39 = arith.constant 0 : index
    %c18 = arith.constant 18 : index
    %c0_40 = arith.constant 0 : index
    %41 = vector.load %arg1[%c0_39, %c18, %c0_40] : memref<1x240x128xbf16, #tpu.memory_space<vmem>>, vector<1x160x128xbf16>
    %42 = vector.shape_cast %41 : vector<1x160x128xbf16> to vector<160x128xbf16>
    %c7 = arith.constant 7 : index
    %c0_41 = arith.constant 0 : index
    %c0_42 = arith.constant 0 : index
    %43 = vector.load %arg2[%c7, %c0_41, %c0_42] : memref<25x128x64xbf16, #tpu.memory_space<vmem>>, vector<1x128x64xbf16>
    %44 = vector.shape_cast %43 : vector<1x128x64xbf16> to vector<128x64xbf16>
    %cst_43 = arith.constant dense<0.000000e+00> : vector<160x64xf32>
    %45 = tpu.matmul %42, %44, %cst_43 {dimension_numbers = #tpu.dot_dimension_numbers<[1], [0], [0], [1], [0, 0, 1, 1], [], []>} : vector<160x128xbf16>, vector<128x64xbf16>, vector<160x64xf32> -> vector<160x64xf32>
    %46 = arith.addf %40, %45 : vector<160x64xf32>
    %c0_44 = arith.constant 0 : index
    %c19 = arith.constant 19 : index
    %c0_45 = arith.constant 0 : index
    %47 = vector.load %arg1[%c0_44, %c19, %c0_45] : memref<1x240x128xbf16, #tpu.memory_space<vmem>>, vector<1x160x128xbf16>
    %48 = vector.shape_cast %47 : vector<1x160x128xbf16> to vector<160x128xbf16>
    %c8 = arith.constant 8 : index
    %c0_46 = arith.constant 0 : index
    %c0_47 = arith.constant 0 : index
    %49 = vector.load %arg2[%c8, %c0_46, %c0_47] : memref<25x128x64xbf16, #tpu.memory_space<vmem>>, vector<1x128x64xbf16>
    %50 = vector.shape_cast %49 : vector<1x128x64xbf16> to vector<128x64xbf16>
    %cst_48 = arith.constant dense<0.000000e+00> : vector<160x64xf32>
    %51 = tpu.matmul %48, %50, %cst_48 {dimension_numbers = #tpu.dot_dimension_numbers<[1], [0], [0], [1], [0, 0, 1, 1], [], []>} : vector<160x128xbf16>, vector<128x64xbf16>, vector<160x64xf32> -> vector<160x64xf32>
    %52 = arith.addf %46, %51 : vector<160x64xf32>
    %c0_49 = arith.constant 0 : index
    %c20 = arith.constant 20 : index
    %c0_50 = arith.constant 0 : index
    %53 = vector.load %arg1[%c0_49, %c20, %c0_50] : memref<1x240x128xbf16, #tpu.memory_space<vmem>>, vector<1x160x128xbf16>
    %54 = vector.shape_cast %53 : vector<1x160x128xbf16> to vector<160x128xbf16>
    %c9 = arith.constant 9 : index
    %c0_51 = arith.constant 0 : index
    %c0_52 = arith.constant 0 : index
    %55 = vector.load %arg2[%c9, %c0_51, %c0_52] : memref<25x128x64xbf16, #tpu.memory_space<vmem>>, vector<1x128x64xbf16>
    %56 = vector.shape_cast %55 : vector<1x128x64xbf16> to vector<128x64xbf16>
    %cst_53 = arith.constant dense<0.000000e+00> : vector<160x64xf32>
    %57 = tpu.matmul %54, %56, %cst_53 {dimension_numbers = #tpu.dot_dimension_numbers<[1], [0], [0], [1], [0, 0, 1, 1], [], []>} : vector<160x128xbf16>, vector<128x64xbf16>, vector<160x64xf32> -> vector<160x64xf32>
    %58 = arith.addf %52, %57 : vector<160x64xf32>
    %c0_54 = arith.constant 0 : index
    %c32 = arith.constant 32 : index
    %c0_55 = arith.constant 0 : index
    %59 = vector.load %arg1[%c0_54, %c32, %c0_55] : memref<1x240x128xbf16, #tpu.memory_space<vmem>>, vector<1x160x128xbf16>
    %60 = vector.shape_cast %59 : vector<1x160x128xbf16> to vector<160x128xbf16>
    %c10 = arith.constant 10 : index
    %c0_56 = arith.constant 0 : index
    %c0_57 = arith.constant 0 : index
    %61 = vector.load %arg2[%c10, %c0_56, %c0_57] : memref<25x128x64xbf16, #tpu.memory_space<vmem>>, vector<1x128x64xbf16>
    %62 = vector.shape_cast %61 : vector<1x128x64xbf16> to vector<128x64xbf16>
    %cst_58 = arith.constant dense<0.000000e+00> : vector<160x64xf32>
    %63 = tpu.matmul %60, %62, %cst_58 {dimension_numbers = #tpu.dot_dimension_numbers<[1], [0], [0], [1], [0, 0, 1, 1], [], []>} : vector<160x128xbf16>, vector<128x64xbf16>, vector<160x64xf32> -> vector<160x64xf32>
    %64 = arith.addf %58, %63 : vector<160x64xf32>
    %c0_59 = arith.constant 0 : index
    %c33 = arith.constant 33 : index
    %c0_60 = arith.constant 0 : index
    %65 = vector.load %arg1[%c0_59, %c33, %c0_60] : memref<1x240x128xbf16, #tpu.memory_space<vmem>>, vector<1x160x128xbf16>
    %66 = vector.shape_cast %65 : vector<1x160x128xbf16> to vector<160x128xbf16>
    %c11 = arith.constant 11 : index
    %c0_61 = arith.constant 0 : index
    %c0_62 = arith.constant 0 : index
    %67 = vector.load %arg2[%c11, %c0_61, %c0_62] : memref<25x128x64xbf16, #tpu.memory_space<vmem>>, vector<1x128x64xbf16>
    %68 = vector.shape_cast %67 : vector<1x128x64xbf16> to vector<128x64xbf16>
    %cst_63 = arith.constant dense<0.000000e+00> : vector<160x64xf32>
    %69 = tpu.matmul %66, %68, %cst_63 {dimension_numbers = #tpu.dot_dimension_numbers<[1], [0], [0], [1], [0, 0, 1, 1], [], []>} : vector<160x128xbf16>, vector<128x64xbf16>, vector<160x64xf32> -> vector<160x64xf32>
    %70 = arith.addf %64, %69 : vector<160x64xf32>
    %c0_64 = arith.constant 0 : index
    %c34 = arith.constant 34 : index
    %c0_65 = arith.constant 0 : index
    %71 = vector.load %arg1[%c0_64, %c34, %c0_65] : memref<1x240x128xbf16, #tpu.memory_space<vmem>>, vector<1x160x128xbf16>
    %72 = vector.shape_cast %71 : vector<1x160x128xbf16> to vector<160x128xbf16>
    %c12 = arith.constant 12 : index
    %c0_66 = arith.constant 0 : index
    %c0_67 = arith.constant 0 : index
    %73 = vector.load %arg2[%c12, %c0_66, %c0_67] : memref<25x128x64xbf16, #tpu.memory_space<vmem>>, vector<1x128x64xbf16>
    %74 = vector.shape_cast %73 : vector<1x128x64xbf16> to vector<128x64xbf16>
    %cst_68 = arith.constant dense<0.000000e+00> : vector<160x64xf32>
    %75 = tpu.matmul %72, %74, %cst_68 {dimension_numbers = #tpu.dot_dimension_numbers<[1], [0], [0], [1], [0, 0, 1, 1], [], []>} : vector<160x128xbf16>, vector<128x64xbf16>, vector<160x64xf32> -> vector<160x64xf32>
    %76 = arith.addf %70, %75 : vector<160x64xf32>
    %c0_69 = arith.constant 0 : index
    %c35 = arith.constant 35 : index
    %c0_70 = arith.constant 0 : index
    %77 = vector.load %arg1[%c0_69, %c35, %c0_70] : memref<1x240x128xbf16, #tpu.memory_space<vmem>>, vector<1x160x128xbf16>
    %78 = vector.shape_cast %77 : vector<1x160x128xbf16> to vector<160x128xbf16>
    %c13 = arith.constant 13 : index
    %c0_71 = arith.constant 0 : index
    %c0_72 = arith.constant 0 : index
    %79 = vector.load %arg2[%c13, %c0_71, %c0_72] : memref<25x128x64xbf16, #tpu.memory_space<vmem>>, vector<1x128x64xbf16>
    %80 = vector.shape_cast %79 : vector<1x128x64xbf16> to vector<128x64xbf16>
    %cst_73 = arith.constant dense<0.000000e+00> : vector<160x64xf32>
    %81 = tpu.matmul %78, %80, %cst_73 {dimension_numbers = #tpu.dot_dimension_numbers<[1], [0], [0], [1], [0, 0, 1, 1], [], []>} : vector<160x128xbf16>, vector<128x64xbf16>, vector<160x64xf32> -> vector<160x64xf32>
    %82 = arith.addf %76, %81 : vector<160x64xf32>
    %c0_74 = arith.constant 0 : index
    %c36 = arith.constant 36 : index
    %c0_75 = arith.constant 0 : index
    %83 = vector.load %arg1[%c0_74, %c36, %c0_75] : memref<1x240x128xbf16, #tpu.memory_space<vmem>>, vector<1x160x128xbf16>
    %84 = vector.shape_cast %83 : vector<1x160x128xbf16> to vector<160x128xbf16>
    %c14 = arith.constant 14 : index
    %c0_76 = arith.constant 0 : index
    %c0_77 = arith.constant 0 : index
    %85 = vector.load %arg2[%c14, %c0_76, %c0_77] : memref<25x128x64xbf16, #tpu.memory_space<vmem>>, vector<1x128x64xbf16>
    %86 = vector.shape_cast %85 : vector<1x128x64xbf16> to vector<128x64xbf16>
    %cst_78 = arith.constant dense<0.000000e+00> : vector<160x64xf32>
    %87 = tpu.matmul %84, %86, %cst_78 {dimension_numbers = #tpu.dot_dimension_numbers<[1], [0], [0], [1], [0, 0, 1, 1], [], []>} : vector<160x128xbf16>, vector<128x64xbf16>, vector<160x64xf32> -> vector<160x64xf32>
    %88 = arith.addf %82, %87 : vector<160x64xf32>
    %c0_79 = arith.constant 0 : index
    %c48 = arith.constant 48 : index
    %c0_80 = arith.constant 0 : index
    %89 = vector.load %arg1[%c0_79, %c48, %c0_80] : memref<1x240x128xbf16, #tpu.memory_space<vmem>>, vector<1x160x128xbf16>
    %90 = vector.shape_cast %89 : vector<1x160x128xbf16> to vector<160x128xbf16>
    %c15 = arith.constant 15 : index
    %c0_81 = arith.constant 0 : index
    %c0_82 = arith.constant 0 : index
    %91 = vector.load %arg2[%c15, %c0_81, %c0_82] : memref<25x128x64xbf16, #tpu.memory_space<vmem>>, vector<1x128x64xbf16>
    %92 = vector.shape_cast %91 : vector<1x128x64xbf16> to vector<128x64xbf16>
    %cst_83 = arith.constant dense<0.000000e+00> : vector<160x64xf32>
    %93 = tpu.matmul %90, %92, %cst_83 {dimension_numbers = #tpu.dot_dimension_numbers<[1], [0], [0], [1], [0, 0, 1, 1], [], []>} : vector<160x128xbf16>, vector<128x64xbf16>, vector<160x64xf32> -> vector<160x64xf32>
    %94 = arith.addf %88, %93 : vector<160x64xf32>
    %c0_84 = arith.constant 0 : index
    %c49 = arith.constant 49 : index
    %c0_85 = arith.constant 0 : index
    %95 = vector.load %arg1[%c0_84, %c49, %c0_85] : memref<1x240x128xbf16, #tpu.memory_space<vmem>>, vector<1x160x128xbf16>
    %96 = vector.shape_cast %95 : vector<1x160x128xbf16> to vector<160x128xbf16>
    %c16_86 = arith.constant 16 : index
    %c0_87 = arith.constant 0 : index
    %c0_88 = arith.constant 0 : index
    %97 = vector.load %arg2[%c16_86, %c0_87, %c0_88] : memref<25x128x64xbf16, #tpu.memory_space<vmem>>, vector<1x128x64xbf16>
    %98 = vector.shape_cast %97 : vector<1x128x64xbf16> to vector<128x64xbf16>
    %cst_89 = arith.constant dense<0.000000e+00> : vector<160x64xf32>
    %99 = tpu.matmul %96, %98, %cst_89 {dimension_numbers = #tpu.dot_dimension_numbers<[1], [0], [0], [1], [0, 0, 1, 1], [], []>} : vector<160x128xbf16>, vector<128x64xbf16>, vector<160x64xf32> -> vector<160x64xf32>
    %100 = arith.addf %94, %99 : vector<160x64xf32>
    %c0_90 = arith.constant 0 : index
    %c50 = arith.constant 50 : index
    %c0_91 = arith.constant 0 : index
    %101 = vector.load %arg1[%c0_90, %c50, %c0_91] : memref<1x240x128xbf16, #tpu.memory_space<vmem>>, vector<1x160x128xbf16>
    %102 = vector.shape_cast %101 : vector<1x160x128xbf16> to vector<160x128xbf16>
    %c17_92 = arith.constant 17 : index
    %c0_93 = arith.constant 0 : index
    %c0_94 = arith.constant 0 : index
    %103 = vector.load %arg2[%c17_92, %c0_93, %c0_94] : memref<25x128x64xbf16, #tpu.memory_space<vmem>>, vector<1x128x64xbf16>
    %104 = vector.shape_cast %103 : vector<1x128x64xbf16> to vector<128x64xbf16>
    %cst_95 = arith.constant dense<0.000000e+00> : vector<160x64xf32>
    %105 = tpu.matmul %102, %104, %cst_95 {dimension_numbers = #tpu.dot_dimension_numbers<[1], [0], [0], [1], [0, 0, 1, 1], [], []>} : vector<160x128xbf16>, vector<128x64xbf16>, vector<160x64xf32> -> vector<160x64xf32>
    %106 = arith.addf %100, %105 : vector<160x64xf32>
    %c0_96 = arith.constant 0 : index
    %c51 = arith.constant 51 : index
    %c0_97 = arith.constant 0 : index
    %107 = vector.load %arg1[%c0_96, %c51, %c0_97] : memref<1x240x128xbf16, #tpu.memory_space<vmem>>, vector<1x160x128xbf16>
    %108 = vector.shape_cast %107 : vector<1x160x128xbf16> to vector<160x128xbf16>
    %c18_98 = arith.constant 18 : index
    %c0_99 = arith.constant 0 : index
    %c0_100 = arith.constant 0 : index
    %109 = vector.load %arg2[%c18_98, %c0_99, %c0_100] : memref<25x128x64xbf16, #tpu.memory_space<vmem>>, vector<1x128x64xbf16>
    %110 = vector.shape_cast %109 : vector<1x128x64xbf16> to vector<128x64xbf16>
    %cst_101 = arith.constant dense<0.000000e+00> : vector<160x64xf32>
    %111 = tpu.matmul %108, %110, %cst_101 {dimension_numbers = #tpu.dot_dimension_numbers<[1], [0], [0], [1], [0, 0, 1, 1], [], []>} : vector<160x128xbf16>, vector<128x64xbf16>, vector<160x64xf32> -> vector<160x64xf32>
    %112 = arith.addf %106, %111 : vector<160x64xf32>
    %c0_102 = arith.constant 0 : index
    %c52 = arith.constant 52 : index
    %c0_103 = arith.constant 0 : index
    %113 = vector.load %arg1[%c0_102, %c52, %c0_103] : memref<1x240x128xbf16, #tpu.memory_space<vmem>>, vector<1x160x128xbf16>
    %114 = vector.shape_cast %113 : vector<1x160x128xbf16> to vector<160x128xbf16>
    %c19_104 = arith.constant 19 : index
    %c0_105 = arith.constant 0 : index
    %c0_106 = arith.constant 0 : index
    %115 = vector.load %arg2[%c19_104, %c0_105, %c0_106] : memref<25x128x64xbf16, #tpu.memory_space<vmem>>, vector<1x128x64xbf16>
    %116 = vector.shape_cast %115 : vector<1x128x64xbf16> to vector<128x64xbf16>
    %cst_107 = arith.constant dense<0.000000e+00> : vector<160x64xf32>
    %117 = tpu.matmul %114, %116, %cst_107 {dimension_numbers = #tpu.dot_dimension_numbers<[1], [0], [0], [1], [0, 0, 1, 1], [], []>} : vector<160x128xbf16>, vector<128x64xbf16>, vector<160x64xf32> -> vector<160x64xf32>
    %118 = arith.addf %112, %117 : vector<160x64xf32>
    %c0_108 = arith.constant 0 : index
    %c64 = arith.constant 64 : index
    %c0_109 = arith.constant 0 : index
    %119 = vector.load %arg1[%c0_108, %c64, %c0_109] : memref<1x240x128xbf16, #tpu.memory_space<vmem>>, vector<1x160x128xbf16>
    %120 = vector.shape_cast %119 : vector<1x160x128xbf16> to vector<160x128xbf16>
    %c20_110 = arith.constant 20 : index
    %c0_111 = arith.constant 0 : index
    %c0_112 = arith.constant 0 : index
    %121 = vector.load %arg2[%c20_110, %c0_111, %c0_112] : memref<25x128x64xbf16, #tpu.memory_space<vmem>>, vector<1x128x64xbf16>
    %122 = vector.shape_cast %121 : vector<1x128x64xbf16> to vector<128x64xbf16>
    %cst_113 = arith.constant dense<0.000000e+00> : vector<160x64xf32>
    %123 = tpu.matmul %120, %122, %cst_113 {dimension_numbers = #tpu.dot_dimension_numbers<[1], [0], [0], [1], [0, 0, 1, 1], [], []>} : vector<160x128xbf16>, vector<128x64xbf16>, vector<160x64xf32> -> vector<160x64xf32>
    %124 = arith.addf %118, %123 : vector<160x64xf32>
    %c0_114 = arith.constant 0 : index
    %c65 = arith.constant 65 : index
    %c0_115 = arith.constant 0 : index
    %125 = vector.load %arg1[%c0_114, %c65, %c0_115] : memref<1x240x128xbf16, #tpu.memory_space<vmem>>, vector<1x160x128xbf16>
    %126 = vector.shape_cast %125 : vector<1x160x128xbf16> to vector<160x128xbf16>
    %c21 = arith.constant 21 : index
    %c0_116 = arith.constant 0 : index
    %c0_117 = arith.constant 0 : index
    %127 = vector.load %arg2[%c21, %c0_116, %c0_117] : memref<25x128x64xbf16, #tpu.memory_space<vmem>>, vector<1x128x64xbf16>
    %128 = vector.shape_cast %127 : vector<1x128x64xbf16> to vector<128x64xbf16>
    %cst_118 = arith.constant dense<0.000000e+00> : vector<160x64xf32>
    %129 = tpu.matmul %126, %128, %cst_118 {dimension_numbers = #tpu.dot_dimension_numbers<[1], [0], [0], [1], [0, 0, 1, 1], [], []>} : vector<160x128xbf16>, vector<128x64xbf16>, vector<160x64xf32> -> vector<160x64xf32>
    %130 = arith.addf %124, %129 : vector<160x64xf32>
    %c0_119 = arith.constant 0 : index
    %c66 = arith.constant 66 : index
    %c0_120 = arith.constant 0 : index
    %131 = vector.load %arg1[%c0_119, %c66, %c0_120] : memref<1x240x128xbf16, #tpu.memory_space<vmem>>, vector<1x160x128xbf16>
    %132 = vector.shape_cast %131 : vector<1x160x128xbf16> to vector<160x128xbf16>
    %c22 = arith.constant 22 : index
    %c0_121 = arith.constant 0 : index
    %c0_122 = arith.constant 0 : index
    %133 = vector.load %arg2[%c22, %c0_121, %c0_122] : memref<25x128x64xbf16, #tpu.memory_space<vmem>>, vector<1x128x64xbf16>
    %134 = vector.shape_cast %133 : vector<1x128x64xbf16> to vector<128x64xbf16>
    %cst_123 = arith.constant dense<0.000000e+00> : vector<160x64xf32>
    %135 = tpu.matmul %132, %134, %cst_123 {dimension_numbers = #tpu.dot_dimension_numbers<[1], [0], [0], [1], [0, 0, 1, 1], [], []>} : vector<160x128xbf16>, vector<128x64xbf16>, vector<160x64xf32> -> vector<160x64xf32>
    %136 = arith.addf %130, %135 : vector<160x64xf32>
    %c0_124 = arith.constant 0 : index
    %c67 = arith.constant 67 : index
    %c0_125 = arith.constant 0 : index
    %137 = vector.load %arg1[%c0_124, %c67, %c0_125] : memref<1x240x128xbf16, #tpu.memory_space<vmem>>, vector<1x160x128xbf16>
    %138 = vector.shape_cast %137 : vector<1x160x128xbf16> to vector<160x128xbf16>
    %c23 = arith.constant 23 : index
    %c0_126 = arith.constant 0 : index
    %c0_127 = arith.constant 0 : index
    %139 = vector.load %arg2[%c23, %c0_126, %c0_127] : memref<25x128x64xbf16, #tpu.memory_space<vmem>>, vector<1x128x64xbf16>
    %140 = vector.shape_cast %139 : vector<1x128x64xbf16> to vector<128x64xbf16>
    %cst_128 = arith.constant dense<0.000000e+00> : vector<160x64xf32>
    %141 = tpu.matmul %138, %140, %cst_128 {dimension_numbers = #tpu.dot_dimension_numbers<[1], [0], [0], [1], [0, 0, 1, 1], [], []>} : vector<160x128xbf16>, vector<128x64xbf16>, vector<160x64xf32> -> vector<160x64xf32>
    %142 = arith.addf %136, %141 : vector<160x64xf32>
    %c0_129 = arith.constant 0 : index
    %c68 = arith.constant 68 : index
    %c0_130 = arith.constant 0 : index
    %143 = vector.load %arg1[%c0_129, %c68, %c0_130] : memref<1x240x128xbf16, #tpu.memory_space<vmem>>, vector<1x160x128xbf16>
    %144 = vector.shape_cast %143 : vector<1x160x128xbf16> to vector<160x128xbf16>
    %c24 = arith.constant 24 : index
    %c0_131 = arith.constant 0 : index
    %c0_132 = arith.constant 0 : index
    %145 = vector.load %arg2[%c24, %c0_131, %c0_132] : memref<25x128x64xbf16, #tpu.memory_space<vmem>>, vector<1x128x64xbf16>
    %146 = vector.shape_cast %145 : vector<1x128x64xbf16> to vector<128x64xbf16>
    %cst_133 = arith.constant dense<0.000000e+00> : vector<160x64xf32>
    %147 = tpu.matmul %144, %146, %cst_133 {dimension_numbers = #tpu.dot_dimension_numbers<[1], [0], [0], [1], [0, 0, 1, 1], [], []>} : vector<160x128xbf16>, vector<128x64xbf16>, vector<160x64xf32> -> vector<160x64xf32>
    %148 = arith.addf %142, %147 : vector<160x64xf32>
    %c0_134 = arith.constant 0 : index
    %c0_135 = arith.constant 0 : index
    %149 = vector.load %arg3[%c0_134, %c0_135] : memref<1x64xf32, #tpu.memory_space<vmem>>, vector<1x64xf32>
    %150 = vector.extract_strided_slice %148 {offsets = [0, 0], sizes = [16, 64], strides = [1, 1]} : vector<160x64xf32> to vector<16x64xf32>
    %151 = vector.extract_strided_slice %148 {offsets = [16, 0], sizes = [16, 64], strides = [1, 1]} : vector<160x64xf32> to vector<16x64xf32>
    %152 = arith.maximumf %150, %151 : vector<16x64xf32>
    %153 = vector.broadcast %149 : vector<1x64xf32> to vector<16x64xf32>
    %154 = arith.addf %152, %153 : vector<16x64xf32>
    %cst_136 = arith.constant 0.000000e+00 : f32
    %155 = vector.broadcast %cst_136 : f32 to vector<16x64xf32>
    %156 = arith.maximumf %154, %155 : vector<16x64xf32>
    %c0_137 = arith.constant 0 : index
    %c0_138 = arith.constant 0 : index
    %c0_139 = arith.constant 0 : index
    %157 = vector.load %arg5[%c0_137, %c0_138, %c0_139] : memref<5x16x64xf32, #tpu.memory_space<vmem>>, vector<1x16x64xf32>
    %158 = vector.shape_cast %157 : vector<1x16x64xf32> to vector<16x64xf32>
    %159 = vector.shape_cast %156 : vector<16x64xf32> to vector<1x16x64xf32>
    tpu.vector_store %arg5[%c0_137, %c0_138, %c0_139], %159 {strides = array<i32>} : memref<5x16x64xf32, #tpu.memory_space<vmem>>, vector<1x16x64xf32>,
    %160 = vector.extract_strided_slice %148 {offsets = [32, 0], sizes = [16, 64], strides = [1, 1]} : vector<160x64xf32> to vector<16x64xf32>
    %161 = vector.extract_strided_slice %148 {offsets = [48, 0], sizes = [16, 64], strides = [1, 1]} : vector<160x64xf32> to vector<16x64xf32>
    %162 = arith.maximumf %160, %161 : vector<16x64xf32>
    %163 = vector.broadcast %149 : vector<1x64xf32> to vector<16x64xf32>
    %164 = arith.addf %162, %163 : vector<16x64xf32>
    %cst_140 = arith.constant 0.000000e+00 : f32
    %165 = vector.broadcast %cst_140 : f32 to vector<16x64xf32>
    %166 = arith.maximumf %164, %165 : vector<16x64xf32>
    %c1_141 = arith.constant 1 : index
    %c0_142 = arith.constant 0 : index
    %c0_143 = arith.constant 0 : index
    %167 = vector.load %arg5[%c1_141, %c0_142, %c0_143] : memref<5x16x64xf32, #tpu.memory_space<vmem>>, vector<1x16x64xf32>
    %168 = vector.shape_cast %167 : vector<1x16x64xf32> to vector<16x64xf32>
    %169 = vector.shape_cast %166 : vector<16x64xf32> to vector<1x16x64xf32>
    tpu.vector_store %arg5[%c1_141, %c0_142, %c0_143], %169 {strides = array<i32>} : memref<5x16x64xf32, #tpu.memory_space<vmem>>, vector<1x16x64xf32>,
    %170 = vector.extract_strided_slice %148 {offsets = [64, 0], sizes = [16, 64], strides = [1, 1]} : vector<160x64xf32> to vector<16x64xf32>
    %171 = vector.extract_strided_slice %148 {offsets = [80, 0], sizes = [16, 64], strides = [1, 1]} : vector<160x64xf32> to vector<16x64xf32>
    %172 = arith.maximumf %170, %171 : vector<16x64xf32>
    %173 = vector.broadcast %149 : vector<1x64xf32> to vector<16x64xf32>
    %174 = arith.addf %172, %173 : vector<16x64xf32>
    %cst_144 = arith.constant 0.000000e+00 : f32
    %175 = vector.broadcast %cst_144 : f32 to vector<16x64xf32>
    %176 = arith.maximumf %174, %175 : vector<16x64xf32>
    %c2_145 = arith.constant 2 : index
    %c0_146 = arith.constant 0 : index
    %c0_147 = arith.constant 0 : index
    %177 = vector.load %arg5[%c2_145, %c0_146, %c0_147] : memref<5x16x64xf32, #tpu.memory_space<vmem>>, vector<1x16x64xf32>
    %178 = vector.shape_cast %177 : vector<1x16x64xf32> to vector<16x64xf32>
    %179 = vector.shape_cast %176 : vector<16x64xf32> to vector<1x16x64xf32>
    tpu.vector_store %arg5[%c2_145, %c0_146, %c0_147], %179 {strides = array<i32>} : memref<5x16x64xf32, #tpu.memory_space<vmem>>, vector<1x16x64xf32>,
    %180 = vector.extract_strided_slice %148 {offsets = [96, 0], sizes = [16, 64], strides = [1, 1]} : vector<160x64xf32> to vector<16x64xf32>
    %181 = vector.extract_strided_slice %148 {offsets = [112, 0], sizes = [16, 64], strides = [1, 1]} : vector<160x64xf32> to vector<16x64xf32>
    %182 = arith.maximumf %180, %181 : vector<16x64xf32>
    %183 = vector.broadcast %149 : vector<1x64xf32> to vector<16x64xf32>
    %184 = arith.addf %182, %183 : vector<16x64xf32>
    %cst_148 = arith.constant 0.000000e+00 : f32
    %185 = vector.broadcast %cst_148 : f32 to vector<16x64xf32>
    %186 = arith.maximumf %184, %185 : vector<16x64xf32>
    %c3_149 = arith.constant 3 : index
    %c0_150 = arith.constant 0 : index
    %c0_151 = arith.constant 0 : index
    %187 = vector.load %arg5[%c3_149, %c0_150, %c0_151] : memref<5x16x64xf32, #tpu.memory_space<vmem>>, vector<1x16x64xf32>
    %188 = vector.shape_cast %187 : vector<1x16x64xf32> to vector<16x64xf32>
    %189 = vector.shape_cast %186 : vector<16x64xf32> to vector<1x16x64xf32>
    tpu.vector_store %arg5[%c3_149, %c0_150, %c0_151], %189 {strides = array<i32>} : memref<5x16x64xf32, #tpu.memory_space<vmem>>, vector<1x16x64xf32>,
    %190 = vector.extract_strided_slice %148 {offsets = [128, 0], sizes = [16, 64], strides = [1, 1]} : vector<160x64xf32> to vector<16x64xf32>
    %191 = vector.extract_strided_slice %148 {offsets = [144, 0], sizes = [16, 64], strides = [1, 1]} : vector<160x64xf32> to vector<16x64xf32>
    %192 = arith.maximumf %190, %191 : vector<16x64xf32>
    %193 = vector.broadcast %149 : vector<1x64xf32> to vector<16x64xf32>
    %194 = arith.addf %192, %193 : vector<16x64xf32>
    %cst_152 = arith.constant 0.000000e+00 : f32
    %195 = vector.broadcast %cst_152 : f32 to vector<16x64xf32>
    %196 = arith.maximumf %194, %195 : vector<16x64xf32>
    %c4_153 = arith.constant 4 : index
    %c0_154 = arith.constant 0 : index
    %c0_155 = arith.constant 0 : index
    %197 = vector.load %arg5[%c4_153, %c0_154, %c0_155] : memref<5x16x64xf32, #tpu.memory_space<vmem>>, vector<1x16x64xf32>
    %198 = vector.shape_cast %197 : vector<1x16x64xf32> to vector<16x64xf32>
    %199 = vector.shape_cast %196 : vector<16x64xf32> to vector<1x16x64xf32>
    tpu.vector_store %arg5[%c4_153, %c0_154, %c0_155], %199 {strides = array<i32>} : memref<5x16x64xf32, #tpu.memory_space<vmem>>, vector<1x16x64xf32>,
    %c0_156 = arith.constant 0 : index
    %c0_157 = arith.constant 0 : index
    %c0_158 = arith.constant 0 : index
    %200 = tpu.strided_load %arg5[%c0_156, %c0_157, %c0_158] {strides = array<i32: 1, 2, 1>} : memref<5x16x64xf32, #tpu.memory_space<vmem>>, vector<5x5x64xf32>
    %c0_159 = arith.constant 0 : index
    %c1_160 = arith.constant 1 : index
    %c0_161 = arith.constant 0 : index
    %201 = tpu.strided_load %arg5[%c0_159, %c1_160, %c0_161] {strides = array<i32: 1, 2, 1>} : memref<5x16x64xf32, #tpu.memory_space<vmem>>, vector<5x5x64xf32>
    %202 = arith.maximumf %200, %201 : vector<5x5x64xf32>
    %203 = arith.truncf %202 : vector<5x5x64xf32> to vector<5x5x64xbf16>
    %c0_162 = arith.constant 0 : index
    %c0_163 = arith.constant 0 : index
    %c0_164 = arith.constant 0 : index
    %c0_165 = arith.constant 0 : index
    %204 = vector.load %arg4[%c0_162, %c0_163, %c0_164, %c0_165] : memref<1x5x5x64xbf16, #tpu.memory_space<vmem>>, vector<1x5x5x64xbf16>
    %205 = vector.shape_cast %204 : vector<1x5x5x64xbf16> to vector<5x5x64xbf16>
    %206 = vector.shape_cast %203 : vector<5x5x64xbf16> to vector<1x5x5x64xbf16>
    tpu.vector_store %arg4[%c0_162, %c0_163, %c0_164, %c0_165], %206 {strides = array<i32>} : memref<1x5x5x64xbf16, #tpu.memory_space<vmem>>, vector<1x5x5x64xbf16>,
    return
  }
  func.func @transform_0(%arg0: i32) -> (i32, i32, i32) {
    %c0_i32 = arith.constant 0 : i32
    %c0_i32_0 = arith.constant 0 : i32
    %c0_i32_1 = arith.constant 0 : i32
    return %arg0, %c0_i32, %c0_i32_0 : i32, i32, i32
  }
  func.func @transform_1(%arg0: i32) -> (i32, i32, i32) {
    %c0_i32 = arith.constant 0 : i32
    %c0_i32_0 = arith.constant 0 : i32
    %c0_i32_1 = arith.constant 0 : i32
    %c0_i32_2 = arith.constant 0 : i32
    return %c0_i32, %c0_i32_0, %c0_i32_1 : i32, i32, i32
  }
  func.func @transform_2(%arg0: i32) -> (i32, i32) {
    %c0_i32 = arith.constant 0 : i32
    %c0_i32_0 = arith.constant 0 : i32
    %c0_i32_1 = arith.constant 0 : i32
    return %c0_i32, %c0_i32_0 : i32, i32
  }
  func.func @transform_3(%arg0: i32) -> (i32, i32, i32, i32) {
    %c0_i32 = arith.constant 0 : i32
    %c0_i32_0 = arith.constant 0 : i32
    %c0_i32_1 = arith.constant 0 : i32
    %c0_i32_2 = arith.constant 0 : i32
    return %arg0, %c0_i32, %c0_i32_0, %c0_i32_1 : i32, i32, i32, i32
  }
}

module attributes {stable_mosaic.version = 11 : i64} {
  func.func @_fc_kernel(%arg0: i32, %arg1: memref<2x1600xbf16, #tpu.memory_space<vmem>>, %arg2: memref<1600x128xbf16, #tpu.memory_space<vmem>>, %arg3: memref<1x128xf32, #tpu.memory_space<vmem>>, %arg4: memref<128x128xbf16, #tpu.memory_space<vmem>>, %arg5: memref<1x128xf32, #tpu.memory_space<vmem>>, %arg6: memref<128x128xbf16, #tpu.memory_space<vmem>>, %arg7: memref<1x128xf32, #tpu.memory_space<vmem>>, %arg8: memref<2x128xf32, #tpu.memory_space<vmem>>) attributes {dimension_semantics = [#tpu.dimension_semantics<arbitrary>], iteration_bounds = array<i64: 1>, scalar_prefetch = 0 : i64, scratch_operands = 0 : i64, tpu.core_type = #tpu.core_type<tc>, window_params = [{pipeline_mode = #tpu.pipeline_mode<synchronous>, transform_indices = @transform_0, window_bounds = array<i64: 2, 1600>}, {pipeline_mode = #tpu.pipeline_mode<synchronous>, transform_indices = @transform_1, window_bounds = array<i64: 1600, 128>}, {pipeline_mode = #tpu.pipeline_mode<synchronous>, transform_indices = @transform_2, window_bounds = array<i64: 1, 128>}, {pipeline_mode = #tpu.pipeline_mode<synchronous>, transform_indices = @transform_3, window_bounds = array<i64: 128, 128>}, {pipeline_mode = #tpu.pipeline_mode<synchronous>, transform_indices = @transform_4, window_bounds = array<i64: 1, 128>}, {pipeline_mode = #tpu.pipeline_mode<synchronous>, transform_indices = @transform_5, window_bounds = array<i64: 128, 128>}, {pipeline_mode = #tpu.pipeline_mode<synchronous>, transform_indices = @transform_6, window_bounds = array<i64: 1, 128>}, {pipeline_mode = #tpu.pipeline_mode<synchronous>, transform_indices = @transform_7, window_bounds = array<i64: 2, 128>}]} {
    %c0 = arith.constant 0 : index
    %c0_0 = arith.constant 0 : index
    %0 = vector.load %arg1[%c0, %c0_0] : memref<2x1600xbf16, #tpu.memory_space<vmem>>, vector<2x1600xbf16>
    %c0_1 = arith.constant 0 : index
    %c0_2 = arith.constant 0 : index
    %1 = vector.load %arg2[%c0_1, %c0_2] : memref<1600x128xbf16, #tpu.memory_space<vmem>>, vector<1600x128xbf16>
    %cst = arith.constant dense<0.000000e+00> : vector<2x128xf32>
    %2 = tpu.matmul %0, %1, %cst {dimension_numbers = #tpu.dot_dimension_numbers<[1], [0], [0], [1], [0, 0, 1, 1], [], []>} : vector<2x1600xbf16>, vector<1600x128xbf16>, vector<2x128xf32> -> vector<2x128xf32>
    %c0_3 = arith.constant 0 : index
    %c0_4 = arith.constant 0 : index
    %3 = vector.load %arg3[%c0_3, %c0_4] : memref<1x128xf32, #tpu.memory_space<vmem>>, vector<1x128xf32>
    %4 = vector.broadcast %3 : vector<1x128xf32> to vector<2x128xf32>
    %5 = arith.addf %2, %4 : vector<2x128xf32>
    %cst_5 = arith.constant 0.000000e+00 : f32
    %6 = vector.broadcast %cst_5 : f32 to vector<2x128xf32>
    %7 = arith.maximumf %5, %6 : vector<2x128xf32>
    %8 = arith.truncf %7 : vector<2x128xf32> to vector<2x128xbf16>
    %c0_6 = arith.constant 0 : index
    %c0_7 = arith.constant 0 : index
    %9 = vector.load %arg4[%c0_6, %c0_7] : memref<128x128xbf16, #tpu.memory_space<vmem>>, vector<128x128xbf16>
    %cst_8 = arith.constant dense<0.000000e+00> : vector<2x128xf32>
    %10 = tpu.matmul %8, %9, %cst_8 {dimension_numbers = #tpu.dot_dimension_numbers<[1], [0], [0], [1], [0, 0, 1, 1], [], []>} : vector<2x128xbf16>, vector<128x128xbf16>, vector<2x128xf32> -> vector<2x128xf32>
    %c0_9 = arith.constant 0 : index
    %c0_10 = arith.constant 0 : index
    %11 = vector.load %arg5[%c0_9, %c0_10] : memref<1x128xf32, #tpu.memory_space<vmem>>, vector<1x128xf32>
    %12 = vector.broadcast %11 : vector<1x128xf32> to vector<2x128xf32>
    %13 = arith.addf %10, %12 : vector<2x128xf32>
    %cst_11 = arith.constant 0.000000e+00 : f32
    %14 = vector.broadcast %cst_11 : f32 to vector<2x128xf32>
    %15 = arith.maximumf %13, %14 : vector<2x128xf32>
    %16 = arith.truncf %15 : vector<2x128xf32> to vector<2x128xbf16>
    %c0_12 = arith.constant 0 : index
    %c0_13 = arith.constant 0 : index
    %17 = vector.load %arg6[%c0_12, %c0_13] : memref<128x128xbf16, #tpu.memory_space<vmem>>, vector<128x128xbf16>
    %cst_14 = arith.constant dense<0.000000e+00> : vector<2x128xf32>
    %18 = tpu.matmul %16, %17, %cst_14 {dimension_numbers = #tpu.dot_dimension_numbers<[1], [0], [0], [1], [0, 0, 1, 1], [], []>} : vector<2x128xbf16>, vector<128x128xbf16>, vector<2x128xf32> -> vector<2x128xf32>
    %c0_15 = arith.constant 0 : index
    %c0_16 = arith.constant 0 : index
    %19 = vector.load %arg7[%c0_15, %c0_16] : memref<1x128xf32, #tpu.memory_space<vmem>>, vector<1x128xf32>
    %20 = vector.broadcast %19 : vector<1x128xf32> to vector<2x128xf32>
    %21 = arith.addf %18, %20 : vector<2x128xf32>
    %c0_17 = arith.constant 0 : index
    %c0_18 = arith.constant 0 : index
    %22 = vector.load %arg8[%c0_17, %c0_18] : memref<2x128xf32, #tpu.memory_space<vmem>>, vector<2x128xf32>
    tpu.vector_store %arg8[%c0_17, %c0_18], %21 {strides = array<i32>} : memref<2x128xf32, #tpu.memory_space<vmem>>, vector<2x128xf32>,
    return
  }
  func.func @transform_0(%arg0: i32) -> (i32, i32) {
    %c0_i32 = arith.constant 0 : i32
    %c0_i32_0 = arith.constant 0 : i32
    %c0_i32_1 = arith.constant 0 : i32
    return %c0_i32, %c0_i32_0 : i32, i32
  }
  func.func @transform_1(%arg0: i32) -> (i32, i32) {
    %c0_i32 = arith.constant 0 : i32
    %c0_i32_0 = arith.constant 0 : i32
    %c0_i32_1 = arith.constant 0 : i32
    return %c0_i32, %c0_i32_0 : i32, i32
  }
  func.func @transform_2(%arg0: i32) -> (i32, i32) {
    %c0_i32 = arith.constant 0 : i32
    %c0_i32_0 = arith.constant 0 : i32
    %c0_i32_1 = arith.constant 0 : i32
    return %c0_i32, %c0_i32_0 : i32, i32
  }
  func.func @transform_3(%arg0: i32) -> (i32, i32) {
    %c0_i32 = arith.constant 0 : i32
    %c0_i32_0 = arith.constant 0 : i32
    %c0_i32_1 = arith.constant 0 : i32
    return %c0_i32, %c0_i32_0 : i32, i32
  }
  func.func @transform_4(%arg0: i32) -> (i32, i32) {
    %c0_i32 = arith.constant 0 : i32
    %c0_i32_0 = arith.constant 0 : i32
    %c0_i32_1 = arith.constant 0 : i32
    return %c0_i32, %c0_i32_0 : i32, i32
  }
  func.func @transform_5(%arg0: i32) -> (i32, i32) {
    %c0_i32 = arith.constant 0 : i32
    %c0_i32_0 = arith.constant 0 : i32
    %c0_i32_1 = arith.constant 0 : i32
    return %c0_i32, %c0_i32_0 : i32, i32
  }
  func.func @transform_6(%arg0: i32) -> (i32, i32) {
    %c0_i32 = arith.constant 0 : i32
    %c0_i32_0 = arith.constant 0 : i32
    %c0_i32_1 = arith.constant 0 : i32
    return %c0_i32, %c0_i32_0 : i32, i32
  }
  func.func @transform_7(%arg0: i32) -> (i32, i32) {
    %c0_i32 = arith.constant 0 : i32
    %c0_i32_0 = arith.constant 0 : i32
    %c0_i32_1 = arith.constant 0 : i32
    return %c0_i32, %c0_i32_0 : i32, i32
  }
}

</mosaic_0001>

<bundles_post_ra>
// kernel: net_forward.5
= control target key start
LH: loop header
LB: loop body
LE: loop exit
PB: predicated region body
PF: predicated region fallthrough
CT: control target
= control target key end

     0   :  { %v243_v27 = vlaneseq  ;;  %v1937_v35 = vmov 1966171168   ;;  %vm1939_vm0 = vmmov 0   ;;  %s2400_s0 = inlined_call_operand.vmem [shape: bf16[2,1600], index: 0, kind: input, shape index: {}]   ;;  %s2401_s1 = inlined_call_operand.vmem [shape: bf16[1600,128], index: 1, kind: input, shape index: {}]   ;;  %s2402_s2 = inlined_call_operand.vmem [shape: f32[1,128], index: 2, kind: input, shape index: {}]   ;;  %s2403_s3 = inlined_call_operand.vmem [shape: bf16[128,128], index: 3, kind: input, shape index: {}]   ;;  %s2404_s4 = inlined_call_operand.vmem [shape: f32[1,128], index: 4, kind: input, shape index: {}]   ;;  %s2405_s5 = inlined_call_operand.vmem [shape: bf16[128,128], index: 5, kind: input, shape index: {}]   ;;  %s2406_s6 = inlined_call_operand.vmem [shape: f32[1,128], index: 6, kind: input, shape index: {}]   ;;  %s2407_s7 = inlined_call_operand.hbm [shape: f32[2,128], index: 7, kind: output, shape index: {}]  }
   0x1   :  { %v1795_v0 = vld [vmem:[%s2401_s1 + $0x40] sm:$0xff]   ;;  %v1799_v4 = vld [vmem:[%s2401_s1 + $0x48] sm:$0xff]   ;;  %v1803_v8 = vld [vmem:[%s2401_s1 + $0x50] sm:$0xff]   ;;  %v241_v36 = vunpack.c.l.s4 %v1937_v35 }
   0x2   :  { %v1796_v1 = vld [vmem:[%s2401_s1] sm:$0xff]   ;;  %1584 = vmatprep.subr.bf16.mxu0 %v1795_v0  ;;  %v1800_v5 = vld [vmem:[%s2401_s1 + $0x8] sm:$0xff]   ;;  %v1804_v9 = vld [vmem:[%s2401_s1 + $0x10] sm:$0xff]   ;;  %v244_v32 = vshrl.u32 %v243_v27, 7 }
   0x3   :  { %v1797_v2 = vld [vmem:[%s2401_s1 + $0xc0] sm:$0xff]   ;;  %1585 = vmatpush3.bf16.msra.mxu0 %v1796_v1  ;;  %v1801_v6 = vld [vmem:[%s2401_s1 + $0xc8] sm:$0xff]   ;;  %v1805_v10 = vld [vmem:[%s2401_s1 + $0xd0] sm:$0xff]   ;;  %v242_v39 = vunpack.c.0.s8 %v241_v36 }
   0x4   :  { %v1798_v3 = vld [vmem:[%s2401_s1 + $0x80] sm:$0xff]   ;;  %1606 = vmatprep.subr.bf16.mxu1 %v1797_v2  ;;  %1586 = vmatprep.subr.bf16.mxu0 %v1799_v4  ;;  %v1802_v7 = vld [vmem:[%s2401_s1 + $0x88] sm:$0xff]   ;;  %v1806_v11 = vld [vmem:[%s2401_s1 + $0x90] sm:$0xff]  }
   0x5   :  { %1607 = vmatpush3.bf16.msra.mxu1 %v1798_v3  ;;  %v1807_v12 = vld [vmem:[%s2401_s1 + $0x58] sm:$0xff]   ;;  %v1811_v16 = vld [vmem:[%s2401_s1 + $0x60] sm:$0xff]   ;;  %v1815_v20 = vld [vmem:[%s2401_s1 + $0x68] sm:$0xff]   ;;  %v2086_v41 = vsub.s32 %v242_v39, %v244_v32 }
   0x6   :  { %1608 = vmatprep.subr.bf16.mxu1 %v1801_v6  ;;  %v1808_v13 = vld [vmem:[%s2401_s1 + $0x18] sm:$0xff]   ;;  %v1812_v17 = vld [vmem:[%s2401_s1 + $0x20] sm:$0xff]   ;;  %v1816_v21 = vld [vmem:[%s2401_s1 + $0x28] sm:$0xff]  }
   0x7   :  { %1587 = vmatpush3.bf16.msra.mxu0 %v1800_v5  ;;  %v1809_v14 = vld [vmem:[%s2401_s1 + $0xd8] sm:$0xff]   ;;  %v1813_v18 = vld [vmem:[%s2401_s1 + $0xe0] sm:$0xff]   ;;  %v1817_v22 = vld [vmem:[%s2401_s1 + $0xe8] sm:$0xff]  }
   0x8   :  { %1588 = vmatprep.subr.bf16.mxu0 %v1803_v8  ;;  %v1810_v15 = vld [vmem:[%s2401_s1 + $0x98] sm:$0xff]   ;;  %v1814_v19 = vld [vmem:[%s2401_s1 + $0xa0] sm:$0xff]   ;;  %v1818_v23 = vld [vmem:[%s2401_s1 + $0xa8] sm:$0xff]  }
   0x9   :  { %1609 = vmatpush3.bf16.msra.mxu1 %v1802_v7  ;;  %v1819_v24 = vld [vmem:[%s2401_s1 + $0x70] sm:$0xff]   ;;  %v1823_v29 = vld [vmem:[%s2401_s1 + $0x78] sm:$0xff]   ;;  %v28_v33 = vld [vmem:[%s2400_s0] sm:$0xff] }
   0xa   :  { %1610 = vmatprep.subr.bf16.mxu1 %v1805_v10  ;;  %v1820_v25 = vld [vmem:[%s2401_s1 + $0x30] sm:$0xff]   ;;  %v1824_v30 = vld [vmem:[%s2401_s1 + $0x38] sm:$0xff]   ;;  %v1828_v37 = vld [vmem:[%s2401_s1 + $0x140] sm:$0xff]   ;;  %v239_v38 = vcombine.high %v28_v33, %v28_v33  ;;  %v246_v42 = vrot.slane %v28_v33, %v2086_v41 }
   0xb   :  { %1589 = vmatpush3.bf16.msra.mxu0 %v1804_v9  ;;  %v1821_v26 = vld [vmem:[%s2401_s1 + $0xf0] sm:$0xff]   ;;  %v1825_v31 = vld [vmem:[%s2401_s1 + $0xf8] sm:$0xff]   ;;  %v1830_v40 = vld [vmem:[%s2401_s1 + $0x1c0] sm:$0xff]  }
   0xc   :  { %1590 = vmatprep.subr.bf16.mxu0 %v1807_v12  ;;  %v1822_v28 = vld [vmem:[%s2401_s1 + $0xb0] sm:$0xff]   ;;  %v1827_v34 = vld [vmem:[%s2401_s1 + $0xb8] sm:$0xff]   ;;  %v2090_v43 = vrot.slane %v239_v38, %v2086_v41  ;;  %v254_v44 = vcombine.high %v246_v42, %v246_v42  ;;  %v262_v45 = vrot.slane %v246_v42, %v2086_v41  ;;  %v1829_v47 = vld [vmem:[%s2401_s1 + $0x100] sm:$0xff]  }
   0xd   :  { %1611 = vmatpush3.bf16.msra.mxu1 %v1806_v11  ;;  %v1831_v49 = vld [vmem:[%s2401_s1 + $0x180] sm:$0xff]   ;;  %v1832_v52 = vld [vmem:[%s2401_s1 + $0x148] sm:$0xff]   ;;  %v1836_v58 = vld [vmem:[%s2401_s1 + $0x150] sm:$0xff]  }
   0xe   :  { %1612 = vmatprep.subr.bf16.mxu1 %v1809_v14  ;;  %v255_v46 = vcombine.high %v2090_v43, %v2090_v43  ;;  %v276_v48 = vrot.slane %v254_v44, %v2086_v41  ;;  %v284_v51 = vcombine.high %v262_v45, %v262_v45  ;;  %v1833_v54 = vld [vmem:[%s2401_s1 + $0x108] sm:$0xff]   ;;  %v1837_v59 = vld [vmem:[%s2401_s1 + $0x110] sm:$0xff]   ;;  %v1840_v62 = vld [vmem:[%s2401_s1 + $0x158] sm:$0xff]  }
   0xf   :  { %1591 = vmatpush3.bf16.msra.mxu0 %v1808_v13  ;;  %v1834_v55 = vld [vmem:[%s2401_s1 + $0x1c8] sm:$0xff]   ;;  %v1838_v60 = vld [vmem:[%s2401_s1 + $0x1d0] sm:$0xff]   ;;  %v1841_v63 = vld [vmem:[%s2401_s1 + $0x118] sm:$0xff]  }
  0x10   :  { %1592 = vmatprep.subr.bf16.mxu0 %v1811_v16  ;;  %v283_v50 = vrot.slane %v255_v46, %v2086_v41  ;;  %975 = vmatprep.mubr.bf16.mxu0 %v276_v48  ;;  %v286_v53 = vcombine.high %v276_v48, %v276_v48  ;;  %v1835_v57 = vld [vmem:[%s2401_s1 + $0x188] sm:$0xff]   ;;  %v1839_v61 = vld [vmem:[%s2401_s1 + $0x190] sm:$0xff]   ;;  %v1842_v0 = vld [vmem:[%s2401_s1 + $0x1d8] sm:$0xff]  }
  0x11   :  { %1613 = vmatpush3.bf16.msra.mxu1 %v1810_v15  ;;  %v1843_v1 = vld [vmem:[%s2401_s1 + $0x198] sm:$0xff]   ;;  %v1844_v2 = vld [vmem:[%s2401_s1 + $0x160] sm:$0xff]   ;;  %v1848_v6 = vld [vmem:[%s2401_s1 + $0x168] sm:$0xff]  }
  0x12   :  { %1614 = vmatprep.subr.bf16.mxu1 %v1813_v18  ;;  %v287_v56 = vcombine.high %v283_v50, %v283_v50  ;;  %1015 = vmatprep.mubr.bf16.mxu1 %v286_v53  ;;  %v1845_v3 = vld [vmem:[%s2401_s1 + $0x120] sm:$0xff]   ;;  %v1849_v7 = vld [vmem:[%s2401_s1 + $0x128] sm:$0xff]   ;;  %v1852_v10 = vld [vmem:[%s2401_s1 + $0x170] sm:$0xff]   ;;  %v269_v18 = vrot.slane %v2090_v43, %v2086_v41 }
  0x13   :  { %1593 = vmatpush3.bf16.msra.mxu0 %v1812_v17  ;;  %v1846_v4 = vld [vmem:[%s2401_s1 + $0x1e0] sm:$0xff]   ;;  %v1850_v8 = vld [vmem:[%s2401_s1 + $0x1e8] sm:$0xff]   ;;  %v1853_v11 = vld [vmem:[%s2401_s1 + $0x130] sm:$0xff]  }
  0x14   :  { %1594 = vmatprep.subr.bf16.mxu0 %v1815_v20  ;;  %v1847_v5 = vld [vmem:[%s2401_s1 + $0x1a0] sm:$0xff]   ;;  %v1851_v9 = vld [vmem:[%s2401_s1 + $0x1a8] sm:$0xff]   ;;  %v1854_v12 = vld [vmem:[%s2401_s1 + $0x1f0] sm:$0xff]  }
  0x15   :  { %1615 = vmatpush3.bf16.msra.mxu1 %v1814_v19  ;;  %v1855_v13 = vld [vmem:[%s2401_s1 + $0x1b0] sm:$0xff]   ;;  %v1856_v14 = vld [vmem:[%s2401_s1 + $0x178] sm:$0xff]   ;;  %v1860_v19 = vld [vmem:[%s2401_s1 + $0x240] sm:$0xff]  }
  0x16   :  { %1616 = vmatprep.subr.bf16.mxu1 %v1817_v22  ;;  %v1857_v15 = vld [vmem:[%s2401_s1 + $0x138] sm:$0xff]   ;;  %v1861_v20 = vld [vmem:[%s2401_s1 + $0x200] sm:$0xff]   ;;  %v1867_v27 = vld [vmem:[%s2401_s1 + $0x288] sm:$0xff]  }
  0x17   :  { %1595 = vmatpush3.bf16.msra.mxu0 %v1816_v21  ;;  %v1858_v16 = vld [vmem:[%s2401_s1 + $0x1f8] sm:$0xff]   ;;  %v1862_v21 = vld [vmem:[%s2401_s1 + $0x2c0] sm:$0xff]   ;;  %v1881_v42 = vld [vmem:[%s2401_s1 + $0x228] sm:$0xff]  }
  0x18   :  { %1596 = vmatprep.subr.bf16.mxu0 %v1819_v24  ;;  %v1859_v17 = vld [vmem:[%s2401_s1 + $0x1b8] sm:$0xff]   ;;  %v1863_v22 = vld [vmem:[%s2401_s1 + $0x280] sm:$0xff]   ;;  %v1864_v24 = vld [vmem:[%s2401_s1 + $0x248] sm:$0xff]  }
  0x19   :  { %1617 = vmatpush3.bf16.msra.mxu1 %v1818_v23  ;;  %v285_v23 = vcombine.high %v269_v18, %v269_v18  ;;  %v1872_v32 = vld [vmem:[%s2401_s1 + $0x258] sm:$0xff]   ;;  %v1876_v36 = vld [vmem:[%s2401_s1 + $0x260] sm:$0xff]   ;;  %v1882_v43 = vld [vmem:[%s2401_s1 + $0x2e8] sm:$0xff]  }
  0x1a   :  { %1618 = vmatprep.subr.bf16.mxu1 %v1821_v26  ;;  %v1866_v26 = vld [vmem:[%s2401_s1 + $0x2c8] sm:$0xff]   ;;  %v1873_v33 = vld [vmem:[%s2401_s1 + $0x218] sm:$0xff]   ;;  %v1878_v38 = vld [vmem:[%s2401_s1 + $0x2e0] sm:$0xff]  }
  0x1b   :  { %1597 = vmatpush3.bf16.msra.mxu0 %v1820_v25  ;;  %v1865_v25 = vld [vmem:[%s2401_s1 + $0x208] sm:$0xff]   ;;  %v1875_v35 = vld [vmem:[%s2401_s1 + $0x298] sm:$0xff]   ;;  %v1879_v39 = vld [vmem:[%s2401_s1 + $0x2a0] sm:$0xff]  }
  0x1c   :  { %1598 = vmatprep.subr.bf16.mxu0 %v1823_v29  ;;  %v1869_v29 = vld [vmem:[%s2401_s1 + $0x210] sm:$0xff]   ;;  %v1883_v44 = vld [vmem:[%s2401_s1 + $0x2a8] sm:$0xff]   ;;  %v1889_v53 = vld [vmem:[%s2401_s1 + $0x238] sm:$0xff]  }
  0x1d   :  { %1619 = vmatpush3.bf16.msra.mxu1 %v1822_v28  ;;  %v1868_v28 = vld [vmem:[%s2401_s1 + $0x250] sm:$0xff]   ;;  %v29_v46 = vld [vmem:[%s2400_s0 + $0x8] sm:$0x1f] }
  0x1e   :  { %1620 = vmatprep.subr.bf16.mxu1 %v1825_v31  ;;  %v1871_v31 = vld [vmem:[%s2401_s1 + $0x290] sm:$0xff]   ;;  %v295_v48 = vrot.slane %v29_v46, %v2086_v41 }
  0x1f   :  { %1599 = vmatpush3.bf16.msra.mxu0 %v1824_v30  ;;  %v1870_v30 = vld [vmem:[%s2401_s1 + $0x2d0] sm:$0xff]  }
  0x20   :  { %1628 = vmatprep.subr.bf16.mxu0 %v1828_v37  ;;  %v1877_v37 = vld [vmem:[%s2401_s1 + $0x220] sm:$0xff]  }
  0x21   :  { %1621 = vmatpush3.bf16.msra.mxu1 %v1827_v34  ;;  %v1874_v34 = vld [vmem:[%s2401_s1 + $0x2d8] sm:$0xff]  }
  0x22   :  { %1650 = vmatprep.subr.bf16.mxu1 %v1830_v40  ;;  %976 = vmatmul.mubr.bf16.vlgmr.msra.gmra.mrb[0].mxu0 %v262_v45  ;;  %v1880_v40 = vld [vmem:[%s2401_s1 + $0x268] sm:$0xff]   ;;  %v1884_v45 = vld [vmem:[%s2401_s1 + $0x270] sm:$0xff]  }
  0x23   :  { %1629 = vmatpush3.bf16.msra.mxu0 %v1829_v47  ;;  %1055 = vmatprep.mubr.bf16.mxu0 %v283_v50  ;;  %v1885_v47 = vld [vmem:[%s2401_s1 + $0x230] sm:$0xff]  }
  0x24   :  { %1016 = vmatmul.mubr.bf16.vlgmr.msra.gmra.mrb[0].mxu1 %v284_v51  ;;  %1630 = vmatprep.subr.bf16.mxu0 %v1832_v52  ;;  %v1887_v50 = vld [vmem:[%s2401_s1 + $0x2b0] sm:$0xff]   ;;  %v303_v51 = vcombine.high %v295_v48, %v295_v48  ;;  %v1888_v52 = vld [vmem:[%s2401_s1 + $0x278] sm:$0xff]  }
  0x25   :  { %1651 = vmatpush3.bf16.msra.mxu1 %v1831_v49  ;;  %1095 = vmatprep.mubr.bf16.mxu1 %v287_v56  ;;  %v1886_v49 = vld [vmem:[%s2401_s1 + $0x2f0] sm:$0xff]   ;;  %v1892_v56 = vld [vmem:[%s2401_s1 + $0x2b8] sm:$0xff]  }
  0x26   :  { %1652 = vmatprep.subr.bf16.mxu1 %v1834_v55  ;;  %v324_v55 = vrot.slane %v303_v51, %v2086_v41 }
  0x27   :  { %1631 = vmatpush3.bf16.msra.mxu0 %v1833_v54  ;;  %v1890_v54 = vld [vmem:[%s2401_s1 + $0x2f8] sm:$0xff]  }
  0x28   :  { %1632 = vmatprep.subr.bf16.mxu0 %v1836_v58  ;;  %v310_v58 = vrot.slane %v295_v48, %v2086_v41 }
  0x29   :  { %1653 = vmatpush3.bf16.msra.mxu1 %v1835_v57  ;;  %v326_v57 = vcombine.high %v324_v55, %v324_v55 }
  0x2a   :  { %1654 = vmatprep.subr.bf16.mxu1 %v1838_v60  ;;  %v1938_v60 = vmov 0.0  }
  0x2b   :  { %1633 = vmatpush3.bf16.msra.mxu0 %v1837_v59  ;;  %v1893_v59 = vld [vmem:[%s2401_s1 + $0x300] sm:$0xff]  }
  0x2c   :  { %1634 = vmatprep.subr.bf16.mxu0 %v1840_v62  ;;  %v1894_v62 = vld [vmem:[%s2401_s1 + $0x308] sm:$0xff]  }
  0x2d   :  { %1655 = vmatpush3.bf16.msra.mxu1 %v1839_v61  ;;  %v325_v61 = vcombine.high %v310_v58, %v310_v58 }
  0x2e   :  { %1656 = vmatprep.subr.bf16.mxu1 %v1842_v0 }
  0x2f   :  { %1635 = vmatpush3.bf16.msra.mxu0 %v1841_v63 }
  0x30   :  { %1636 = vmatprep.subr.bf16.mxu0 %v1844_v2 }
  0x31   :  { %1657 = vmatpush3.bf16.msra.mxu1 %v1843_v1 }
  0x32   :  { %1658 = vmatprep.subr.bf16.mxu1 %v1846_v4 }
  0x33   :  { %1637 = vmatpush3.bf16.msra.mxu0 %v1845_v3 }
  0x34   :  { %1638 = vmatprep.subr.bf16.mxu0 %v1848_v6 }
  0x35   :  { %1659 = vmatpush3.bf16.msra.mxu1 %v1847_v5 }
  0x36   :  { %1660 = vmatprep.subr.bf16.mxu1 %v1850_v8 }
  0x37   :  { %1639 = vmatpush3.bf16.msra.mxu0 %v1849_v7 }
  0x38   :  { %1640 = vmatprep.subr.bf16.mxu0 %v1852_v10 }
  0x39   :  { %1661 = vmatpush3.bf16.msra.mxu1 %v1851_v9 }
  0x3a   :  { %1662 = vmatprep.subr.bf16.mxu1 %v1854_v12 }
  0x3b   :  { %1641 = vmatpush3.bf16.msra.mxu0 %v1853_v11 }
  0x3c   :  { %1642 = vmatprep.subr.bf16.mxu0 %v1856_v14 }
  0x3d   :  { %1663 = vmatpush3.bf16.msra.mxu1 %v1855_v13 }
  0x3e   :  { %1664 = vmatprep.subr.bf16.mxu1 %v1858_v16 }
  0x3f   :  { %1643 = vmatpush3.bf16.msra.mxu0 %v1857_v15 }
  0x40   :  { %1672 = vmatprep.subr.bf16.mxu0 %v1860_v19 }
  0x41   :  { %1665 = vmatpush3.bf16.msra.mxu1 %v1859_v17 }
  0x42   :  { %1056 = vmatmul.mubr.bf16.vlgmr.msra.gmra.mrb[4].mxu0 %v269_v18  ;;  %1694 = vmatprep.subr.bf16.mxu1 %v1862_v21 }
  0x43   :  { %1673 = vmatpush3.bf16.msra.mxu0 %v1861_v20  ;;  %1135 = vmatprep.mubr.bf16.mxu0 %v324_v55 }
  0x44   :  { %1096 = vmatmul.mubr.bf16.vlgmr.msra.gmra.mrb[4].mxu1 %v285_v23  ;;  %1674 = vmatprep.subr.bf16.mxu0 %v1864_v24 }
  0x45   :  { %1695 = vmatpush3.bf16.msra.mxu1 %v1863_v22  ;;  %1175 = vmatprep.mubr.bf16.mxu1 %v326_v57 }
  0x46   :  { %1696 = vmatprep.subr.bf16.mxu1 %v1866_v26 }
  0x47   :  { %1675 = vmatpush3.bf16.msra.mxu0 %v1865_v25 }
  0x48   :  { %1676 = vmatprep.subr.bf16.mxu0 %v1868_v28 }
  0x49   :  { %1697 = vmatpush3.bf16.msra.mxu1 %v1867_v27 }
  0x4a   :  { %1698 = vmatprep.subr.bf16.mxu1 %v1870_v30 }
  0x4b   :  { %1677 = vmatpush3.bf16.msra.mxu0 %v1869_v29 }
  0x4c   :  { %1678 = vmatprep.subr.bf16.mxu0 %v1872_v32 }
  0x4d   :  { %1699 = vmatpush3.bf16.msra.mxu1 %v1871_v31 }
  0x4e   :  { %1700 = vmatprep.subr.bf16.mxu1 %v1874_v34 }
  0x4f   :  { %1679 = vmatpush3.bf16.msra.mxu0 %v1873_v33 }
  0x50   :  { %1680 = vmatprep.subr.bf16.mxu0 %v1876_v36 }
  0x51   :  { %1701 = vmatpush3.bf16.msra.mxu1 %v1875_v35 }
  0x52   :  { %1702 = vmatprep.subr.bf16.mxu1 %v1878_v38 }
  0x53   :  { %1681 = vmatpush3.bf16.msra.mxu0 %v1877_v37 }
  0x54   :  { %1682 = vmatprep.subr.bf16.mxu0 %v1880_v40 }
  0x55   :  { %1703 = vmatpush3.bf16.msra.mxu1 %v1879_v39 }
  0x56   :  { %1704 = vmatprep.subr.bf16.mxu1 %v1882_v43 }
  0x57   :  { %1683 = vmatpush3.bf16.msra.mxu0 %v1881_v42 }
  0x58   :  { %1684 = vmatprep.subr.bf16.mxu0 %v1884_v45 }
  0x59   :  { %1705 = vmatpush3.bf16.msra.mxu1 %v1883_v44 }
  0x5a   :  { %1706 = vmatprep.subr.bf16.mxu1 %v1886_v49 }
  0x5b   :  { %1685 = vmatpush3.bf16.msra.mxu0 %v1885_v47 }
  0x5c   :  { %1686 = vmatprep.subr.bf16.mxu0 %v1888_v52 }
  0x5d   :  { %1707 = vmatpush3.bf16.msra.mxu1 %v1887_v50 }
  0x5e   :  { %1708 = vmatprep.subr.bf16.mxu1 %v1890_v54 }
  0x5f   :  { %1687 = vmatpush3.bf16.msra.mxu0 %v1889_v53 }
  0x60   :  { %1739 = vmatprep.subr.bf16.mxu0 %v1938_v60 }
  0x61   :  { %1709 = vmatpush3.bf16.msra.mxu1 %v1892_v56 }
  0x62   :  { %1136 = vmatmul.mubr.bf16.vlgmr.msra.gmra.mrb[8].mxu0 %v310_v58  ;;  %1751 = vmatprep.subr.bf16.mxu1 %v1938_v60 }
  0x63   :  { %1740 = vmatpush3.bf16.msra.mxu0 %v1893_v59  ;;  %1747 = vmatprep.mubr.msk.bf16.mxu0 %vm1939_vm0, %v1938_v60 }
  0x64   :  { %1176 = vmatmul.mubr.bf16.vlgmr.msra.gmra.mrb[8].mxu1 %v325_v61  ;;  %1741 = vmatprep.subr.bf16.mxu0 %v1938_v60 }
  0x65   :  { %12 = vsyncpa [#allocation3], 0  ;;  %1767 = vmatprep.mubr.msk.bf16.mxu1 %vm1939_vm0, %v1938_v60  ;;  %v288_v63 = vcombine.high %v29_v46, %v29_v46  ;;  %v1895_v0 = vld [vmem:[%s2401_s1 + $0x310] sm:$0xff]   ;;  %v1896_v2 = vld [vmem:[%s2401_s1 + $0x318] sm:$0xff]   ;;  %vm939_vm1 = vcmask 523264   ;;  %s1940_s29 = smov [#allocation2]  }
  0x66   :  { %v1897_v4 = vld [vmem:[%s2403_s3] sm:$0xff]   ;;  %v1898_v5 = vld [vmem:[%s2403_s3 + $0x8] sm:$0xff]   ;;  %v1900_v6 = vld [vmem:[%s2403_s3 + $0x18] sm:$0xff]   ;;  %s1456_s30 = sshll.u32 %s1940_s29, 4  ;;  %s1457_s30 = int_to_ptr.vmem [resolvable:$true] %s1456_s30 }
  0x67   :  { %1742 = vmatpush3.bf16.msra.mxu0 %v1894_v62  ;;  %v302_v1 = vrot.slane %v288_v63, %v2086_v41  ;;  %1752 = vmatpush3.bf16.msra.mxu1 %v1897_v4  ;;  %v1901_v7 = vld [vmem:[%s2403_s3 + $0x20] sm:$0xff]   ;;  %v1902_v8 = vld [vmem:[%s2403_s3 + $0x28] sm:$0xff]   ;;  %v1903_v9 = vld [vmem:[%s2403_s3 + $0x30] sm:$0xff]   ;;  %p1918_p1 = scmp.lt.s32.totalorder %s1457_s30, %s1457_s30 }
  0x68   :  { %1743 = vmatprep.subr.bf16.mxu0 %v1938_v60  ;;  %1753 = vmatprep.subr.bf16.mxu1 %v1938_v60  ;;  %v1904_v10 = vld [vmem:[%s2403_s3 + $0x38] sm:$0xff]   ;;  %v1905_v11 = vld [vmem:[%s2405_s5] sm:$0xff]   ;;  %v1906_v12 = vld [vmem:[%s2405_s5 + $0x8] sm:$0xff]  }
  0x69   :  { %v317_v3 = vrot.slane %v302_v1, %v2086_v41  ;;  %v1899_v41 = vld [vmem:[%s2403_s3 + $0x10] sm:$0xff]   ;;  %v1908_v14 = vld [vmem:[%s2405_s5 + $0x18] sm:$0xff]   ;;  %v1909_v15 = vld [vmem:[%s2405_s5 + $0x20] sm:$0xff]  }
  0x6a   :  { %v1907_v13 = vld [vmem:[%s2405_s5 + $0x10] sm:$0xff]   ;;  %v1910_v16 = vld [vmem:[%s2405_s5 + $0x28] sm:$0xff]   ;;  %v1464_v18 = vld [vmem:[%s2402_s2] ss:$0 sm:$0xff] }
  0x6b   :  { %1744 = vmatpush3.bf16.msra.mxu0 %v1895_v0  ;;  %1754 = vmatpush3.bf16.msra.mxu1 %v1898_v5  ;;  %v1911_v63 = vld [vmem:[%s2405_s5 + $0x30] sm:$0xff]   ;;  %v1912_v0 = vld [vmem:[%s2405_s5 + $0x38] sm:$0xff]   ;;  %v1566_v1 = vld [vmem:[%s2404_s4] ss:$0 sm:$0xff]  ;;  %s1913_s4 = scalar_lea.vmem %s1457_s30, 32 }
  0x6c   :  { %1745 = vmatprep.subr.bf16.mxu0 %v1938_v60  ;;  %1755 = vmatprep.subr.bf16.mxu1 %v1938_v60  ;;  %p1914_p0 = scmp.ne.s32.totalorder %s1457_s30, %s1913_s4  ;;  %p1919_p2 = scmp.lt.s32.totalorder %s1913_s4, %s1913_s4 }
  0x6e   :  { %p1920_p3 = por %p1919_p2, %p1918_p1 }
  0x6f   :  { %1746 = vmatpush3.bf16.msra.mxu0 %v1896_v2  ;;  %1756 = vmatpush3.bf16.msra.mxu1 %v1899_v41 }
  0x70   :  { %1771 = vmatprep.subr.bf16.mxu0 %v1938_v60  ;;  %1757 = vmatprep.subr.bf16.mxu1 %v1938_v60  ;;  %p1921_p4 = pnand %p1920_p3, %p1914_p0 }
  0x72   :  { %1748 = vmatmul.mubr.msk.bf16.vlgmr.msra.gmra.mrb[12].mxu0 %vm939_vm1, %v317_v3 }
  0x73   :  { %1787 = vmatprep.mubr.msk.bf16.mxu0 %vm1939_vm0, %v1938_v60  ;;  %1758 = vmatpush3.bf16.msra.mxu1 %v1900_v6 }
  0x74   :  { %1759 = vmatprep.subr.bf16.mxu1 %v1938_v60  ;;  %1772 = vmatpush3.bf16.msra.mxu0 %v1905_v11 }
  0x75   :  { %1773 = vmatprep.subr.bf16.mxu0 %v1938_v60 }
  0x77   :  { %1760 = vmatpush3.bf16.msra.mxu1 %v1901_v7 }
  0x78   :  { %1761 = vmatprep.subr.bf16.mxu1 %v1938_v60  ;;  %1774 = vmatpush3.bf16.msra.mxu0 %v1906_v12 }
  0x79   :  { %1775 = vmatprep.subr.bf16.mxu0 %v1938_v60 }
  0x7b   :  { %1762 = vmatpush3.bf16.msra.mxu1 %v1902_v8 }
  0x7c   :  { %1763 = vmatprep.subr.bf16.mxu1 %v1938_v60  ;;  %1776 = vmatpush3.bf16.msra.mxu0 %v1907_v13 }
  0x7d   :  { %1777 = vmatprep.subr.bf16.mxu0 %v1938_v60 }
  0x7f   :  { %1764 = vmatpush3.bf16.msra.mxu1 %v1903_v9 }
  0x80   :  { %1765 = vmatprep.subr.bf16.mxu1 %v1938_v60  ;;  %1778 = vmatpush3.bf16.msra.mxu0 %v1908_v14 }
  0x81   :  { %1779 = vmatprep.subr.bf16.mxu0 %v1938_v60 }
  0x83   :  { %1766 = vmatpush3.bf16.msra.mxu1 %v1904_v10 }
  0x84   :  { %1780 = vmatpush3.bf16.msra.mxu0 %v1909_v15 }
  0x85   :  { %1781 = vmatprep.subr.bf16.mxu0 %v1938_v60 }
  0x88   :  { %1782 = vmatpush3.bf16.msra.mxu0 %v1910_v16 }
  0x89   :  { %1783 = vmatprep.subr.bf16.mxu0 %v1938_v60 }
  0x8c   :  { %1784 = vmatpush3.bf16.msra.mxu0 %v1911_v63 }
  0x8d   :  { %1785 = vmatprep.subr.bf16.mxu0 %v1938_v60  ;;  %v1575_v60 = vld [vmem:[%s2406_s6] ss:$0 sm:$0xff] }
  0x90   :  { %1786 = vmatpush3.bf16.msra.mxu0 %v1912_v0 }
  0xf5   :  { %v1600_v17 = vpop.f32.mrb[0].mxu0 }
  0xf6   :  { %v1601_v19 = vpop.f32.mrb[1].mxu0 }
  0xf7   :  { %v1602_v20 = vadd.f32 %v1601_v19, %v1600_v17  ;;  %v1603_v21 = vpop.f32.mrb[2].mxu0  ;;  %v1622_v22 = vpop.f32.mrb[0].mxu1 }
  0xf8   :  { %v1604_v23 = vpop.f32.mrb[3].mxu0  ;;  %v1623_v24 = vpop.f32.mrb[1].mxu1 }
  0xf9   :  { %v978_v25 = vadd.f32 %v1602_v20, %v1464_v18  ;;  %v1624_v26 = vadd.f32 %v1623_v24, %v1622_v22  ;;  %v1625_v27 = vpop.f32.mrb[2].mxu1 }
  0xfa   :  { %v1626_v28 = vpop.f32.mrb[3].mxu1 }
  0xfb   :  { %v1018_v29 = vadd.f32 %v1624_v26, %v978_v25 }
 0x115   :  { %v1644_v30 = vpop.f32.mrb[4].mxu0 }
 0x116   :  { %v1645_v31 = vpop.f32.mrb[5].mxu0 }
 0x117   :  { %v1646_v32 = vadd.f32 %v1645_v31, %v1644_v30  ;;  %v1647_v33 = vpop.f32.mrb[6].mxu0  ;;  %v1666_v34 = vpop.f32.mrb[4].mxu1 }
 0x118   :  { %v1648_v35 = vpop.f32.mrb[7].mxu0  ;;  %v1667_v36 = vpop.f32.mrb[5].mxu1 }
 0x119   :  { %v1058_v37 = vadd.f32 %v1646_v32, %v1018_v29  ;;  %v1668_v38 = vadd.f32 %v1667_v36, %v1666_v34  ;;  %v1669_v39 = vpop.f32.mrb[6].mxu1 }
 0x11a   :  { %v1670_v40 = vpop.f32.mrb[7].mxu1 }
 0x11b   :  { %v1098_v42 = vadd.f32 %v1668_v38, %v1058_v37 }
 0x135   :  { %v1688_v43 = vpop.f32.mrb[8].mxu0 }
 0x136   :  { %v1689_v44 = vpop.f32.mrb[9].mxu0 }
 0x137   :  { %v1690_v45 = vadd.f32 %v1689_v44, %v1688_v43  ;;  %v1691_v46 = vpop.f32.mrb[10].mxu0  ;;  %v1710_v47 = vpop.f32.mrb[8].mxu1 }
 0x138   :  { %v1692_v48 = vpop.f32.mrb[11].mxu0  ;;  %v1711_v49 = vpop.f32.mrb[9].mxu1 }
 0x139   :  { %v1138_v50 = vadd.f32 %v1690_v45, %v1098_v42  ;;  %v1712_v51 = vadd.f32 %v1711_v49, %v1710_v47  ;;  %v1713_v52 = vpop.f32.mrb[10].mxu1 }
 0x13a   :  { %v1714_v53 = vpop.f32.mrb[11].mxu1 }
 0x13b   :  { %v1178_v54 = vadd.f32 %v1712_v51, %v1138_v50 }
 0x145   :  { %v1217_v55 = vpop.f32.mrb[12].mxu0 }
 0x146   :  { %v1218_v56 = vadd.f32 %v1217_v55, %v1178_v54  ;;  %v1749_v57 = vpop.f32.mrb[13].mxu0 }
 0x147   :  { %v1220_v58 = vpop.f32.mrb[14].mxu0 }
 0x148   :  { %v1223_v59 = vmax.f32 %v1218_v56, 0.0  ;;  %v1750_v61 = vpop.f32.mrb[15].mxu0 }
 0x14a   :  { %v1224_v62 = vpack.c.bf16 %v1223_v59, %v1223_v59 }
 0x14c   :  { %1768 = vmatmul.mubr.bf16.vlgmr.msra.gmra.mrb[12].mxu1 %v1224_v62 }
 0x21f   :  { %v1330_v2 = vpop.f32.mrb[12].mxu1 }
 0x220   :  { %v1331_v3 = vadd.f32 %v1566_v1, %v1330_v2  ;;  %v1769_v4 = vpop.f32.mrb[13].mxu1 }
 0x221   :  { %v1333_v5 = vpop.f32.mrb[14].mxu1 }
 0x222   :  { %v1336_v41 = vmax.f32 %v1331_v3, 0.0  ;;  %v1770_v6 = vpop.f32.mrb[15].mxu1 }
 0x224   :  { %v1337_v7 = vpack.c.bf16 %v1336_v41, %v1336_v41 }
 0x226   :  { %1788 = vmatmul.mubr.bf16.vlgmr.msra.gmra.mrb[16].mxu0 %v1337_v7 }
 0x2f9   :  { %v1443_v8 = vpop.f32.mrb[16].mxu0 }
 0x2fa   :  { %v1444_v9 = vadd.f32 %v1575_v60, %v1443_v8  ;;  %v1789_v10 = vpop.f32.mrb[17].mxu0 }
 0x2fb   :  { %v1446_v11 = vpop.f32.mrb[18].mxu0 }
 0x2fc   :  { %1449 = vst [vmem:[#allocation2] sm:$0x3] %v1444_v9  ;;  %v1790_v12 = vpop.f32.mrb[19].mxu0 }
 0x2fd   :  { %1924 = shalt.err (!%p1921_p4)
}
 0x2fe   :  { %s1925_s6 = scalar_lea.hbm %s2407_s7, 32 }
 0x2ff   :  { %p1926_p5 = scmp.ne.s32.totalorder %s2407_s7, %s1925_s6  ;;  %p1929_p6 = scmp.lt.u32.totalorder %s1925_s6, %s2407_s7 }
 0x301   :  { %p1931_p7 = pnand %p1929_p6, %p1926_p5 }
 0x303   :  { %1934 = shalt.err (!%p1931_p7)
}
 0x304   :  { %1459 = dma.vmem_to_hbm [thread:$0]  %s1457_s30, 32, %s2407_s7, [#allocation3]  }
 0x305   :  { %1935 = dma.done.wait [#allocation3], 32  }
 0x306   :  { %1936 = vsyncadd [#allocation3], 4294967264 }
 0x307   :  { %1463 = vsyncpa [#allocation3], 1 }

// kernel: net_forward.3
= control target key start
LH: loop header
LB: loop body
LE: loop exit
PB: predicated region body
PF: predicated region fallthrough
CT: control target
= control target key end

     0   :  { %s7994_s12 = smov 0   ;;  %s8965_s0 = inlined_call_operand.vmem [shape: bf16[2,1024,15], index: 0, kind: input, shape index: {}]   ;;  %s8966_s1 = inlined_call_operand.vmem [shape: bf16[5,15,128], index: 1, kind: input, shape index: {}]   ;;  %s8967_s2 = inlined_call_operand.vmem [shape: f32[1,128], index: 2, kind: input, shape index: {}]   ;;  %s8968_s3 = inlined_call_operand.vmem [shape: bf16[2,14,14,128], index: 3, kind: output, shape index: {}]  }
   0x1 LB: > { %s5810_s13 = sadd.s32 4294967295, %s7971_s12   ;;  %p5814_p0 = scmp.ge.s32.totalorder %s7971_s12, 1  ;;  %s7971_s12 = sphi %s7994_s12, %s13_s12  }
   0x2   : > { %p137_p1 = scmp.lt.s32.totalorder %s7971_s12, 3 }
   0x4   : > { %p138_p2 = pnand %p5814_p0, %p137_p1 }
   0x6   : > { %141 = sbr.rel (%p138_p2) target bundleno = 810 (0x32a), region = 32 }
   0xd   : > { %v7712_v0 = vld [vmem:[%s8966_s1 + $0x8] sm:$0xff]   ;;  %vm747_vm0 = vcmask 1046528   ;;  %vm748_vm1 = vcmask 1047552   ;;  %v7973_v1 = vmov 65535   ;;  %v7713_v3 = vld [vmem:[%s8966_s1 + $0x10] sm:$0xff]   ;;  %p161_p3 = scmp.lt.s32.totalorder %s5810_s13, 1 }
   0xe   : > { %v749_v2 = vsel %vm747_vm0, 4294967295, %v7973_v1  ;;  %v7715_v5 = vld [vmem:[%s8966_s1] sm:$0xff]   ;;  %v7717_v8 = vld [vmem:[%s8966_s1 + $0x18] sm:$0xff]   ;;  %vm578_vm2 = vcmask 121856  }
   0xf   : > { %v750_v4 = vsel %vm748_vm1, %v749_v2, 0  ;;  %s8986_s13 = smov (!%p161_p3, %s5810_s13), 1  ;;  %v7774_v11 = vld [vmem:[%s8966_s1 + $0x20] sm:$0xff]  }
  0x10   : > { %v752_v6 = vand.u32 %v7712_v0, %v750_v4  ;;  %v8011_v7 = vand.u32 %v7713_v3, %v750_v4  ;;  %v1257_v9 = vand.u32 %v7715_v5, %v750_v4  ;;  %s6368_s22 = sshll.u32 %s8986_s13, 9  ;;  %v3473_v10 = vand.u32 %v7717_v8, %v750_v4  ;;  %s7702_s30 = smul.u32 112, %s8986_s13 }
  0x11   : > { %s8024_s25 = scalar_lea.vmem %s8965_s0, %s6368_s22  ;;  %v8035_v16 = vand.u32 %v7774_v11, %v750_v4 }
  0x12   : > { %6682 = vmatprep.subr.bf16.mxu1 %v752_v6  ;;  %6910 = vmatprep.subr.bf16.mxu0 %v8011_v7  ;;  %v7714_v12 = vld [vmem:[%s8024_s25 + $0x10] sm:$0xff]   ;;  %v7716_v13 = vld [vmem:[%s8024_s25 + $0x20] sm:$0xff]   ;;  %v7718_v14 = vld [vmem:[%s8024_s25 + $0x18] sm:$0xff]   ;;  %s8833_s6 = scalar_lea.vmem %s8968_s3, %s7702_s30 }
  0x13   : > { %6683 = vmatpush3.bf16.msra.mxu1 %v752_v6  ;;  %6911 = vmatpush3.bf16.msra.mxu0 %v8011_v7  ;;  %v7719_v15 = vld [vmem:[%s8024_s25 + $0x28] sm:$0xff]   ;;  %v7720_v17 = vld [vmem:[%s8024_s25 + $0x20] sm:$0xff]   ;;  %v7721_v18 = vld [vmem:[%s8024_s25 + $0x30] sm:$0xff]  }
  0x14   : > { %6796 = vmatprep.subr.bf16.mxu1 %v1257_v9  ;;  %7024 = vmatprep.subr.bf16.mxu0 %v3473_v10  ;;  %v7722_v19 = vld [vmem:[%s8024_s25 + $0x28] sm:$0xff]   ;;  %v7723_v20 = vld [vmem:[%s8024_s25 + $0x38] sm:$0xff]   ;;  %v7724_v21 = vld [vmem:[%s8024_s25 + $0x30] sm:$0xff]  }
  0x15   : > { %6684 = vmatprep.mubr.msk.bf16.mxu1 %vm578_vm2, %v7714_v12  ;;  %6912 = vmatprep.mubr.msk.bf16.mxu0 %vm578_vm2, %v7716_v13  ;;  %v7725_v22 = vld [vmem:[%s8024_s25 + $0x40] sm:$0xff]   ;;  %v7726_v23 = vld [vmem:[%s8024_s25 + $0x38] sm:$0xff]   ;;  %v7727_v24 = vld [vmem:[%s8024_s25 + $0x48] sm:$0xff]  }
  0x16   : > { %6685 = vmatmul.mubr.msk.bf16.vlgmr.msra.gmra.mrb[0].mxu1 %vm578_vm2, %v7718_v14  ;;  %6913 = vmatmul.mubr.msk.bf16.vlgmr.msra.gmra.mrb[0].mxu0 %vm578_vm2, %v7719_v15  ;;  %v7728_v25 = vld [vmem:[%s8024_s25 + $0x40] sm:$0xff]   ;;  %v7729_v26 = vld [vmem:[%s8024_s25 + $0x50] sm:$0xff]   ;;  %v7730_v27 = vld [vmem:[%s8024_s25 + $0x48] sm:$0xff]  }
  0x17   : > { %6797 = vmatpush3.bf16.msra.mxu1 %v1257_v9  ;;  %7025 = vmatpush3.bf16.msra.mxu0 %v3473_v10  ;;  %v7731_v28 = vld [vmem:[%s8024_s25 + $0x58] sm:$0xff]   ;;  %v7732_v29 = vld [vmem:[%s8024_s25 + $0x50] sm:$0xff]   ;;  %v7733_v30 = vld [vmem:[%s8024_s25 + $0x60] sm:$0xff]  }
  0x18   : > { %6688 = vmatprep.mubr.msk.bf16.mxu1 %vm578_vm2, %v7720_v17  ;;  %6916 = vmatprep.mubr.msk.bf16.mxu0 %vm578_vm2, %v7721_v18  ;;  %v7734_v31 = vld [vmem:[%s8024_s25 + $0x58] sm:$0xff]   ;;  %v7735_v32 = vld [vmem:[%s8024_s25 + $0x68] sm:$0xff]   ;;  %v7736_v33 = vld [vmem:[%s8024_s25 + $0x60] sm:$0xff]  }
  0x19   : > { %7138 = vmatprep.subr.bf16.mxu0 %v8035_v16  ;;  %7252 = vmatprep.subr.bf16.mxu1 %v8011_v7  ;;  %v7737_v34 = vld [vmem:[%s8024_s25 + $0x70] sm:$0xff]   ;;  %v7738_v35 = vld [vmem:[%s8024_s25 + $0x68] sm:$0xff]   ;;  %v7739_v36 = vld [vmem:[%s8024_s25 + $0x78] sm:$0xff]  }
  0x1a   : > { %v7740_v37 = vld [vmem:[%s8024_s25 + $0x70] sm:$0xff]   ;;  %v7741_v38 = vld [vmem:[%s8024_s25 + $0x80] sm:$0xff]   ;;  %v7742_v39 = vld [vmem:[%s8024_s25 + $0x78] sm:$0xff]  }
  0x1b   : > { %v7743_v40 = vld [vmem:[%s8024_s25 + $0x88] sm:$0xff]   ;;  %v7744_v41 = vld [vmem:[%s8024_s25 + $0x80] sm:$0xff]   ;;  %v7745_v42 = vld [vmem:[%s8024_s25 + $0x90] sm:$0xff]  }
  0x1c   : > { %v7746_v43 = vld [vmem:[%s8024_s25 + $0x88] sm:$0xff]   ;;  %v7747_v44 = vld [vmem:[%s8024_s25 + $0x98] sm:$0xff]   ;;  %v7748_v45 = vld [vmem:[%s8024_s25 + $0x90] sm:$0xff]  }
  0x1d   : > { %v7749_v46 = vld [vmem:[%s8024_s25 + $0xa0] sm:$0xff]   ;;  %v7750_v47 = vld [vmem:[%s8024_s25 + $0x98] sm:$0xff]   ;;  %v7751_v48 = vld [vmem:[%s8024_s25 + $0xa8] sm:$0xff]  }
  0x1e   : > { %6689 = vmatmul.mubr.msk.bf16.gmra.mrb[4].mxu1 %vm578_vm2, %v7722_v19  ;;  %6917 = vmatmul.mubr.msk.bf16.gmra.mrb[4].mxu0 %vm578_vm2, %v7723_v20  ;;  %v7752_v49 = vld [vmem:[%s8024_s25 + $0xa0] sm:$0xff]   ;;  %v7753_v50 = vld [vmem:[%s8024_s25 + $0xb0] sm:$0xff]   ;;  %v7754_v51 = vld [vmem:[%s8024_s25 + $0xa8] sm:$0xff]  }
  0x1f   : > { %6692 = vmatprep.mubr.msk.bf16.mxu1 %vm578_vm2, %v7724_v21  ;;  %6920 = vmatprep.mubr.msk.bf16.mxu0 %vm578_vm2, %v7725_v22  ;;  %v7755_v52 = vld [vmem:[%s8024_s25 + $0xb8] sm:$0xff]   ;;  %v7756_v53 = vld [vmem:[%s8024_s25 + $0xb0] sm:$0xff]   ;;  %v7757_v54 = vld [vmem:[%s8024_s25 + $0xc0] sm:$0xff]  }
  0x20   : > { %v8118_v55 = vld [vmem:[%s8024_s25 + $0xb8] sm:$0xff]   ;;  %v7759_v56 = vld [vmem:[%s8024_s25 + $0xc8] sm:$0xff]   ;;  %v8122_v57 = vld [vmem:[%s8024_s25 + $0xc0] sm:$0xff]  }
  0x21   : > { %v7761_v58 = vld [vmem:[%s8024_s25 + $0xd0] sm:$0xff]   ;;  %v8132_v59 = vld [vmem:[%s8024_s25 + $0xc8] sm:$0xff]   ;;  %v7763_v60 = vld [vmem:[%s8024_s25 + $0xd8] sm:$0xff]  }
  0x22   : > { %v8136_v61 = vld [vmem:[%s8024_s25 + $0xd0] sm:$0xff]   ;;  %v7765_v62 = vld [vmem:[%s8024_s25 + $0xe0] sm:$0xff]   ;;  %v8146_v63 = vld [vmem:[%s8024_s25 + $0xd8] sm:$0xff]  }
  0x23   : > { %v7767_v0 = vld [vmem:[%s8024_s25 + $0xe8] sm:$0xff]   ;;  %v8150_v1 = vld [vmem:[%s8024_s25 + $0xe0] sm:$0xff]   ;;  %v7769_v2 = vld [vmem:[%s8024_s25 + $0xf0] sm:$0xff]  }
  0x24   : > { %v8160_v3 = vld [vmem:[%s8024_s25 + $0xe8] sm:$0xff]   ;;  %v7771_v4 = vld [vmem:[%s8024_s25 + $0xf8] sm:$0xff]   ;;  %v8164_v5 = vld [vmem:[%s8024_s25 + $0xf0] sm:$0xff]  }
  0x25   : > { %v7773_v6 = vld [vmem:[%s8024_s25 + $0x30] sm:$0xff]   ;;  %v8174_v8 = vld [vmem:[%s8024_s25 + $0xf8] sm:$0xff]   ;;  %v8178_v10 = vld [vmem:[%s8024_s25 + $0x100] sm:$0xff]  }
  0x26   : > { %6693 = vmatmul.mubr.msk.bf16.gmra.mrb[8].mxu1 %vm578_vm2, %v7726_v23  ;;  %6921 = vmatmul.mubr.msk.bf16.gmra.mrb[8].mxu0 %vm578_vm2, %v7727_v24  ;;  %v7776_v9 = vld [vmem:[%s8024_s25 + $0x38] sm:$0xff]   ;;  %v7778_v11 = vld [vmem:[%s8024_s25 + $0x40] sm:$0xff]   ;;  %v8189_v12 = vld [vmem:[%s8024_s25 + $0x108] sm:$0xff]  }
  0x27   : > { %6696 = vmatprep.mubr.msk.bf16.mxu1 %vm578_vm2, %v7728_v25  ;;  %6924 = vmatprep.mubr.msk.bf16.mxu0 %vm578_vm2, %v7729_v26  ;;  %v7780_v13 = vld [vmem:[%s8024_s25 + $0x48] sm:$0xff]   ;;  %v8193_v14 = vld [vmem:[%s8024_s25 + $0x110] sm:$0xff]   ;;  %v7784_v17 = vld [vmem:[%s8024_s25 + $0x58] sm:$0xff]  }
  0x28   : > { %v7782_v15 = vld [vmem:[%s8024_s25 + $0x50] sm:$0xff]   ;;  %v8207_v18 = vld [vmem:[%s8024_s25 + $0x120] sm:$0xff]   ;;  %v8217_v20 = vld [vmem:[%s8024_s25 + $0x128] sm:$0xff]  }
  0x29   : > { %v7786_v19 = vld [vmem:[%s8024_s25 + $0x60] sm:$0xff]   ;;  %v7788_v21 = vld [vmem:[%s8024_s25 + $0x68] sm:$0xff]   ;;  %v8221_v22 = vld [vmem:[%s8024_s25 + $0x130] sm:$0xff]  }
  0x2a   : > { %v7790_v23 = vld [vmem:[%s8024_s25 + $0x70] sm:$0xff]   ;;  %v8231_v24 = vld [vmem:[%s8024_s25 + $0x138] sm:$0xff]   ;;  %v8235_v26 = vld [vmem:[%s8024_s25 + $0x140] sm:$0xff]  }
  0x2b   : > { %v7792_v25 = vld [vmem:[%s8024_s25 + $0x78] sm:$0xff]  }
  0x2e   : > { %6697 = vmatmul.mubr.msk.bf16.gmra.mrb[12].mxu1 %vm578_vm2, %v7730_v27  ;;  %6925 = vmatmul.mubr.msk.bf16.gmra.mrb[12].mxu0 %vm578_vm2, %v7731_v28  ;;  %v7794_v27 = vld [vmem:[%s8024_s25 + $0x80] sm:$0xff]   ;;  %v8245_v28 = vld [vmem:[%s8024_s25 + $0x148] sm:$0xff]  }
  0x2f   : > { %6700 = vmatprep.mubr.msk.bf16.mxu1 %vm578_vm2, %v7732_v29  ;;  %6928 = vmatprep.mubr.msk.bf16.mxu0 %vm578_vm2, %v7733_v30  ;;  %v7796_v29 = vld [vmem:[%s8024_s25 + $0x88] sm:$0xff]   ;;  %v8249_v30 = vld [vmem:[%s8024_s25 + $0x150] sm:$0xff]  }
  0x36   : > { %6701 = vmatmul.mubr.msk.bf16.gmra.mrb[16].mxu1 %vm578_vm2, %v7734_v31  ;;  %6929 = vmatmul.mubr.msk.bf16.gmra.mrb[16].mxu0 %vm578_vm2, %v7735_v32  ;;  %v7798_v31 = vld [vmem:[%s8024_s25 + $0x90] sm:$0xff]   ;;  %v8259_v32 = vld [vmem:[%s8024_s25 + $0x158] sm:$0xff]  }
  0x37   : > { %6704 = vmatprep.mubr.msk.bf16.mxu1 %vm578_vm2, %v7736_v33  ;;  %6932 = vmatprep.mubr.msk.bf16.mxu0 %vm578_vm2, %v7737_v34  ;;  %v7800_v33 = vld [vmem:[%s8024_s25 + $0x98] sm:$0xff]   ;;  %v8263_v34 = vld [vmem:[%s8024_s25 + $0x160] sm:$0xff]  }
  0x3e   : > { %6705 = vmatmul.mubr.msk.bf16.gmra.mrb[20].mxu1 %vm578_vm2, %v7738_v35  ;;  %6933 = vmatmul.mubr.msk.bf16.gmra.mrb[20].mxu0 %vm578_vm2, %v7739_v36  ;;  %v7802_v35 = vld [vmem:[%s8024_s25 + $0xa0] sm:$0xff]   ;;  %v8273_v36 = vld [vmem:[%s8024_s25 + $0x168] sm:$0xff]  }
  0x3f   : > { %6708 = vmatprep.mubr.msk.bf16.mxu1 %vm578_vm2, %v7740_v37  ;;  %6936 = vmatprep.mubr.msk.bf16.mxu0 %vm578_vm2, %v7741_v38  ;;  %v7804_v37 = vld [vmem:[%s8024_s25 + $0xa8] sm:$0xff]   ;;  %v8277_v38 = vld [vmem:[%s8024_s25 + $0x170] sm:$0xff]  }
  0x46   : > { %6709 = vmatmul.mubr.msk.bf16.gmra.mrb[24].mxu1 %vm578_vm2, %v7742_v39  ;;  %6937 = vmatmul.mubr.msk.bf16.gmra.mrb[24].mxu0 %vm578_vm2, %v7743_v40  ;;  %v7806_v39 = vld [vmem:[%s8024_s25 + $0xb0] sm:$0xff]   ;;  %v8287_v40 = vld [vmem:[%s8024_s25 + $0x178] sm:$0xff]  }
  0x47   : > { %6712 = vmatprep.mubr.msk.bf16.mxu1 %vm578_vm2, %v7744_v41  ;;  %6940 = vmatprep.mubr.msk.bf16.mxu0 %vm578_vm2, %v7745_v42  ;;  %v7808_v41 = vld [vmem:[%s8024_s25 + $0xb8] sm:$0xff]   ;;  %v8291_v42 = vld [vmem:[%s8024_s25 + $0x180] sm:$0xff]  }
  0x4e   : > { %6713 = vmatmul.mubr.msk.bf16.gmra.mrb[28].mxu1 %vm578_vm2, %v7746_v43  ;;  %6941 = vmatmul.mubr.msk.bf16.gmra.mrb[28].mxu0 %vm578_vm2, %v7747_v44  ;;  %v7810_v43 = vld [vmem:[%s8024_s25 + $0xc0] sm:$0xff]   ;;  %v8301_v44 = vld [vmem:[%s8024_s25 + $0x188] sm:$0xff]  }
  0x4f   : > { %6716 = vmatprep.mubr.msk.bf16.mxu1 %vm578_vm2, %v7748_v45  ;;  %6944 = vmatprep.mubr.msk.bf16.mxu0 %vm578_vm2, %v7749_v46  ;;  %v7812_v45 = vld [vmem:[%s8024_s25 + $0xc8] sm:$0xff]   ;;  %v8305_v46 = vld [vmem:[%s8024_s25 + $0x190] sm:$0xff]  }
  0x56   : > { %6717 = vmatmul.mubr.msk.bf16.gmra.mrb[32].mxu1 %vm578_vm2, %v7750_v47  ;;  %6945 = vmatmul.mubr.msk.bf16.gmra.mrb[32].mxu0 %vm578_vm2, %v7751_v48  ;;  %v7814_v47 = vld [vmem:[%s8024_s25 + $0xd0] sm:$0xff]   ;;  %v8315_v48 = vld [vmem:[%s8024_s25 + $0x198] sm:$0xff]  }
  0x57   : > { %6720 = vmatprep.mubr.msk.bf16.mxu1 %vm578_vm2, %v7752_v49  ;;  %6948 = vmatprep.mubr.msk.bf16.mxu0 %vm578_vm2, %v7753_v50  ;;  %v7816_v49 = vld [vmem:[%s8024_s25 + $0xd8] sm:$0xff]   ;;  %v8319_v50 = vld [vmem:[%s8024_s25 + $0x1a0] sm:$0xff]  }
  0x5e   : > { %6721 = vmatmul.mubr.msk.bf16.gmra.mrb[36].mxu1 %vm578_vm2, %v7754_v51  ;;  %6949 = vmatmul.mubr.msk.bf16.gmra.mrb[36].mxu0 %vm578_vm2, %v7755_v52  ;;  %v7818_v51 = vld [vmem:[%s8024_s25 + $0xe0] sm:$0xff]   ;;  %v8329_v52 = vld [vmem:[%s8024_s25 + $0x1a8] sm:$0xff]  }
  0x5f   : > { %6724 = vmatprep.mubr.msk.bf16.mxu1 %vm578_vm2, %v7756_v53  ;;  %6952 = vmatprep.mubr.msk.bf16.mxu0 %vm578_vm2, %v7757_v54  ;;  %v7820_v53 = vld [vmem:[%s8024_s25 + $0xe8] sm:$0xff]   ;;  %v8333_v54 = vld [vmem:[%s8024_s25 + $0x1b0] sm:$0xff]  }
  0x66   : > { %6725 = vmatmul.mubr.msk.bf16.gmra.mrb[40].mxu1 %vm578_vm2, %v8118_v55  ;;  %6953 = vmatmul.mubr.msk.bf16.gmra.mrb[40].mxu0 %vm578_vm2, %v7759_v56  ;;  %v7822_v56 = vld [vmem:[%s8024_s25 + $0xf0] sm:$0xff]  }
  0x67   : > { %6728 = vmatprep.mubr.msk.bf16.mxu1 %vm578_vm2, %v8122_v57  ;;  %6956 = vmatprep.mubr.msk.bf16.mxu0 %vm578_vm2, %v7761_v58  ;;  %v8343_v58 = vld [vmem:[%s8024_s25 + $0x1b8] sm:$0xff]  }
  0x6e   : > { %6729 = vmatmul.mubr.msk.bf16.gmra.mrb[44].mxu1 %vm578_vm2, %v8132_v59  ;;  %6957 = vmatmul.mubr.msk.bf16.gmra.mrb[44].mxu0 %vm578_vm2, %v7763_v60  ;;  %v7824_v60 = vld [vmem:[%s8024_s25 + $0xf8] sm:$0xff]  }
  0x6f   : > { %6732 = vmatprep.mubr.msk.bf16.mxu1 %vm578_vm2, %v8136_v61  ;;  %6960 = vmatprep.mubr.msk.bf16.mxu0 %vm578_vm2, %v7765_v62  ;;  %v7825_v62 = vld [vmem:[%s8024_s25 + $0x1c0] sm:$0xff]  }
  0x76   : > { %6733 = vmatmul.mubr.msk.bf16.gmra.mrb[48].mxu1 %vm578_vm2, %v8146_v63  ;;  %6961 = vmatmul.mubr.msk.bf16.gmra.mrb[48].mxu0 %vm578_vm2, %v7767_v0  ;;  %v7826_v0 = vld [vmem:[%s8024_s25 + $0x100] sm:$0xff]  }
  0x77   : > { %6736 = vmatprep.mubr.msk.bf16.mxu1 %vm578_vm2, %v8150_v1  ;;  %6964 = vmatprep.mubr.msk.bf16.mxu0 %vm578_vm2, %v7769_v2  ;;  %v7827_v2 = vld [vmem:[%s8024_s25 + $0x1c8] sm:$0xff]  }
  0x7e   : > { %6737 = vmatmul.mubr.msk.bf16.gmra.mrb[52].mxu1 %vm578_vm2, %v8160_v3  ;;  %6965 = vmatmul.mubr.msk.bf16.gmra.mrb[52].mxu0 %vm578_vm2, %v7771_v4  ;;  %v7828_v4 = vld [vmem:[%s8024_s25 + $0x108] sm:$0xff]  }
  0x7f   : > { %6740 = vmatprep.mubr.msk.bf16.mxu1 %vm578_vm2, %v8164_v5  ;;  %7026 = vmatprep.mubr.msk.bf16.mxu0 %vm578_vm2, %v7773_v6  ;;  %v7829_v6 = vld [vmem:[%s8024_s25] sm:$0xff]  }
  0x86   : > { %6741 = vmatmul.mubr.msk.bf16.gmra.mrb[56].mxu1 %vm578_vm2, %v8174_v8  ;;  %7027 = vmatmul.mubr.msk.bf16.vlgmr.msra.gmra.mrb[0].mxu0 %vm578_vm2, %v7776_v9  ;;  %v7830_v9 = vld [vmem:[%s8024_s25 + $0x110] sm:$0xff]  }
  0x87   : > { %6744 = vmatprep.mubr.msk.bf16.mxu1 %vm578_vm2, %v8178_v10  ;;  %7139 = vmatpush3.bf16.msra.mxu0 %v8035_v16  ;;  %v8203_v16 = vld [vmem:[%s8024_s25 + $0x118] sm:$0xff]  }
  0x88   : > { %7030 = vmatprep.mubr.msk.bf16.mxu0 %vm578_vm2, %v7778_v11  ;;  %v7831_v11 = vld [vmem:[%s8024_s25 + $0x8] sm:$0xff]  }
  0x8e   : > { %6745 = vmatmul.mubr.msk.bf16.gmra.mrb[60].mxu1 %vm578_vm2, %v8189_v12  ;;  %7031 = vmatmul.mubr.msk.bf16.gmra.mrb[4].mxu0 %vm578_vm2, %v7780_v13  ;;  %v7832_v13 = vld [vmem:[%s8024_s25 + $0x118] sm:$0xff]  }
  0x8f   : > { %6748 = vmatprep.mubr.msk.bf16.mxu1 %vm578_vm2, %v8193_v14  ;;  %7034 = vmatprep.mubr.msk.bf16.mxu0 %vm578_vm2, %v7782_v15  ;;  %v7833_v15 = vld [vmem:[%s8024_s25 + $0x120] sm:$0xff]  }
  0x96   : > { %6749 = vmatmul.mubr.msk.bf16.gmra.mrb[64].mxu1 %vm578_vm2, %v8203_v16  ;;  %7035 = vmatmul.mubr.msk.bf16.gmra.mrb[8].mxu0 %vm578_vm2, %v7784_v17  ;;  %v7943_v17 = vld [vmem:[%s8024_s25 + $0x10] sm:$0xff]  }
  0x97   : > { %6752 = vmatprep.mubr.msk.bf16.mxu1 %vm578_vm2, %v8207_v18  ;;  %7038 = vmatprep.mubr.msk.bf16.mxu0 %vm578_vm2, %v7786_v19  ;;  %v7834_v19 = vld [vmem:[%s8024_s25 + $0x128] sm:$0xff]  }
  0x9e   : > { %6753 = vmatmul.mubr.msk.bf16.gmra.mrb[68].mxu1 %vm578_vm2, %v8217_v20  ;;  %7039 = vmatmul.mubr.msk.bf16.gmra.mrb[12].mxu0 %vm578_vm2, %v7788_v21  ;;  %v7835_v21 = vld [vmem:[%s8024_s25 + $0x130] sm:$0xff]  }
  0x9f   : > { %6756 = vmatprep.mubr.msk.bf16.mxu1 %vm578_vm2, %v8221_v22  ;;  %7042 = vmatprep.mubr.msk.bf16.mxu0 %vm578_vm2, %v7790_v23  ;;  %v7944_v23 = vld [vmem:[%s8024_s25 + $0x18] sm:$0xff]  }
  0xa6   : > { %6757 = vmatmul.mubr.msk.bf16.gmra.mrb[72].mxu1 %vm578_vm2, %v8231_v24  ;;  %7043 = vmatmul.mubr.msk.bf16.gmra.mrb[16].mxu0 %vm578_vm2, %v7792_v25  ;;  %v7945_v25 = vld [vmem:[%s8024_s25 + $0x20] sm:$0xff]  }
  0xa7   : > { %6760 = vmatprep.mubr.msk.bf16.mxu1 %vm578_vm2, %v8235_v26  ;;  %7046 = vmatprep.mubr.msk.bf16.mxu0 %vm578_vm2, %v7794_v27  ;;  %v7837_v27 = vld [vmem:[%s8024_s25 + $0x140] sm:$0xff]  }
  0xae   : > { %6761 = vmatmul.mubr.msk.bf16.gmra.mrb[76].mxu1 %vm578_vm2, %v8245_v28  ;;  %7047 = vmatmul.mubr.msk.bf16.gmra.mrb[20].mxu0 %vm578_vm2, %v7796_v29  ;;  %v7946_v29 = vld [vmem:[%s8024_s25 + $0x28] sm:$0xff]  }
  0xaf   : > { %6764 = vmatprep.mubr.msk.bf16.mxu1 %vm578_vm2, %v8249_v30  ;;  %7050 = vmatprep.mubr.msk.bf16.mxu0 %vm578_vm2, %v7798_v31  ;;  %v7947_v31 = vld [vmem:[%s8024_s25 + $0x30] sm:$0xff]  }
  0xb6   : > { %6765 = vmatmul.mubr.msk.bf16.gmra.mrb[80].mxu1 %vm578_vm2, %v8259_v32  ;;  %7051 = vmatmul.mubr.msk.bf16.gmra.mrb[24].mxu0 %vm578_vm2, %v7800_v33  ;;  %v7838_v33 = vld [vmem:[%s8024_s25 + $0x148] sm:$0xff]  }
  0xb7   : > { %6768 = vmatprep.mubr.msk.bf16.mxu1 %vm578_vm2, %v8263_v34  ;;  %7054 = vmatprep.mubr.msk.bf16.mxu0 %vm578_vm2, %v7802_v35  ;;  %v7839_v35 = vld [vmem:[%s8024_s25 + $0x150] sm:$0xff]  }
  0xbe   : > { %6769 = vmatmul.mubr.msk.bf16.gmra.mrb[84].mxu1 %vm578_vm2, %v8273_v36  ;;  %7055 = vmatmul.mubr.msk.bf16.gmra.mrb[28].mxu0 %vm578_vm2, %v7804_v37  ;;  %v7948_v37 = vld [vmem:[%s8024_s25 + $0x38] sm:$0xff]  }
  0xbf   : > { %6772 = vmatprep.mubr.msk.bf16.mxu1 %vm578_vm2, %v8277_v38  ;;  %7058 = vmatprep.mubr.msk.bf16.mxu0 %vm578_vm2, %v7806_v39  ;;  %v7949_v39 = vld [vmem:[%s8024_s25 + $0x40] sm:$0xff]  }
  0xc6   : > { %6773 = vmatmul.mubr.msk.bf16.gmra.mrb[88].mxu1 %vm578_vm2, %v8287_v40  ;;  %7059 = vmatmul.mubr.msk.bf16.gmra.mrb[32].mxu0 %vm578_vm2, %v7808_v41  ;;  %v7840_v41 = vld [vmem:[%s8024_s25 + $0x158] sm:$0xff]  }
  0xc7   : > { %6776 = vmatprep.mubr.msk.bf16.mxu1 %vm578_vm2, %v8291_v42  ;;  %7062 = vmatprep.mubr.msk.bf16.mxu0 %vm578_vm2, %v7810_v43  ;;  %v7841_v43 = vld [vmem:[%s8024_s25 + $0x160] sm:$0xff]  }
  0xce   : > { %6777 = vmatmul.mubr.msk.bf16.gmra.mrb[92].mxu1 %vm578_vm2, %v8301_v44  ;;  %7063 = vmatmul.mubr.msk.bf16.gmra.mrb[36].mxu0 %vm578_vm2, %v7812_v45  ;;  %v7950_v45 = vld [vmem:[%s8024_s25 + $0x48] sm:$0xff]  }
  0xcf   : > { %6780 = vmatprep.mubr.msk.bf16.mxu1 %vm578_vm2, %v8305_v46  ;;  %7066 = vmatprep.mubr.msk.bf16.mxu0 %vm578_vm2, %v7814_v47  ;;  %v7951_v47 = vld [vmem:[%s8024_s25 + $0x50] sm:$0xff]  }
  0xd6   : > { %6781 = vmatmul.mubr.msk.bf16.gmra.mrb[96].mxu1 %vm578_vm2, %v8315_v48  ;;  %7067 = vmatmul.mubr.msk.bf16.gmra.mrb[40].mxu0 %vm578_vm2, %v7816_v49  ;;  %v7842_v49 = vld [vmem:[%s8024_s25 + $0x168] sm:$0xff]  }
  0xd7   : > { %6784 = vmatprep.mubr.msk.bf16.mxu1 %vm578_vm2, %v8319_v50  ;;  %7070 = vmatprep.mubr.msk.bf16.mxu0 %vm578_vm2, %v7818_v51  ;;  %v7843_v51 = vld [vmem:[%s8024_s25 + $0x170] sm:$0xff]  }
  0xde   : > { %6785 = vmatmul.mubr.msk.bf16.gmra.mrb[100].mxu1 %vm578_vm2, %v8329_v52  ;;  %7071 = vmatmul.mubr.msk.bf16.gmra.mrb[44].mxu0 %vm578_vm2, %v7820_v53  ;;  %v7952_v53 = vld [vmem:[%s8024_s25 + $0x58] sm:$0xff]  }
  0xdf   : > { %6788 = vmatprep.mubr.msk.bf16.mxu1 %vm578_vm2, %v8333_v54  ;;  %7074 = vmatprep.mubr.msk.bf16.mxu0 %vm578_vm2, %v7822_v56  ;;  %v7953_v56 = vld [vmem:[%s8024_s25 + $0x60] sm:$0xff]  }
  0xe6   : > { %6789 = vmatmul.mubr.msk.bf16.gmra.mrb[104].mxu1 %vm578_vm2, %v8343_v58  ;;  %7075 = vmatmul.mubr.msk.bf16.gmra.mrb[48].mxu0 %vm578_vm2, %v7824_v60  ;;  %v7844_v60 = vld [vmem:[%s8024_s25 + $0x178] sm:$0xff]  }
  0xe7   : > { %6792 = vmatprep.mubr.msk.bf16.mxu1 %vm578_vm2, %v7825_v62  ;;  %7078 = vmatprep.mubr.msk.bf16.mxu0 %vm578_vm2, %v7826_v0  ;;  %v7845_v62 = vld [vmem:[%s8024_s25 + $0x180] sm:$0xff]   ;;  %v7954_v0 = vld [vmem:[%s8024_s25 + $0x68] sm:$0xff]  }
  0xee   : > { %6793 = vmatmul.mubr.msk.bf16.gmra.mrb[108].mxu1 %vm578_vm2, %v7827_v2  ;;  %7079 = vmatmul.mubr.msk.bf16.gmra.mrb[52].mxu0 %vm578_vm2, %v7828_v4  ;;  %v7955_v2 = vld [vmem:[%s8024_s25 + $0x70] sm:$0xff]   ;;  %v7846_v4 = vld [vmem:[%s8024_s25 + $0x188] sm:$0xff]  }
  0xef   : > { %6798 = vmatprep.mubr.msk.bf16.mxu1 %vm578_vm2, %v7829_v6  ;;  %7082 = vmatprep.mubr.msk.bf16.mxu0 %vm578_vm2, %v7830_v9  ;;  %v7847_v6 = vld [vmem:[%s8024_s25 + $0x190] sm:$0xff]   ;;  %v7956_v9 = vld [vmem:[%s8024_s25 + $0x78] sm:$0xff]  }
  0xf6   : > { %6799 = vmatmul.mubr.msk.bf16.vlgmr.msra.gmra.mrb[0].mxu1 %vm578_vm2, %v7831_v11  ;;  %7083 = vmatmul.mubr.msk.bf16.gmra.mrb[56].mxu0 %vm578_vm2, %v7832_v13  ;;  %v7957_v11 = vld [vmem:[%s8024_s25 + $0x80] sm:$0xff]   ;;  %v7848_v13 = vld [vmem:[%s8024_s25 + $0x198] sm:$0xff]  }
  0xf7   : > { %7253 = vmatpush3.bf16.msra.mxu1 %v8011_v7  ;;  %6802 = vmatprep.mubr.msk.bf16.mxu1 %vm578_vm2, %v7943_v17  ;;  %v7836_v7 = vld [vmem:[%s8024_s25 + $0x138] sm:$0xff]   ;;  %v7958_v17 = vld [vmem:[%s8024_s25 + $0x88] sm:$0xff]  }
  0xf8   : > { %7086 = vmatprep.mubr.msk.bf16.mxu0 %vm578_vm2, %v7833_v15  ;;  %v7849_v15 = vld [vmem:[%s8024_s25 + $0x1a0] sm:$0xff]  }
  0xfe   : > { %6803 = vmatmul.mubr.msk.bf16.gmra.mrb[4].mxu1 %vm578_vm2, %v7944_v23  ;;  %7087 = vmatmul.mubr.msk.bf16.gmra.mrb[60].mxu0 %vm578_vm2, %v7834_v19  ;;  %v7959_v19 = vld [vmem:[%s8024_s25 + $0x90] sm:$0xff]  }
  0xff   : > { %6806 = vmatprep.mubr.msk.bf16.mxu1 %vm578_vm2, %v7945_v25  ;;  %7090 = vmatprep.mubr.msk.bf16.mxu0 %vm578_vm2, %v7835_v21  ;;  %v7850_v21 = vld [vmem:[%s8024_s25 + $0x1a8] sm:$0xff]   ;;  %v7851_v23 = vld [vmem:[%s8024_s25 + $0x1b0] sm:$0xff]   ;;  %v7960_v25 = vld [vmem:[%s8024_s25 + $0x98] sm:$0xff]  }
 0x106   : > { %6807 = vmatmul.mubr.msk.bf16.gmra.mrb[8].mxu1 %vm578_vm2, %v7946_v29  ;;  %7091 = vmatmul.mubr.msk.bf16.gmra.mrb[64].mxu0 %vm578_vm2, %v7836_v7  ;;  %v7961_v7 = vld [vmem:[%s8024_s25 + $0xa0] sm:$0xff]  }
 0x107   : > { %6810 = vmatprep.mubr.msk.bf16.mxu1 %vm578_vm2, %v7947_v31  ;;  %7094 = vmatprep.mubr.msk.bf16.mxu0 %vm578_vm2, %v7837_v27  ;;  %v7852_v27 = vld [vmem:[%s8024_s25 + $0x1b8] sm:$0xff]   ;;  %v7853_v29 = vld [vmem:[%s8024_s25 + $0x1c0] sm:$0xff]   ;;  %v7962_v31 = vld [vmem:[%s8024_s25 + $0xa8] sm:$0xff]  }
 0x10e   : > { %6811 = vmatmul.mubr.msk.bf16.gmra.mrb[12].mxu1 %vm578_vm2, %v7948_v37  ;;  %7095 = vmatmul.mubr.msk.bf16.gmra.mrb[68].mxu0 %vm578_vm2, %v7838_v33  ;;  %v7963_v33 = vld [vmem:[%s8024_s25 + $0xb0] sm:$0xff]  }
 0x10f   : > { %6814 = vmatprep.mubr.msk.bf16.mxu1 %vm578_vm2, %v7949_v39  ;;  %7098 = vmatprep.mubr.msk.bf16.mxu0 %vm578_vm2, %v7839_v35  ;;  %v7854_v35 = vld [vmem:[%s8024_s25 + $0x1c8] sm:$0xff]   ;;  %v7855_v37 = vld [vmem:[%s8024_s25 + $0x1d0] sm:$0xff]   ;;  %v7856_v39 = vld [vmem:[%s8024_s25 + $0x1d8] sm:$0xff]  }
 0x116   : > { %6815 = vmatmul.mubr.msk.bf16.gmra.mrb[16].mxu1 %vm578_vm2, %v7950_v45  ;;  %7099 = vmatmul.mubr.msk.bf16.gmra.mrb[72].mxu0 %vm578_vm2, %v7840_v41  ;;  %v7857_v41 = vld [vmem:[%s8024_s25 + $0x1e0] sm:$0xff]   ;;  %v7886_v45 = vld [vmem:[%s8024_s25 + $0x118] sm:$0xff]  }
 0x117   : > { %6818 = vmatprep.mubr.msk.bf16.mxu1 %vm578_vm2, %v7951_v47  ;;  %7102 = vmatprep.mubr.msk.bf16.mxu0 %vm578_vm2, %v7841_v43  ;;  %v7859_v43 = vld [vmem:[%s8024_s25 + $0x40] sm:$0xff]  }
 0x118   : > { %v7887_v47 = vld [vmem:[%s8024_s25 + $0x100] sm:$0xff]  }
 0x11e   : > { %6819 = vmatmul.mubr.msk.bf16.gmra.mrb[20].mxu1 %vm578_vm2, %v7952_v53  ;;  %7103 = vmatmul.mubr.msk.bf16.gmra.mrb[76].mxu0 %vm578_vm2, %v7842_v49  ;;  %v7888_v49 = vld [vmem:[%s8024_s25 + $0x120] sm:$0xff]   ;;  %v7889_v53 = vld [vmem:[%s8024_s25 + $0x108] sm:$0xff]  }
 0x11f   : > { %6822 = vmatprep.mubr.msk.bf16.mxu1 %vm578_vm2, %v7953_v56  ;;  %7106 = vmatprep.mubr.msk.bf16.mxu0 %vm578_vm2, %v7843_v51 }
 0x126   : > { %6823 = vmatmul.mubr.msk.bf16.gmra.mrb[24].mxu1 %vm578_vm2, %v7954_v0  ;;  %7107 = vmatmul.mubr.msk.bf16.gmra.mrb[80].mxu0 %vm578_vm2, %v7844_v60  ;;  %v7890_v60 = vld [vmem:[%s8024_s25 + $0x128] sm:$0xff]   ;;  %v7892_v0 = vld [vmem:[%s8024_s25 + $0x130] sm:$0xff]  }
 0x127   : > { %6826 = vmatprep.mubr.msk.bf16.mxu1 %vm578_vm2, %v7955_v2  ;;  %7110 = vmatprep.mubr.msk.bf16.mxu0 %vm578_vm2, %v7845_v62  ;;  %v7891_v62 = vld [vmem:[%s8024_s25 + $0x110] sm:$0xff]  }
 0x12e   : > { %6827 = vmatmul.mubr.msk.bf16.gmra.mrb[28].mxu1 %vm578_vm2, %v7956_v9  ;;  %7111 = vmatmul.mubr.msk.bf16.gmra.mrb[84].mxu0 %vm578_vm2, %v7846_v4 }
 0x12f   : > { %6830 = vmatprep.mubr.msk.bf16.mxu1 %vm578_vm2, %v7957_v11  ;;  %7114 = vmatprep.mubr.msk.bf16.mxu0 %vm578_vm2, %v7847_v6  ;;  %v7893_v6 = vld [vmem:[%s8024_s25 + $0x118] sm:$0xff]  }
 0x130   : > { %v7894_v11 = vld [vmem:[%s8024_s25 + $0x138] sm:$0xff]  }
 0x136   : > { %6831 = vmatmul.mubr.msk.bf16.gmra.mrb[32].mxu1 %vm578_vm2, %v7958_v17  ;;  %7115 = vmatmul.mubr.msk.bf16.gmra.mrb[88].mxu0 %vm578_vm2, %v7848_v13  ;;  %v7895_v13 = vld [vmem:[%s8024_s25 + $0x120] sm:$0xff]  }
 0x137   : > { %6834 = vmatprep.mubr.msk.bf16.mxu1 %vm578_vm2, %v7959_v19  ;;  %7118 = vmatprep.mubr.msk.bf16.mxu0 %vm578_vm2, %v7849_v15  ;;  %v7896_v17 = vld [vmem:[%s8024_s25 + $0x140] sm:$0xff]  }
 0x13e   : > { %6835 = vmatmul.mubr.msk.bf16.gmra.mrb[36].mxu1 %vm578_vm2, %v7960_v25  ;;  %7119 = vmatmul.mubr.msk.bf16.gmra.mrb[92].mxu0 %vm578_vm2, %v7850_v21 }
 0x13f   : > { %6838 = vmatprep.mubr.msk.bf16.mxu1 %vm578_vm2, %v7961_v7  ;;  %7122 = vmatprep.mubr.msk.bf16.mxu0 %vm578_vm2, %v7851_v23  ;;  %v7897_v23 = vld [vmem:[%s8024_s25 + $0x128] sm:$0xff]  }
 0x140   : > { %v7898_v7 = vld [vmem:[%s8024_s25 + $0x148] sm:$0xff]  }
 0x146   : > { %6839 = vmatmul.mubr.msk.bf16.gmra.mrb[40].mxu1 %vm578_vm2, %v7962_v31  ;;  %7123 = vmatmul.mubr.msk.bf16.gmra.mrb[96].mxu0 %vm578_vm2, %v7852_v27  ;;  %v7899_v27 = vld [vmem:[%s8024_s25 + $0x130] sm:$0xff]  }
 0x147   : > { %6842 = vmatprep.mubr.msk.bf16.mxu1 %vm578_vm2, %v7963_v33  ;;  %7126 = vmatprep.mubr.msk.bf16.mxu0 %vm578_vm2, %v7853_v29  ;;  %v7900_v31 = vld [vmem:[%s8024_s25 + $0x150] sm:$0xff]  }
 0x14e   : > { %6843 = vmatmul.mubr.msk.bf16.gmra.mrb[44].mxu1 %vm578_vm2, %v8118_v55  ;;  %7127 = vmatmul.mubr.msk.bf16.gmra.mrb[100].mxu0 %vm578_vm2, %v7854_v35  ;;  %v7858_v55 = vld [vmem:[%s8024_s25 + $0x1e8] sm:$0xff]  }
 0x14f   : > { %6846 = vmatprep.mubr.msk.bf16.mxu1 %vm578_vm2, %v8122_v57  ;;  %7130 = vmatprep.mubr.msk.bf16.mxu0 %vm578_vm2, %v7855_v37  ;;  %v7860_v57 = vld [vmem:[%s8024_s25 + $0x48] sm:$0xff]   ;;  %v7901_v37 = vld [vmem:[%s8024_s25 + $0x138] sm:$0xff]  }
 0x156   : > { %6847 = vmatmul.mubr.msk.bf16.gmra.mrb[48].mxu1 %vm578_vm2, %v8132_v59  ;;  %7131 = vmatmul.mubr.msk.bf16.gmra.mrb[104].mxu0 %vm578_vm2, %v7856_v39  ;;  %v7861_v59 = vld [vmem:[%s8024_s25 + $0x50] sm:$0xff]  }
 0x157   : > { %6850 = vmatprep.mubr.msk.bf16.mxu1 %vm578_vm2, %v8136_v61  ;;  %7134 = vmatprep.mubr.msk.bf16.mxu0 %vm578_vm2, %v7857_v41  ;;  %v7862_v61 = vld [vmem:[%s8024_s25 + $0x58] sm:$0xff]  }
 0x158   : > { %v7902_v41 = vld [vmem:[%s8024_s25 + $0x158] sm:$0xff]  }
 0x15e   : > { %6851 = vmatmul.mubr.msk.bf16.gmra.mrb[52].mxu1 %vm578_vm2, %v8146_v63  ;;  %7135 = vmatmul.mubr.msk.bf16.gmra.mrb[108].mxu0 %vm578_vm2, %v7858_v55  ;;  %v7863_v63 = vld [vmem:[%s8024_s25 + $0x60] sm:$0xff]  }
 0x15f   : > { %6854 = vmatprep.mubr.msk.bf16.mxu1 %vm578_vm2, %v8150_v1  ;;  %7140 = vmatprep.mubr.msk.bf16.mxu0 %vm578_vm2, %v7859_v43  ;;  %v7864_v1 = vld [vmem:[%s8024_s25 + $0x68] sm:$0xff]   ;;  %v7903_v55 = vld [vmem:[%s8024_s25 + $0x140] sm:$0xff]  }
 0x166   : > { %6855 = vmatmul.mubr.msk.bf16.gmra.mrb[56].mxu1 %vm578_vm2, %v8160_v3  ;;  %7141 = vmatmul.mubr.msk.bf16.vlgmr.msra.gmra.mrb[0].mxu0 %vm578_vm2, %v7860_v57  ;;  %v7865_v3 = vld [vmem:[%s8024_s25 + $0x70] sm:$0xff]   ;;  %v7904_v57 = vld [vmem:[%s8024_s25 + $0x160] sm:$0xff]  }
 0x167   : > { %6858 = vmatprep.mubr.msk.bf16.mxu1 %vm578_vm2, %v8164_v5  ;;  %7144 = vmatprep.mubr.msk.bf16.mxu0 %vm578_vm2, %v7861_v59  ;;  %v7866_v5 = vld [vmem:[%s8024_s25 + $0x78] sm:$0xff]  }
 0x16e   : > { %6859 = vmatmul.mubr.msk.bf16.gmra.mrb[60].mxu1 %vm578_vm2, %v8174_v8  ;;  %7145 = vmatmul.mubr.msk.bf16.gmra.mrb[4].mxu0 %vm578_vm2, %v7862_v61  ;;  %v7867_v8 = vld [vmem:[%s8024_s25 + $0x80] sm:$0xff]  }
 0x16f   : > { %6862 = vmatprep.mubr.msk.bf16.mxu1 %vm578_vm2, %v8178_v10  ;;  %7148 = vmatprep.mubr.msk.bf16.mxu0 %vm578_vm2, %v7863_v63  ;;  %v7868_v10 = vld [vmem:[%s8024_s25 + $0x88] sm:$0xff]  }
 0x170   : > { %v7905_v63 = vld [vmem:[%s8024_s25 + $0x148] sm:$0xff]  }
 0x176   : > { %6863 = vmatmul.mubr.msk.bf16.gmra.mrb[64].mxu1 %vm578_vm2, %v8189_v12  ;;  %7149 = vmatmul.mubr.msk.bf16.gmra.mrb[8].mxu0 %vm578_vm2, %v7864_v1  ;;  %v7869_v12 = vld [vmem:[%s8024_s25 + $0x90] sm:$0xff]  }
 0x177   : > { %6866 = vmatprep.mubr.msk.bf16.mxu1 %vm578_vm2, %v8193_v14  ;;  %7152 = vmatprep.mubr.msk.bf16.mxu0 %vm578_vm2, %v7865_v3  ;;  %v7870_v14 = vld [vmem:[%s8024_s25 + $0x98] sm:$0xff]   ;;  %v7906_v3 = vld [vmem:[%s8024_s25 + $0x168] sm:$0xff]  }
 0x17e   : > { %6867 = vmatmul.mubr.msk.bf16.gmra.mrb[68].mxu1 %vm578_vm2, %v8203_v16  ;;  %7153 = vmatmul.mubr.msk.bf16.gmra.mrb[12].mxu0 %vm578_vm2, %v7866_v5  ;;  %v7871_v16 = vld [vmem:[%s8024_s25 + $0xa0] sm:$0xff]   ;;  %v7907_v5 = vld [vmem:[%s8024_s25 + $0x150] sm:$0xff]  }
 0x17f   : > { %6870 = vmatprep.mubr.msk.bf16.mxu1 %vm578_vm2, %v8207_v18  ;;  %7156 = vmatprep.mubr.msk.bf16.mxu0 %vm578_vm2, %v7867_v8  ;;  %v7872_v18 = vld [vmem:[%s8024_s25 + $0xa8] sm:$0xff]  }
 0x186   : > { %6871 = vmatmul.mubr.msk.bf16.gmra.mrb[72].mxu1 %vm578_vm2, %v8217_v20  ;;  %7157 = vmatmul.mubr.msk.bf16.gmra.mrb[16].mxu0 %vm578_vm2, %v7868_v10  ;;  %v7873_v20 = vld [vmem:[%s8024_s25 + $0xb0] sm:$0xff]  }
 0x187   : > { %6874 = vmatprep.mubr.msk.bf16.mxu1 %vm578_vm2, %v8221_v22  ;;  %7160 = vmatprep.mubr.msk.bf16.mxu0 %vm578_vm2, %v7869_v12  ;;  %v7874_v22 = vld [vmem:[%s8024_s25 + $0xb8] sm:$0xff]   ;;  %v7908_v10 = vld [vmem:[%s8024_s25 + $0x170] sm:$0xff]  }
 0x18e   : > { %6875 = vmatmul.mubr.msk.bf16.gmra.mrb[76].mxu1 %vm578_vm2, %v8231_v24  ;;  %7161 = vmatmul.mubr.msk.bf16.gmra.mrb[20].mxu0 %vm578_vm2, %v7870_v14  ;;  %v7875_v24 = vld [vmem:[%s8024_s25 + $0xc0] sm:$0xff]  }
 0x18f   : > { %6878 = vmatprep.mubr.msk.bf16.mxu1 %vm578_vm2, %v8235_v26  ;;  %7164 = vmatprep.mubr.msk.bf16.mxu0 %vm578_vm2, %v7871_v16  ;;  %v7876_v26 = vld [vmem:[%s8024_s25 + $0xc8] sm:$0xff]   ;;  %v7909_v16 = vld [vmem:[%s8024_s25 + $0x158] sm:$0xff]  }
 0x196   : > { %6879 = vmatmul.mubr.msk.bf16.gmra.mrb[80].mxu1 %vm578_vm2, %v8245_v28  ;;  %7165 = vmatmul.mubr.msk.bf16.gmra.mrb[24].mxu0 %vm578_vm2, %v7872_v18  ;;  %v7877_v28 = vld [vmem:[%s8024_s25 + $0xd0] sm:$0xff]  }
 0x197   : > { %6882 = vmatprep.mubr.msk.bf16.mxu1 %vm578_vm2, %v8249_v30  ;;  %7168 = vmatprep.mubr.msk.bf16.mxu0 %vm578_vm2, %v7873_v20  ;;  %v7878_v30 = vld [vmem:[%s8024_s25 + $0xd8] sm:$0xff]  }
 0x198   : > { %v7910_v20 = vld [vmem:[%s8024_s25 + $0x178] sm:$0xff]  }
 0x19e   : > { %6883 = vmatmul.mubr.msk.bf16.gmra.mrb[84].mxu1 %vm578_vm2, %v8259_v32  ;;  %7169 = vmatmul.mubr.msk.bf16.gmra.mrb[28].mxu0 %vm578_vm2, %v7874_v22  ;;  %v7879_v32 = vld [vmem:[%s8024_s25 + $0xe0] sm:$0xff]  }
 0x19f   : > { %6886 = vmatprep.mubr.msk.bf16.mxu1 %vm578_vm2, %v8263_v34  ;;  %7172 = vmatprep.mubr.msk.bf16.mxu0 %vm578_vm2, %v7875_v24  ;;  %v7880_v34 = vld [vmem:[%s8024_s25 + $0xe8] sm:$0xff]   ;;  %v7911_v22 = vld [vmem:[%s8024_s25 + $0x160] sm:$0xff]  }
 0x1a6   : > { %6887 = vmatmul.mubr.msk.bf16.gmra.mrb[88].mxu1 %vm578_vm2, %v8273_v36  ;;  %7173 = vmatmul.mubr.msk.bf16.gmra.mrb[32].mxu0 %vm578_vm2, %v7876_v26  ;;  %v7881_v36 = vld [vmem:[%s8024_s25 + $0xf0] sm:$0xff]   ;;  %v7912_v26 = vld [vmem:[%s8024_s25 + $0x180] sm:$0xff]  }
 0x1a7   : > { %6890 = vmatprep.mubr.msk.bf16.mxu1 %vm578_vm2, %v8277_v38  ;;  %7176 = vmatprep.mubr.msk.bf16.mxu0 %vm578_vm2, %v7877_v28  ;;  %v7882_v38 = vld [vmem:[%s8024_s25 + $0xf8] sm:$0xff]  }
 0x1ae   : > { %6891 = vmatmul.mubr.msk.bf16.gmra.mrb[92].mxu1 %vm578_vm2, %v8287_v40  ;;  %7177 = vmatmul.mubr.msk.bf16.gmra.mrb[36].mxu0 %vm578_vm2, %v7878_v30  ;;  %v7883_v40 = vld [vmem:[%s8024_s25 + $0x100] sm:$0xff]  }
 0x1af   : > { %6894 = vmatprep.mubr.msk.bf16.mxu1 %vm578_vm2, %v8291_v42  ;;  %7180 = vmatprep.mubr.msk.bf16.mxu0 %vm578_vm2, %v7879_v32  ;;  %v7884_v42 = vld [vmem:[%s8024_s25 + $0x108] sm:$0xff]  }
 0x1b0   : > { %v7913_v32 = vld [vmem:[%s8024_s25 + $0x168] sm:$0xff]  }
 0x1b6   : > { %6895 = vmatmul.mubr.msk.bf16.gmra.mrb[96].mxu1 %vm578_vm2, %v8301_v44  ;;  %7181 = vmatmul.mubr.msk.bf16.gmra.mrb[40].mxu0 %vm578_vm2, %v7880_v34  ;;  %v7885_v44 = vld [vmem:[%s8024_s25 + $0x110] sm:$0xff]  }
 0x1b7   : > { %6898 = vmatprep.mubr.msk.bf16.mxu1 %vm578_vm2, %v8305_v46  ;;  %7184 = vmatprep.mubr.msk.bf16.mxu0 %vm578_vm2, %v7881_v36  ;;  %v7914_v36 = vld [vmem:[%s8024_s25 + $0x188] sm:$0xff]  }
 0x1be   : > { %6899 = vmatmul.mubr.msk.bf16.gmra.mrb[100].mxu1 %vm578_vm2, %v8315_v48  ;;  %7185 = vmatmul.mubr.msk.bf16.gmra.mrb[44].mxu0 %vm578_vm2, %v7882_v38  ;;  %v7915_v38 = vld [vmem:[%s8024_s25 + $0x170] sm:$0xff]  }
 0x1bf   : > { %6902 = vmatprep.mubr.msk.bf16.mxu1 %vm578_vm2, %v8319_v50  ;;  %7188 = vmatprep.mubr.msk.bf16.mxu0 %vm578_vm2, %v7883_v40 }
 0x1c6   : > { %6903 = vmatmul.mubr.msk.bf16.gmra.mrb[104].mxu1 %vm578_vm2, %v8329_v52  ;;  %7189 = vmatmul.mubr.msk.bf16.gmra.mrb[48].mxu0 %vm578_vm2, %v7884_v42  ;;  %v7916_v42 = vld [vmem:[%s8024_s25 + $0x190] sm:$0xff]  }
 0x1c7   : > { %6906 = vmatprep.mubr.msk.bf16.mxu1 %vm578_vm2, %v8333_v54  ;;  %7192 = vmatprep.mubr.msk.bf16.mxu0 %vm578_vm2, %v7885_v44 }
 0x1c9   : > { %v8578_v46 = vpop.f32.mrb[0].mxu1 }
 0x1ca   : > { %v8580_v48 = vpop.f32.mrb[1].mxu1 }
 0x1cb   : > { %v8582_v50 = vpop.f32.mrb[2].mxu1 }
 0x1cc   : > { %v8586_v52 = vpop.f32.mrb[3].mxu1 }
 0x1ce   : > { %6907 = vmatmul.mubr.msk.bf16.gmra.mrb[108].mxu1 %vm578_vm2, %v8343_v58  ;;  %7193 = vmatmul.mubr.msk.bf16.gmra.mrb[52].mxu0 %vm578_vm2, %v7886_v45 }
 0x1cf   : > { %6968 = vmatprep.mubr.msk.bf16.mxu1 %vm578_vm2, %v7887_v47  ;;  %7196 = vmatprep.mubr.msk.bf16.mxu0 %vm578_vm2, %v7888_v49  ;;  %v7917_v47 = vld [vmem:[%s8024_s25 + $0x178] sm:$0xff]  }
 0x1d1   : > { %v8594_v54 = vpop.f32.mrb[4].mxu1 }
 0x1d2   : > { %v8596_v51 = vpop.f32.mrb[5].mxu1 }
 0x1d3   : > { %v8599_v56 = vpop.f32.mrb[6].mxu1 }
 0x1d4   : > { %v8603_v58 = vpop.f32.mrb[7].mxu1 }
 0x1d6   : > { %6969 = vmatmul.mubr.msk.bf16.vlgmr.msra.gmra.mrb[56].mxu1 %vm578_vm2, %v7889_v53  ;;  %7197 = vmatmul.mubr.msk.bf16.gmra.mrb[56].mxu0 %vm578_vm2, %v7890_v60  ;;  %v7918_v53 = vld [vmem:[%s8024_s25 + $0x198] sm:$0xff]   ;;  %v7919_v60 = vld [vmem:[%s8024_s25 + $0x180] sm:$0xff]  }
 0x1d7   : > { %6972 = vmatprep.mubr.msk.bf16.mxu1 %vm578_vm2, %v7891_v62  ;;  %7200 = vmatprep.mubr.msk.bf16.mxu0 %vm578_vm2, %v7892_v0  ;;  %v7920_v0 = vld [vmem:[%s8024_s25 + $0x1a0] sm:$0xff]  }
 0x1d9   : > { %v8610_v2 = vpop.f32.mrb[8].mxu1 }
 0x1da   : > { %v8612_v4 = vpop.f32.mrb[9].mxu1 }
 0x1db   : > { %v8615_v9 = vpop.f32.mrb[10].mxu1 }
 0x1dc   : > { %v8619_v15 = vpop.f32.mrb[11].mxu1 }
 0x1de   : > { %6973 = vmatmul.mubr.msk.bf16.gmra.mrb[60].mxu1 %vm578_vm2, %v7893_v6  ;;  %7201 = vmatmul.mubr.msk.bf16.gmra.mrb[60].mxu0 %vm578_vm2, %v7894_v11 }
 0x1df   : > { %6976 = vmatprep.mubr.msk.bf16.mxu1 %vm578_vm2, %v7895_v13  ;;  %7204 = vmatprep.mubr.msk.bf16.mxu0 %vm578_vm2, %v7896_v17  ;;  %v7921_v13 = vld [vmem:[%s8024_s25 + $0x188] sm:$0xff]  }
 0x1e1   : > { %v8626_v19 = vpop.f32.mrb[12].mxu1 }
 0x1e2   : > { %v8628_v21 = vpop.f32.mrb[13].mxu1 }
 0x1e3   : > { %v8631_v25 = vpop.f32.mrb[14].mxu1 }
 0x1e4   : > { %v8635_v29 = vpop.f32.mrb[15].mxu1 }
 0x1e6   : > { %6977 = vmatmul.mubr.msk.bf16.gmra.mrb[64].mxu1 %vm578_vm2, %v7897_v23  ;;  %7205 = vmatmul.mubr.msk.bf16.gmra.mrb[64].mxu0 %vm578_vm2, %v7898_v7  ;;  %v7922_v23 = vld [vmem:[%s8024_s25 + $0x1a8] sm:$0xff]   ;;  %v7923_v7 = vld [vmem:[%s8024_s25 + $0x190] sm:$0xff]  }
 0x1e7   : > { %6980 = vmatprep.mubr.msk.bf16.mxu1 %vm578_vm2, %v7899_v27  ;;  %7208 = vmatprep.mubr.msk.bf16.mxu0 %vm578_vm2, %v7900_v31  ;;  %v7924_v31 = vld [vmem:[%s8024_s25 + $0x1b0] sm:$0xff]  }
 0x1e9   : > { %v8642_v33 = vpop.f32.mrb[16].mxu1 }
 0x1ea   : > { %v8644_v35 = vpop.f32.mrb[17].mxu1 }
 0x1eb   : > { %v8647_v39 = vpop.f32.mrb[18].mxu1 }
 0x1ec   : > { %v8651_v43 = vpop.f32.mrb[19].mxu1 }
 0x1ee   : > { %6981 = vmatmul.mubr.msk.bf16.gmra.mrb[68].mxu1 %vm578_vm2, %v7901_v37  ;;  %7209 = vmatmul.mubr.msk.bf16.gmra.mrb[68].mxu0 %vm578_vm2, %v7902_v41 }
 0x1ef   : > { %6984 = vmatprep.mubr.msk.bf16.mxu1 %vm578_vm2, %v7903_v55  ;;  %7212 = vmatprep.mubr.msk.bf16.mxu0 %vm578_vm2, %v7904_v57  ;;  %v7925_v55 = vld [vmem:[%s8024_s25 + $0x198] sm:$0xff]  }
 0x1f1   : > { %v8658_v59 = vpop.f32.mrb[20].mxu1 }
 0x1f2   : > { %v8660_v61 = vpop.f32.mrb[21].mxu1 }
 0x1f3   : > { %v8663_v1 = vpop.f32.mrb[22].mxu1 }
 0x1f4   : > { %v8667_v8 = vpop.f32.mrb[23].mxu1 }
 0x1f6   : > { %6985 = vmatmul.mubr.msk.bf16.gmra.mrb[72].mxu1 %vm578_vm2, %v7905_v63  ;;  %7213 = vmatmul.mubr.msk.bf16.gmra.mrb[72].mxu0 %vm578_vm2, %v7906_v3  ;;  %v7926_v63 = vld [vmem:[%s8024_s25 + $0x1b8] sm:$0xff]   ;;  %v7927_v3 = vld [vmem:[%s8024_s25 + $0x1a0] sm:$0xff]  }
 0x1f7   : > { %6988 = vmatprep.mubr.msk.bf16.mxu1 %vm578_vm2, %v7907_v5  ;;  %7216 = vmatprep.mubr.msk.bf16.mxu0 %vm578_vm2, %v7908_v10  ;;  %v7928_v10 = vld [vmem:[%s8024_s25 + $0x1c0] sm:$0xff]  }
 0x1f9   : > { %v8674_v12 = vpop.f32.mrb[24].mxu1 }
 0x1fa   : > { %v8676_v14 = vpop.f32.mrb[25].mxu1 }
 0x1fb   : > { %v8679_v18 = vpop.f32.mrb[26].mxu1 }
 0x1fc   : > { %v8683_v24 = vpop.f32.mrb[27].mxu1 }
 0x1fe   : > { %6989 = vmatmul.mubr.msk.bf16.gmra.mrb[76].mxu1 %vm578_vm2, %v7909_v16  ;;  %7217 = vmatmul.mubr.msk.bf16.gmra.mrb[76].mxu0 %vm578_vm2, %v7910_v20 }
 0x1ff   : > { %6992 = vmatprep.mubr.msk.bf16.mxu1 %vm578_vm2, %v7911_v22  ;;  %7220 = vmatprep.mubr.msk.bf16.mxu0 %vm578_vm2, %v7912_v26  ;;  %v7929_v22 = vld [vmem:[%s8024_s25 + $0x1a8] sm:$0xff]  }
 0x201   : > { %v8690_v28 = vpop.f32.mrb[28].mxu1 }
 0x202   : > { %v8692_v30 = vpop.f32.mrb[29].mxu1 }
 0x203   : > { %v8695_v34 = vpop.f32.mrb[30].mxu1 }
 0x204   : > { %v8699_v40 = vpop.f32.mrb[31].mxu1 }
 0x206   : > { %6993 = vmatmul.mubr.msk.bf16.gmra.mrb[80].mxu1 %vm578_vm2, %v7913_v32  ;;  %7221 = vmatmul.mubr.msk.bf16.gmra.mrb[80].mxu0 %vm578_vm2, %v7914_v36  ;;  %v7930_v32 = vld [vmem:[%s8024_s25 + $0x1c8] sm:$0xff]   ;;  %v7931_v36 = vld [vmem:[%s8024_s25 + $0x1b0] sm:$0xff]  }
 0x207   : > { %6996 = vmatprep.mubr.msk.bf16.mxu1 %vm578_vm2, %v7915_v38  ;;  %7224 = vmatprep.mubr.msk.bf16.mxu0 %vm578_vm2, %v7916_v42  ;;  %v7932_v42 = vld [vmem:[%s8024_s25 + $0x1d0] sm:$0xff]  }
 0x209   : > { %v8706_v44 = vpop.f32.mrb[32].mxu1 }
 0x20a   : > { %v8708_v45 = vpop.f32.mrb[33].mxu1 }
 0x20b   : > { %v8711_v49 = vpop.f32.mrb[34].mxu1 }
 0x20c   : > { %v8715_v62 = vpop.f32.mrb[35].mxu1 }
 0x20e   : > { %6997 = vmatmul.mubr.msk.bf16.gmra.mrb[84].mxu1 %vm578_vm2, %v7917_v47  ;;  %7225 = vmatmul.mubr.msk.bf16.gmra.mrb[84].mxu0 %vm578_vm2, %v7918_v53 }
 0x20f   : > { %7000 = vmatprep.mubr.msk.bf16.mxu1 %vm578_vm2, %v7919_v60  ;;  %7228 = vmatprep.mubr.msk.bf16.mxu0 %vm578_vm2, %v7920_v0  ;;  %v7933_v60 = vld [vmem:[%s8024_s25 + $0x1b8] sm:$0xff]  }
 0x211   : > { %v8722_v6 = vpop.f32.mrb[36].mxu1 }
 0x212   : > { %v8724_v11 = vpop.f32.mrb[37].mxu1 }
 0x213   : > { %v8727_v17 = vpop.f32.mrb[38].mxu1 }
 0x214   : > { %v8731_v27 = vpop.f32.mrb[39].mxu1 }
 0x216   : > { %7001 = vmatmul.mubr.msk.bf16.gmra.mrb[88].mxu1 %vm578_vm2, %v7921_v13  ;;  %7229 = vmatmul.mubr.msk.bf16.gmra.mrb[88].mxu0 %vm578_vm2, %v7922_v23  ;;  %v7934_v13 = vld [vmem:[%s8024_s25 + $0x1d8] sm:$0xff]   ;;  %v7935_v23 = vld [vmem:[%s8024_s25 + $0x1c0] sm:$0xff]  }
 0x217   : > { %7004 = vmatprep.mubr.msk.bf16.mxu1 %vm578_vm2, %v7923_v7  ;;  %7232 = vmatprep.mubr.msk.bf16.mxu0 %vm578_vm2, %v7924_v31  ;;  %v7936_v31 = vld [vmem:[%s8024_s25 + $0x1e0] sm:$0xff]  }
 0x219   : > { %v8738_v37 = vpop.f32.mrb[40].mxu1 }
 0x21a   : > { %v8740_v41 = vpop.f32.mrb[41].mxu1 }
 0x21b   : > { %v8743_v57 = vpop.f32.mrb[42].mxu1 }
 0x21c   : > { %v8747_v5 = vpop.f32.mrb[43].mxu1 }
 0x21e   : > { %7005 = vmatmul.mubr.msk.bf16.gmra.mrb[92].mxu1 %vm578_vm2, %v7925_v55  ;;  %7233 = vmatmul.mubr.msk.bf16.gmra.mrb[92].mxu0 %vm578_vm2, %v7926_v63 }
 0x21f   : > { %7008 = vmatprep.mubr.msk.bf16.mxu1 %vm578_vm2, %v7927_v3  ;;  %7236 = vmatprep.mubr.msk.bf16.mxu0 %vm578_vm2, %v7928_v10  ;;  %v7937_v3 = vld [vmem:[%s8024_s25 + $0x1c8] sm:$0xff]  }
 0x221   : > { %v8754_v16 = vpop.f32.mrb[44].mxu1 }
 0x222   : > { %v8756_v20 = vpop.f32.mrb[45].mxu1 }
 0x223   : > { %v8759_v26 = vpop.f32.mrb[46].mxu1 }
 0x224   : > { %v8763_v38 = vpop.f32.mrb[47].mxu1 }
 0x226   : > { %7009 = vmatmul.mubr.msk.bf16.gmra.mrb[96].mxu1 %vm578_vm2, %v7929_v22  ;;  %7237 = vmatmul.mubr.msk.bf16.gmra.mrb[96].mxu0 %vm578_vm2, %v7930_v32  ;;  %v7938_v22 = vld [vmem:[%s8024_s25 + $0x1e8] sm:$0xff]   ;;  %v7939_v32 = vld [vmem:[%s8024_s25 + $0x1d0] sm:$0xff]  }
 0x227   : > { %7012 = vmatprep.mubr.msk.bf16.mxu1 %vm578_vm2, %v7931_v36  ;;  %7240 = vmatprep.mubr.msk.bf16.mxu0 %vm578_vm2, %v7932_v42  ;;  %v7940_v42 = vld [vmem:[%s8024_s25 + $0x1f0] sm:$0xff]  }
 0x229   : > { %v8770_v47 = vpop.f32.mrb[48].mxu1 }
 0x22a   : > { %8969 = vst [vmem:[#allocation3_spill] sm:$0xff] %v8770_v47  ;;  %v8772_v53 = vpop.f32.mrb[49].mxu1 }
 0x22b   : > { %8970 = vst [vmem:[#allocation4_spill] sm:$0xff] %v8772_v53  ;;  %v8775_v0 = vpop.f32.mrb[50].mxu1 }
 0x22c   : > { %8971 = vst [vmem:[#allocation5_spill] sm:$0xff] %v8775_v0  ;;  %v8779_v7 = vpop.f32.mrb[51].mxu1 }
 0x22d   : > { %8972 = vst [vmem:[#allocation6_spill] sm:$0xff] %v8779_v7 }
 0x22e   : > { %7013 = vmatmul.mubr.msk.bf16.gmra.mrb[100].mxu1 %vm578_vm2, %v7933_v60  ;;  %7241 = vmatmul.mubr.msk.bf16.gmra.mrb[100].mxu0 %vm578_vm2, %v7934_v13  ;;  %v7941_v13 = vld [vmem:[%s8024_s25 + $0x1d8] sm:$0xff]  }
 0x22f   : > { %7016 = vmatprep.mubr.msk.bf16.mxu1 %vm578_vm2, %v7935_v23  ;;  %7244 = vmatprep.mubr.msk.bf16.mxu0 %vm578_vm2, %v7936_v31 }
 0x231   : > { %v8786_v55 = vpop.f32.mrb[52].mxu1 }
 0x232   : > { %8973 = vst [vmem:[#allocation7_spill] sm:$0xff] %v8786_v55  ;;  %v8788_v63 = vpop.f32.mrb[53].mxu1 }
 0x233   : > { %8974 = vst [vmem:[#allocation8_spill] sm:$0xff] %v8788_v63  ;;  %v8791_v10 = vpop.f32.mrb[54].mxu1  ;;  %v7942_v63 = vld [vmem:[%s8024_s25 + $0x1f8] sm:$0xff]  }
 0x234   : > { %8975 = vst [vmem:[#allocation9_spill] sm:$0xff] %v8791_v10  ;;  %v8795_v36 = vpop.f32.mrb[55].mxu1 }
 0x235   : > { %8976 = vst [vmem:[#allocation10_spill] sm:$0xff] %v8795_v36 }
 0x236   : > { %7017 = vmatmul.mubr.msk.bf16.gmra.mrb[104].mxu1 %vm578_vm2, %v7937_v3  ;;  %7245 = vmatmul.mubr.msk.bf16.gmra.mrb[104].mxu0 %vm578_vm2, %v7938_v22 }
 0x237   : > { %7020 = vmatprep.mubr.msk.bf16.mxu1 %vm578_vm2, %v7939_v32  ;;  %7248 = vmatprep.mubr.msk.bf16.mxu0 %vm578_vm2, %v7940_v42 }
 0x239   : > { %v7142_v60 = vpop.f32.mrb[0].mxu0 }
 0x23a   : > { %v7254_v23 = vadd.f32 %v7142_v60, %v8578_v46  ;;  %v4673_v31 = vpop.f32.mrb[1].mxu0  ;;  %v8814_v46 = vld [vmem:[%s8967_s2] ss:$0 sm:$0xff] }
 0x23b   : > { %v7255_v10 = vadd.f32 %v4673_v31, %v8580_v48  ;;  %v7143_v55 = vpop.f32.mrb[2].mxu0 }
 0x23c   : > { %v7256_v36 = vadd.f32 %v7143_v55, %v8582_v50  ;;  %v4676_v7 = vpop.f32.mrb[3].mxu0 }
 0x23d   : > { %v7257_v3 = vadd.f32 %v4676_v7, %v8586_v52 }
 0x23e   : > { %7021 = vmatmul.mubr.msk.bf16.gmra.mrb[108].mxu1 %vm578_vm2, %v7941_v13  ;;  %7249 = vmatmul.mubr.msk.bf16.gmra.mrb[108].mxu0 %vm578_vm2, %v7942_v63 }
 0x241   : > { %v7146_v22 = vpop.f32.mrb[4].mxu0 }
 0x242   : > { %v7258_v32 = vadd.f32 %v7146_v22, %v8594_v54  ;;  %v4689_v42 = vpop.f32.mrb[5].mxu0 }
 0x243   : > { %v7259_v48 = vadd.f32 %v4689_v42, %v8596_v51  ;;  %v7147_v60 = vpop.f32.mrb[6].mxu0 }
 0x244   : > { %v5235_v50 = vmax.f32 %v7254_v23, %v7258_v32  ;;  %v7260_v55 = vadd.f32 %v7147_v60, %v8599_v56  ;;  %v4692_v52 = vpop.f32.mrb[7].mxu0 }
 0x245   : > { %v5233_v7 = vmax.f32 %v7255_v10, %v7259_v48  ;;  %v7261_v13 = vadd.f32 %v4692_v52, %v8603_v58 }
 0x246   : > { %v5245_v63 = vadd.f32 %v8814_v46, %v5235_v50  ;;  %v5236_v31 = vmax.f32 %v7256_v36, %v7260_v55 }
 0x247   : > { %v5243_v54 = vadd.f32 %v8814_v46, %v5233_v7  ;;  %v5234_v22 = vmax.f32 %v7257_v3, %v7261_v13 }
 0x248   : > { %v5249_v0 = vmax.f32 %v5245_v63, 0.0  ;;  %v5246_v53 = vadd.f32 %v8814_v46, %v5236_v31 }
 0x249   : > { %v5247_v47 = vmax.f32 %v5243_v54, 0.0  ;;  %v5244_v51 = vadd.f32 %v8814_v46, %v5234_v22  ;;  %v7150_v23 = vpop.f32.mrb[8].mxu0 }
 0x24a   : > { %5253 = vst [vmem:[#allocation2 + $0x10] sm:$0xff] %v5249_v0  ;;  %v5250_v56 = vmax.f32 %v5246_v53, 0.0  ;;  %v7262_v10 = vadd.f32 %v7150_v23, %v8610_v2  ;;  %v4705_v32 = vpop.f32.mrb[9].mxu0 }
 0x24b   : > { %5251 = vst [vmem:[#allocation2] sm:$0xff] %v5247_v47  ;;  %v5248_v58 = vmax.f32 %v5244_v51, 0.0  ;;  %v7263_v36 = vadd.f32 %v4705_v32, %v8612_v4  ;;  %v7151_v42 = vpop.f32.mrb[10].mxu0 }
 0x24c   : > { %5254 = vst [vmem:[#allocation2 + $0x18] sm:$0xff] %v5250_v56  ;;  %v7264_v3 = vadd.f32 %v7151_v42, %v8615_v9  ;;  %v4708_v48 = vpop.f32.mrb[11].mxu0 }
 0x24d   : > { %5252 = vst [vmem:[#allocation2 + $0x8] sm:$0xff] %v5248_v58  ;;  %v7265_v60 = vadd.f32 %v4708_v48, %v8619_v15 }
 0x251   : > { %v7154_v50 = vpop.f32.mrb[12].mxu0 }
 0x252   : > { %v7266_v0 = vadd.f32 %v7154_v50, %v8626_v19  ;;  %v4721_v53 = vpop.f32.mrb[13].mxu0 }
 0x253   : > { %v5478_v55 = vld [vmem:[#allocation2 + $0x10] ss:$2 sm:$0x3f]  ;;  %v5534_v2 = vld [vmem:[#allocation2 + $0x11] ss:$2 sm:$0x3f]  ;;  %v7267_v47 = vadd.f32 %v4721_v53, %v8628_v21 }
 0x254   : > { %v5588_v52 = vmax.f32 %v5478_v55, %v5534_v2  ;;  %v5476_v7 = vld [vmem:[#allocation2] ss:$2 sm:$0xff]  ;;  %v5532_v4 = vld [vmem:[#allocation2 + $0x1] ss:$2 sm:$0xff]  ;;  %v5257_v13 = vmax.f32 %v7262_v10, %v7266_v0  ;;  %v7155_v63 = vpop.f32.mrb[14].mxu0 }
 0x255   : > { %v5587_v9 = vmax.f32 %v5476_v7, %v5532_v4  ;;  %v5255_v15 = vmax.f32 %v7263_v36, %v7267_v47  ;;  %v7268_v19 = vadd.f32 %v7155_v63, %v8631_v25  ;;  %v4724_v31 = vpop.f32.mrb[15].mxu0 }
 0x256   : > { %v6370_v54 = vpack.c.bf16 %v5588_v52, %v5588_v52  ;;  %v5261_v21 = vadd.f32 %v8814_v46, %v5257_v13  ;;  %v7269_v22 = vadd.f32 %v4724_v31, %v8635_v29 }
 0x257   : > { %v6369_v51 = vpack.c.bf16 %v5587_v9, %v5587_v9  ;;  %v5259_v23 = vadd.f32 %v8814_v46, %v5255_v15  ;;  %v5258_v56 = vmax.f32 %v7264_v3, %v7268_v19 }
 0x258   : > { %5728 = vst [vmem:[%s8833_s6 + $0x4] sm:$0x7] %v6370_v54  ;;  %v5265_v10 = vmax.f32 %v5261_v21, 0.0  ;;  %v5256_v32 = vmax.f32 %v7265_v60, %v7269_v22 }
 0x259   : > { %5727 = vst [vmem:[%s8833_s6] sm:$0xf] %v6369_v51  ;;  %v5263_v58 = vmax.f32 %v5259_v23, 0.0  ;;  %v5262_v42 = vadd.f32 %v8814_v46, %v5258_v56  ;;  %v7158_v36 = vpop.f32.mrb[16].mxu0 }
 0x25a   : > { %5270 = vst [vmem:[#allocation2 + $0x30] sm:$0xff] %v5265_v10  ;;  %v5260_v25 = vadd.f32 %v8814_v46, %v5256_v32  ;;  %v7270_v48 = vadd.f32 %v7158_v36, %v8642_v33  ;;  %v4737_v50 = vpop.f32.mrb[17].mxu0 }
 0x25b   : > { %5268 = vst [vmem:[#allocation2 + $0x20] sm:$0xff] %v5263_v58  ;;  %v5266_v29 = vmax.f32 %v5262_v42, 0.0  ;;  %v7271_v0 = vadd.f32 %v4737_v50, %v8644_v35  ;;  %v7159_v53 = vpop.f32.mrb[18].mxu0 }
 0x25c   : > { %v5264_v3 = vmax.f32 %v5260_v25, 0.0  ;;  %v7272_v55 = vadd.f32 %v7159_v53, %v8647_v39  ;;  %v4740_v60 = vpop.f32.mrb[19].mxu0 }
 0x25d   : > { %5271 = vst [vmem:[#allocation2 + $0x38] sm:$0xff] %v5266_v29  ;;  %v7273_v2 = vadd.f32 %v4740_v60, %v8651_v43 }
 0x25e   : > { %5269 = vst [vmem:[#allocation2 + $0x28] sm:$0xff] %v5264_v3 }
 0x261   : > { %v7162_v47 = vpop.f32.mrb[20].mxu0 }
 0x262   : > { %v7274_v52 = vadd.f32 %v7162_v47, %v8658_v59  ;;  %v4753_v7 = vpop.f32.mrb[21].mxu0 }
 0x263   : > { %v7275_v33 = vadd.f32 %v4753_v7, %v8660_v61  ;;  %v7163_v4 = vpop.f32.mrb[22].mxu0 }
 0x264   : > { %v5482_v13 = vld [vmem:[#allocation2 + $0x30] ss:$2 sm:$0x3f]  ;;  %v5538_v63 = vld [vmem:[#allocation2 + $0x31] ss:$2 sm:$0x3f]  ;;  %v5274_v9 = vmax.f32 %v7270_v48, %v7274_v52  ;;  %v7276_v35 = vadd.f32 %v7163_v4, %v8663_v1 }
 0x265   : > { %v5590_v15 = vmax.f32 %v5482_v13, %v5538_v63  ;;  %v5480_v39 = vld [vmem:[#allocation2 + $0x20] ss:$2 sm:$0xff]  ;;  %v5536_v19 = vld [vmem:[#allocation2 + $0x21] ss:$2 sm:$0xff]  ;;  %v5272_v31 = vmax.f32 %v7271_v0, %v7275_v33  ;;  %v4756_v43 = vpop.f32.mrb[23].mxu0 }
 0x266   : > { %v5589_v54 = vmax.f32 %v5480_v39, %v5536_v19  ;;  %v5278_v21 = vadd.f32 %v8814_v46, %v5274_v9  ;;  %v5275_v59 = vmax.f32 %v7272_v55, %v7276_v35  ;;  %v7277_v22 = vadd.f32 %v4756_v43, %v8667_v8 }
 0x267   : > { %v6372_v61 = vpack.c.bf16 %v5590_v15, %v5590_v15  ;;  %v5276_v51 = vadd.f32 %v8814_v46, %v5272_v31 }
 0x268   : > { %v6371_v23 = vpack.c.bf16 %v5589_v54, %v5589_v54  ;;  %v5282_v56 = vmax.f32 %v5278_v21, 0.0  ;;  %v5279_v1 = vadd.f32 %v8814_v46, %v5275_v59  ;;  %v5273_v10 = vmax.f32 %v7273_v2, %v7277_v22 }
 0x269   : > { %5730 = vst [vmem:[%s8833_s6 + $0xc] sm:$0x7] %v6372_v61  ;;  %v5280_v32 = vmax.f32 %v5276_v51, 0.0  ;;  %v7166_v58 = vpop.f32.mrb[24].mxu0 }
 0x26a   : > { %5729 = vst [vmem:[%s8833_s6 + $0x8] sm:$0xf] %v6371_v23  ;;  %5287 = vst [vmem:[#allocation2 + $0x50] sm:$0xff] %v5282_v56  ;;  %v5283_v42 = vmax.f32 %v5279_v1, 0.0  ;;  %v5277_v36 = vadd.f32 %v8814_v46, %v5273_v10  ;;  %v7278_v25 = vadd.f32 %v7166_v58, %v8674_v12  ;;  %v4769_v48 = vpop.f32.mrb[25].mxu0 }
 0x26b   : > { %5285 = vst [vmem:[#allocation2 + $0x40] sm:$0xff] %v5280_v32  ;;  %v7279_v8 = vadd.f32 %v4769_v48, %v8676_v14  ;;  %v7167_v50 = vpop.f32.mrb[26].mxu0 }
 0x26c   : > { %5288 = vst [vmem:[#allocation2 + $0x58] sm:$0xff] %v5283_v42  ;;  %v5281_v29 = vmax.f32 %v5277_v36, 0.0  ;;  %v7280_v0 = vadd.f32 %v7167_v50, %v8679_v18  ;;  %v4772_v53 = vpop.f32.mrb[27].mxu0 }
 0x26d   : > { %v7281_v3 = vadd.f32 %v4772_v53, %v8683_v24 }
 0x26e   : > { %5286 = vst [vmem:[#allocation2 + $0x48] sm:$0xff] %v5281_v29 }
 0x271   : > { %v7170_v55 = vpop.f32.mrb[28].mxu0 }
 0x272   : > { %v7282_v60 = vadd.f32 %v7170_v55, %v8690_v28  ;;  %v4785_v2 = vpop.f32.mrb[29].mxu0 }
 0x273   : > { %v5486_v47 = vld [vmem:[#allocation2 + $0x50] ss:$2 sm:$0x3f]  ;;  %v5542_v52 = vld [vmem:[#allocation2 + $0x51] ss:$2 sm:$0x3f]  ;;  %v7283_v12 = vadd.f32 %v4785_v2, %v8692_v30 }
 0x274   : > { %v5592_v7 = vmax.f32 %v5486_v47, %v5542_v52  ;;  %v5291_v14 = vmax.f32 %v7278_v25, %v7282_v60  ;;  %v7171_v33 = vpop.f32.mrb[30].mxu0 }
 0x275   : > { %v5484_v4 = vld [vmem:[#allocation2 + $0x40] ss:$2 sm:$0xff]  ;;  %v5540_v13 = vld [vmem:[#allocation2 + $0x41] ss:$2 sm:$0xff]  ;;  %v5289_v63 = vmax.f32 %v7279_v8, %v7283_v12  ;;  %v7284_v18 = vadd.f32 %v7171_v33, %v8695_v34  ;;  %v4788_v24 = vpop.f32.mrb[31].mxu0 }
 0x276   : > { %v6374_v9 = vpack.c.bf16 %v5592_v7, %v5592_v7  ;;  %v5591_v35 = vmax.f32 %v5484_v4, %v5540_v13  ;;  %v5295_v28 = vadd.f32 %v8814_v46, %v5291_v14  ;;  %v7285_v15 = vadd.f32 %v4788_v24, %v8699_v40 }
 0x277   : > { %v5293_v39 = vadd.f32 %v8814_v46, %v5289_v63  ;;  %v5292_v19 = vmax.f32 %v7280_v0, %v7284_v18 }
 0x278   : > { %5732 = vst [vmem:[%s8833_s6 + $0x14] sm:$0x7] %v6374_v9  ;;  %v6373_v30 = vpack.c.bf16 %v5591_v35, %v5591_v35  ;;  %v5299_v31 = vmax.f32 %v5295_v28, 0.0  ;;  %v5290_v43 = vmax.f32 %v7281_v3, %v7285_v15 }
 0x279   : > { %v5297_v54 = vmax.f32 %v5293_v39, 0.0  ;;  %v5296_v21 = vadd.f32 %v8814_v46, %v5292_v19  ;;  %v7174_v59 = vpop.f32.mrb[32].mxu0 }
 0x27a   : > { %5731 = vst [vmem:[%s8833_s6 + $0x10] sm:$0xf] %v6373_v30  ;;  %5304 = vst [vmem:[#allocation2 + $0x70] sm:$0xff] %v5299_v31  ;;  %v5294_v34 = vadd.f32 %v8814_v46, %v5290_v43  ;;  %v7286_v22 = vadd.f32 %v7174_v59, %v8706_v44  ;;  %v4801_v61 = vpop.f32.mrb[33].mxu0 }
 0x27b   : > { %5302 = vst [vmem:[#allocation2 + $0x60] sm:$0xff] %v5297_v54  ;;  %v5300_v40 = vmax.f32 %v5296_v21, 0.0  ;;  %v7287_v51 = vadd.f32 %v4801_v61, %v8708_v45  ;;  %v7175_v23 = vpop.f32.mrb[34].mxu0 }
 0x27c   : > { %v5298_v56 = vmax.f32 %v5294_v34, 0.0  ;;  %v7288_v1 = vadd.f32 %v7175_v23, %v8711_v49  ;;  %v4804_v10 = vpop.f32.mrb[35].mxu0 }
 0x27d   : > { %5305 = vst [vmem:[#allocation2 + $0x78] sm:$0xff] %v5300_v40  ;;  %v7289_v32 = vadd.f32 %v4804_v10, %v8715_v62 }
 0x27e   : > { %5303 = vst [vmem:[#allocation2 + $0x68] sm:$0xff] %v5298_v56 }
 0x281   : > { %v7178_v58 = vpop.f32.mrb[36].mxu0 }
 0x282   : > { %v7290_v42 = vadd.f32 %v7178_v58, %v8722_v6  ;;  %v4817_v36 = vpop.f32.mrb[37].mxu0 }
 0x283   : > { %v7291_v44 = vadd.f32 %v4817_v36, %v8724_v11  ;;  %v7179_v25 = vpop.f32.mrb[38].mxu0 }
 0x284   : > { %v5490_v48 = vld [vmem:[#allocation2 + $0x70] ss:$2 sm:$0x3f]  ;;  %v5546_v8 = vld [vmem:[#allocation2 + $0x71] ss:$2 sm:$0x3f]  ;;  %v5308_v50 = vmax.f32 %v7286_v22, %v7290_v42  ;;  %v7292_v45 = vadd.f32 %v7179_v25, %v8727_v17 }
 0x285   : > { %v5594_v29 = vmax.f32 %v5490_v48, %v5546_v8  ;;  %v5488_v49 = vld [vmem:[#allocation2 + $0x60] ss:$2 sm:$0xff]  ;;  %v5544_v0 = vld [vmem:[#allocation2 + $0x61] ss:$2 sm:$0xff]  ;;  %v5306_v53 = vmax.f32 %v7287_v51, %v7291_v44  ;;  %v4820_v62 = vpop.f32.mrb[39].mxu0 }
 0x286   : > { %v5593_v3 = vmax.f32 %v5488_v49, %v5544_v0  ;;  %v5312_v55 = vadd.f32 %v8814_v46, %v5308_v50  ;;  %v5309_v6 = vmax.f32 %v7288_v1, %v7292_v45  ;;  %v7293_v60 = vadd.f32 %v4820_v62, %v8731_v27  ;;  %v8977_v42 = vld [vmem:[#allocation3_spill] sm:$0xff]  ;;  %v8978_v25 = vld [vmem:[#allocation4_spill] sm:$0xff]  ;;  %v8979_v45 = vld [vmem:[#allocation5_spill] sm:$0xff] }
 0x287   : > { %v6376_v11 = vpack.c.bf16 %v5594_v29, %v5594_v29  ;;  %v5310_v2 = vadd.f32 %v8814_v46, %v5306_v53  ;;  %v8980_v0 = vld [vmem:[#allocation6_spill] sm:$0xff] }
 0x288   : > { %v6375_v47 = vpack.c.bf16 %v5593_v3, %v5593_v3  ;;  %v5316_v52 = vmax.f32 %v5312_v55, 0.0  ;;  %v5313_v17 = vadd.f32 %v8814_v46, %v5309_v6  ;;  %v5307_v12 = vmax.f32 %v7289_v32, %v7293_v60  ;;  %v8981_v3 = vld [vmem:[#allocation7_spill] sm:$0xff]  ;;  %v8982_v60 = vld [vmem:[#allocation8_spill] sm:$0xff] }
 0x289   : > { %5734 = vst [vmem:[%s8833_s6 + $0x1c] sm:$0x7] %v6376_v11  ;;  %v5314_v7 = vmax.f32 %v5310_v2, 0.0  ;;  %v7182_v14 = vpop.f32.mrb[40].mxu0 }
 0x28a   : > { %5733 = vst [vmem:[%s8833_s6 + $0x18] sm:$0xf] %v6375_v47  ;;  %5321 = vst [vmem:[#allocation2 + $0x90] sm:$0xff] %v5316_v52  ;;  %v5317_v33 = vmax.f32 %v5313_v17, 0.0  ;;  %v5311_v4 = vadd.f32 %v8814_v46, %v5307_v12  ;;  %v7294_v13 = vadd.f32 %v7182_v14, %v8738_v37  ;;  %v4833_v63 = vpop.f32.mrb[41].mxu0  ;;  %v8983_v12 = vld [vmem:[#allocation9_spill] sm:$0xff] }
 0x28b   : > { %5319 = vst [vmem:[#allocation2 + $0x80] sm:$0xff] %v5314_v7  ;;  %v7295_v27 = vadd.f32 %v4833_v63, %v8740_v41  ;;  %v7183_v18 = vpop.f32.mrb[42].mxu0 }
 0x28c   : > { %5322 = vst [vmem:[#allocation2 + $0x98] sm:$0xff] %v5317_v33  ;;  %v5315_v24 = vmax.f32 %v5311_v4, 0.0  ;;  %v7296_v9 = vadd.f32 %v7183_v18, %v8743_v57  ;;  %v4836_v35 = vpop.f32.mrb[43].mxu0 }
 0x28d   : > { %v7297_v28 = vadd.f32 %v4836_v35, %v8747_v5 }
 0x28e   : > { %5320 = vst [vmem:[#allocation2 + $0x88] sm:$0xff] %v5315_v24 }
 0x291   : > { %v7186_v15 = vpop.f32.mrb[44].mxu0 }
 0x292   : > { %v7298_v39 = vadd.f32 %v7186_v15, %v8754_v16  ;;  %v4849_v19 = vpop.f32.mrb[45].mxu0 }
 0x293   : > { %v5494_v30 = vld [vmem:[#allocation2 + $0x90] ss:$2 sm:$0x3f]  ;;  %v5550_v31 = vld [vmem:[#allocation2 + $0x91] ss:$2 sm:$0x3f]  ;;  %v7299_v37 = vadd.f32 %v4849_v19, %v8756_v20 }
 0x294   : > { %v5596_v43 = vmax.f32 %v5494_v30, %v5550_v31  ;;  %v5325_v41 = vmax.f32 %v7294_v13, %v7298_v39  ;;  %v7187_v54 = vpop.f32.mrb[46].mxu0 }
 0x295   : > { %v5492_v21 = vld [vmem:[#allocation2 + $0x80] ss:$2 sm:$0xff]  ;;  %v5548_v59 = vld [vmem:[#allocation2 + $0x81] ss:$2 sm:$0xff]  ;;  %v5323_v34 = vmax.f32 %v7295_v27, %v7299_v37  ;;  %v7300_v57 = vadd.f32 %v7187_v54, %v8759_v26  ;;  %v4852_v5 = vpop.f32.mrb[47].mxu0 }
 0x296   : > { %v6378_v22 = vpack.c.bf16 %v5596_v43, %v5596_v43  ;;  %v5595_v61 = vmax.f32 %v5492_v21, %v5548_v59  ;;  %v5329_v16 = vadd.f32 %v8814_v46, %v5325_v41  ;;  %v7301_v40 = vadd.f32 %v4852_v5, %v8763_v38 }
 0x297   : > { %v5327_v51 = vadd.f32 %v8814_v46, %v5323_v34  ;;  %v5326_v23 = vmax.f32 %v7296_v9, %v7300_v57  ;;  %v8984_v9 = vld [vmem:[#allocation10_spill] sm:$0xff] }
 0x298   : > { %5736 = vst [vmem:[%s8833_s6 + $0x24] sm:$0x7] %v6378_v22  ;;  %v6377_v20 = vpack.c.bf16 %v5595_v61, %v5595_v61  ;;  %v5333_v56 = vmax.f32 %v5329_v16, 0.0  ;;  %v5324_v1 = vmax.f32 %v7297_v28, %v7301_v40 }
 0x299   : > { %v5331_v10 = vmax.f32 %v5327_v51, 0.0  ;;  %v5330_v32 = vadd.f32 %v8814_v46, %v5326_v23  ;;  %v7190_v58 = vpop.f32.mrb[48].mxu0 }
 0x29a   : > { %5735 = vst [vmem:[%s8833_s6 + $0x20] sm:$0xf] %v6377_v20  ;;  %5338 = vst [vmem:[#allocation2 + $0xb0] sm:$0xff] %v5333_v56  ;;  %v5328_v26 = vadd.f32 %v8814_v46, %v5324_v1  ;;  %v7302_v36 = vadd.f32 %v7190_v58, %v8977_v42  ;;  %v4865_v44 = vpop.f32.mrb[49].mxu0 }
 0x29b   : > { %5336 = vst [vmem:[#allocation2 + $0xa0] sm:$0xff] %v5331_v10  ;;  %v5334_v38 = vmax.f32 %v5330_v32, 0.0  ;;  %v7303_v48 = vadd.f32 %v4865_v44, %v8978_v25  ;;  %v7191_v8 = vpop.f32.mrb[50].mxu0 }
 0x29c   : > { %v5332_v50 = vmax.f32 %v5328_v26, 0.0  ;;  %v7304_v29 = vadd.f32 %v7191_v8, %v8979_v45  ;;  %v4868_v49 = vpop.f32.mrb[51].mxu0 }
 0x29d   : > { %5339 = vst [vmem:[#allocation2 + $0xb8] sm:$0xff] %v5334_v38  ;;  %v7305_v53 = vadd.f32 %v4868_v49, %v8980_v0 }
 0x29e   : > { %5337 = vst [vmem:[#allocation2 + $0xa8] sm:$0xff] %v5332_v50 }
 0x2a1   : > { %v7194_v62 = vpop.f32.mrb[52].mxu0 }
 0x2a2   : > { %v7306_v55 = vadd.f32 %v7194_v62, %v8981_v3  ;;  %v4881_v6 = vpop.f32.mrb[53].mxu0 }
 0x2a3   : > { %v7307_v11 = vadd.f32 %v4881_v6, %v8982_v60  ;;  %v7195_v2 = vpop.f32.mrb[54].mxu0 }
 0x2a4   : > { %v5498_v47 = vld [vmem:[#allocation2 + $0xb0] ss:$2 sm:$0x3f]  ;;  %v5554_v52 = vld [vmem:[#allocation2 + $0xb1] ss:$2 sm:$0x3f]  ;;  %v5342_v17 = vmax.f32 %v7302_v36, %v7306_v55  ;;  %v7308_v7 = vadd.f32 %v7195_v2, %v8983_v12 }
 0x2a5   : > { %v5598_v14 = vmax.f32 %v5498_v47, %v5554_v52  ;;  %v5496_v33 = vld [vmem:[#allocation2 + $0xa0] ss:$2 sm:$0xff]  ;;  %v5552_v4 = vld [vmem:[#allocation2 + $0xa1] ss:$2 sm:$0xff]  ;;  %v5340_v13 = vmax.f32 %v7303_v48, %v7307_v11  ;;  %v4884_v63 = vpop.f32.mrb[55].mxu0 }
 0x2a6   : > { %v5597_v27 = vmax.f32 %v5496_v33, %v5552_v4  ;;  %v5346_v18 = vadd.f32 %v8814_v46, %v5342_v17  ;;  %v5343_v24 = vmax.f32 %v7304_v29, %v7308_v7  ;;  %v7309_v35 = vadd.f32 %v4884_v63, %v8984_v9 }
 0x2a7   : > { %v6380_v28 = vpack.c.bf16 %v5598_v14, %v5598_v14  ;;  %v5344_v15 = vadd.f32 %v8814_v46, %v5340_v13 }
 0x2a8   : > { %v6379_v39 = vpack.c.bf16 %v5597_v27, %v5597_v27  ;;  %v5350_v19 = vmax.f32 %v5346_v18, 0.0  ;;  %v5347_v30 = vadd.f32 %v8814_v46, %v5343_v24  ;;  %v5341_v31 = vmax.f32 %v7305_v53, %v7309_v35 }
 0x2a9   : > { %v6970_v37 = vpop.f32.mrb[56].mxu1  ;;  %5738 = vst [vmem:[%s8833_s6 + $0x2c] sm:$0x7] %v6380_v28  ;;  %v5348_v43 = vmax.f32 %v5344_v15, 0.0  ;;  %v7198_v41 = vpop.f32.mrb[56].mxu0 }
 0x2aa   : > { %v2569_v54 = vpop.f32.mrb[57].mxu1  ;;  %5737 = vst [vmem:[%s8833_s6 + $0x28] sm:$0xf] %v6379_v39  ;;  %5355 = vst [vmem:[#allocation2 + $0xd0] sm:$0xff] %v5350_v19  ;;  %v5351_v21 = vmax.f32 %v5347_v30, 0.0  ;;  %v5345_v59 = vadd.f32 %v8814_v46, %v5341_v31  ;;  %v7310_v34 = vadd.f32 %v7198_v41, %v6970_v37  ;;  %v4897_v57 = vpop.f32.mrb[57].mxu0 }
 0x2ab   : > { %v6971_v5 = vpop.f32.mrb[58].mxu1  ;;  %5353 = vst [vmem:[#allocation2 + $0xc0] sm:$0xff] %v5348_v43  ;;  %v7311_v22 = vadd.f32 %v4897_v57, %v2569_v54  ;;  %v7199_v61 = vpop.f32.mrb[58].mxu0 }
 0x2ac   : > { %v2572_v16 = vpop.f32.mrb[59].mxu1  ;;  %5356 = vst [vmem:[#allocation2 + $0xd8] sm:$0xff] %v5351_v21  ;;  %v5349_v40 = vmax.f32 %v5345_v59, 0.0  ;;  %v7312_v51 = vadd.f32 %v7199_v61, %v6971_v5  ;;  %v4900_v23 = vpop.f32.mrb[59].mxu0 }
 0x2ad   : > { %v7313_v20 = vadd.f32 %v4900_v23, %v2572_v16 }
 0x2ae   : > { %5354 = vst [vmem:[#allocation2 + $0xc8] sm:$0xff] %v5349_v40 }
 0x2b1   : > { %v6974_v56 = vpop.f32.mrb[60].mxu1  ;;  %v7202_v1 = vpop.f32.mrb[60].mxu0 }
 0x2b2   : > { %v2585_v10 = vpop.f32.mrb[61].mxu1  ;;  %v7314_v32 = vadd.f32 %v7202_v1, %v6974_v56  ;;  %v4913_v58 = vpop.f32.mrb[61].mxu0 }
 0x2b3   : > { %v6975_v26 = vpop.f32.mrb[62].mxu1  ;;  %v5502_v42 = vld [vmem:[#allocation2 + $0xd0] ss:$2 sm:$0x3f]  ;;  %v7315_v44 = vadd.f32 %v4913_v58, %v2585_v10  ;;  %v7203_v48 = vpop.f32.mrb[62].mxu0 }
 0x2b4   : > { %v5558_v36 = vld [vmem:[#allocation2 + $0xd1] ss:$2 sm:$0x3f]  ;;  %v5359_v25 = vmax.f32 %v7310_v34, %v7314_v32  ;;  %v2588_v8 = vpop.f32.mrb[63].mxu1  ;;  %v7316_v49 = vadd.f32 %v7203_v48, %v6975_v26  ;;  %v4916_v0 = vpop.f32.mrb[63].mxu0 }
 0x2b5   : > { %v5600_v38 = vmax.f32 %v5502_v42, %v5558_v36  ;;  %v5500_v50 = vld [vmem:[#allocation2 + $0xc0] ss:$2 sm:$0xff]  ;;  %v5556_v45 = vld [vmem:[#allocation2 + $0xc1] ss:$2 sm:$0xff]  ;;  %v5357_v29 = vmax.f32 %v7311_v22, %v7315_v44  ;;  %v7317_v55 = vadd.f32 %v4916_v0, %v2588_v8 }
 0x2b6   : > { %v5599_v62 = vmax.f32 %v5500_v50, %v5556_v45  ;;  %v5363_v3 = vadd.f32 %v8814_v46, %v5359_v25  ;;  %v5360_v60 = vmax.f32 %v7312_v51, %v7316_v49 }
 0x2b7   : > { %v6382_v53 = vpack.c.bf16 %v5600_v38, %v5600_v38  ;;  %v5361_v6 = vadd.f32 %v8814_v46, %v5357_v29  ;;  %v5358_v47 = vmax.f32 %v7313_v20, %v7317_v55 }
 0x2b8   : > { %v6381_v11 = vpack.c.bf16 %v5599_v62, %v5599_v62  ;;  %v5367_v2 = vmax.f32 %v5363_v3, 0.0  ;;  %v5364_v12 = vadd.f32 %v8814_v46, %v5360_v60 }
 0x2b9   : > { %5740 = vst [vmem:[%s8833_s6 + $0x34] sm:$0x7] %v6382_v53  ;;  %v6978_v52 = vpop.f32.mrb[64].mxu1  ;;  %v5365_v17 = vmax.f32 %v5361_v6, 0.0  ;;  %v7206_v7 = vpop.f32.mrb[64].mxu0  ;;  %v5362_v33 = vadd.f32 %v8814_v46, %v5358_v47 }
 0x2ba   : > { %v2601_v14 = vpop.f32.mrb[65].mxu1  ;;  %5739 = vst [vmem:[%s8833_s6 + $0x30] sm:$0xf] %v6381_v11  ;;  %5372 = vst [vmem:[#allocation2 + $0xf0] sm:$0xff] %v5367_v2  ;;  %v7318_v4 = vadd.f32 %v7206_v7, %v6978_v52  ;;  %v4929_v13 = vpop.f32.mrb[65].mxu0  ;;  %v5368_v27 = vmax.f32 %v5364_v12, 0.0 }
 0x2bb   : > { %v6979_v63 = vpop.f32.mrb[66].mxu1  ;;  %5370 = vst [vmem:[#allocation2 + $0xe0] sm:$0xff] %v5365_v17  ;;  %v7319_v18 = vadd.f32 %v4929_v13, %v2601_v14  ;;  %v7207_v24 = vpop.f32.mrb[66].mxu0  ;;  %v5366_v35 = vmax.f32 %v5362_v33, 0.0 }
 0x2bc   : > { %v2604_v9 = vpop.f32.mrb[67].mxu1  ;;  %v7320_v28 = vadd.f32 %v7207_v24, %v6979_v63  ;;  %v4932_v15 = vpop.f32.mrb[67].mxu0  ;;  %5373 = vst [vmem:[#allocation2 + $0xf8] sm:$0xff] %v5368_v27 }
 0x2bd   : > { %v7321_v39 = vadd.f32 %v4932_v15, %v2604_v9  ;;  %5371 = vst [vmem:[#allocation2 + $0xe8] sm:$0xff] %v5366_v35 }
 0x2c1   : > { %v6982_v19 = vpop.f32.mrb[68].mxu1  ;;  %v7210_v30 = vpop.f32.mrb[68].mxu0 }
 0x2c2   : > { %v2617_v31 = vpop.f32.mrb[69].mxu1  ;;  %v7322_v37 = vadd.f32 %v7210_v30, %v6982_v19  ;;  %v4945_v43 = vpop.f32.mrb[69].mxu0 }
 0x2c3   : > { %v6983_v41 = vpop.f32.mrb[70].mxu1  ;;  %v7323_v54 = vadd.f32 %v4945_v43, %v2617_v31  ;;  %v7211_v21 = vpop.f32.mrb[70].mxu0  ;;  %v5506_v34 = vld [vmem:[#allocation2 + $0xf0] ss:$2 sm:$0x3f] }
 0x2c4   : > { %v2620_v59 = vpop.f32.mrb[71].mxu1  ;;  %v5562_v57 = vld [vmem:[#allocation2 + $0xf1] ss:$2 sm:$0x3f]  ;;  %v5376_v5 = vmax.f32 %v7318_v4, %v7322_v37  ;;  %v7324_v22 = vadd.f32 %v7211_v21, %v6983_v41  ;;  %v5504_v16 = vld [vmem:[#allocation2 + $0xe0] ss:$2 sm:$0xff] }
 0x2c5   : > { %v5602_v61 = vmax.f32 %v5506_v34, %v5562_v57  ;;  %v5560_v40 = vld [vmem:[#allocation2 + $0xe1] ss:$2 sm:$0xff]  ;;  %v5374_v51 = vmax.f32 %v7319_v18, %v7323_v54  ;;  %v4948_v23 = vpop.f32.mrb[71].mxu0 }
 0x2c6   : > { %v5601_v20 = vmax.f32 %v5504_v16, %v5560_v40  ;;  %v5380_v56 = vadd.f32 %v8814_v46, %v5376_v5  ;;  %v5377_v1 = vmax.f32 %v7320_v28, %v7324_v22  ;;  %v7325_v10 = vadd.f32 %v4948_v23, %v2620_v59 }
 0x2c7   : > { %v6384_v32 = vpack.c.bf16 %v5602_v61, %v5602_v61  ;;  %v5378_v58 = vadd.f32 %v8814_v46, %v5374_v51 }
 0x2c8   : > { %v6383_v26 = vpack.c.bf16 %v5601_v20, %v5601_v20  ;;  %v5384_v42 = vmax.f32 %v5380_v56, 0.0  ;;  %v5381_v36 = vadd.f32 %v8814_v46, %v5377_v1  ;;  %v5375_v44 = vmax.f32 %v7321_v39, %v7325_v10 }
 0x2c9   : > { %v6986_v38 = vpop.f32.mrb[72].mxu1  ;;  %5742 = vst [vmem:[%s8833_s6 + $0x3c] sm:$0x7] %v6384_v32  ;;  %v5382_v25 = vmax.f32 %v5378_v58, 0.0  ;;  %v7214_v48 = vpop.f32.mrb[72].mxu0 }
 0x2ca   : > { %v2633_v8 = vpop.f32.mrb[73].mxu1  ;;  %5741 = vst [vmem:[%s8833_s6 + $0x38] sm:$0xf] %v6383_v26  ;;  %5389 = vst [vmem:[#allocation2 + $0x110] sm:$0xff] %v5384_v42  ;;  %v5385_v50 = vmax.f32 %v5381_v36, 0.0  ;;  %v5379_v45 = vadd.f32 %v8814_v46, %v5375_v44  ;;  %v7326_v29 = vadd.f32 %v7214_v48, %v6986_v38  ;;  %v4961_v49 = vpop.f32.mrb[73].mxu0 }
 0x2cb   : > { %v6987_v0 = vpop.f32.mrb[74].mxu1  ;;  %5387 = vst [vmem:[#allocation2 + $0x100] sm:$0xff] %v5382_v25  ;;  %v7327_v53 = vadd.f32 %v4961_v49, %v2633_v8  ;;  %v7215_v62 = vpop.f32.mrb[74].mxu0 }
 0x2cc   : > { %v2636_v3 = vpop.f32.mrb[75].mxu1  ;;  %5390 = vst [vmem:[#allocation2 + $0x118] sm:$0xff] %v5385_v50  ;;  %v5383_v55 = vmax.f32 %v5379_v45, 0.0  ;;  %v7328_v6 = vadd.f32 %v7215_v62, %v6987_v0  ;;  %v4964_v60 = vpop.f32.mrb[75].mxu0 }
 0x2cd   : > { %v7329_v11 = vadd.f32 %v4964_v60, %v2636_v3 }
 0x2ce   : > { %5388 = vst [vmem:[#allocation2 + $0x108] sm:$0xff] %v5383_v55 }
 0x2d1   : > { %v6990_v2 = vpop.f32.mrb[76].mxu1  ;;  %v7218_v47 = vpop.f32.mrb[76].mxu0 }
 0x2d2   : > { %v2649_v52 = vpop.f32.mrb[77].mxu1  ;;  %v7330_v17 = vadd.f32 %v7218_v47, %v6990_v2  ;;  %v4977_v12 = vpop.f32.mrb[77].mxu0 }
 0x2d3   : > { %v6991_v7 = vpop.f32.mrb[78].mxu1  ;;  %v5510_v14 = vld [vmem:[#allocation2 + $0x110] ss:$2 sm:$0x3f]  ;;  %v7331_v4 = vadd.f32 %v4977_v12, %v2649_v52  ;;  %v7219_v27 = vpop.f32.mrb[78].mxu0 }
 0x2d4   : > { %v5566_v33 = vld [vmem:[#allocation2 + $0x111] ss:$2 sm:$0x3f]  ;;  %v5393_v63 = vmax.f32 %v7326_v29, %v7330_v17  ;;  %v2652_v18 = vpop.f32.mrb[79].mxu1  ;;  %v7332_v28 = vadd.f32 %v7219_v27, %v6991_v7  ;;  %v4980_v15 = vpop.f32.mrb[79].mxu0 }
 0x2d5   : > { %v5604_v13 = vmax.f32 %v5510_v14, %v5566_v33  ;;  %v5508_v24 = vld [vmem:[#allocation2 + $0x100] ss:$2 sm:$0xff]  ;;  %v5564_v9 = vld [vmem:[#allocation2 + $0x101] ss:$2 sm:$0xff]  ;;  %v5391_v35 = vmax.f32 %v7327_v53, %v7331_v4  ;;  %v7333_v31 = vadd.f32 %v4980_v15, %v2652_v18 }
 0x2d6   : > { %v5603_v19 = vmax.f32 %v5508_v24, %v5564_v9  ;;  %v5397_v30 = vadd.f32 %v8814_v46, %v5393_v63  ;;  %v5394_v43 = vmax.f32 %v7328_v6, %v7332_v28 }
 0x2d7   : > { %v6386_v39 = vpack.c.bf16 %v5604_v13, %v5604_v13  ;;  %v5395_v37 = vadd.f32 %v8814_v46, %v5391_v35  ;;  %v5392_v21 = vmax.f32 %v7329_v11, %v7333_v31 }
 0x2d8   : > { %v6385_v41 = vpack.c.bf16 %v5603_v19, %v5603_v19  ;;  %v5401_v54 = vmax.f32 %v5397_v30, 0.0  ;;  %v5398_v57 = vadd.f32 %v8814_v46, %v5394_v43 }
 0x2d9   : > { %5744 = vst [vmem:[%s8833_s6 + $0x44] sm:$0x7] %v6386_v39  ;;  %v6994_v59 = vpop.f32.mrb[80].mxu1  ;;  %v5399_v34 = vmax.f32 %v5395_v37, 0.0  ;;  %v7222_v5 = vpop.f32.mrb[80].mxu0  ;;  %v5396_v61 = vadd.f32 %v8814_v46, %v5392_v21 }
 0x2da   : > { %v2665_v22 = vpop.f32.mrb[81].mxu1  ;;  %5743 = vst [vmem:[%s8833_s6 + $0x40] sm:$0xf] %v6385_v41  ;;  %5406 = vst [vmem:[#allocation2 + $0x130] sm:$0xff] %v5401_v54  ;;  %v7334_v16 = vadd.f32 %v7222_v5, %v6994_v59  ;;  %v4993_v40 = vpop.f32.mrb[81].mxu0  ;;  %v5402_v23 = vmax.f32 %v5398_v57, 0.0 }
 0x2db   : > { %v6995_v51 = vpop.f32.mrb[82].mxu1  ;;  %5404 = vst [vmem:[#allocation2 + $0x120] sm:$0xff] %v5399_v34  ;;  %v7335_v20 = vadd.f32 %v4993_v40, %v2665_v22  ;;  %v7223_v56 = vpop.f32.mrb[82].mxu0  ;;  %v5400_v10 = vmax.f32 %v5396_v61, 0.0 }
 0x2dc   : > { %v2668_v1 = vpop.f32.mrb[83].mxu1  ;;  %v7336_v32 = vadd.f32 %v7223_v56, %v6995_v51  ;;  %v4996_v58 = vpop.f32.mrb[83].mxu0  ;;  %5407 = vst [vmem:[#allocation2 + $0x138] sm:$0xff] %v5402_v23 }
 0x2dd   : > { %v7337_v26 = vadd.f32 %v4996_v58, %v2668_v1  ;;  %5405 = vst [vmem:[#allocation2 + $0x128] sm:$0xff] %v5400_v10 }
 0x2e1   : > { %v6998_v42 = vpop.f32.mrb[84].mxu1  ;;  %v7226_v36 = vpop.f32.mrb[84].mxu0 }
 0x2e2   : > { %v2681_v44 = vpop.f32.mrb[85].mxu1  ;;  %v7338_v38 = vadd.f32 %v7226_v36, %v6998_v42  ;;  %v5009_v25 = vpop.f32.mrb[85].mxu0 }
 0x2e3   : > { %v6999_v48 = vpop.f32.mrb[86].mxu1  ;;  %v7339_v8 = vadd.f32 %v5009_v25, %v2681_v44  ;;  %v7227_v50 = vpop.f32.mrb[86].mxu0  ;;  %v5514_v29 = vld [vmem:[#allocation2 + $0x130] ss:$2 sm:$0x3f] }
 0x2e4   : > { %v2684_v45 = vpop.f32.mrb[87].mxu1  ;;  %v5570_v49 = vld [vmem:[#allocation2 + $0x131] ss:$2 sm:$0x3f]  ;;  %v5410_v0 = vmax.f32 %v7334_v16, %v7338_v38  ;;  %v7340_v53 = vadd.f32 %v7227_v50, %v6999_v48  ;;  %v5512_v3 = vld [vmem:[#allocation2 + $0x120] ss:$2 sm:$0xff] }
 0x2e5   : > { %v5606_v62 = vmax.f32 %v5514_v29, %v5570_v49  ;;  %v5568_v55 = vld [vmem:[#allocation2 + $0x121] ss:$2 sm:$0xff]  ;;  %v5408_v6 = vmax.f32 %v7335_v20, %v7339_v8  ;;  %v5012_v60 = vpop.f32.mrb[87].mxu0  ;;  %v8943_v49 = vld [vmem:[%s8967_s2] ss:$0 sm:$0xff] }
 0x2e6   : > { %v5605_v11 = vmax.f32 %v5512_v3, %v5568_v55  ;;  %v5414_v2 = vadd.f32 %v8814_v46, %v5410_v0  ;;  %v5411_v47 = vmax.f32 %v7336_v32, %v7340_v53  ;;  %v7341_v52 = vadd.f32 %v5012_v60, %v2684_v45 }
 0x2e7   : > { %v6388_v17 = vpack.c.bf16 %v5606_v62, %v5606_v62  ;;  %v5412_v12 = vadd.f32 %v8814_v46, %v5408_v6 }
 0x2e8   : > { %v6387_v7 = vpack.c.bf16 %v5605_v11, %v5605_v11  ;;  %v5418_v14 = vmax.f32 %v5414_v2, 0.0  ;;  %v5415_v33 = vadd.f32 %v8814_v46, %v5411_v47  ;;  %v5409_v4 = vmax.f32 %v7337_v26, %v7341_v52 }
 0x2e9   : > { %v7002_v13 = vpop.f32.mrb[88].mxu1  ;;  %5746 = vst [vmem:[%s8833_s6 + $0x4c] sm:$0x7] %v6388_v17  ;;  %v5416_v63 = vmax.f32 %v5412_v12, 0.0  ;;  %v7230_v27 = vpop.f32.mrb[88].mxu0 }
 0x2ea   : > { %v2697_v18 = vpop.f32.mrb[89].mxu1  ;;  %5745 = vst [vmem:[%s8833_s6 + $0x48] sm:$0xf] %v6387_v7  ;;  %5423 = vst [vmem:[#allocation2 + $0x150] sm:$0xff] %v5418_v14  ;;  %v5419_v24 = vmax.f32 %v5415_v33, 0.0  ;;  %v5413_v9 = vadd.f32 %v8814_v46, %v5409_v4  ;;  %v7342_v35 = vadd.f32 %v7230_v27, %v7002_v13  ;;  %v5025_v28 = vpop.f32.mrb[89].mxu0 }
 0x2eb   : > { %v7003_v15 = vpop.f32.mrb[90].mxu1  ;;  %5421 = vst [vmem:[#allocation2 + $0x140] sm:$0xff] %v5416_v63  ;;  %v7343_v39 = vadd.f32 %v5025_v28, %v2697_v18  ;;  %v7231_v19 = vpop.f32.mrb[90].mxu0 }
 0x2ec   : > { %v2700_v30 = vpop.f32.mrb[91].mxu1  ;;  %5424 = vst [vmem:[#allocation2 + $0x158] sm:$0xff] %v5419_v24  ;;  %v5417_v31 = vmax.f32 %v5413_v9, 0.0  ;;  %v7344_v37 = vadd.f32 %v7231_v19, %v7003_v15  ;;  %v5028_v43 = vpop.f32.mrb[91].mxu0 }
 0x2ed   : > { %v7345_v41 = vadd.f32 %v5028_v43, %v2700_v30 }
 0x2ee   : > { %5422 = vst [vmem:[#allocation2 + $0x148] sm:$0xff] %v5417_v31 }
 0x2f1   : > { %v7006_v54 = vpop.f32.mrb[92].mxu1  ;;  %v7234_v21 = vpop.f32.mrb[92].mxu0 }
 0x2f2   : > { %v2713_v59 = vpop.f32.mrb[93].mxu1  ;;  %v7346_v34 = vadd.f32 %v7234_v21, %v7006_v54  ;;  %v5041_v57 = vpop.f32.mrb[93].mxu0 }
 0x2f3   : > { %v7007_v5 = vpop.f32.mrb[94].mxu1  ;;  %v5518_v22 = vld [vmem:[#allocation2 + $0x150] ss:$2 sm:$0x3f]  ;;  %v7347_v16 = vadd.f32 %v5041_v57, %v2713_v59  ;;  %v7235_v23 = vpop.f32.mrb[94].mxu0 }
 0x2f4   : > { %v5574_v61 = vld [vmem:[#allocation2 + $0x151] ss:$2 sm:$0x3f]  ;;  %v5427_v51 = vmax.f32 %v7342_v35, %v7346_v34  ;;  %v2716_v20 = vpop.f32.mrb[95].mxu1  ;;  %v7348_v32 = vadd.f32 %v7235_v23, %v7007_v5  ;;  %v5044_v58 = vpop.f32.mrb[95].mxu0 }
 0x2f5   : > { %v5608_v40 = vmax.f32 %v5518_v22, %v5574_v61  ;;  %v5516_v56 = vld [vmem:[#allocation2 + $0x140] ss:$2 sm:$0xff]  ;;  %v5572_v1 = vld [vmem:[#allocation2 + $0x141] ss:$2 sm:$0xff]  ;;  %v5425_v10 = vmax.f32 %v7343_v39, %v7347_v16  ;;  %v7349_v44 = vadd.f32 %v5044_v58, %v2716_v20 }
 0x2f6   : > { %v5607_v42 = vmax.f32 %v5516_v56, %v5572_v1  ;;  %v5431_v36 = vadd.f32 %v8814_v46, %v5427_v51  ;;  %v5428_v25 = vmax.f32 %v7344_v37, %v7348_v32 }
 0x2f7   : > { %v6390_v26 = vpack.c.bf16 %v5608_v40, %v5608_v40  ;;  %v5429_v38 = vadd.f32 %v8814_v46, %v5425_v10  ;;  %v5426_v50 = vmax.f32 %v7345_v41, %v7349_v44 }
 0x2f8   : > { %v6389_v48 = vpack.c.bf16 %v5607_v42, %v5607_v42  ;;  %v5435_v8 = vmax.f32 %v5431_v36, 0.0  ;;  %v5432_v0 = vadd.f32 %v8943_v49, %v5428_v25 }
 0x2f9   : > { %5748 = vst [vmem:[%s8833_s6 + $0x54] sm:$0x7] %v6390_v26  ;;  %v7010_v45 = vpop.f32.mrb[96].mxu1  ;;  %v5433_v29 = vmax.f32 %v5429_v38, 0.0  ;;  %v7238_v53 = vpop.f32.mrb[96].mxu0  ;;  %v5430_v46 = vadd.f32 %v8943_v49, %v5426_v50 }
 0x2fa   : > { %v2729_v62 = vpop.f32.mrb[97].mxu1  ;;  %5747 = vst [vmem:[%s8833_s6 + $0x50] sm:$0xf] %v6389_v48  ;;  %5440 = vst [vmem:[#allocation2 + $0x170] sm:$0xff] %v5435_v8  ;;  %v7350_v3 = vadd.f32 %v7238_v53, %v7010_v45  ;;  %v5057_v55 = vpop.f32.mrb[97].mxu0  ;;  %v5436_v60 = vmax.f32 %v5432_v0, 0.0 }
 0x2fb   : > { %v7011_v6 = vpop.f32.mrb[98].mxu1  ;;  %5438 = vst [vmem:[#allocation2 + $0x160] sm:$0xff] %v5433_v29  ;;  %v7351_v11 = vadd.f32 %v5057_v55, %v2729_v62  ;;  %v7239_v2 = vpop.f32.mrb[98].mxu0  ;;  %v5434_v52 = vmax.f32 %v5430_v46, 0.0 }
 0x2fc   : > { %v2732_v47 = vpop.f32.mrb[99].mxu1  ;;  %v7352_v17 = vadd.f32 %v7239_v2, %v7011_v6  ;;  %v5060_v12 = vpop.f32.mrb[99].mxu0  ;;  %5441 = vst [vmem:[#allocation2 + $0x178] sm:$0xff] %v5436_v60 }
 0x2fd   : > { %v7353_v7 = vadd.f32 %v5060_v12, %v2732_v47  ;;  %5439 = vst [vmem:[#allocation2 + $0x168] sm:$0xff] %v5434_v52 }
 0x301   : > { %v7014_v14 = vpop.f32.mrb[100].mxu1  ;;  %v7242_v33 = vpop.f32.mrb[100].mxu0 }
 0x302   : > { %v2745_v4 = vpop.f32.mrb[101].mxu1  ;;  %v7354_v13 = vadd.f32 %v7242_v33, %v7014_v14  ;;  %v5073_v63 = vpop.f32.mrb[101].mxu0 }
 0x303   : > { %v7015_v27 = vpop.f32.mrb[102].mxu1  ;;  %v7355_v18 = vadd.f32 %v5073_v63, %v2745_v4  ;;  %v7243_v24 = vpop.f32.mrb[102].mxu0  ;;  %v5522_v35 = vld [vmem:[#allocation2 + $0x170] ss:$2 sm:$0x3f] }
 0x304   : > { %v2748_v9 = vpop.f32.mrb[103].mxu1  ;;  %v5578_v28 = vld [vmem:[#allocation2 + $0x171] ss:$2 sm:$0x3f]  ;;  %v5444_v15 = vmax.f32 %v7350_v3, %v7354_v13  ;;  %v7356_v39 = vadd.f32 %v7243_v24, %v7015_v27  ;;  %v5520_v30 = vld [vmem:[#allocation2 + $0x160] ss:$2 sm:$0xff] }
 0x305   : > { %v5610_v19 = vmax.f32 %v5522_v35, %v5578_v28  ;;  %v5576_v31 = vld [vmem:[#allocation2 + $0x161] ss:$2 sm:$0xff]  ;;  %v5442_v37 = vmax.f32 %v7351_v11, %v7355_v18  ;;  %v5076_v43 = vpop.f32.mrb[103].mxu0 }
 0x306   : > { %v5609_v41 = vmax.f32 %v5520_v30, %v5576_v31  ;;  %v5448_v54 = vadd.f32 %v8943_v49, %v5444_v15  ;;  %v5445_v21 = vmax.f32 %v7352_v17, %v7356_v39  ;;  %v7357_v59 = vadd.f32 %v5076_v43, %v2748_v9 }
 0x307   : > { %v6392_v34 = vpack.c.bf16 %v5610_v19, %v5610_v19  ;;  %v5446_v57 = vadd.f32 %v8943_v49, %v5442_v37 }
 0x308   : > { %v6391_v5 = vpack.c.bf16 %v5609_v41, %v5609_v41  ;;  %v5452_v22 = vmax.f32 %v5448_v54, 0.0  ;;  %v5449_v61 = vadd.f32 %v8943_v49, %v5445_v21  ;;  %v5443_v16 = vmax.f32 %v7353_v7, %v7357_v59 }
 0x309   : > { %v7018_v40 = vpop.f32.mrb[104].mxu1  ;;  %5750 = vst [vmem:[%s8833_s6 + $0x5c] sm:$0x7] %v6392_v34  ;;  %v5450_v51 = vmax.f32 %v5446_v57, 0.0  ;;  %v7246_v23 = vpop.f32.mrb[104].mxu0 }
 0x30a   : > { %v2761_v20 = vpop.f32.mrb[105].mxu1  ;;  %5749 = vst [vmem:[%s8833_s6 + $0x58] sm:$0xf] %v6391_v5  ;;  %5457 = vst [vmem:[#allocation2 + $0x190] sm:$0xff] %v5452_v22  ;;  %v5453_v56 = vmax.f32 %v5449_v61, 0.0  ;;  %v5447_v1 = vadd.f32 %v8943_v49, %v5443_v16  ;;  %v7358_v10 = vadd.f32 %v7246_v23, %v7018_v40  ;;  %v5089_v32 = vpop.f32.mrb[105].mxu0 }
 0x30b   : > { %v7019_v58 = vpop.f32.mrb[106].mxu1  ;;  %5455 = vst [vmem:[#allocation2 + $0x180] sm:$0xff] %v5450_v51  ;;  %v7359_v26 = vadd.f32 %v5089_v32, %v2761_v20  ;;  %v7247_v42 = vpop.f32.mrb[106].mxu0 }
 0x30c   : > { %v2764_v36 = vpop.f32.mrb[107].mxu1  ;;  %5458 = vst [vmem:[#allocation2 + $0x198] sm:$0xff] %v5453_v56  ;;  %v5451_v44 = vmax.f32 %v5447_v1, 0.0  ;;  %v7360_v38 = vadd.f32 %v7247_v42, %v7019_v58  ;;  %v5092_v25 = vpop.f32.mrb[107].mxu0 }
 0x30d   : > { %v7361_v48 = vadd.f32 %v5092_v25, %v2764_v36 }
 0x30e   : > { %5456 = vst [vmem:[#allocation2 + $0x188] sm:$0xff] %v5451_v44 }
 0x311   : > { %v7022_v8 = vpop.f32.mrb[108].mxu1  ;;  %v7250_v50 = vpop.f32.mrb[108].mxu0 }
 0x312   : > { %v2777_v45 = vpop.f32.mrb[109].mxu1  ;;  %v7362_v29 = vadd.f32 %v7250_v50, %v7022_v8  ;;  %v5105_v0 = vpop.f32.mrb[109].mxu0 }
 0x313   : > { %v7023_v53 = vpop.f32.mrb[110].mxu1  ;;  %v5526_v62 = vld [vmem:[#allocation2 + $0x190] ss:$2 sm:$0x3f]  ;;  %v7363_v3 = vadd.f32 %v5105_v0, %v2777_v45  ;;  %v7251_v60 = vpop.f32.mrb[110].mxu0 }
 0x314   : > { %v5582_v46 = vld [vmem:[#allocation2 + $0x191] ss:$2 sm:$0x3f]  ;;  %v5461_v6 = vmax.f32 %v7358_v10, %v7362_v29  ;;  %v2780_v11 = vpop.f32.mrb[111].mxu1  ;;  %v7364_v17 = vadd.f32 %v7251_v60, %v7023_v53  ;;  %v5108_v12 = vpop.f32.mrb[111].mxu0 }
 0x315   : > { %v5612_v55 = vmax.f32 %v5526_v62, %v5582_v46  ;;  %v5524_v2 = vld [vmem:[#allocation2 + $0x180] ss:$2 sm:$0xff]  ;;  %v5580_v47 = vld [vmem:[#allocation2 + $0x181] ss:$2 sm:$0xff]  ;;  %v5459_v52 = vmax.f32 %v7359_v26, %v7363_v3  ;;  %v7365_v4 = vadd.f32 %v5108_v12, %v2780_v11 }
 0x316   : > { %v5611_v14 = vmax.f32 %v5524_v2, %v5580_v47  ;;  %v5465_v33 = vadd.f32 %v8943_v49, %v5461_v6  ;;  %v5462_v63 = vmax.f32 %v7360_v38, %v7364_v17 }
 0x317   : > { %v6394_v7 = vpack.c.bf16 %v5612_v55, %v5612_v55  ;;  %v5463_v13 = vadd.f32 %v8943_v49, %v5459_v52  ;;  %v5460_v24 = vmax.f32 %v7361_v48, %v7365_v4 }
 0x318   : > { %v6393_v27 = vpack.c.bf16 %v5611_v14, %v5611_v14  ;;  %v5469_v18 = vmax.f32 %v5465_v33, 0.0  ;;  %v5466_v35 = vadd.f32 %v8943_v49, %v5462_v63 }
 0x319   : > { %5752 = vst [vmem:[%s8833_s6 + $0x64] sm:$0x7] %v6394_v7  ;;  %v5467_v9 = vmax.f32 %v5463_v13, 0.0  ;;  %v5464_v28 = vadd.f32 %v8943_v49, %v5460_v24 }
 0x31a   : > { %5751 = vst [vmem:[%s8833_s6 + $0x60] sm:$0xf] %v6393_v27  ;;  %5474 = vst [vmem:[#allocation2 + $0x1b0] sm:$0xff] %v5469_v18  ;;  %v5470_v15 = vmax.f32 %v5466_v35, 0.0 }
 0x31b   : > { %5472 = vst [vmem:[#allocation2 + $0x1a0] sm:$0xff] %v5467_v9  ;;  %v5468_v39 = vmax.f32 %v5464_v28, 0.0 }
 0x31c   : > { %5475 = vst [vmem:[#allocation2 + $0x1b8] sm:$0xff] %v5470_v15 }
 0x31d   : > { %5473 = vst [vmem:[#allocation2 + $0x1a8] sm:$0xff] %v5468_v39 }
 0x323   : > { %v5530_v19 = vld [vmem:[#allocation2 + $0x1b0] ss:$2 sm:$0x3f]  ;;  %v5586_v30 = vld [vmem:[#allocation2 + $0x1b1] ss:$2 sm:$0x3f] }
 0x324   : > { %v5614_v31 = vmax.f32 %v5530_v19, %v5586_v30  ;;  %v5528_v37 = vld [vmem:[#allocation2 + $0x1a0] ss:$2 sm:$0xff]  ;;  %v5584_v43 = vld [vmem:[#allocation2 + $0x1a1] ss:$2 sm:$0xff] }
 0x325   : > { %v5613_v41 = vmax.f32 %v5528_v37, %v5584_v43 }
 0x326   : > { %v6396_v54 = vpack.c.bf16 %v5614_v31, %v5614_v31 }
 0x327   : > { %v6395_v21 = vpack.c.bf16 %v5613_v41, %v5613_v41 }
 0x328   : > { %5754 = vst [vmem:[%s8833_s6 + $0x6c] sm:$0x7] %v6396_v54 }
 0x329   : > { %5753 = vst [vmem:[%s8833_s6 + $0x68] sm:$0xf] %v6395_v21 }
 0x32a PF: > { %s13_s12 = sadd.s32 1, %s7971_s12  }
 0x32b   : > { %p10_p4 = scmp.ge.s32.totalorder %s13_s12, 4  }
 0x32d   :  { %12 = sbr.rel (!%p10_p4) target bundleno = 1 (0x1), region = 134 }

// kernel: net_forward.4
= control target key start
LH: loop header
LB: loop body
LE: loop exit
PB: predicated region body
PF: predicated region fallthrough
CT: control target
= control target key end

     0   :  { %s10024_s12 = smov 0   ;;  %s11920_s0 = inlined_call_operand.vmem [shape: bf16[2,240,128], index: 0, kind: input, shape index: {}]   ;;  %s11921_s1 = inlined_call_operand.vmem [shape: bf16[25,128,64], index: 1, kind: input, shape index: {}]   ;;  %s11922_s2 = inlined_call_operand.vmem [shape: f32[1,64], index: 2, kind: input, shape index: {}]   ;;  %s11923_s3 = inlined_call_operand.vmem [shape: bf16[2,5,5,64], index: 3, kind: output, shape index: {}]  }
   0x1 LB: > { %s7094_s13 = sadd.s32 4294967295, %s10002_s12   ;;  %p7098_p0 = scmp.ge.s32.totalorder %s10002_s12, 1  ;;  %s10002_s12 = sphi %s10024_s12, %s13_s12  }
   0x2   : > { %p137_p1 = scmp.lt.s32.totalorder %s10002_s12, 3 }
   0x4   : > { %p138_p2 = pnand %p7098_p0, %p137_p1 }
   0x5   : > { %v9654_v0 = vld [vmem:[%s11921_s1 + $0x40] sm:$0xff] (!%p138_p2)   ;;  %p161_p3 = scmp.lt.s32.totalorder (!%p138_p2), %s7094_s13, 1  ;;  %v9656_v2 = vld [vmem:[%s11921_s1 + $0x48] sm:$0xff] (!%p138_p2)   ;;  %v9658_v4 = vld [vmem:[%s11921_s1 + $0x50] sm:$0xff] (!%p138_p2)   ;;  %vm727_vm0 = vcmask (!%p138_p2), 1046528   ;;  %vm1227_vm3 = vcmask (!%p138_p2), 1045504  }
   0x6   : > { %141 = sbr.rel (%p138_p2) target bundleno = 774 (0x306), region = 32  ;;  %v9655_v1 = vld [vmem:[%s11921_s1 + $0x300] sm:$0xff] (!%p138_p2)   ;;  %8248 = vmatprep.subr.bf16.mxu1 (!%p138_p2), %v9654_v0  ;;  %v9657_v3 = vld [vmem:[%s11921_s1 + $0x308] sm:$0xff] (!%p138_p2)   ;;  %v9659_v5 = vld [vmem:[%s11921_s1 + $0x310] sm:$0xff] (!%p138_p2)   ;;  %vm279_vm1 = vsmask.f32 (!%p138_p2), 7424 }
   0x7   : > { %8680 = vmatprep.subr.bf16.mxu0 (!%p138_p2), %v9655_v1  ;;  %8249 = vmatpush3.bf16.msra.mxu1 (!%p138_p2), %v9654_v0  ;;  %v9660_v6 = vld [vmem:[%s11921_s1 + $0x58] sm:$0xff] (!%p138_p2)   ;;  %v9662_v8 = vld [vmem:[%s11921_s1 + $0x60] sm:$0xff] (!%p138_p2)   ;;  %v9664_v10 = vld [vmem:[%s11921_s1 + $0x68] sm:$0xff] (!%p138_p2)   ;;  %vm961_vm2 = vsmask.f32 (!%p138_p2), 6400  ;;  %vm6953_vm4 = vcmask (!%p138_p2), 523264  }
   0x8   : > { %8681 = vmatpush3.bf16.msra.mxu0 (!%p138_p2), %v9655_v1  ;;  %8250 = vmatprep.subr.bf16.mxu1 (!%p138_p2), %v9656_v2  ;;  %v9661_v7 = vld [vmem:[%s11921_s1 + $0x318] sm:$0xff] (!%p138_p2)   ;;  %v9663_v9 = vld [vmem:[%s11921_s1 + $0x320] sm:$0xff] (!%p138_p2)   ;;  %v9665_v11 = vld [vmem:[%s11921_s1 + $0x328] sm:$0xff] (!%p138_p2)   ;;  %vm7021_vm5 = vcmask (!%p138_p2), 518144   ;;  %vm7022_vm6 = vsmask.f32 (!%p138_p2), 2304 }
   0x9   : > { %8682 = vmatprep.subr.bf16.mxu0 (!%p138_p2), %v9657_v3  ;;  %v9666_v17 = vld [vmem:[%s11921_s1 + $0x70] sm:$0xff] (!%p138_p2)   ;;  %v9668_v29 = vld [vmem:[%s11921_s1 + $0x78] sm:$0xff] (!%p138_p2)   ;;  %v9676_v44 = vld [vmem:[%s11921_s1 + $0x340] sm:$0xff] (!%p138_p2)  }
   0xa   : > { %v9667_v19 = vld [vmem:[%s11921_s1 + $0x330] sm:$0xff] (!%p138_p2)   ;;  %v9669_v34 = vld [vmem:[%s11921_s1 + $0x338] sm:$0xff] (!%p138_p2)   ;;  %v9681_v50 = vld [vmem:[%s11921_s1] sm:$0xff] (!%p138_p2)  }
   0xb   : > { %8251 = vmatpush3.bf16.msra.mxu1 (!%p138_p2), %v9656_v2  ;;  %v9677_v56 = vld [vmem:[%s11921_s1 + $0x348] sm:$0xff] (!%p138_p2)   ;;  %vm11886_vm7 = vmand (!%p138_p2), %vm7021_vm5, %vm7022_vm6 }
   0xc   : > { %8683 = vmatpush3.bf16.msra.mxu0 (!%p138_p2), %v9657_v3  ;;  %8252 = vmatprep.subr.bf16.mxu1 (!%p138_p2), %v9658_v4  ;;  %v9684_v61 = vld [vmem:[%s11921_s1 + $0x8] sm:$0xff] (!%p138_p2)  }
   0xd   : > { %s12003_s13 = smov (!%p161_p3, %s7094_s13), 1  ;;  %8684 = vmatprep.subr.bf16.mxu0 %v9659_v5 }
   0xe   : > { %s9644_s30 = smul.u32 120, %s12003_s13 }
   0xf   : > { %8253 = vmatpush3.bf16.msra.mxu1 %v9658_v4  ;;  %s9645_s7 = smul.u32 20, %s12003_s13 }
  0x10   : > { %8685 = vmatpush3.bf16.msra.mxu0 %v9659_v5  ;;  %8254 = vmatprep.subr.bf16.mxu1 %v9660_v6  ;;  %s10068_s10 = scalar_lea.vmem %s11920_s0, %s9644_s30 }
  0x11   : > { %8686 = vmatprep.subr.bf16.mxu0 %v9661_v7  ;;  %v172_v12 = vld [vmem:[%s10068_s10] sm:$0xf]  ;;  %v10078_v13 = vld [vmem:[%s10068_s10 + $0x4] sm:$0xf]  ;;  %v10084_v15 = vld [vmem:[%s10068_s10 + $0x8] sm:$0xff]   ;;  %s11878_s11 = scalar_lea.vmem %s11923_s3, %s9645_s7 }
  0x12   : > { %v10081_v14 = vcombine.low %v172_v12, %v10078_v13  ;;  %v10087_v16 = vld [vmem:[%s10068_s10 + $0x18] sm:$0xff]   ;;  %v10093_v18 = vld [vmem:[%s10068_s10 + $0x14] sm:$0xf]  ;;  %v288_v22 = vshll.u32 %v10084_v15, 16  ;;  %v3459_v23 = vld [vmem:[%s10068_s10 + $0x10] sm:$0xe] }
  0x13   : > { %8255 = vmatpush3.bf16.msra.mxu1 %v9660_v6  ;;  %v10103_v24 = vcombine.low %v3459_v23, %v10093_v18  ;;  %v3481_v25 = vrot.slane %v10087_v16, 1  ;;  %v10107_v26 = vld [vmem:[%s10068_s10 + $0x10] sm:$0xff]   ;;  %v292_v31 = vshrl.u32 %v10084_v15, 16  ;;  %v10122_v37 = vld [vmem:[%s10068_s10 + $0x20] sm:$0xff]   ;;  %v10126_v39 = vld [vmem:[%s10068_s10 + $0x18] sm:$0xff]  }
  0x14   : > { %8687 = vmatpush3.bf16.msra.mxu0 %v9661_v7  ;;  %8256 = vmatprep.subr.bf16.mxu1 %v9662_v8  ;;  %v281_v20 = vshrl.u32 %v10081_v14, 16  ;;  %v283_v21 = vshll.u32 %v10081_v14, 16  ;;  %v290_v28 = vrot.slane %v288_v22, 1  ;;  %v296_v32 = vshll.u32 %v10107_v26, 16  ;;  %v10130_v42 = vld [vmem:[%s10068_s10 + $0x28] sm:$0xff]   ;;  %v10139_v47 = vld [vmem:[%s10068_s10 + $0x20] sm:$0xff]  }
  0x15   : > { %8688 = vmatprep.subr.bf16.mxu0 %v9663_v9  ;;  %v3480_v30 = vrot.slane %v10103_v24, 1  ;;  %v300_v40 = vshrl.u32 %v10107_v26, 16  ;;  %v11944_v45 = vshll.u32 %v10126_v39, 16  ;;  %v3483_v48 = vrot.slane %v10122_v37, 1  ;;  %v10157_v58 = vld [vmem:[%s10068_s10 + $0x30] sm:$0xff]   ;;  %v10167_v0 = vld [vmem:[%s10068_s10 + $0x28] sm:$0xff]  }
  0x16   : > { %v285_v27 = vrot.slane %v283_v21, 1  ;;  %v975_v36 = vrot.slane %v296_v32, 2  ;;  %v298_v41 = vrot.slane %v296_v32, 1  ;;  %v294_v43 = vor.u32 %v292_v31, %v290_v28  ;;  %v10172_v2 = vld [vmem:[%s10068_s10 + $0x38] sm:$0xff]   ;;  %v9683_v6 = vld [vmem:[%s11921_s1 + $0x350] sm:$0xff]   ;;  %v10199_v21 = vld [vmem:[%s10068_s10 + $0x40] sm:$0xff]  }
  0x17   : > { %8257 = vmatpush3.bf16.msra.mxu1 %v9662_v8  ;;  %v3482_v35 = vsel %vm727_vm0, %v3480_v30, %v3481_v25  ;;  %v974_v46 = vrot.slane %v300_v40, 1  ;;  %v306_v51 = vrot.slane %v11944_v45, 1  ;;  %v3485_v52 = vrot.slane %v10130_v42, 1  ;;  %v10184_v8 = vld [vmem:[%s10068_s10 + $0x30] sm:$0xff]  }
  0x18   : > { %8689 = vmatpush3.bf16.msra.mxu0 %v9663_v9  ;;  %8258 = vmatprep.subr.bf16.mxu1 %v9664_v10  ;;  %v286_v33 = vor.u32 %v285_v27, %v281_v20  ;;  %v302_v49 = vor.u32 %v300_v40, %v298_v41  ;;  %v11942_v54 = vshll.u32 %v10139_v47, 16  ;;  %v299_v55 = vsel %vm279_vm1, %v294_v43, %v298_v41  ;;  %v9689_v12 = vld [vmem:[%s11921_s1 + $0x10] sm:$0xff]   ;;  %v9692_v41 = vld [vmem:[%s11921_s1 + $0x360] sm:$0xff]  }
  0x19   : > { %8690 = vmatprep.subr.bf16.mxu0 %v9665_v11  ;;  %8696 = vmatprep.mubr.bf16.mxu0 %v3482_v35  ;;  %v10148_v53 = vor.u32 %v975_v36, %v974_v46  ;;  %v11945_v57 = vshrl.u32 %v10126_v39, 16  ;;  %v3484_v59 = vsel %vm727_vm0, %v3481_v25, %v3483_v48  ;;  %v11943_v62 = vshrl.u32 %v10139_v47, 16  ;;  %v10218_v35 = vld [vmem:[%s10068_s10 + $0x40] sm:$0xff]  }
  0x1a   : > { %v291_v38 = vsel %vm279_vm1, %v286_v33, %v290_v28  ;;  %v307_v60 = vsel %vm279_vm1, %v302_v49, %v306_v51  ;;  %v3486_v63 = vsel %vm727_vm0, %v3483_v48, %v3485_v52  ;;  %v314_v1 = vrot.slane %v11942_v54, 1  ;;  %v9691_v28 = vld [vmem:[%s11921_s1 + $0x18] sm:$0xff]   ;;  %v10214_v33 = vld [vmem:[%s10068_s10 + $0x48] sm:$0xff]  }
  0x1b   : > { %8259 = vmatpush3.bf16.msra.mxu1 %v9664_v10  ;;  %8264 = vmatprep.mubr.bf16.mxu1 %v291_v38  ;;  %v310_v3 = vor.u32 %v11945_v57, %v306_v51  ;;  %v320_v4 = vshll.u32 %v10167_v0, 16  ;;  %v3487_v5 = vrot.slane %v10157_v58, 1  ;;  %v3489_v10 = vrot.slane %v10172_v2, 1  ;;  %v10238_v51 = vld [vmem:[%s10068_s10 + $0x50] sm:$0xff]  }
  0x1c   : > { %8691 = vmatpush3.bf16.msra.mxu0 %v9665_v11  ;;  %8260 = vmatprep.subr.bf16.mxu1 %v9666_v17  ;;  %v318_v7 = vor.u32 %v11943_v62, %v314_v1  ;;  %v328_v11 = vshll.u32 %v10184_v8, 16  ;;  %v324_v20 = vshrl.u32 %v10167_v0, 16  ;;  %v332_v32 = vshrl.u32 %v10184_v8, 16  ;;  %v706_v62 = vld [vmem:[%s10068_s10] sm:$0xe] }
  0x1d   : > { %8692 = vmatprep.subr.bf16.mxu0 %v9667_v19  ;;  %v322_v9 = vrot.slane %v320_v4, 1  ;;  %v3488_v23 = vsel %vm727_vm0, %v3485_v52, %v3487_v5  ;;  %v3490_v30 = vsel %vm727_vm0, %v3487_v5, %v3489_v10  ;;  %v11939_v38 = vshll.u32 %v10087_v16, 16 }
  0x1e   : > { %v330_v27 = vrot.slane %v328_v11, 1  ;;  %v3491_v40 = vrot.slane %v10199_v21, 1  ;;  %v3493_v46 = vrot.slane %v10214_v33, 1  ;;  %v344_v49 = vshll.u32 %v10218_v35, 16 }
  0x1f   : > { %8261 = vmatpush3.bf16.msra.mxu1 %v9666_v17  ;;  %v315_v17 = vsel %vm279_vm1, %v310_v3, %v314_v1  ;;  %v323_v25 = vsel %vm279_vm1, %v318_v7, %v322_v9  ;;  %v326_v36 = vor.u32 %v324_v20, %v322_v9  ;;  %v10252_v1 = vld [vmem:[%s10068_s10 + $0x48] sm:$0xff]   ;;  %v11936_v3 = vshrl.u32 %v10087_v16, 16 }
  0x20   : > { %8693 = vmatpush3.bf16.msra.mxu0 %v9667_v19  ;;  %8262 = vmatprep.subr.bf16.mxu1 %v9668_v29  ;;  %v9687_v19 = vld [vmem:[%s11921_s1 + $0x358] sm:$0xff]   ;;  %v334_v43 = vor.u32 %v332_v32, %v330_v27  ;;  %v346_v5 = vrot.slane %v344_v49, 1  ;;  %v3495_v9 = vrot.slane %v10238_v51, 1 }
  0x21   : > { %8694 = vmatprep.subr.bf16.mxu0 %v9669_v34  ;;  %v331_v52 = vsel %vm279_vm1, %v326_v36, %v330_v27 }
  0x23   : > { %8263 = vmatpush3.bf16.msra.mxu1 %v9668_v29  ;;  %v10209_v29 = vld [vmem:[%s10068_s10 + $0x38] sm:$0xff]  }
  0x24   : > { %8695 = vmatpush3.bf16.msra.mxu0 %v9669_v34  ;;  %8284 = vmatprep.subr.bf16.mxu1 %v9681_v50  ;;  %v336_v34 = vshll.u32 %v10209_v29, 16  ;;  %v340_v48 = vshrl.u32 %v10209_v29, 16 }
  0x25   : > { %8716 = vmatprep.subr.bf16.mxu0 %v9676_v44 }
  0x26   : > { %8265 = vmatmul.mubr.bf16.vlgmr.msra.gmra.mrb[0].mxu1 %v299_v55  ;;  %v9698_v55 = vld [vmem:[%s11921_s1 + $0x368] sm:$0xff]  }
  0x27   : > { %8697 = vmatmul.mubr.bf16.vlgmr.msra.gmra.mrb[0].mxu0 %v3484_v59  ;;  %8268 = vmatprep.mubr.bf16.mxu1 %v307_v60  ;;  %v9699_v60 = vld [vmem:[%s11921_s1 + $0x28] sm:$0xff]  }
  0x28   : > { %8717 = vmatpush3.bf16.msra.mxu0 %v9676_v44  ;;  %8700 = vmatprep.mubr.bf16.mxu0 %v3486_v63  ;;  %v338_v44 = vrot.slane %v336_v34, 1  ;;  %v3494_v63 = vsel %vm727_vm0, %v3491_v40, %v3493_v46 }
  0x29   : > { %8718 = vmatprep.subr.bf16.mxu0 %v9677_v56  ;;  %8285 = vmatpush3.bf16.msra.mxu1 %v9681_v50  ;;  %v9696_v50 = vld [vmem:[%s11921_s1 + $0x20] sm:$0xff]  }
  0x2a   : > { %8286 = vmatprep.subr.bf16.mxu1 %v9684_v61  ;;  %v339_v59 = vsel %vm279_vm1, %v334_v43, %v338_v44  ;;  %v342_v7 = vor.u32 %v340_v48, %v338_v44  ;;  %v9705_v44 = vld [vmem:[%s10068_s10 + $0x60] ss:$0 sps:$4 sm:$0x11]  }
  0x2c   : > { %8719 = vmatpush3.bf16.msra.mxu0 %v9677_v56  ;;  %v3492_v56 = vsel %vm727_vm0, %v3489_v10, %v3491_v40  ;;  %v352_v10 = vshll.u32 %v10252_v1, 16  ;;  %v347_v36 = vsel %vm279_vm1, %v342_v7, %v346_v5  ;;  %v356_v40 = vshrl.u32 %v10252_v1, 16 }
  0x2d   : > { %8720 = vmatprep.subr.bf16.mxu0 %v9683_v6  ;;  %8287 = vmatpush3.bf16.msra.mxu1 %v9684_v61  ;;  %v348_v61 = vshrl.u32 %v10218_v35, 16  ;;  %v3499_v7 = vrot.slane %v9705_v44, 1 }
  0x2e   : > { %8269 = vmatmul.mubr.bf16.gmra.mrb[4].mxu1 %v315_v17  ;;  %8288 = vmatprep.subr.bf16.mxu1 %v9689_v12  ;;  %v3714_v17 = vshrl.u32 %v10103_v24, 16  ;;  %v354_v27 = vrot.slane %v352_v10, 1 }
  0x2f   : > { %8701 = vmatmul.mubr.bf16.gmra.mrb[4].mxu0 %v3488_v23  ;;  %8272 = vmatprep.mubr.bf16.mxu1 %v323_v25  ;;  %v350_v23 = vor.u32 %v348_v61, %v346_v5  ;;  %v3717_v25 = vshll.u32 %v10103_v24, 16  ;;  %v3496_v24 = vsel %vm727_vm0, %v3493_v46, %v3495_v9  ;;  %v3722_v46 = vrot.slane %v11939_v38, 2 }
  0x30   : > { %8721 = vmatpush3.bf16.msra.mxu0 %v9683_v6  ;;  %8704 = vmatprep.mubr.bf16.mxu0 %v3490_v30  ;;  %v10258_v6 = vld [vmem:[%s10068_s10 + $0x58] sm:$0xff]   ;;  %v9704_v30 = vld [vmem:[%s11921_s1 + $0x30] sm:$0xff]  }
  0x31   : > { %8722 = vmatprep.subr.bf16.mxu0 %v9687_v19  ;;  %8289 = vmatpush3.bf16.msra.mxu1 %v9689_v12  ;;  %v10265_v12 = vld [vmem:[%s10068_s10 + $0x50] ss:$0 sps:$4 sm:$0x11]   ;;  %v355_v43 = vsel %vm279_vm1, %v350_v23, %v354_v27  ;;  %v9708_v23 = vld [vmem:[%s11921_s1 + $0x380] sm:$0xff]  }
  0x32   : > { %8290 = vmatprep.subr.bf16.mxu1 %v9691_v28 }
  0x34   : > { %8723 = vmatpush3.bf16.msra.mxu0 %v9687_v19  ;;  %v9700_v19 = vld [vmem:[%s11921_s1 + $0x370] sm:$0xff]  }
  0x35   : > { %8724 = vmatprep.subr.bf16.mxu0 %v9692_v41  ;;  %8291 = vmatpush3.bf16.msra.mxu1 %v9691_v28  ;;  %v3497_v28 = vrot.slane %v10258_v6, 1 }
  0x36   : > { %8273 = vmatmul.mubr.bf16.gmra.mrb[8].mxu1 %v331_v52  ;;  %8292 = vmatprep.subr.bf16.mxu1 %v9696_v50  ;;  %v3716_v52 = vrot.slane %v3714_v17, 1  ;;  %v11934_v17 = vshrl.u32 %v10122_v37, 16 }
  0x37   : > { %8705 = vmatmul.mubr.bf16.gmra.mrb[8].mxu0 %v3492_v56  ;;  %8276 = vmatprep.mubr.bf16.mxu1 %v339_v59  ;;  %v3719_v56 = vrot.slane %v3717_v25, 2  ;;  %v3498_v59 = vsel %vm727_vm0, %v3495_v9, %v3497_v28  ;;  %v11937_v9 = vshll.u32 %v10122_v37, 16 }
  0x38   : > { %8725 = vmatpush3.bf16.msra.mxu0 %v9692_v41  ;;  %8708 = vmatprep.mubr.bf16.mxu0 %v3494_v63  ;;  %v360_v41 = vshll.u32 %v10265_v12, 16  ;;  %v3721_v63 = vrot.slane %v11936_v3, 1 }
  0x39   : > { %8293 = vmatpush3.bf16.msra.mxu1 %v9696_v50  ;;  %8726 = vmatprep.subr.bf16.mxu0 %v9698_v55  ;;  %v9706_v50 = vld [vmem:[%s11921_s1 + $0x378] sm:$0xff]   ;;  %v3720_v25 = vor.u32 %v3719_v56, %v3716_v52  ;;  %v3726_v44 = vrot.slane %v11937_v9, 2  ;;  %v10406_v9 = vld [vmem:[%s10068_s10 + $0x60] ss:$0 sps:$4 sm:$0x33]  }
  0x3a   : > { %8294 = vmatprep.subr.bf16.mxu1 %v9699_v60  ;;  %v362_v5 = vrot.slane %v360_v41, 1  ;;  %v3761_v54 = vshll.u32 %v10406_v9, 16 }
  0x3c   : > { %8727 = vmatpush3.bf16.msra.mxu0 %v9698_v55  ;;  %v9707_v55 = vld [vmem:[%s11921_s1 + $0x38] sm:$0xff]   ;;  %v3763_v57 = vrot.slane %v3761_v54, 2 }
  0x3d   : > { %8295 = vmatpush3.bf16.msra.mxu1 %v9699_v60  ;;  %8728 = vmatprep.subr.bf16.mxu0 %v9700_v19  ;;  %v358_v60 = vor.u32 %v356_v40, %v354_v27  ;;  %v11927_v27 = vshrl.u32 %v10130_v42, 16 }
  0x3e   : > { %8277 = vmatmul.mubr.bf16.gmra.mrb[12].mxu1 %v347_v36  ;;  %8296 = vmatprep.subr.bf16.mxu1 %v9704_v30  ;;  %v3723_v36 = vor.u32 %v3722_v46, %v3721_v63  ;;  %v11925_v46 = vshll.u32 %v10172_v2, 16 }
  0x3f   : > { %8709 = vmatmul.mubr.bf16.gmra.mrb[12].mxu0 %v3496_v24  ;;  %8280 = vmatprep.mubr.bf16.mxu1 %v355_v43  ;;  %v11933_v24 = vshll.u32 %v10130_v42, 16  ;;  %v363_v41 = vsel %vm279_vm1, %v358_v60, %v362_v5  ;;  %v3500_v43 = vsel %vm727_vm0, %v3497_v28, %v3499_v7  ;;  %v3729_v56 = vrot.slane %v11927_v27, 1 }
  0x40   : > { %8712 = vmatprep.mubr.bf16.mxu0 %v3498_v59  ;;  %8729 = vmatpush3.bf16.msra.mxu0 %v9700_v19  ;;  %v9710_v19 = vld [vmem:[%s11921_s1 + $0x80] sm:$0xff]   ;;  %v3724_v52 = vsel %vm961_vm2, %v3720_v25, %v3723_v36  ;;  %v11926_v28 = vshrl.u32 %v10157_v58, 16  ;;  %v11938_v27 = vshrl.u32 %v10238_v51, 16 }
  0x41   : > { %8297 = vmatpush3.bf16.msra.mxu1 %v9704_v30  ;;  %8730 = vmatprep.subr.bf16.mxu0 %v9706_v50  ;;  %v3725_v30 = vrot.slane %v11934_v17, 1  ;;  %v3730_v59 = vrot.slane %v11933_v24, 2 }
  0x42   : > { %8298 = vmatprep.subr.bf16.mxu1 %v9707_v55  ;;  %v3733_v5 = vrot.slane %v11926_v28, 1  ;;  %v9713_v28 = vld [vmem:[%s11921_s1 + $0x398] sm:$0xff]  }
  0x43   : > { %v3727_v63 = vor.u32 %v3726_v44, %v3725_v30  ;;  %v3731_v60 = vor.u32 %v3730_v59, %v3729_v56  ;;  %v11929_v44 = vshll.u32 %v10199_v21, 16 }
  0x44   : > { %8731 = vmatpush3.bf16.msra.mxu0 %v9706_v50  ;;  %v11930_v50 = vshll.u32 %v10157_v58, 16 }
  0x45   : > { %8299 = vmatpush3.bf16.msra.mxu1 %v9707_v55  ;;  %8752 = vmatprep.subr.bf16.mxu0 %v9708_v23  ;;  %v11924_v55 = vshrl.u32 %v10172_v2, 16  ;;  %v3728_v7 = vsel %vm961_vm2, %v3723_v36, %v3727_v63  ;;  %v3732_v30 = vsel %vm961_vm2, %v3727_v63, %v3731_v60  ;;  %v9712_v36 = vld [vmem:[%s11921_s1 + $0x88] sm:$0xff]   ;;  %v9711_v63 = vld [vmem:[%s11921_s1 + $0x390] sm:$0xff]  }
  0x46   : > { %8281 = vmatmul.mubr.bf16.gmra.mrb[16].mxu1 %v363_v41  ;;  %8320 = vmatprep.subr.bf16.mxu1 %v9710_v19  ;;  %v3734_v25 = vrot.slane %v11930_v50, 2  ;;  %v3738_v41 = vrot.slane %v11925_v46, 2  ;;  %v11932_v46 = vshll.u32 %v10214_v33, 16  ;;  %v3985_v50 = vrot.slane %v10157_v58, 2 }
  0x47   : > { %8713 = vmatmul.mubr.bf16.gmra.mrb[16].mxu0 %v3500_v43  ;;  %8300 = vmatprep.mubr.bf16.mxu1 %v10081_v14  ;;  %v3737_v14 = vrot.slane %v11924_v55, 1  ;;  %v9709_v43 = vld [vmem:[%s11921_s1 + $0x388] sm:$0xff]   ;;  %v9714_v55 = vld [vmem:[%s11921_s1 + $0x90] sm:$0xff]  }
  0x48   : > { %8732 = vmatprep.mubr.bf16.mxu0 %v3724_v52  ;;  %v11928_v52 = vshrl.u32 %v10199_v21, 16  ;;  %v3735_v56 = vor.u32 %v3734_v25, %v3733_v5  ;;  %v11935_v25 = vshll.u32 %v10238_v51, 16 }
  0x49   : > { %v3739_v59 = vor.u32 %v3738_v41, %v3737_v14  ;;  %v3981_v14 = vrot.slane %v10122_v37, 2 }
  0x4a   : > { %v3741_v5 = vrot.slane %v11928_v52, 1  ;;  %v3736_v41 = vsel %vm961_vm2, %v3731_v60, %v3735_v56  ;;  %v3983_v52 = vrot.slane %v10130_v42, 2  ;;  %v3746_v60 = vrot.slane %v11932_v46, 2 }
  0x4b   : > { %v3750_v46 = vrot.slane %v11935_v25, 2  ;;  %v3987_v25 = vrot.slane %v10172_v2, 2 }
  0x4c   : > { %v10388_v24 = vsel %vm1227_vm3, %v3981_v14, %v3983_v52  ;;  %v10397_v17 = vsel %vm1227_vm3, %v3983_v52, %v3985_v50  ;;  %v3991_v52 = vrot.slane %v10214_v33, 2 }
  0x4d   : > { %v10403_v3 = vsel %vm1227_vm3, %v3985_v50, %v3987_v25 }
  0x4e   : > { %8301 = vmatmul.mubr.bf16.vlgmr.msra.gmra.mrb[0].mxu1 %v10084_v15 }
  0x4f   : > { %8733 = vmatmul.mubr.bf16.vlgmr.msra.gmra.mrb[0].mxu0 %v3728_v7  ;;  %8304 = vmatprep.mubr.bf16.mxu1 %v10107_v26  ;;  %v11931_v7 = vshrl.u32 %v10214_v33, 16 }
  0x50   : > { %8753 = vmatpush3.bf16.msra.mxu0 %v9708_v23  ;;  %8736 = vmatprep.mubr.bf16.mxu0 %v3732_v30  ;;  %v3979_v23 = vrot.slane %v10087_v16, 2  ;;  %v3740_v30 = vsel %vm961_vm2, %v3735_v56, %v3739_v59 }
  0x51   : > { %8754 = vmatprep.subr.bf16.mxu0 %v9709_v43  ;;  %8321 = vmatpush3.bf16.msra.mxu1 %v9710_v19  ;;  %v3742_v19 = vrot.slane %v11929_v44, 2  ;;  %v9715_v44 = vld [vmem:[%s11921_s1 + $0x98] sm:$0xff]  }
  0x52   : > { %8322 = vmatprep.subr.bf16.mxu1 %v9712_v36  ;;  %v10377_v56 = vsel %vm1227_vm3, %v3979_v23, %v3981_v14 }
  0x54   : > { %8755 = vmatpush3.bf16.msra.mxu0 %v9709_v43  ;;  %v3745_v43 = vrot.slane %v11931_v7, 1  ;;  %v9716_v7 = vld [vmem:[%s11921_s1 + $0x3a0] sm:$0xff]  }
  0x55   : > { %8756 = vmatprep.subr.bf16.mxu0 %v9711_v63  ;;  %8323 = vmatpush3.bf16.msra.mxu1 %v9712_v36  ;;  %v3743_v36 = vor.u32 %v3742_v19, %v3741_v5  ;;  %v3749_v5 = vrot.slane %v11938_v27, 1  ;;  %v11941_v19 = vshll.u32 %v10258_v6, 16 }
  0x56   : > { %8305 = vmatmul.mubr.bf16.gmra.mrb[4].mxu1 %v10126_v39  ;;  %8324 = vmatprep.subr.bf16.mxu1 %v9714_v55  ;;  %v3747_v14 = vor.u32 %v3746_v60, %v3745_v43  ;;  %v3993_v43 = vrot.slane %v10238_v51, 2 }
  0x57   : > { %8737 = vmatmul.mubr.bf16.gmra.mrb[4].mxu0 %v3736_v41  ;;  %8308 = vmatprep.mubr.bf16.mxu1 %v10139_v47  ;;  %v9717_v41 = vld [vmem:[%s11921_s1 + $0xa0] sm:$0xff]   ;;  %v3744_v38 = vsel %vm961_vm2, %v3739_v59, %v3743_v36 }
  0x58   : > { %8757 = vmatpush3.bf16.msra.mxu0 %v9711_v63  ;;  %8740 = vmatprep.mubr.bf16.mxu0 %v3740_v30  ;;  %v11940_v63 = vshrl.u32 %v10258_v6, 16  ;;  %v3989_v30 = vrot.slane %v10199_v21, 2  ;;  %v3748_v50 = vsel %vm961_vm2, %v3743_v36, %v3747_v14  ;;  %v3995_v36 = vrot.slane %v10258_v6, 2 }
  0x59   : > { %8758 = vmatprep.subr.bf16.mxu0 %v9713_v28  ;;  %8325 = vmatpush3.bf16.msra.mxu1 %v9714_v55  ;;  %v9718_v55 = vld [vmem:[%s11921_s1 + $0x3a8] sm:$0xff]  }
  0x5a   : > { %8326 = vmatprep.subr.bf16.mxu1 %v9715_v44  ;;  %v10409_v27 = vsel %vm1227_vm3, %v3987_v25, %v3989_v30  ;;  %v3753_v60 = vrot.slane %v11940_v63, 1  ;;  %v3754_v25 = vrot.slane %v11941_v19, 2  ;;  %v10423_v59 = vsel %vm1227_vm3, %v3989_v30, %v3991_v52  ;;  %v9720_v30 = vld [vmem:[%s11921_s1 + $0x3b0] sm:$0xff]  }
  0x5b   : > { %v3751_v63 = vor.u32 %v3750_v46, %v3749_v5  ;;  %v3758_v19 = vshrl.u32 %v10406_v9, 16  ;;  %v3957_v46 = vld [vmem:[%s10068_s10 + $0x10] sm:$0xc] }
  0x5c   : > { %8759 = vmatpush3.bf16.msra.mxu0 %v9713_v28  ;;  %v9719_v28 = vld [vmem:[%s11921_s1 + $0xa8] sm:$0xff]   ;;  %v9721_v5 = vld [vmem:[%s11921_s1 + $0xb0] sm:$0xff]  }
  0x5d   : > { %8760 = vmatprep.subr.bf16.mxu0 %v9716_v7  ;;  %8327 = vmatpush3.bf16.msra.mxu1 %v9715_v44  ;;  %v10430_v44 = vsel %vm1227_vm3, %v3991_v52, %v3993_v43  ;;  %v10443_v52 = vsel %vm1227_vm3, %v3993_v43, %v3995_v36  ;;  %v3752_v45 = vsel %vm961_vm2, %v3747_v14, %v3751_v63  ;;  %v9724_v14 = vld [vmem:[%s11921_s1 + $0xb8] sm:$0xff]  }
  0x5e   : > { %8309 = vmatmul.mubr.bf16.gmra.mrb[8].mxu1 %v10167_v0  ;;  %8328 = vmatprep.subr.bf16.mxu1 %v9717_v41  ;;  %v10454_v43 = vcombine.low %v706_v62, %v10078_v13 }
  0x5f   : > { %8741 = vmatmul.mubr.bf16.gmra.mrb[8].mxu0 %v3744_v38  ;;  %8312 = vmatprep.mubr.bf16.mxu1 %v10184_v8  ;;  %v3755_v38 = vor.u32 %v3754_v25, %v3753_v60 }
  0x60   : > { %8761 = vmatpush3.bf16.msra.mxu0 %v9716_v7  ;;  %8744 = vmatprep.mubr.bf16.mxu0 %v3748_v50  ;;  %v9723_v7 = vld [vmem:[%s11921_s1 + $0x3b8] sm:$0xff]   ;;  %v3760_v50 = vrot.slane %v3758_v19, 1  ;;  %v728_v54 = vrot.slane %v10454_v43, 1  ;;  %v9727_v19 = vld [vmem:[%s11921_s1 + $0x3c0] sm:$0xff]  }
  0x61   : > { %8329 = vmatpush3.bf16.msra.mxu1 %v9717_v41  ;;  %8762 = vmatprep.subr.bf16.mxu0 %v9718_v55  ;;  %v7498_v41 = vcombine.low %v3957_v46, %v10093_v18  ;;  %v3756_v60 = vsel %vm961_vm2, %v3751_v63, %v3755_v38  ;;  %v729_v18 = vrot.slane %v10084_v15, 1  ;;  %v986_v63 = vrot.slane %v324_v20, 1 }
  0x62   : > { %8330 = vmatprep.subr.bf16.mxu1 %v9719_v28  ;;  %v3764_v13 = vor.u32 %v3763_v57, %v3760_v50  ;;  %v987_v57 = vrot.slane %v320_v4, 2  ;;  %v991_v20 = vrot.slane %v328_v11, 2  ;;  %v994_v4 = vrot.slane %v340_v48, 1 }
  0x63   : > { %v3978_v62 = vrot.slane %v7498_v41, 2  ;;  %v730_v25 = vsel %vm727_vm0, %v728_v54, %v729_v18  ;;  %v998_v11 = vrot.slane %v348_v61, 1  ;;  %v999_v48 = vrot.slane %v344_v49, 2 }
  0x64   : > { %8763 = vmatpush3.bf16.msra.mxu0 %v9718_v55  ;;  %v3765_v55 = vsel %vm961_vm2, %v3755_v38, %v3764_v13  ;;  %v10482_v46 = vor.u32 %v987_v57, %v986_v63  ;;  %v1003_v61 = vrot.slane %v352_v10, 2  ;;  %v9728_v13 = vld [vmem:[%s11921_s1 + $0x3c8] sm:$0xff]   ;;  %v735_v10 = vrot.slane %v10139_v47, 1  ;;  %v9730_v63 = vld [vmem:[%s11921_s1 + $0x3d0] sm:$0xff]  }
  0x65   : > { %8331 = vmatpush3.bf16.msra.mxu1 %v9719_v28  ;;  %8764 = vmatprep.subr.bf16.mxu0 %v9720_v30  ;;  %v990_v28 = vrot.slane %v332_v32, 1  ;;  %v731_v32 = vrot.slane %v10107_v26, 1  ;;  %v1002_v26 = vrot.slane %v356_v40, 1  ;;  %v9731_v40 = vld [vmem:[%s11921_s1 + $0xc8] sm:$0xff]   ;;  %v3997_v15 = vrot.slane %v10406_v9, 2 }
  0x66   : > { %8313 = vmatmul.mubr.bf16.gmra.mrb[12].mxu1 %v10209_v29  ;;  %8332 = vmatprep.subr.bf16.mxu1 %v9721_v5 }
  0x67   : > { %8745 = vmatmul.mubr.bf16.gmra.mrb[12].mxu0 %v3752_v45  ;;  %8316 = vmatprep.mubr.bf16.mxu1 %v10218_v35  ;;  %v9729_v45 = vld [vmem:[%s11921_s1 + $0xc0] sm:$0xff]   ;;  %v992_v38 = vor.u32 %v991_v20, %v990_v28  ;;  %v732_v41 = vsel %vm727_vm0, %v729_v18, %v731_v32  ;;  %v10516_v54 = vor.u32 %v1003_v61, %v1002_v26  ;;  %v963_v20 = vshrl.u32 %v10454_v43, 16 }
  0x68   : > { %8748 = vmatprep.mubr.bf16.mxu0 %v3756_v60  ;;  %8765 = vmatpush3.bf16.msra.mxu0 %v9720_v30  ;;  %v3980_v30 = vsel %vm1227_vm3, %v3978_v62, %v3979_v23  ;;  %v995_v23 = vrot.slane %v336_v34, 2  ;;  %v1000_v60 = vor.u32 %v999_v48, %v998_v11  ;;  %v737_v62 = vrot.slane %v10167_v0, 1  ;;  %v9732_v0 = vld [vmem:[%s11921_s1 + $0x3d8] sm:$0xff]   ;;  %v9736_v28 = vld [vmem:[%s11921_s1 + $0xe0] sm:$0xff]  }
  0x69   : > { %8333 = vmatpush3.bf16.msra.mxu1 %v9721_v5  ;;  %8766 = vmatprep.subr.bf16.mxu0 %v9723_v7  ;;  %v733_v5 = vrot.slane %v10126_v39, 1  ;;  %v9741_v11 = vld [vmem:[%s11921_s1 + $0x3f8] sm:$0xff]   ;;  %v9745_v26 = vld [vmem:[%s11921_s1 + $0x400] sm:$0xff]   ;;  %v3998_v9 = vsel %vm1227_vm3, %v3995_v36, %v3997_v15 }
  0x6a   : > { %8334 = vmatprep.subr.bf16.mxu1 %v9724_v14  ;;  %v996_v50 = vor.u32 %v995_v23, %v994_v4  ;;  %v10525_v18 = vsel %vm961_vm2, %v1000_v60, %v10516_v54  ;;  %v745_v4 = vrot.slane %v10252_v1, 1  ;;  %v965_v23 = vrot.slane %v963_v20, 1  ;;  %v10674_v15 = vld [vmem:[%s10068_s10 + $0x38] sm:$0xff]  }
  0x6b   : > { %v736_v57 = vsel %vm727_vm0, %v733_v5, %v735_v10 }
  0x6c   : > { %8767 = vmatpush3.bf16.msra.mxu0 %v9723_v7  ;;  %v10497_v7 = vsel %vm961_vm2, %v10482_v46, %v992_v38  ;;  %v10505_v34 = vsel %vm961_vm2, %v992_v38, %v996_v50  ;;  %v10514_v49 = vsel %vm961_vm2, %v996_v50, %v1000_v60  ;;  %v9739_v38 = vld [vmem:[%s11921_s1 + $0x3f0] sm:$0xff]   ;;  %v9742_v50 = vld [vmem:[%s11921_s1 + $0xf8] sm:$0xff]   ;;  %v11962_v60 = vshrl.u32 %v10126_v39, 16 }
  0x6d   : > { %8335 = vmatpush3.bf16.msra.mxu1 %v9724_v14  ;;  %8788 = vmatprep.subr.bf16.mxu0 %v9727_v19  ;;  %v734_v14 = vsel %vm727_vm0, %v731_v32, %v733_v5  ;;  %v966_v32 = vshll.u32 %v10454_v43, 16  ;;  %v971_v5 = vrot.slane %v288_v22, 2 }
  0x6e   : > { %8317 = vmatmul.mubr.bf16.gmra.mrb[16].mxu1 %v10252_v1  ;;  %8356 = vmatprep.subr.bf16.mxu1 %v9729_v45  ;;  %v978_v61 = vrot.slane %v11962_v60, 1 }
  0x6f   : > { %8749 = vmatmul.mubr.bf16.gmra.mrb[16].mxu0 %v3765_v55  ;;  %8336 = vmatprep.mubr.bf16.mxu1 %v730_v25  ;;  %v741_v55 = vrot.slane %v10209_v29, 1  ;;  %v9735_v25 = vld [vmem:[%s11921_s1 + $0x3e0] sm:$0xff]   ;;  %v9737_v29 = vld [vmem:[%s11921_s1 + $0x3e8] sm:$0xff]   ;;  %v968_v43 = vrot.slane %v966_v32, 2 }
  0x70   : > { %8768 = vmatprep.mubr.bf16.mxu0 %v3980_v30  ;;  %v743_v30 = vrot.slane %v10218_v35, 1  ;;  %v9740_v35 = vld [vmem:[%s11921_s1 + $0xf0] sm:$0xff]  }
  0x71   : > { %v969_v22 = vor.u32 %v968_v43, %v965_v23  ;;  %v10656_v23 = vld [vmem:[%s10068_s10 + $0x28] sm:$0xff]   ;;  %v9759_v43 = vld [vmem:[%s11921_s1 + $0x120] sm:$0xff]  }
  0x72   : > { %v746_v1 = vsel %vm727_vm0, %v743_v30, %v745_v4 }
  0x76   : > { %8337 = vmatmul.mubr.bf16.vlgmr.msra.gmra.mrb[0].mxu1 %v732_v41  ;;  %v9743_v41 = vld [vmem:[%s10068_s10 + $0x18] sm:$0xff]  }
  0x77   : > { %8769 = vmatmul.mubr.bf16.vlgmr.msra.gmra.mrb[0].mxu0 %v10377_v56  ;;  %8340 = vmatprep.mubr.bf16.mxu1 %v734_v14  ;;  %v9733_v56 = vld [vmem:[%s11921_s1 + $0xd0] sm:$0xff]   ;;  %v11963_v14 = vshll.u32 %v10126_v39, 16  ;;  %v9746_v39 = vld [vmem:[%s11921_s1 + $0x408] sm:$0xff]  }
  0x78   : > { %8789 = vmatpush3.bf16.msra.mxu0 %v9727_v19  ;;  %8772 = vmatprep.mubr.bf16.mxu0 %v10388_v24  ;;  %v738_v19 = vsel %vm727_vm0, %v735_v10, %v737_v62  ;;  %v9734_v24 = vld [vmem:[%s11921_s1 + $0xd8] sm:$0xff]  }
  0x79   : > { %8790 = vmatprep.subr.bf16.mxu0 %v9728_v13  ;;  %8357 = vmatpush3.bf16.msra.mxu1 %v9729_v45  ;;  %v739_v45 = vrot.slane %v10184_v8, 1 }
  0x7a   : > { %8358 = vmatprep.subr.bf16.mxu1 %v9731_v40 }
  0x7b   : > { %v742_v8 = vsel %vm727_vm0, %v739_v45, %v741_v55 }
  0x7c   : > { %8791 = vmatpush3.bf16.msra.mxu0 %v9728_v13  ;;  %v979_v13 = vrot.slane %v11963_v14, 2 }
  0x7d   : > { %8792 = vmatprep.subr.bf16.mxu0 %v9730_v63  ;;  %8359 = vmatpush3.bf16.msra.mxu1 %v9731_v40  ;;  %v9744_v40 = vld [vmem:[%s10068_s10 + $0x20] sm:$0xff]  }
  0x7e   : > { %8341 = vmatmul.mubr.bf16.gmra.mrb[4].mxu1 %v736_v57  ;;  %8360 = vmatprep.subr.bf16.mxu1 %v9733_v56  ;;  %v980_v36 = vor.u32 %v979_v13, %v978_v61  ;;  %v4591_v61 = vshll.u32 %v10674_v15, 16  ;;  %v1206_v13 = vld [vmem:[%s10068_s10] sm:$0xc] }
  0x7f   : > { %8773 = vmatmul.mubr.bf16.gmra.mrb[4].mxu0 %v10397_v17  ;;  %8344 = vmatprep.mubr.bf16.mxu1 %v738_v19  ;;  %v740_v17 = vsel %vm727_vm0, %v737_v62, %v739_v45  ;;  %v11964_v62 = vshrl.u32 %v10139_v47, 16  ;;  %v9751_v45 = vld [vmem:[%s11921_s1 + $0x108] sm:$0xff]  }
  0x80   : > { %8793 = vmatpush3.bf16.msra.mxu0 %v9730_v63  ;;  %8776 = vmatprep.mubr.bf16.mxu0 %v10403_v3  ;;  %v9738_v3 = vld [vmem:[%s11921_s1 + $0xe8] sm:$0xff]   ;;  %v981_v19 = vsel %vm961_vm2, %v10148_v53, %v980_v36 }
  0x81   : > { %8794 = vmatprep.subr.bf16.mxu0 %v9732_v0  ;;  %8361 = vmatpush3.bf16.msra.mxu1 %v9733_v56  ;;  %v982_v63 = vrot.slane %v11964_v62, 1  ;;  %v11965_v56 = vshll.u32 %v10139_v47, 16  ;;  %v9750_v47 = vld [vmem:[%s11921_s1 + $0x410] sm:$0xff]  }
  0x82   : > { %8362 = vmatprep.subr.bf16.mxu1 %v9734_v24 }
  0x83   : > { %v983_v57 = vrot.slane %v11965_v56, 2 }
  0x84   : > { %8795 = vmatpush3.bf16.msra.mxu0 %v9732_v0  ;;  %v9747_v0 = vld [vmem:[%s10068_s10 + $0x28] sm:$0xff]  }
  0x85   : > { %8796 = vmatprep.subr.bf16.mxu0 %v9735_v25  ;;  %8363 = vmatpush3.bf16.msra.mxu1 %v9734_v24  ;;  %v10619_v24 = vld [vmem:[%s10068_s10 + $0x50] ss:$0 sps:$4 sm:$0x33]  }
  0x86   : > { %8345 = vmatmul.mubr.bf16.gmra.mrb[8].mxu1 %v740_v17  ;;  %8364 = vmatprep.subr.bf16.mxu1 %v9736_v28  ;;  %v9752_v17 = vld [vmem:[%s10068_s10 + $0x38] sm:$0xff]   ;;  %v1010_v20 = vshll.u32 %v10619_v24, 16 }
  0x87   : > { %8777 = vmatmul.mubr.bf16.gmra.mrb[8].mxu0 %v10409_v27  ;;  %8348 = vmatprep.mubr.bf16.mxu1 %v742_v8  ;;  %v744_v27 = vsel %vm727_vm0, %v741_v55, %v743_v30  ;;  %v984_v55 = vor.u32 %v983_v57, %v982_v63  ;;  %v9754_v8 = vld [vmem:[%s11921_s1 + $0x110] sm:$0xff]   ;;  %v9753_v30 = vld [vmem:[%s11921_s1 + $0x418] sm:$0xff]  }
  0x88   : > { %8797 = vmatpush3.bf16.msra.mxu0 %v9735_v25  ;;  %8780 = vmatprep.mubr.bf16.mxu0 %v10423_v59  ;;  %v970_v59 = vrot.slane %v292_v31, 1  ;;  %v747_v31 = vrot.slane %v10265_v12, 1  ;;  %v9749_v25 = vld [vmem:[%s10068_s10 + $0x30] sm:$0xff]  }
  0x89   : > { %8365 = vmatpush3.bf16.msra.mxu1 %v9736_v28  ;;  %8798 = vmatprep.subr.bf16.mxu0 %v9737_v29  ;;  %v10630_v28 = vld [vmem:[%s10068_s10 + $0x1c] sm:$0xf]  ;;  %v9766_v63 = vld [vmem:[%s11921_s1 + $0x130] sm:$0xff]  }
  0x8a   : > { %8366 = vmatprep.subr.bf16.mxu1 %v9738_v3  ;;  %v972_v48 = vor.u32 %v971_v5, %v970_v59  ;;  %v748_v12 = vsel %vm727_vm0, %v745_v4, %v747_v31  ;;  %v989_v4 = vsel %vm961_vm2, %v984_v55, %v10482_v46  ;;  %v9757_v46 = vld [vmem:[%s11921_s1 + $0x420] sm:$0xff]   ;;  %v10661_v59 = vrot.slane %v1010_v20, 2 }
  0x8b   : > { %v4579_v31 = vshrl.u32 %v10656_v23, 16 }
  0x8c   : > { %8799 = vmatpush3.bf16.msra.mxu0 %v9737_v29  ;;  %v977_v10 = vsel %vm961_vm2, %v972_v48, %v10148_v53  ;;  %v4468_v53 = vld [vmem:[%s10068_s10 + $0x18] sm:$0xf]  ;;  %v1007_v29 = vshrl.u32 %v10619_v24, 16 }
  0x8d   : > { %8367 = vmatpush3.bf16.msra.mxu1 %v9738_v3  ;;  %8800 = vmatprep.subr.bf16.mxu0 %v9739_v38  ;;  %v985_v3 = vsel %vm961_vm2, %v980_v36, %v984_v55  ;;  %v10645_v32 = vcombine.low %v4468_v53, %v10630_v28  ;;  %v10697_v36 = vld [vmem:[%s10068_s10 + $0x40] sm:$0xff]   ;;  %v9764_v55 = vld [vmem:[%s10068_s10 + $0x58] sm:$0xff]  }
  0x8e   : > { %8349 = vmatmul.mubr.bf16.gmra.mrb[12].mxu1 %v744_v27  ;;  %8368 = vmatprep.subr.bf16.mxu1 %v9740_v35  ;;  %v10653_v27 = vrot.slane %v1007_v29, 1 }
  0x8f   : > { %8781 = vmatmul.mubr.bf16.gmra.mrb[12].mxu0 %v10430_v44  ;;  %8352 = vmatprep.mubr.bf16.mxu1 %v746_v1  ;;  %v9748_v44 = vld [vmem:[%s11921_s1 + $0x100] sm:$0xff]   ;;  %v10664_v1 = vld [vmem:[%s10068_s10 + $0x30] sm:$0xff]   ;;  %v4562_v5 = vshll.u32 %v10645_v32, 16 }
  0x90   : > { %8784 = vmatprep.mubr.bf16.mxu0 %v10443_v52  ;;  %8801 = vmatpush3.bf16.msra.mxu0 %v9739_v38  ;;  %v973_v52 = vsel %vm961_vm2, %v969_v22, %v972_v48  ;;  %v10648_v38 = vld [vmem:[%s10068_s10 + $0x20] sm:$0xff]   ;;  %v9758_v22 = vld [vmem:[%s10068_s10 + $0x48] sm:$0xff]  }
  0x91   : > { %8369 = vmatpush3.bf16.msra.mxu1 %v9740_v35  ;;  %8802 = vmatprep.subr.bf16.mxu0 %v9741_v11  ;;  %v9756_v35 = vld [vmem:[%s11921_s1 + $0x118] sm:$0xff]   ;;  %v4571_v48 = vshrl.u32 %v10648_v38, 16 }
  0x92   : > { %8370 = vmatprep.subr.bf16.mxu1 %v9742_v50 }
  0x93   : > { %v5096_v60 = vrot.slane %v4571_v48, 1 }
  0x94   : > { %8803 = vmatpush3.bf16.msra.mxu0 %v9741_v11  ;;  %v4567_v11 = vshll.u32 %v10648_v38, 16 }
  0x95   : > { %8371 = vmatpush3.bf16.msra.mxu1 %v9742_v50  ;;  %8824 = vmatprep.subr.bf16.mxu0 %v9745_v26  ;;  %v9755_v50 = vld [vmem:[%s10068_s10 + $0x40] sm:$0xff]  }
  0x96   : > { %8353 = vmatmul.mubr.bf16.gmra.mrb[16].mxu1 %v748_v12  ;;  %8392 = vmatprep.subr.bf16.mxu1 %v9748_v44  ;;  %v4583_v12 = vshll.u32 %v10664_v1, 16  ;;  %v5097_v14 = vrot.slane %v4567_v11, 2 }
  0x97   : > { %8785 = vmatmul.mubr.bf16.gmra.mrb[16].mxu0 %v3998_v9  ;;  %8372 = vmatprep.mubr.bf16.mxu1 %v973_v52  ;;  %v5100_v9 = vrot.slane %v4579_v31, 1  ;;  %v9762_v52 = vld [vmem:[%s11921_s1 + $0x128] sm:$0xff]  }
  0x98   : > { %8804 = vmatprep.mubr.bf16.mxu0 %v9743_v41  ;;  %v4587_v41 = vshrl.u32 %v10664_v1, 16  ;;  %v10706_v62 = vor.u32 %v5097_v14, %v5096_v60  ;;  %v5105_v57 = vrot.slane %v4583_v12, 2 }
  0x9e   : > { %8373 = vmatmul.mubr.bf16.vlgmr.msra.gmra.mrb[0].mxu1 %v977_v10  ;;  %v9763_v10 = vld [vmem:[%s11921_s1 + $0x430] sm:$0xff]  }
  0x9f   : > { %8805 = vmatmul.mubr.bf16.vlgmr.msra.gmra.mrb[0].mxu0 %v9744_v40  ;;  %8376 = vmatprep.mubr.bf16.mxu1 %v981_v19  ;;  %v9760_v19 = vld [vmem:[%s10068_s10 + $0x50] sm:$0xff]  }
  0xa0   : > { %8825 = vmatpush3.bf16.msra.mxu0 %v9745_v26  ;;  %8808 = vmatprep.mubr.bf16.mxu0 %v9747_v0  ;;  %v4575_v26 = vshll.u32 %v10656_v23, 16  ;;  %v4603_v0 = vshrl.u32 %v10697_v36, 16 }
  0xa1   : > { %8826 = vmatprep.subr.bf16.mxu0 %v9746_v39  ;;  %8393 = vmatpush3.bf16.msra.mxu1 %v9748_v44  ;;  %v9761_v44 = vld [vmem:[%s11921_s1 + $0x428] sm:$0xff]  }
  0xa2   : > { %8394 = vmatprep.subr.bf16.mxu1 %v9751_v45  ;;  %v5101_v40 = vrot.slane %v4575_v26, 2 }
  0xa4   : > { %8827 = vmatpush3.bf16.msra.mxu0 %v9746_v39  ;;  %v4595_v39 = vshrl.u32 %v10674_v15, 16  ;;  %v5102_v56 = vor.u32 %v5101_v40, %v5100_v9  ;;  %v9769_v9 = vld [vmem:[%s11921_s1 + $0x138] sm:$0xff]  }
  0xa5   : > { %8828 = vmatprep.subr.bf16.mxu0 %v9750_v47  ;;  %8395 = vmatpush3.bf16.msra.mxu1 %v9751_v45 }
  0xa6   : > { %8377 = vmatmul.mubr.bf16.gmra.mrb[4].mxu1 %v985_v3  ;;  %8396 = vmatprep.subr.bf16.mxu1 %v9754_v8  ;;  %v5108_v45 = vrot.slane %v4595_v39, 1  ;;  %v10726_v53 = vsel %vm961_vm2, %v10706_v62, %v5102_v56 }
  0xa7   : > { %8809 = vmatmul.mubr.bf16.gmra.mrb[4].mxu0 %v9749_v25  ;;  %8380 = vmatprep.mubr.bf16.mxu1 %v989_v4 }
  0xa8   : > { %8829 = vmatpush3.bf16.msra.mxu0 %v9750_v47  ;;  %8812 = vmatprep.mubr.bf16.mxu0 %v9752_v17  ;;  %v4599_v47 = vshll.u32 %v10697_v36, 16  ;;  %v5109_v17 = vrot.slane %v4591_v61, 2 }
  0xa9   : > { %8830 = vmatprep.subr.bf16.mxu0 %v9753_v30  ;;  %8397 = vmatpush3.bf16.msra.mxu1 %v9754_v8  ;;  %v9964_v8 = vld [vmem:[%s10068_s10 + $0x4] sm:$0xf] }
  0xaa   : > { %8398 = vmatprep.subr.bf16.mxu1 %v9756_v35  ;;  %v7210_v29 = vcombine.low %v1206_v13, %v9964_v8 }
  0xac   : > { %8831 = vmatpush3.bf16.msra.mxu0 %v9753_v30  ;;  %v5112_v30 = vrot.slane %v4603_v0, 1 }
  0xad   : > { %8832 = vmatprep.subr.bf16.mxu0 %v9757_v46  ;;  %8399 = vmatpush3.bf16.msra.mxu1 %v9756_v35  ;;  %v5110_v35 = vor.u32 %v5109_v17, %v5108_v45  ;;  %v9967_v17 = vld [vmem:[%s10068_s10 + $0x18] sm:$0xff]  }
  0xae   : > { %8381 = vmatmul.mubr.bf16.gmra.mrb[8].mxu1 %v10497_v7  ;;  %8400 = vmatprep.subr.bf16.mxu1 %v9759_v43  ;;  %v5104_v7 = vrot.slane %v4587_v41, 1  ;;  %v1233_v8 = vrot.slane %v9967_v17, 2 }
  0xaf   : > { %8813 = vmatmul.mubr.bf16.gmra.mrb[8].mxu0 %v9755_v50  ;;  %8384 = vmatprep.mubr.bf16.mxu1 %v10505_v34  ;;  %v10714_v34 = vld [vmem:[%s10068_s10 + $0x48] sm:$0xff]   ;;  %v4560_v50 = vshrl.u32 %v10645_v32, 16  ;;  %v1013_v32 = vor.u32 %v10661_v59, %v10653_v27 }
  0xb0   : > { %8833 = vmatpush3.bf16.msra.mxu0 %v9757_v46  ;;  %8816 = vmatprep.mubr.bf16.mxu0 %v9758_v22  ;;  %v5106_v25 = vor.u32 %v5105_v57, %v5104_v7  ;;  %v4611_v3 = vshrl.u32 %v10714_v34, 16  ;;  %v4607_v20 = vshll.u32 %v10714_v34, 16  ;;  %v5113_v46 = vrot.slane %v4599_v47, 2 }
  0xb1   : > { %8401 = vmatpush3.bf16.msra.mxu1 %v9759_v43  ;;  %8834 = vmatprep.subr.bf16.mxu0 %v9761_v44  ;;  %v9768_v43 = vld [vmem:[%s11921_s1 + $0x438] sm:$0xff]   ;;  %v4564_v22 = vrot.slane %v4562_v5, 1  ;;  %v9965_v5 = vld [vmem:[%s10068_s10 + $0x8] sm:$0xff]   ;;  %v4569_v7 = vrot.slane %v4567_v11, 1 }
  0xb2   : > { %8402 = vmatprep.subr.bf16.mxu1 %v9762_v52  ;;  %v10736_v4 = vsel %vm961_vm2, %v5102_v56, %v5106_v25  ;;  %v5114_v60 = vor.u32 %v5113_v46, %v5112_v30  ;;  %v5117_v14 = vrot.slane %v4607_v20, 2  ;;  %v1229_v13 = vrot.slane %v9965_v5, 2  ;;  %v9767_v56 = vld [vmem:[%s10068_s10 + $0x60] sm:$0xff]   ;;  %v9969_v5 = vld [vmem:[%s10068_s10 + $0x28] sm:$0xff]  }
  0xb3   : > { %v4565_v40 = vor.u32 %v4564_v22, %v4560_v50  ;;  %v4573_v30 = vor.u32 %v4571_v48, %v4569_v7 }
  0xb4   : > { %8835 = vmatpush3.bf16.msra.mxu0 %v9761_v44  ;;  %v5116_v44 = vrot.slane %v4611_v3, 1  ;;  %v10765_v27 = vsel %vm961_vm2, %v5110_v35, %v5114_v60 }
  0xb5   : > { %8403 = vmatpush3.bf16.msra.mxu1 %v9762_v52  ;;  %8836 = vmatprep.subr.bf16.mxu0 %v9763_v10  ;;  %v10751_v52 = vsel %vm961_vm2, %v5106_v25, %v5110_v35  ;;  %v4570_v45 = vsel %vm279_vm1, %v4565_v40, %v4569_v7  ;;  %v4593_v7 = vrot.slane %v4591_v61, 1 }
  0xb6   : > { %8385 = vmatmul.mubr.bf16.gmra.mrb[12].mxu1 %v10514_v49  ;;  %8404 = vmatprep.subr.bf16.mxu1 %v9766_v63  ;;  %v1228_v49 = vrot.slane %v7210_v29, 2  ;;  %v5118_v59 = vor.u32 %v5117_v14, %v5116_v44  ;;  %v10799_v44 = vld [vmem:[%s10068_s10 + $0x58] sm:$0xff]  }
  0xb7   : > { %8817 = vmatmul.mubr.bf16.gmra.mrb[12].mxu0 %v9760_v19  ;;  %8388 = vmatprep.mubr.bf16.mxu1 %v10525_v18  ;;  %v9774_v18 = vld [vmem:[%s11921_s1 + $0x440] sm:$0xff]   ;;  %v10778_v19 = vld [vmem:[%s10068_s10 + $0x50] sm:$0xff]   ;;  %v4597_v61 = vor.u32 %v4595_v39, %v4593_v7 }
  0xb8   : > { %8820 = vmatprep.mubr.bf16.mxu0 %v9764_v55  ;;  %8837 = vmatpush3.bf16.msra.mxu0 %v9763_v10  ;;  %v9777_v10 = vld [vmem:[%s11921_s1 + $0x140] sm:$0xff]   ;;  %v10774_v11 = vsel %vm961_vm2, %v5114_v60, %v5118_v59  ;;  %v1230_v57 = vsel %vm1227_vm3, %v1228_v49, %v1229_v13  ;;  %v9966_v55 = vld [vmem:[%s10068_s10 + $0x10] sm:$0xff]   ;;  %v4619_v29 = vshrl.u32 %v10778_v19, 16  ;;  %v4615_v35 = vshll.u32 %v10778_v19, 16  ;;  %v9780_v49 = vld [vmem:[%s11921_s1 + $0x148] sm:$0xff]  }
  0xb9   : > { %8405 = vmatpush3.bf16.msra.mxu1 %v9766_v63  ;;  %8838 = vmatprep.subr.bf16.mxu0 %v9768_v43  ;;  %v1014_v63 = vsel %vm961_vm2, %v10516_v54, %v1013_v32  ;;  %v1231_v25 = vrot.slane %v9966_v55, 2  ;;  %v4577_v54 = vrot.slane %v4575_v26, 1  ;;  %v4601_v55 = vrot.slane %v4599_v47, 1 }
  0xba   : > { %8406 = vmatprep.subr.bf16.mxu1 %v9769_v9  ;;  %v5120_v46 = vrot.slane %v4619_v29, 1  ;;  %v5121_v50 = vrot.slane %v4615_v35, 2 }
  0xbb   : > { %v4581_v26 = vor.u32 %v4579_v31, %v4577_v54  ;;  %v1232_v22 = vsel %vm1227_vm3, %v1229_v13, %v1231_v25  ;;  %v4578_v48 = vsel %vm279_vm1, %v4573_v30, %v4577_v54  ;;  %v9775_v31 = vld [vmem:[%s11921_s1 + $0x448] sm:$0xff]   ;;  %v1237_v13 = vrot.slane %v9969_v5, 2 }
  0xbc   : > { %8839 = vmatpush3.bf16.msra.mxu0 %v9768_v43  ;;  %v4585_v43 = vrot.slane %v4583_v12, 1  ;;  %v5122_v60 = vor.u32 %v5121_v50, %v5120_v46  ;;  %v9968_v12 = vld [vmem:[%s10068_s10 + $0x20] sm:$0xff]   ;;  %v4602_v46 = vsel %vm279_vm1, %v4597_v61, %v4601_v55  ;;  %v10881_v61 = vld [vmem:[%s10068_s10 + $0x68] ss:$0 sps:$4 sm:$0x11]  }
  0xbd   : > { %8407 = vmatpush3.bf16.msra.mxu1 %v9769_v9  ;;  %8860 = vmatprep.subr.bf16.mxu0 %v9774_v18  ;;  %v1234_v9 = vsel %vm1227_vm3, %v1231_v25, %v1233_v8  ;;  %v1235_v32 = vrot.slane %v9968_v12, 2  ;;  %v9971_v12 = vld [vmem:[%s10068_s10 + $0x38] sm:$0xff]  }
  0xbe   : > { %8389 = vmatmul.mubr.bf16.gmra.mrb[16].mxu1 %v1014_v63  ;;  %8428 = vmatprep.subr.bf16.mxu1 %v9777_v10  ;;  %v4586_v14 = vsel %vm279_vm1, %v4581_v26, %v4585_v43  ;;  %v10813_v40 = vsel %vm961_vm2, %v5118_v59, %v5122_v60  ;;  %v4623_v63 = vshll.u32 %v10799_v44, 16  ;;  %v9779_v59 = vld [vmem:[%s11921_s1 + $0x450] sm:$0xff]  }
  0xbf   : > { %8821 = vmatmul.mubr.bf16.gmra.mrb[16].mxu0 %v9767_v56  ;;  %8408 = vmatprep.mubr.bf16.mxu1 %v1230_v57  ;;  %v10819_v56 = vld [vmem:[%s10068_s10 + $0x60] sm:$0xff]   ;;  %v4627_v57 = vshrl.u32 %v10799_v44, 16  ;;  %v1236_v25 = vsel %vm1227_vm3, %v1233_v8, %v1235_v32  ;;  %v1238_v47 = vsel %vm1227_vm3, %v1235_v32, %v1237_v13  ;;  %v9782_v8 = vld [vmem:[%s11921_s1 + $0x458] sm:$0xff]   ;;  %v1241_v32 = vrot.slane %v9971_v12, 2 }
  0xc0   : > { %8840 = vmatprep.mubr.bf16.mxu0 %v4570_v45  ;;  %v4589_v45 = vor.u32 %v4587_v41, %v4585_v43  ;;  %v4635_v54 = vshrl.u32 %v10819_v56, 16  ;;  %v4631_v17 = vshll.u32 %v10819_v56, 16  ;;  %v9785_v43 = vld [vmem:[%s11921_s1 + $0x158] sm:$0xff]   ;;  %v4856_v12 = vrot.slane %v10648_v38, 1 }
  0xc1   : > { %v5124_v41 = vrot.slane %v4627_v57, 1 }
  0xc2   : > { %v4594_v39 = vsel %vm279_vm1, %v4589_v45, %v4593_v7  ;;  %v5128_v26 = vrot.slane %v4635_v54, 1 }
  0xc6   : > { %8409 = vmatmul.mubr.bf16.vlgmr.msra.gmra.mrb[0].mxu1 %v1232_v22  ;;  %v5129_v22 = vrot.slane %v4631_v17, 2 }
  0xc7   : > { %8841 = vmatmul.mubr.bf16.vlgmr.msra.gmra.mrb[0].mxu0 %v4578_v48  ;;  %8412 = vmatprep.mubr.bf16.mxu1 %v1234_v9  ;;  %v9970_v48 = vld [vmem:[%s10068_s10 + $0x30] sm:$0xff]  }
  0xc8   : > { %8861 = vmatpush3.bf16.msra.mxu0 %v9774_v18  ;;  %8844 = vmatprep.mubr.bf16.mxu0 %v4586_v14  ;;  %v9783_v18 = vld [vmem:[%s11921_s1 + $0x150] sm:$0xff]   ;;  %v1239_v9 = vrot.slane %v9970_v48, 2  ;;  %v4605_v14 = vor.u32 %v4603_v0, %v4601_v55  ;;  %v9788_v0 = vld [vmem:[%s11921_s1 + $0x160] sm:$0xff]   ;;  %v9790_v55 = vld [vmem:[%s11921_s1 + $0x468] sm:$0xff]  }
  0xc9   : > { %8862 = vmatprep.subr.bf16.mxu0 %v9775_v31  ;;  %8429 = vmatpush3.bf16.msra.mxu1 %v9777_v10  ;;  %v5125_v10 = vrot.slane %v4623_v63, 2 }
  0xca   : > { %8430 = vmatprep.subr.bf16.mxu1 %v9780_v49  ;;  %v1240_v45 = vsel %vm1227_vm3, %v1237_v13, %v1239_v9  ;;  %v9791_v13 = vld [vmem:[%s11921_s1 + $0x168] sm:$0xff]  }
  0xcb   : > { %v5126_v30 = vor.u32 %v5125_v10, %v5124_v41  ;;  %v4625_v10 = vrot.slane %v4623_v63, 1  ;;  %v9794_v63 = vld [vmem:[%s11921_s1 + $0x170] sm:$0xff]  }
  0xcc   : > { %8863 = vmatpush3.bf16.msra.mxu0 %v9775_v31  ;;  %v4609_v31 = vrot.slane %v4607_v20, 1  ;;  %v4617_v20 = vrot.slane %v4615_v35, 1 }
  0xcd   : > { %8864 = vmatprep.subr.bf16.mxu0 %v9779_v59  ;;  %8431 = vmatpush3.bf16.msra.mxu1 %v9780_v49  ;;  %v10853_v50 = vsel %vm961_vm2, %v5122_v60, %v5126_v30  ;;  %v10861_v49 = vor.u32 %v5129_v22, %v5128_v26  ;;  %v9786_v60 = vld [vmem:[%s11921_s1 + $0x460] sm:$0xff]   ;;  %v4633_v26 = vrot.slane %v4631_v17, 1 }
  0xce   : > { %8413 = vmatmul.mubr.bf16.gmra.mrb[4].mxu1 %v1236_v25  ;;  %8432 = vmatprep.subr.bf16.mxu1 %v9783_v18  ;;  %v4613_v5 = vor.u32 %v4611_v3, %v4609_v31  ;;  %v1242_v3 = vsel %vm1227_vm3, %v1239_v9, %v1241_v32  ;;  %v9973_v25 = vld [vmem:[%s10068_s10 + $0x48] sm:$0xff]  }
  0xcf   : > { %8845 = vmatmul.mubr.bf16.gmra.mrb[4].mxu0 %v4594_v39  ;;  %8416 = vmatprep.mubr.bf16.mxu1 %v1238_v47  ;;  %v10875_v7 = vsel %vm961_vm2, %v5126_v30, %v10861_v49  ;;  %v1245_v39 = vrot.slane %v9973_v25, 2  ;;  %v4621_v47 = vor.u32 %v4619_v29, %v4617_v20  ;;  %v4834_v30 = vld [vmem:[%s10068_s10 + $0x18] sm:$0xe]  ;;  %v4637_v38 = vor.u32 %v4635_v54, %v4633_v26 }
  0xd0   : > { %8865 = vmatpush3.bf16.msra.mxu0 %v9779_v59  ;;  %8848 = vmatprep.mubr.bf16.mxu0 %v4602_v46  ;;  %v4610_v59 = vsel %vm279_vm1, %v4605_v14, %v4609_v31  ;;  %v4618_v35 = vsel %vm279_vm1, %v4613_v5, %v4617_v20  ;;  %v9792_v46 = vld [vmem:[%s11921_s1 + $0x470] sm:$0xff]   ;;  %v10908_v22 = vcombine.low %v4834_v30, %v10630_v28  ;;  %v1247_v31 = vrot.slane %v10619_v24, 2  ;;  %v9797_v28 = vld [vmem:[%s11921_s1 + $0x178] sm:$0xff]   ;;  %v10929_v5 = vld [vmem:[%s11921_s1 + $0x480] sm:$0xff]  }
  0xd1   : > { %8866 = vmatprep.subr.bf16.mxu0 %v9782_v8  ;;  %8433 = vmatpush3.bf16.msra.mxu1 %v9783_v18  ;;  %v9972_v18 = vld [vmem:[%s10068_s10 + $0x40] sm:$0xff]   ;;  %v4626_v48 = vsel %vm279_vm1, %v4621_v47, %v4625_v10  ;;  %v4860_v20 = vrot.slane %v10664_v1, 1  ;;  %v9812_v1 = vld [vmem:[%s11921_s1 + $0x198] sm:$0xff]  }
  0xd2   : > { %8434 = vmatprep.subr.bf16.mxu1 %v9785_v43  ;;  %v1243_v41 = vrot.slane %v9972_v18, 2  ;;  %v4855_v24 = vrot.slane %v10908_v22, 1  ;;  %v1248_v54 = vsel %vm1227_vm3, %v1245_v39, %v1247_v31 }
  0xd4   : > { %8867 = vmatpush3.bf16.msra.mxu0 %v9782_v8  ;;  %v4629_v8 = vor.u32 %v4627_v57, %v4625_v10  ;;  %v1244_v29 = vsel %vm1227_vm3, %v1241_v32, %v1243_v41  ;;  %v1246_v9 = vsel %vm1227_vm3, %v1243_v41, %v1245_v39  ;;  %v9796_v57 = vld [vmem:[%s11921_s1 + $0x478] sm:$0xff]   ;;  %v4858_v32 = vrot.slane %v10656_v23, 1  ;;  %v9798_v23 = vld [vmem:[%s10068_s10 + $0x8] sm:$0xff]  }
  0xd5   : > { %8868 = vmatprep.subr.bf16.mxu0 %v9786_v60  ;;  %8435 = vmatpush3.bf16.msra.mxu1 %v9785_v43  ;;  %v4639_v43 = vshll.u32 %v10881_v61, 16  ;;  %v4857_v41 = vsel %vm727_vm0, %v4855_v24, %v4856_v12  ;;  %v4862_v10 = vrot.slane %v10674_v15, 1  ;;  %v9802_v24 = vld [vmem:[%s11921_s1 + $0x488] sm:$0xff]  }
  0xd6   : > { %8417 = vmatmul.mubr.bf16.gmra.mrb[8].mxu1 %v1240_v45  ;;  %8436 = vmatprep.subr.bf16.mxu1 %v9788_v0  ;;  %v4634_v17 = vsel %vm279_vm1, %v4629_v8, %v4633_v26  ;;  %v10941_v45 = vld [vmem:[%s11921_s1 + $0x180] sm:$0xff]  }
  0xd7   : > { %8849 = vmatmul.mubr.bf16.gmra.mrb[8].mxu0 %v4610_v59  ;;  %8420 = vmatprep.mubr.bf16.mxu1 %v1242_v3  ;;  %v4641_v14 = vrot.slane %v4639_v43, 1 }
  0xd8   : > { %8869 = vmatpush3.bf16.msra.mxu0 %v9786_v60  ;;  %8852 = vmatprep.mubr.bf16.mxu0 %v4618_v35  ;;  %v10923_v60 = vld [vmem:[%s10068_s10 + $0x10] sm:$0xff]   ;;  %v10946_v35 = vld [vmem:[%s10068_s10 + $0x20] sm:$0xff]  }
  0xd9   : > { %8437 = vmatpush3.bf16.msra.mxu1 %v9788_v0  ;;  %8870 = vmatprep.subr.bf16.mxu0 %v9790_v55  ;;  %v10936_v0 = vld [vmem:[%s10068_s10 + $0x18] sm:$0xff]   ;;  %v11957_v59 = vshll.u32 %v10923_v60, 16  ;;  %v11951_v3 = vshrl.u32 %v10923_v60, 16  ;;  %v4642_v18 = vsel %vm279_vm1, %v4637_v38, %v4641_v14  ;;  %v11949_v30 = vshll.u32 %v10946_v35, 16 }
  0xda   : > { %8438 = vmatprep.subr.bf16.mxu1 %v9791_v13  ;;  %v11952_v25 = vshll.u32 %v10936_v0, 16  ;;  %v11947_v8 = vshrl.u32 %v10946_v35, 16 }
  0xdb   : > { %v2346_v47 = vrot.slane %v11951_v3, 1  ;;  %v2355_v14 = vrot.slane %v11949_v30, 2 }
  0xdc   : > { %8871 = vmatpush3.bf16.msra.mxu0 %v9790_v55  ;;  %v11950_v55 = vshrl.u32 %v10936_v0, 16  ;;  %v2351_v43 = vrot.slane %v11952_v25, 2  ;;  %v2354_v31 = vrot.slane %v11947_v8, 1 }
  0xdd   : > { %8439 = vmatpush3.bf16.msra.mxu1 %v9791_v13  ;;  %8872 = vmatprep.subr.bf16.mxu0 %v9792_v46  ;;  %v10951_v13 = vld [vmem:[%s10068_s10 + $0x28] sm:$0xff]  }
  0xde   : > { %8421 = vmatmul.mubr.bf16.gmra.mrb[12].mxu1 %v1244_v29  ;;  %8440 = vmatprep.subr.bf16.mxu1 %v9794_v63  ;;  %v2350_v39 = vrot.slane %v11950_v55, 1  ;;  %v11948_v26 = vshll.u32 %v10951_v13, 16  ;;  %v9800_v29 = vld [vmem:[%s10068_s10 + $0x10] sm:$0xff]  }
  0xdf   : > { %8853 = vmatmul.mubr.bf16.gmra.mrb[12].mxu0 %v4626_v48  ;;  %8424 = vmatprep.mubr.bf16.mxu1 %v1246_v9  ;;  %v9803_v9 = vld [vmem:[%s10068_s10 + $0x18] sm:$0xff]  }
  0xe0   : > { %8856 = vmatprep.mubr.bf16.mxu0 %v4634_v17  ;;  %8873 = vmatpush3.bf16.msra.mxu0 %v9792_v46  ;;  %v2347_v46 = vrot.slane %v11957_v59, 2  ;;  %v2352_v17 = vor.u32 %v2351_v43, %v2350_v39  ;;  %v4866_v39 = vrot.slane %v10714_v34, 1  ;;  %v9807_v43 = vld [vmem:[%s11921_s1 + $0x188] sm:$0xff]  }
  0xe1   : > { %8441 = vmatpush3.bf16.msra.mxu1 %v9794_v63  ;;  %8874 = vmatprep.subr.bf16.mxu0 %v9796_v57  ;;  %v10969_v63 = vld [vmem:[%s10068_s10 + $0x30] sm:$0xff]   ;;  %v9818_v34 = vld [vmem:[%s11921_s1 + $0x1a8] sm:$0xff]  }
  0xe2   : > { %8442 = vmatprep.subr.bf16.mxu1 %v9797_v28  ;;  %v10974_v48 = vor.u32 %v2347_v46, %v2346_v47  ;;  %v2356_v47 = vor.u32 %v2355_v14, %v2354_v31  ;;  %v4861_v46 = vsel %vm727_vm0, %v4858_v32, %v4860_v20  ;;  %v11953_v8 = vshrl.u32 %v10969_v63, 16 }
  0xe4   : > { %8875 = vmatpush3.bf16.msra.mxu0 %v9796_v57  ;;  %v11946_v57 = vshrl.u32 %v10951_v13, 16  ;;  %v10990_v38 = vsel %vm961_vm2, %v10974_v48, %v2352_v17  ;;  %v11011_v30 = vsel %vm961_vm2, %v2352_v17, %v2356_v47  ;;  %v4868_v17 = vrot.slane %v10778_v19, 1  ;;  %v9824_v19 = vld [vmem:[%s11921_s1 + $0x1b8] sm:$0xff]  }
  0xe5   : > { %8443 = vmatpush3.bf16.msra.mxu1 %v9797_v28  ;;  %8896 = vmatprep.subr.bf16.mxu0 %v10929_v5  ;;  %v10981_v28 = vld [vmem:[%s10068_s10 + $0x38] sm:$0xff]  }
  0xe6   : > { %8425 = vmatmul.mubr.bf16.gmra.mrb[16].mxu1 %v1248_v54  ;;  %8464 = vmatprep.subr.bf16.mxu1 %v10941_v45  ;;  %v2359_v54 = vrot.slane %v11948_v26, 2  ;;  %v11008_v26 = vld [vmem:[%s10068_s10 + $0x40] sm:$0xff]   ;;  %v11956_v31 = vshll.u32 %v10981_v28, 16  ;;  %v11955_v14 = vshrl.u32 %v10981_v28, 16 }
  0xe7   : > { %8857 = vmatmul.mubr.bf16.gmra.mrb[16].mxu0 %v4642_v18  ;;  %8444 = vmatprep.mubr.bf16.mxu1 %v9798_v23  ;;  %v2358_v23 = vrot.slane %v11946_v57, 1  ;;  %v4859_v18 = vsel %vm727_vm0, %v4856_v12, %v4858_v32  ;;  %v11954_v57 = vshll.u32 %v10969_v63, 16  ;;  %v9806_v32 = vld [vmem:[%s11921_s1 + $0x490] sm:$0xff]  }
  0xe8   : > { %8876 = vmatprep.mubr.bf16.mxu0 %v4857_v41  ;;  %v4864_v41 = vrot.slane %v10697_v36, 1  ;;  %v2367_v3 = vrot.slane %v11956_v31, 2  ;;  %v9817_v36 = vld [vmem:[%s11921_s1 + $0x4a8] sm:$0xff]  }
  0xe9   : > { %v2360_v12 = vor.u32 %v2359_v54, %v2358_v23  ;;  %v2362_v23 = vrot.slane %v11953_v8, 1  ;;  %v2363_v54 = vrot.slane %v11954_v57, 2  ;;  %v9809_v8 = vld [vmem:[%s11921_s1 + $0x498] sm:$0xff]  }
  0xeb   : > { %v11019_v55 = vsel %vm961_vm2, %v2356_v47, %v2360_v12  ;;  %v11035_v47 = vld [vmem:[%s10068_s10 + $0x48] sm:$0xff]   ;;  %v2364_v25 = vor.u32 %v2363_v54, %v2362_v23  ;;  %v4865_v23 = vsel %vm727_vm0, %v4862_v10, %v4864_v41 }
  0xec   : > { %v11960_v15 = vshrl.u32 %v11035_v47, 16 }
  0xed   : > { %v11055_v54 = vsel %vm961_vm2, %v2360_v12, %v2364_v25  ;;  %v11071_v12 = vld [vmem:[%s10068_s10 + $0xc] sm:$0xf] }
  0xee   : > { %8445 = vmatmul.mubr.bf16.vlgmr.msra.gmra.mrb[0].mxu1 %v9800_v29  ;;  %v9804_v29 = vld [vmem:[%s10068_s10 + $0x20] sm:$0xff]  }
  0xef   : > { %8877 = vmatmul.mubr.bf16.vlgmr.msra.gmra.mrb[0].mxu0 %v4859_v18  ;;  %8448 = vmatprep.mubr.bf16.mxu1 %v9803_v9  ;;  %v9811_v9 = vld [vmem:[%s11921_s1 + $0x190] sm:$0xff]   ;;  %v9808_v18 = vld [vmem:[%s10068_s10 + $0x28] sm:$0xff]  }
  0xf0   : > { %8897 = vmatpush3.bf16.msra.mxu0 %v10929_v5  ;;  %8880 = vmatprep.mubr.bf16.mxu0 %v4861_v46  ;;  %v11959_v5 = vshll.u32 %v11008_v26, 16  ;;  %v2366_v46 = vrot.slane %v11955_v14, 1  ;;  %v11078_v14 = vld [vmem:[%s10068_s10 + $0x50] sm:$0xff]  }
  0xf1   : > { %8898 = vmatprep.subr.bf16.mxu0 %v9802_v24  ;;  %8465 = vmatpush3.bf16.msra.mxu1 %v10941_v45  ;;  %v4863_v45 = vsel %vm727_vm0, %v4860_v20, %v4862_v10  ;;  %v11958_v20 = vshrl.u32 %v11008_v26, 16  ;;  %v9813_v10 = vld [vmem:[%s11921_s1 + $0x4a0] sm:$0xff]  }
  0xf2   : > { %8466 = vmatprep.subr.bf16.mxu1 %v9807_v43  ;;  %v2368_v57 = vor.u32 %v2367_v3, %v2366_v46  ;;  %v11961_v3 = vshll.u32 %v11035_v47, 16  ;;  %v9810_v46 = vld [vmem:[%s10068_s10 + $0x30] sm:$0xff]  }
  0xf4   : > { %8899 = vmatpush3.bf16.msra.mxu0 %v9802_v24  ;;  %v11064_v24 = vsel %vm961_vm2, %v2364_v25, %v2368_v57  ;;  %v9816_v25 = vld [vmem:[%s11921_s1 + $0x1a0] sm:$0xff]  }
  0xf5   : > { %8900 = vmatprep.subr.bf16.mxu0 %v9806_v32  ;;  %8467 = vmatpush3.bf16.msra.mxu1 %v9807_v43  ;;  %v1718_v43 = vld [vmem:[%s10068_s10 + $0x8] sm:$0xf] }
  0xf6   : > { %8449 = vmatmul.mubr.bf16.gmra.mrb[4].mxu1 %v9804_v29  ;;  %8468 = vmatprep.subr.bf16.mxu1 %v9811_v9  ;;  %v2370_v29 = vrot.slane %v11958_v20, 1  ;;  %v4867_v20 = vsel %vm727_vm0, %v4864_v41, %v4866_v39  ;;  %v4870_v41 = vrot.slane %v10799_v44, 1  ;;  %v9815_v44 = vld [vmem:[%s10068_s10 + $0x40] sm:$0xff]  }
  0xf7   : > { %8881 = vmatmul.mubr.bf16.gmra.mrb[4].mxu0 %v4863_v45  ;;  %8452 = vmatprep.mubr.bf16.mxu1 %v9808_v18  ;;  %v2371_v18 = vrot.slane %v11959_v5, 2  ;;  %v2374_v45 = vrot.slane %v11960_v15, 1  ;;  %v7269_v5 = vcombine.low %v1718_v43, %v11071_v12 }
  0xf8   : > { %8901 = vmatpush3.bf16.msra.mxu0 %v9806_v32  ;;  %8884 = vmatprep.mubr.bf16.mxu0 %v4865_v23  ;;  %v2375_v32 = vrot.slane %v11961_v3, 2  ;;  %v9814_v23 = vld [vmem:[%s10068_s10 + $0x38] sm:$0xff]  }
  0xf9   : > { %8902 = vmatprep.subr.bf16.mxu0 %v9809_v8  ;;  %8469 = vmatpush3.bf16.msra.mxu1 %v9811_v9  ;;  %v2372_v31 = vor.u32 %v2371_v18, %v2370_v29  ;;  %v4869_v9 = vsel %vm727_vm0, %v4866_v39, %v4868_v17  ;;  %v4872_v39 = vrot.slane %v10819_v56, 1  ;;  %v1812_v29 = vshll.u32 %v7269_v5, 16  ;;  %v9820_v56 = vld [vmem:[%s10068_s10 + $0x48] sm:$0xff]  }
  0xfa   : > { %8470 = vmatprep.subr.bf16.mxu1 %v9812_v1  ;;  %v2376_v59 = vor.u32 %v2375_v32, %v2374_v45  ;;  %v9822_v45 = vld [vmem:[%s11921_s1 + $0x1b0] sm:$0xff]   ;;  %v4871_v32 = vsel %vm727_vm0, %v4868_v17, %v4870_v41 }
  0xfb   : > { %v11096_v15 = vsel %vm961_vm2, %v2368_v57, %v2372_v31  ;;  %v1885_v57 = vshrl.u32 %v11078_v14, 16 }
  0xfc   : > { %8903 = vmatpush3.bf16.msra.mxu0 %v9809_v8  ;;  %v11099_v3 = vsel %vm961_vm2, %v2372_v31, %v2376_v59  ;;  %v1881_v8 = vshll.u32 %v11078_v14, 16  ;;  %v5089_v31 = vshrl.u32 %v10908_v22, 16 }
  0xfd   : > { %8904 = vmatprep.subr.bf16.mxu0 %v9813_v10  ;;  %8471 = vmatpush3.bf16.msra.mxu1 %v9812_v1  ;;  %v2378_v1 = vrot.slane %v1885_v57, 1 }
  0xfe   : > { %8453 = vmatmul.mubr.bf16.gmra.mrb[8].mxu1 %v9810_v46  ;;  %8472 = vmatprep.subr.bf16.mxu1 %v9816_v25  ;;  %v2379_v43 = vrot.slane %v1881_v8, 2  ;;  %v9819_v46 = vld [vmem:[%s11921_s1 + $0x4b0] sm:$0xff]  }
  0xff   : > { %8885 = vmatmul.mubr.bf16.gmra.mrb[8].mxu0 %v4867_v20  ;;  %8456 = vmatprep.mubr.bf16.mxu1 %v9814_v23  ;;  %v5092_v20 = vshll.u32 %v10908_v22, 16  ;;  %v1810_v22 = vshrl.u32 %v7269_v5, 16  ;;  %v4873_v23 = vsel %vm727_vm0, %v4870_v41, %v4872_v39  ;;  %v11966_v5 = vshll.u32 %v10923_v60, 16 }
 0x100   : > { %8905 = vmatpush3.bf16.msra.mxu0 %v9813_v10  ;;  %8888 = vmatprep.mubr.bf16.mxu0 %v4869_v9  ;;  %v11127_v18 = vor.u32 %v2379_v43, %v2378_v1  ;;  %v9823_v9 = vld [vmem:[%s11921_s1 + $0x4b8] sm:$0xff]   ;;  %v5091_v1 = vrot.slane %v5089_v31, 1  ;;  %v9821_v31 = vld [vmem:[%s10068_s10 + $0x50] sm:$0xff]  }
 0x101   : > { %8473 = vmatpush3.bf16.msra.mxu1 %v9816_v25  ;;  %8906 = vmatprep.subr.bf16.mxu0 %v9817_v36  ;;  %v1814_v25 = vrot.slane %v1812_v29, 1  ;;  %v5094_v43 = vrot.slane %v5092_v20, 2  ;;  %v11967_v20 = vshll.u32 %v10936_v0, 16 }
 0x102   : > { %8474 = vmatprep.subr.bf16.mxu1 %v9818_v34  ;;  %v11134_v10 = vsel %vm961_vm2, %v2376_v59, %v11127_v18  ;;  %v4874_v59 = vrot.slane %v10881_v61, 1 }
 0x103   : > { %v1815_v17 = vor.u32 %v1814_v25, %v1810_v22  ;;  %v5095_v41 = vor.u32 %v5094_v43, %v5091_v1  ;;  %v11970_v25 = vshll.u32 %v10946_v35, 16  ;;  %v9829_v1 = vld [vmem:[%s11921_s1 + $0x4c8] sm:$0xff]   ;;  %v11971_v43 = vshll.u32 %v10951_v13, 16 }
 0x104   : > { %8907 = vmatpush3.bf16.msra.mxu0 %v9817_v36  ;;  %v1819_v36 = vrot.slane %v11966_v5, 1 }
 0x105   : > { %8475 = vmatpush3.bf16.msra.mxu1 %v9818_v34  ;;  %8908 = vmatprep.subr.bf16.mxu0 %v9819_v46  ;;  %v9828_v34 = vld [vmem:[%s11921_s1 + $0x4c0] sm:$0xff]   ;;  %v5099_v29 = vsel %vm961_vm2, %v5095_v41, %v10706_v62 }
 0x106   : > { %8457 = vmatmul.mubr.bf16.gmra.mrb[12].mxu1 %v9815_v44  ;;  %8476 = vmatprep.subr.bf16.mxu1 %v9822_v45  ;;  %v9832_v44 = vld [vmem:[%s11921_s1 + $0x1c0] sm:$0xff]   ;;  %v1820_v61 = vsel %vm279_vm1, %v1815_v17, %v1819_v36  ;;  %v11972_v17 = vshrl.u32 %v10946_v35, 16 }
 0x107   : > { %8889 = vmatmul.mubr.bf16.gmra.mrb[12].mxu0 %v4871_v32  ;;  %8460 = vmatprep.mubr.bf16.mxu1 %v9820_v56  ;;  %v1827_v56 = vrot.slane %v11967_v20, 1 }
 0x108   : > { %8892 = vmatprep.mubr.bf16.mxu0 %v4873_v23  ;;  %8909 = vmatpush3.bf16.msra.mxu0 %v9819_v46  ;;  %v4875_v46 = vsel %vm727_vm0, %v4872_v39, %v4874_v59  ;;  %v11969_v39 = vshrl.u32 %v10936_v0, 16  ;;  %v1835_v23 = vrot.slane %v11970_v25, 1  ;;  %v9834_v59 = vld [vmem:[%s11921_s1 + $0x1c8] sm:$0xff]  }
 0x109   : > { %8477 = vmatpush3.bf16.msra.mxu1 %v9822_v45  ;;  %8910 = vmatprep.subr.bf16.mxu0 %v9823_v9  ;;  %v11968_v45 = vshrl.u32 %v10923_v60, 16 }
 0x10a   : > { %8478 = vmatprep.subr.bf16.mxu1 %v9824_v19  ;;  %v1831_v22 = vor.u32 %v11969_v39, %v1827_v56  ;;  %v1839_v5 = vor.u32 %v11972_v17, %v1835_v23  ;;  %v9840_v39 = vld [vmem:[%s11921_s1 + $0x4e0] sm:$0xff]   ;;  %v9844_v17 = vld [vmem:[%s11921_s1 + $0x4e8] sm:$0xff]  }
 0x10b   : > { %v1823_v32 = vor.u32 %v11968_v45, %v1819_v36  ;;  %v11973_v36 = vshrl.u32 %v10951_v13, 16  ;;  %v11976_v45 = vshrl.u32 %v10969_v63, 16 }
 0x10c   : > { %8911 = vmatpush3.bf16.msra.mxu0 %v9823_v9  ;;  %v1836_v9 = vsel %vm279_vm1, %v1831_v22, %v1835_v23  ;;  %v11977_v22 = vshrl.u32 %v10981_v28, 16  ;;  %v11978_v23 = vshll.u32 %v11008_v26, 16 }
 0x10d   : > { %8479 = vmatpush3.bf16.msra.mxu1 %v9824_v19  ;;  %8932 = vmatprep.subr.bf16.mxu0 %v9828_v34  ;;  %v1828_v62 = vsel %vm279_vm1, %v1823_v32, %v1827_v56  ;;  %v1843_v19 = vrot.slane %v11971_v43, 1  ;;  %v9839_v56 = vld [vmem:[%s11921_s1 + $0x1d8] sm:$0xff]  }
 0x10e   : > { %8461 = vmatmul.mubr.bf16.gmra.mrb[16].mxu1 %v9821_v31  ;;  %8500 = vmatprep.subr.bf16.mxu1 %v9832_v44  ;;  %v11974_v31 = vshll.u32 %v10969_v63, 16  ;;  %v11222_v43 = vld [vmem:[%s10068_s10 + $0x58] ss:$0 sps:$4 sm:$0x11]  }
 0x10f   : > { %8893 = vmatmul.mubr.bf16.gmra.mrb[16].mxu0 %v4875_v46  ;;  %8480 = vmatprep.mubr.bf16.mxu1 %v1820_v61  ;;  %v1847_v41 = vor.u32 %v11973_v36, %v1843_v19  ;;  %v9833_v61 = vld [vmem:[%s11921_s1 + $0x4d0] sm:$0xff]   ;;  %v11980_v36 = vshrl.u32 %v11008_v26, 16 }
 0x110   : > { %8912 = vmatprep.mubr.bf16.mxu0 %v5099_v29  ;;  %v1851_v46 = vrot.slane %v11974_v31, 1  ;;  %v11975_v29 = vshll.u32 %v10981_v28, 16  ;;  %v9846_v31 = vld [vmem:[%s11921_s1 + $0x4f0] sm:$0xff]  }
 0x112   : > { %v1859_v20 = vrot.slane %v11975_v29, 1  ;;  %v1855_v32 = vor.u32 %v11976_v45, %v1851_v46  ;;  %v1889_v29 = vshll.u32 %v11222_v43, 16 }
 0x114   : > { %v1863_v25 = vor.u32 %v11977_v22, %v1859_v20  ;;  %v9974_v22 = vld [vmem:[%s10068_s10 + $0x1c] sm:$0xf] }
 0x116   : > { %8481 = vmatmul.mubr.bf16.vlgmr.msra.gmra.mrb[0].mxu1 %v1828_v62  ;;  %v1867_v62 = vrot.slane %v11978_v23, 1  ;;  %v9852_v23 = vld [vmem:[%s11921_s1 + $0x1f8] sm:$0xff]  }
 0x117   : > { %8913 = vmatmul.mubr.bf16.vlgmr.msra.gmra.mrb[0].mxu0 %v10726_v53  ;;  %8484 = vmatprep.mubr.bf16.mxu1 %v1836_v9  ;;  %v9838_v53 = vld [vmem:[%s11921_s1 + $0x1d0] sm:$0xff]   ;;  %v11217_v9 = vld [vmem:[%s10068_s10 + $0x68] ss:$0 sps:$4 sm:$0x33]  }
 0x118   : > { %8933 = vmatpush3.bf16.msra.mxu0 %v9828_v34  ;;  %8916 = vmatprep.mubr.bf16.mxu0 %v10736_v4  ;;  %v1844_v34 = vsel %vm279_vm1, %v1839_v5, %v1843_v19  ;;  %v1852_v4 = vsel %vm279_vm1, %v1847_v41, %v1851_v46  ;;  %v11979_v19 = vshll.u32 %v11035_v47, 16  ;;  %v9845_v5 = vld [vmem:[%s11921_s1 + $0x1e8] sm:$0xff]   ;;  %v1871_v41 = vor.u32 %v11980_v36, %v1867_v62 }
 0x119   : > { %8934 = vmatprep.subr.bf16.mxu0 %v9829_v1  ;;  %8501 = vmatpush3.bf16.msra.mxu1 %v9832_v44  ;;  %v9836_v44 = vld [vmem:[%s11921_s1 + $0x4d8] sm:$0xff]   ;;  %v11981_v46 = vshrl.u32 %v11035_v47, 16 }
 0x11a   : > { %8502 = vmatprep.subr.bf16.mxu1 %v9834_v59 }
 0x11c   : > { %8935 = vmatpush3.bf16.msra.mxu0 %v9829_v1  ;;  %v1868_v1 = vsel %vm279_vm1, %v1863_v25, %v1867_v62 }
 0x11d   : > { %8936 = vmatprep.subr.bf16.mxu0 %v9833_v61  ;;  %8503 = vmatpush3.bf16.msra.mxu1 %v9834_v59  ;;  %v1875_v59 = vrot.slane %v11979_v19, 1 }
 0x11e   : > { %8485 = vmatmul.mubr.bf16.gmra.mrb[4].mxu1 %v1844_v34  ;;  %8504 = vmatprep.subr.bf16.mxu1 %v9838_v53  ;;  %v5133_v34 = vshrl.u32 %v11217_v9, 16 }
 0x11f   : > { %8917 = vmatmul.mubr.bf16.gmra.mrb[4].mxu0 %v10751_v52  ;;  %8488 = vmatprep.mubr.bf16.mxu1 %v1852_v4  ;;  %v9843_v52 = vld [vmem:[%s11921_s1 + $0x1e0] sm:$0xff]   ;;  %v2084_v4 = vld [vmem:[%s10068_s10 + $0x8] sm:$0xe] }
 0x120   : > { %8937 = vmatpush3.bf16.msra.mxu0 %v9833_v61  ;;  %8920 = vmatprep.mubr.bf16.mxu0 %v10765_v27  ;;  %v1860_v27 = vsel %vm279_vm1, %v1855_v32, %v1859_v20  ;;  %v1879_v61 = vor.u32 %v11981_v46, %v1875_v59  ;;  %v9849_v20 = vld [vmem:[%s11921_s1 + $0x1f0] sm:$0xff]   ;;  %v5135_v45 = vrot.slane %v5133_v34, 1 }
 0x121   : > { %8938 = vmatprep.subr.bf16.mxu0 %v9836_v44  ;;  %8505 = vmatpush3.bf16.msra.mxu1 %v9838_v53  ;;  %v1883_v53 = vrot.slane %v1881_v8, 1  ;;  %v1876_v8 = vsel %vm279_vm1, %v1871_v41, %v1875_v59  ;;  %v2108_v41 = vrot.slane %v10936_v0, 1 }
 0x122   : > { %8506 = vmatprep.subr.bf16.mxu1 %v9839_v56 }
 0x123   : > { %v1887_v62 = vor.u32 %v1885_v57, %v1883_v53  ;;  %v9857_v57 = vld [vmem:[%s11921_s1 + $0x200] sm:$0xff]  }
 0x124   : > { %8939 = vmatpush3.bf16.msra.mxu0 %v9836_v44  ;;  %v5332_v44 = vld [vmem:[%s10068_s10 + $0x18] sm:$0xc] }
 0x125   : > { %8940 = vmatprep.subr.bf16.mxu0 %v9840_v39  ;;  %8507 = vmatpush3.bf16.msra.mxu1 %v9839_v56  ;;  %v9851_v56 = vld [vmem:[%s11921_s1 + $0x4f8] sm:$0xff]   ;;  %v7642_v25 = vcombine.low %v5332_v44, %v9974_v22  ;;  %v9861_v22 = vld [vmem:[%s11921_s1 + $0x210] sm:$0xff]  }
 0x126   : > { %8489 = vmatmul.mubr.bf16.gmra.mrb[8].mxu1 %v1860_v27  ;;  %8508 = vmatprep.subr.bf16.mxu1 %v9843_v52  ;;  %v9975_v27 = vld [vmem:[%s10068_s10 + $0x20] sm:$0xff]  }
 0x127   : > { %8921 = vmatmul.mubr.bf16.gmra.mrb[8].mxu0 %v10774_v11  ;;  %8492 = vmatprep.mubr.bf16.mxu1 %v1868_v1  ;;  %v5136_v11 = vshll.u32 %v11217_v9, 16  ;;  %v5354_v1 = vrot.slane %v9975_v27, 2  ;;  %v9980_v27 = vld [vmem:[%s10068_s10 + $0x48] sm:$0xff]  }
 0x128   : > { %8941 = vmatpush3.bf16.msra.mxu0 %v9840_v39  ;;  %8924 = vmatprep.mubr.bf16.mxu0 %v10813_v40  ;;  %v1884_v40 = vsel %vm279_vm1, %v1879_v61, %v1883_v53  ;;  %v11257_v39 = vcombine.low %v2084_v4, %v11071_v12  ;;  %v2106_v12 = vrot.slane %v10923_v60, 1  ;;  %v2110_v61 = vrot.slane %v10946_v35, 1  ;;  %v9856_v4 = vld [vmem:[%s11921_s1 + $0x508] sm:$0xff]  }
 0x129   : > { %8509 = vmatpush3.bf16.msra.mxu1 %v9843_v52  ;;  %8942 = vmatprep.subr.bf16.mxu0 %v9844_v17  ;;  %v5138_v32 = vrot.slane %v5136_v11, 2  ;;  %v1891_v52 = vrot.slane %v1889_v29, 1  ;;  %v9859_v29 = vld [vmem:[%s11921_s1 + $0x208] sm:$0xff]   ;;  %v2112_v35 = vrot.slane %v10951_v13, 1 }
 0x12a   : > { %8510 = vmatprep.subr.bf16.mxu1 %v9845_v5  ;;  %v2105_v59 = vrot.slane %v11257_v39, 1  ;;  %v2109_v34 = vsel %vm727_vm0, %v2106_v12, %v2108_v41  ;;  %v2111_v44 = vsel %vm727_vm0, %v2108_v41, %v2110_v61  ;;  %v2120_v41 = vrot.slane %v11035_v47, 1  ;;  %v9868_v47 = vld [vmem:[%s11921_s1 + $0x230] sm:$0xff]  }
 0x12b   : > { %v5139_v19 = vor.u32 %v5138_v32, %v5135_v45  ;;  %v1892_v60 = vsel %vm279_vm1, %v1887_v62, %v1891_v52  ;;  %v9979_v45 = vld [vmem:[%s10068_s10 + $0x40] sm:$0xff]   ;;  %v2113_v13 = vsel %vm727_vm0, %v2110_v61, %v2112_v35  ;;  %v9860_v62 = vld [vmem:[%s11921_s1 + $0x518] sm:$0xff]   ;;  %v2122_v61 = vrot.slane %v11078_v14, 1 }
 0x12c   : > { %8943 = vmatpush3.bf16.msra.mxu0 %v9844_v17  ;;  %v5353_v17 = vrot.slane %v7642_v25, 2  ;;  %v5362_v32 = vrot.slane %v9979_v45, 2  ;;  %v9862_v52 = vld [vmem:[%s11921_s1 + $0x218] sm:$0xff]  }
 0x12d   : > { %8511 = vmatpush3.bf16.msra.mxu1 %v9845_v5  ;;  %8944 = vmatprep.subr.bf16.mxu0 %v9846_v31  ;;  %v2107_v5 = vsel %vm727_vm0, %v2105_v59, %v2106_v12  ;;  %v2116_v12 = vrot.slane %v10981_v28, 1  ;;  %v9863_v59 = vld [vmem:[%s11921_s1 + $0x520] sm:$0xff]  }
 0x12e   : > { %8493 = vmatmul.mubr.bf16.gmra.mrb[12].mxu1 %v1876_v8  ;;  %8512 = vmatprep.subr.bf16.mxu1 %v9849_v20  ;;  %v5355_v36 = vsel %vm1227_vm3, %v5353_v17, %v5354_v1  ;;  %v9981_v17 = vld [vmem:[%s10068_s10 + $0x50] sm:$0xff]  }
 0x12f   : > { %8925 = vmatmul.mubr.bf16.gmra.mrb[12].mxu0 %v10853_v50  ;;  %8496 = vmatprep.mubr.bf16.mxu1 %v1884_v40  ;;  %v9855_v50 = vld [vmem:[%s11921_s1 + $0x500] sm:$0xff]   ;;  %v2114_v40 = vrot.slane %v10969_v63, 1 }
 0x130   : > { %8928 = vmatprep.mubr.bf16.mxu0 %v10875_v7  ;;  %8945 = vmatpush3.bf16.msra.mxu0 %v9846_v31  ;;  %v5140_v7 = vsel %vm961_vm2, %v10861_v49, %v5139_v19  ;;  %v9976_v31 = vld [vmem:[%s10068_s10 + $0x28] sm:$0xff]   ;;  %v9977_v49 = vld [vmem:[%s10068_s10 + $0x30] sm:$0xff]   ;;  %v2118_v19 = vrot.slane %v11008_v26, 1 }
 0x131   : > { %8513 = vmatpush3.bf16.msra.mxu1 %v9849_v20  ;;  %8946 = vmatprep.subr.bf16.mxu0 %v9851_v56  ;;  %v5356_v46 = vrot.slane %v9976_v31, 2  ;;  %v5358_v53 = vrot.slane %v9977_v49, 2  ;;  %v9978_v20 = vld [vmem:[%s10068_s10 + $0x38] sm:$0xff]   ;;  %v2115_v63 = vsel %vm727_vm0, %v2112_v35, %v2114_v40  ;;  %v2117_v28 = vsel %vm727_vm0, %v2114_v40, %v2116_v12 }
 0x132   : > { %8514 = vmatprep.subr.bf16.mxu1 %v9852_v23  ;;  %v5360_v8 = vrot.slane %v9978_v20, 2  ;;  %v2119_v26 = vsel %vm727_vm0, %v2116_v12, %v2118_v19  ;;  %v9982_v31 = vld [vmem:[%s10068_s10 + $0x58] sm:$0xff]   ;;  %v2339_v49 = vshrl.u32 %v11257_v39, 16  ;;  %v2124_v40 = vrot.slane %v11222_v43, 1 }
 0x133   : > { %v5357_v11 = vsel %vm1227_vm3, %v5354_v1, %v5356_v46  ;;  %v5359_v0 = vsel %vm1227_vm3, %v5356_v46, %v5358_v53  ;;  %v5364_v1 = vrot.slane %v9980_v27, 2  ;;  %v5368_v46 = vrot.slane %v9982_v31, 2  ;;  %v9869_v20 = vld [vmem:[%s11921_s1 + $0x538] sm:$0xff]   ;;  %v9880_v27 = vld [vmem:[%s10068_s10 + $0x40] sm:$0xff]  }
 0x134   : > { %8947 = vmatpush3.bf16.msra.mxu0 %v9851_v56  ;;  %v9858_v56 = vld [vmem:[%s11921_s1 + $0x510] sm:$0xff]   ;;  %v5361_v25 = vsel %vm1227_vm3, %v5358_v53, %v5360_v8  ;;  %v2342_v53 = vshll.u32 %v11257_v39, 16  ;;  %v2123_v39 = vsel %vm727_vm0, %v2120_v41, %v2122_v61  ;;  %v2125_v43 = vsel %vm727_vm0, %v2122_v61, %v2124_v40  ;;  %v9877_v12 = vld [vmem:[%s10068_s10 + $0x38] sm:$0xff]  }
 0x135   : > { %8515 = vmatpush3.bf16.msra.mxu1 %v9852_v23  ;;  %8968 = vmatprep.subr.bf16.mxu0 %v9855_v50  ;;  %v5363_v23 = vsel %vm1227_vm3, %v5360_v8, %v5362_v32  ;;  %v9870_v8 = vld [vmem:[%s11921_s1 + $0x238] sm:$0xff]  }
 0x136   : > { %8497 = vmatmul.mubr.bf16.gmra.mrb[16].mxu1 %v1892_v60  ;;  %8536 = vmatprep.subr.bf16.mxu1 %v9857_v57  ;;  %v5365_v60 = vsel %vm1227_vm3, %v5362_v32, %v5364_v1  ;;  %v9873_v32 = vld [vmem:[%s11921_s1 + $0x540] sm:$0xff]  }
 0x137   : > { %8929 = vmatmul.mubr.bf16.gmra.mrb[16].mxu0 %v5140_v7  ;;  %8516 = vmatprep.mubr.bf16.mxu1 %v2107_v5  ;;  %v9865_v5 = vld [vmem:[%s11921_s1 + $0x528] sm:$0xff]  }
 0x138   : > { %8948 = vmatprep.mubr.bf16.mxu0 %v5355_v36  ;;  %v9866_v36 = vld [vmem:[%s11921_s1 + $0x228] sm:$0xff]  }
 0x13e   : > { %8517 = vmatmul.mubr.bf16.vlgmr.msra.gmra.mrb[0].mxu1 %v2109_v34  ;;  %v9867_v34 = vld [vmem:[%s11921_s1 + $0x530] sm:$0xff]  }
 0x13f   : > { %8949 = vmatmul.mubr.bf16.vlgmr.msra.gmra.mrb[0].mxu0 %v5357_v11  ;;  %8520 = vmatprep.mubr.bf16.mxu1 %v2111_v44  ;;  %v9983_v11 = vld [vmem:[%s10068_s10 + $0x60] sm:$0xff]   ;;  %v2121_v44 = vsel %vm727_vm0, %v2118_v19, %v2120_v41  ;;  %v11427_v41 = vld [vmem:[%s10068_s10 + $0x28] sm:$0xff]  }
 0x140   : > { %8969 = vmatpush3.bf16.msra.mxu0 %v9855_v50  ;;  %8952 = vmatprep.mubr.bf16.mxu0 %v5359_v0  ;;  %v5366_v50 = vrot.slane %v9981_v17, 2  ;;  %v2341_v0 = vrot.slane %v2339_v49, 1  ;;  %v9885_v19 = vld [vmem:[%s11921_s1 + $0x560] sm:$0xff]  }
 0x141   : > { %8970 = vmatprep.subr.bf16.mxu0 %v9856_v4  ;;  %8537 = vmatpush3.bf16.msra.mxu1 %v9857_v57  ;;  %v9864_v57 = vld [vmem:[%s11921_s1 + $0x220] sm:$0xff]  }
 0x142   : > { %8538 = vmatprep.subr.bf16.mxu1 %v9859_v29  ;;  %v5367_v7 = vsel %vm1227_vm3, %v5364_v1, %v5366_v50  ;;  %v5369_v14 = vsel %vm1227_vm3, %v5366_v50, %v5368_v46  ;;  %v9884_v1 = vld [vmem:[%s11921_s1 + $0x258] sm:$0xff]   ;;  %v11404_v17 = vld [vmem:[%s10068_s10 + $0x24] sm:$0xf]  ;;  %v9883_v50 = vld [vmem:[%s10068_s10 + $0x48] sm:$0xff]  }
 0x144   : > { %8971 = vmatpush3.bf16.msra.mxu0 %v9856_v4  ;;  %v5370_v4 = vrot.slane %v9983_v11, 2 }
 0x145   : > { %8972 = vmatprep.subr.bf16.mxu0 %v9858_v56  ;;  %8539 = vmatpush3.bf16.msra.mxu1 %v9859_v29  ;;  %v2344_v29 = vrot.slane %v2342_v53, 2  ;;  %v9892_v53 = vld [vmem:[%s10068_s10 + $0x60] sm:$0xff]  }
 0x146   : > { %8521 = vmatmul.mubr.bf16.gmra.mrb[4].mxu1 %v2113_v13  ;;  %8540 = vmatprep.subr.bf16.mxu1 %v9861_v22  ;;  %v5371_v35 = vsel %vm1227_vm3, %v5368_v46, %v5370_v4  ;;  %v9888_v46 = vld [vmem:[%s10068_s10 + $0x58] sm:$0xff]  }
 0x147   : > { %8953 = vmatmul.mubr.bf16.gmra.mrb[4].mxu0 %v5361_v25  ;;  %8524 = vmatprep.mubr.bf16.mxu1 %v2115_v63  ;;  %v2345_v45 = vor.u32 %v2344_v29, %v2341_v0  ;;  %v9871_v25 = vld [vmem:[%s10068_s10 + $0x20] sm:$0xff]   ;;  %v9872_v63 = vld [vmem:[%s10068_s10 + $0x28] sm:$0xff]   ;;  %v11445_v29 = vld [vmem:[%s10068_s10 + $0x30] sm:$0xff]  }
 0x148   : > { %8973 = vmatpush3.bf16.msra.mxu0 %v9858_v56  ;;  %8956 = vmatprep.mubr.bf16.mxu0 %v5363_v23  ;;  %v5372_v56 = vrot.slane %v11217_v9, 2  ;;  %v9875_v23 = vld [vmem:[%s10068_s10 + $0x30] sm:$0xff]  }
 0x149   : > { %8974 = vmatprep.subr.bf16.mxu0 %v9860_v62  ;;  %8541 = vmatpush3.bf16.msra.mxu1 %v9861_v22  ;;  %v9876_v22 = vld [vmem:[%s11921_s1 + $0x240] sm:$0xff]   ;;  %v2349_v9 = vsel %vm961_vm2, %v2345_v45, %v10974_v48  ;;  %v9879_v48 = vld [vmem:[%s11921_s1 + $0x248] sm:$0xff]  }
 0x14a   : > { %8542 = vmatprep.subr.bf16.mxu1 %v9862_v52  ;;  %v5373_v13 = vsel %vm1227_vm3, %v5370_v4, %v5372_v56  ;;  %v9896_v4 = vld [vmem:[%s11921_s1 + $0x578] sm:$0xff]   ;;  %v9902_v56 = vld [vmem:[%s11921_s1 + $0x580] sm:$0xff]  }
 0x14b   : > { %v9905_v45 = vld [vmem:[%s11921_s1 + $0x280] sm:$0xff]  }
 0x14c   : > { %8975 = vmatpush3.bf16.msra.mxu0 %v9860_v62  ;;  %v9874_v62 = vld [vmem:[%s11921_s1 + $0x548] sm:$0xff]  }
 0x14d   : > { %8976 = vmatprep.subr.bf16.mxu0 %v9863_v59  ;;  %8543 = vmatpush3.bf16.msra.mxu1 %v9862_v52  ;;  %v9878_v52 = vld [vmem:[%s11921_s1 + $0x550] sm:$0xff]  }
 0x14e   : > { %8525 = vmatmul.mubr.bf16.gmra.mrb[8].mxu1 %v2117_v28  ;;  %8544 = vmatprep.subr.bf16.mxu1 %v9864_v57  ;;  %v9889_v28 = vld [vmem:[%s11921_s1 + $0x568] sm:$0xff]  }
 0x14f   : > { %8957 = vmatmul.mubr.bf16.gmra.mrb[8].mxu0 %v5365_v60  ;;  %8528 = vmatprep.mubr.bf16.mxu1 %v2119_v26  ;;  %v9890_v26 = vld [vmem:[%s11921_s1 + $0x268] sm:$0xff]  }
 0x150   : > { %8977 = vmatpush3.bf16.msra.mxu0 %v9863_v59  ;;  %8960 = vmatprep.mubr.bf16.mxu0 %v5367_v7  ;;  %v5843_v59 = vld [vmem:[%s10068_s10 + $0x20] sm:$0xf] }
 0x151   : > { %8545 = vmatpush3.bf16.msra.mxu1 %v9864_v57  ;;  %8978 = vmatprep.subr.bf16.mxu0 %v9865_v5  ;;  %v11408_v57 = vld [vmem:[%s10068_s10 + $0x58] ss:$0 sps:$4 sm:$0x33]   ;;  %v7701_v60 = vcombine.low %v5843_v59, %v11404_v17 }
 0x152   : > { %8546 = vmatprep.subr.bf16.mxu1 %v9866_v36  ;;  %v2383_v7 = vshrl.u32 %v11408_v57, 16 }
 0x153   : > { %v5937_v31 = vshll.u32 %v7701_v60, 16 }
 0x154   : > { %8979 = vmatpush3.bf16.msra.mxu0 %v9865_v5  ;;  %v2386_v5 = vshll.u32 %v11408_v57, 16  ;;  %v2385_v61 = vrot.slane %v2383_v7, 1 }
 0x155   : > { %8547 = vmatpush3.bf16.msra.mxu1 %v9866_v36  ;;  %8980 = vmatprep.subr.bf16.mxu0 %v9867_v34  ;;  %v2582_v36 = vld [vmem:[%s10068_s10 + $0x8] sm:$0xc] }
 0x156   : > { %8529 = vmatmul.mubr.bf16.gmra.mrb[12].mxu1 %v2121_v44  ;;  %8548 = vmatprep.subr.bf16.mxu1 %v9868_v47  ;;  %v2388_v49 = vrot.slane %v2386_v5, 2  ;;  %v5939_v44 = vrot.slane %v5937_v31, 1 }
 0x157   : > { %8961 = vmatmul.mubr.bf16.gmra.mrb[12].mxu0 %v5369_v14  ;;  %8532 = vmatprep.mubr.bf16.mxu1 %v2123_v39  ;;  %v5942_v14 = vshll.u32 %v11427_v41, 16  ;;  %v9897_v39 = vld [vmem:[%s11921_s1 + $0x278] sm:$0xff]  }
 0x158   : > { %8964 = vmatprep.mubr.bf16.mxu0 %v5371_v35  ;;  %8981 = vmatpush3.bf16.msra.mxu0 %v9867_v34  ;;  %v9984_v34 = vld [vmem:[%s10068_s10 + $0xc] sm:$0xf]  ;;  %v2389_v0 = vor.u32 %v2388_v49, %v2385_v61  ;;  %v9989_v49 = vld [vmem:[%s10068_s10 + $0x30] sm:$0xff]  }
 0x159   : > { %8549 = vmatpush3.bf16.msra.mxu1 %v9868_v47  ;;  %8982 = vmatprep.subr.bf16.mxu0 %v9869_v20  ;;  %v7354_v11 = vcombine.low %v2582_v36, %v9984_v34  ;;  %v5935_v47 = vshrl.u32 %v7701_v60, 16  ;;  %v5944_v40 = vrot.slane %v5942_v14, 1  ;;  %v9903_v60 = vld [vmem:[%s11921_s1 + $0x588] sm:$0xff]   ;;  %v9907_v34 = vld [vmem:[%s11921_s1 + $0x590] sm:$0xff]  }
 0x15a   : > { %8550 = vmatprep.subr.bf16.mxu1 %v9870_v8  ;;  %v9988_v36 = vld [vmem:[%s10068_s10 + $0x28] sm:$0xff]  }
 0x15b   : > { %v2603_v35 = vrot.slane %v7354_v11, 2  ;;  %v2610_v31 = vrot.slane %v9988_v36, 2 }
 0x15c   : > { %8983 = vmatpush3.bf16.msra.mxu0 %v9869_v20  ;;  %v9985_v20 = vld [vmem:[%s10068_s10 + $0x10] sm:$0xff]  }
 0x15d   : > { %8551 = vmatpush3.bf16.msra.mxu1 %v9870_v8  ;;  %9004 = vmatprep.subr.bf16.mxu0 %v9873_v32  ;;  %v2604_v8 = vrot.slane %v9985_v20, 2 }
 0x15e   : > { %8533 = vmatmul.mubr.bf16.gmra.mrb[16].mxu1 %v2125_v43  ;;  %8572 = vmatprep.subr.bf16.mxu1 %v9876_v22  ;;  %v5950_v43 = vshll.u32 %v11445_v29, 16 }
 0x15f   : > { %8965 = vmatmul.mubr.bf16.gmra.mrb[16].mxu0 %v5373_v13  ;;  %8552 = vmatprep.mubr.bf16.mxu1 %v2349_v9  ;;  %v2605_v13 = vsel %vm1227_vm3, %v2603_v35, %v2604_v8  ;;  %v5946_v9 = vshrl.u32 %v11427_v41, 16 }
 0x160   : > { %8984 = vmatprep.mubr.bf16.mxu0 %v9871_v25 }
 0x166   : > { %8553 = vmatmul.mubr.bf16.vlgmr.msra.gmra.mrb[0].mxu1 %v10990_v38  ;;  %v9882_v38 = vld [vmem:[%s11921_s1 + $0x250] sm:$0xff]  }
 0x167   : > { %8985 = vmatmul.mubr.bf16.vlgmr.msra.gmra.mrb[0].mxu0 %v9872_v63  ;;  %8556 = vmatprep.mubr.bf16.mxu1 %v11011_v30  ;;  %v9881_v30 = vld [vmem:[%s11921_s1 + $0x558] sm:$0xff]   ;;  %v5954_v63 = vshrl.u32 %v11445_v29, 16 }
 0x168   : > { %9005 = vmatpush3.bf16.msra.mxu0 %v9873_v32  ;;  %8988 = vmatprep.mubr.bf16.mxu0 %v9875_v23  ;;  %v2390_v32 = vsel %vm961_vm2, %v11127_v18, %v2389_v0  ;;  %v9986_v18 = vld [vmem:[%s10068_s10 + $0x18] sm:$0xff]  }
 0x169   : > { %9006 = vmatprep.subr.bf16.mxu0 %v9874_v62  ;;  %8573 = vmatpush3.bf16.msra.mxu1 %v9876_v22  ;;  %v9895_v22 = vld [vmem:[%s10068_s10 + $0x68] sm:$0xff]  }
 0x16a   : > { %8574 = vmatprep.subr.bf16.mxu1 %v9879_v48 }
 0x16c   : > { %9007 = vmatpush3.bf16.msra.mxu0 %v9874_v62  ;;  %v2606_v62 = vrot.slane %v9986_v18, 2  ;;  %v11538_v18 = vld [vmem:[%s10068_s10 + $0x60] sm:$0xff]  }
 0x16d   : > { %9008 = vmatprep.subr.bf16.mxu0 %v9878_v52  ;;  %8575 = vmatpush3.bf16.msra.mxu1 %v9879_v48  ;;  %v5952_v48 = vrot.slane %v5950_v43, 1 }
 0x16e   : > { %8557 = vmatmul.mubr.bf16.gmra.mrb[4].mxu1 %v11019_v55  ;;  %8576 = vmatprep.subr.bf16.mxu1 %v9882_v38  ;;  %v9887_v55 = vld [vmem:[%s11921_s1 + $0x260] sm:$0xff]  }
 0x16f   : > { %8989 = vmatmul.mubr.bf16.gmra.mrb[4].mxu0 %v9877_v12  ;;  %8560 = vmatprep.mubr.bf16.mxu1 %v11055_v54  ;;  %v9886_v54 = vld [vmem:[%s10068_s10 + $0x50] sm:$0xff]   ;;  %v9987_v12 = vld [vmem:[%s10068_s10 + $0x20] sm:$0xff]  }
 0x170   : > { %9009 = vmatpush3.bf16.msra.mxu0 %v9878_v52  ;;  %8992 = vmatprep.mubr.bf16.mxu0 %v9880_v27  ;;  %v11472_v52 = vld [vmem:[%s10068_s10 + $0x40] sm:$0xff]   ;;  %v2608_v27 = vrot.slane %v9987_v12, 2 }
 0x171   : > { %9010 = vmatprep.subr.bf16.mxu0 %v9881_v30  ;;  %8577 = vmatpush3.bf16.msra.mxu1 %v9882_v38  ;;  %v5948_v38 = vor.u32 %v5946_v9, %v5944_v40  ;;  %v5966_v59 = vshll.u32 %v11472_v52, 16  ;;  %v5970_v7 = vshrl.u32 %v11472_v52, 16  ;;  %v9914_v12 = vld [vmem:[%s11921_s1 + $0x5a0] sm:$0xff]  }
 0x172   : > { %8578 = vmatprep.subr.bf16.mxu1 %v9884_v1 }
 0x174   : > { %9011 = vmatpush3.bf16.msra.mxu0 %v9881_v30  ;;  %v5956_v30 = vor.u32 %v5954_v63, %v5952_v48 }
 0x175   : > { %9012 = vmatprep.subr.bf16.mxu0 %v9885_v19  ;;  %8579 = vmatpush3.bf16.msra.mxu1 %v9884_v1 }
 0x176   : > { %8561 = vmatmul.mubr.bf16.gmra.mrb[8].mxu1 %v11064_v24  ;;  %8580 = vmatprep.subr.bf16.mxu1 %v9887_v55  ;;  %v9891_v24 = vld [vmem:[%s11921_s1 + $0x570] sm:$0xff]  }
 0x177   : > { %8993 = vmatmul.mubr.bf16.gmra.mrb[8].mxu0 %v9883_v50  ;;  %8564 = vmatprep.mubr.bf16.mxu1 %v11096_v15  ;;  %v9894_v15 = vld [vmem:[%s11921_s1 + $0x270] sm:$0xff]   ;;  %v5953_v50 = vsel %vm279_vm1, %v5948_v38, %v5952_v48  ;;  %v9991_v48 = vld [vmem:[%s10068_s10 + $0x40] sm:$0xff]  }
 0x178   : > { %9013 = vmatpush3.bf16.msra.mxu0 %v9885_v19  ;;  %8996 = vmatprep.mubr.bf16.mxu0 %v9886_v54  ;;  %v11482_v19 = vld [vmem:[%s10068_s10 + $0x48] sm:$0xff]   ;;  %v2609_v54 = vsel %vm1227_vm3, %v2606_v62, %v2608_v27  ;;  %v2616_v38 = vrot.slane %v9991_v48, 2 }
 0x179   : > { %8581 = vmatpush3.bf16.msra.mxu1 %v9887_v55  ;;  %9014 = vmatprep.subr.bf16.mxu0 %v9889_v28  ;;  %v2607_v55 = vsel %vm1227_vm3, %v2604_v8, %v2606_v62  ;;  %v5974_v5 = vshll.u32 %v11482_v19, 16  ;;  %v5978_v8 = vshrl.u32 %v11482_v19, 16 }
 0x17a   : > { %8582 = vmatprep.subr.bf16.mxu1 %v9890_v26 }
 0x17c   : > { %9015 = vmatpush3.bf16.msra.mxu0 %v9889_v28 }
 0x17d   : > { %8583 = vmatpush3.bf16.msra.mxu1 %v9890_v26  ;;  %9016 = vmatprep.subr.bf16.mxu0 %v9891_v24 }
 0x17e   : > { %8565 = vmatmul.mubr.bf16.gmra.mrb[12].mxu1 %v11099_v3  ;;  %8584 = vmatprep.subr.bf16.mxu1 %v9894_v15  ;;  %v5940_v3 = vor.u32 %v5939_v44, %v5935_v47  ;;  %v11515_v47 = vld [vmem:[%s10068_s10 + $0x58] sm:$0xff]   ;;  %v9911_v44 = vld [vmem:[%s11921_s1 + $0x290] sm:$0xff]  }
 0x17f   : > { %8997 = vmatmul.mubr.bf16.gmra.mrb[12].mxu0 %v9888_v46  ;;  %8568 = vmatprep.mubr.bf16.mxu1 %v11134_v10  ;;  %v11454_v10 = vld [vmem:[%s10068_s10 + $0x38] sm:$0xff]   ;;  %v11502_v46 = vld [vmem:[%s10068_s10 + $0x50] sm:$0xff]  }
 0x180   : > { %9000 = vmatprep.mubr.bf16.mxu0 %v9892_v53  ;;  %9017 = vmatpush3.bf16.msra.mxu0 %v9891_v24  ;;  %v5945_v25 = vsel %vm279_vm1, %v5940_v3, %v5944_v40  ;;  %v5958_v23 = vshll.u32 %v11454_v10, 16  ;;  %v5962_v28 = vshrl.u32 %v11454_v10, 16  ;;  %v9908_v24 = vld [vmem:[%s11921_s1 + $0x288] sm:$0xff]   ;;  %v2612_v53 = vrot.slane %v9989_v49, 2  ;;  %v9910_v40 = vld [vmem:[%s11921_s1 + $0x598] sm:$0xff]  }
 0x181   : > { %8585 = vmatpush3.bf16.msra.mxu1 %v9894_v15  ;;  %9018 = vmatprep.subr.bf16.mxu0 %v9896_v4  ;;  %v5968_v15 = vrot.slane %v5966_v59, 1  ;;  %v5982_v0 = vshll.u32 %v11502_v46, 16  ;;  %v9919_v49 = vld [vmem:[%s11921_s1 + $0x2a8] sm:$0xff]  }
 0x182   : > { %8586 = vmatprep.subr.bf16.mxu1 %v9897_v39  ;;  %v5960_v1 = vrot.slane %v5958_v23, 1  ;;  %v2613_v20 = vsel %vm1227_vm3, %v2610_v31, %v2612_v53 }
 0x183   : > { %v5972_v11 = vor.u32 %v5970_v7, %v5968_v15 }
 0x184   : > { %9019 = vmatpush3.bf16.msra.mxu0 %v9896_v4  ;;  %v5961_v26 = vsel %vm279_vm1, %v5956_v30, %v5960_v1  ;;  %v5964_v61 = vor.u32 %v5962_v28, %v5960_v1  ;;  %v5976_v4 = vrot.slane %v5974_v5, 1  ;;  %v11551_v1 = vld [vmem:[%s10068_s10 + $0x68] sm:$0xff]  }
 0x185   : > { %8587 = vmatpush3.bf16.msra.mxu1 %v9897_v39  ;;  %9040 = vmatprep.subr.bf16.mxu0 %v9902_v56  ;;  %v2611_v39 = vsel %vm1227_vm3, %v2608_v27, %v2610_v31  ;;  %v9918_v31 = vld [vmem:[%s11921_s1 + $0x5a8] sm:$0xff]   ;;  %v6010_v48 = vshrl.u32 %v11551_v1, 16 }
 0x186   : > { %8569 = vmatmul.mubr.bf16.gmra.mrb[16].mxu1 %v2390_v32  ;;  %8608 = vmatprep.subr.bf16.mxu1 %v9905_v45  ;;  %v5969_v35 = vsel %vm279_vm1, %v5964_v61, %v5968_v15  ;;  %v5977_v3 = vsel %vm279_vm1, %v5972_v11, %v5976_v4  ;;  %v9913_v32 = vld [vmem:[%s11921_s1 + $0x298] sm:$0xff]   ;;  %v5980_v62 = vor.u32 %v5978_v8, %v5976_v4  ;;  %v6002_v15 = vshrl.u32 %v11538_v18, 16 }
 0x187   : > { %9001 = vmatmul.mubr.bf16.gmra.mrb[16].mxu0 %v9895_v22  ;;  %8588 = vmatprep.mubr.bf16.mxu1 %v2605_v13  ;;  %v9990_v22 = vld [vmem:[%s10068_s10 + $0x38] sm:$0xff]   ;;  %v6006_v61 = vshll.u32 %v11551_v1, 16 }
 0x188   : > { %9020 = vmatprep.mubr.bf16.mxu0 %v5945_v25  ;;  %v2614_v13 = vrot.slane %v9990_v22, 2  ;;  %v5984_v25 = vrot.slane %v5982_v0, 1  ;;  %v6209_v22 = vld [vmem:[%s10068_s10 + $0x20] sm:$0xe] }
 0x18e   : > { %8589 = vmatmul.mubr.bf16.vlgmr.msra.gmra.mrb[0].mxu1 %v2607_v55  ;;  %v9916_v55 = vld [vmem:[%s11921_s1 + $0x2a0] sm:$0xff]  }
 0x18f   : > { %9021 = vmatmul.mubr.bf16.vlgmr.msra.gmra.mrb[0].mxu0 %v5953_v50  ;;  %8592 = vmatprep.mubr.bf16.mxu1 %v2609_v54  ;;  %v2615_v50 = vsel %vm1227_vm3, %v2612_v53, %v2614_v13  ;;  %v5998_v54 = vshll.u32 %v11538_v18, 16  ;;  %v9992_v53 = vld [vmem:[%s10068_s10 + $0x48] sm:$0xff]  }
 0x190   : > { %9041 = vmatpush3.bf16.msra.mxu0 %v9902_v56  ;;  %9024 = vmatprep.mubr.bf16.mxu0 %v5961_v26  ;;  %v5986_v56 = vshrl.u32 %v11502_v46, 16  ;;  %v2617_v26 = vsel %vm1227_vm3, %v2614_v13, %v2616_v38 }
 0x191   : > { %9042 = vmatprep.subr.bf16.mxu0 %v9903_v60  ;;  %8609 = vmatpush3.bf16.msra.mxu1 %v9905_v45  ;;  %v5990_v45 = vshll.u32 %v11515_v47, 16  ;;  %v6000_v11 = vrot.slane %v5998_v54, 1 }
 0x192   : > { %8610 = vmatprep.subr.bf16.mxu1 %v9908_v24  ;;  %v5988_v27 = vor.u32 %v5986_v56, %v5984_v25 }
 0x193   : > { %v5992_v30 = vrot.slane %v5990_v45, 1 }
 0x194   : > { %9043 = vmatpush3.bf16.msra.mxu0 %v9903_v60  ;;  %v5985_v60 = vsel %vm279_vm1, %v5980_v62, %v5984_v25 }
 0x195   : > { %9044 = vmatprep.subr.bf16.mxu0 %v9907_v34  ;;  %8611 = vmatpush3.bf16.msra.mxu1 %v9908_v24  ;;  %v5994_v24 = vshrl.u32 %v11515_v47, 16  ;;  %v5993_v36 = vsel %vm279_vm1, %v5988_v27, %v5992_v30 }
 0x196   : > { %8593 = vmatmul.mubr.bf16.gmra.mrb[4].mxu1 %v2611_v39  ;;  %8612 = vmatprep.subr.bf16.mxu1 %v9911_v44 }
 0x197   : > { %9025 = vmatmul.mubr.bf16.gmra.mrb[4].mxu0 %v5969_v35  ;;  %8596 = vmatprep.mubr.bf16.mxu1 %v2613_v20  ;;  %v5996_v4 = vor.u32 %v5994_v24, %v5992_v30  ;;  %v11577_v35 = vld [vmem:[%s10068_s10 + $0x70] ss:$0 sps:$4 sm:$0x11]   ;;  %v9924_v30 = vld [vmem:[%s11921_s1 + $0x5b8] sm:$0xff]  }
 0x198   : > { %9045 = vmatpush3.bf16.msra.mxu0 %v9907_v34  ;;  %9028 = vmatprep.mubr.bf16.mxu0 %v5977_v3  ;;  %v2618_v34 = vrot.slane %v9992_v53, 2  ;;  %v9920_v20 = vld [vmem:[%s11921_s1 + $0x5b0] sm:$0xff]   ;;  %v6004_v3 = vor.u32 %v6002_v15, %v6000_v11 }
 0x199   : > { %9046 = vmatprep.subr.bf16.mxu0 %v9910_v40  ;;  %8613 = vmatpush3.bf16.msra.mxu1 %v9911_v44  ;;  %v9993_v44 = vld [vmem:[%s10068_s10 + $0x50] sm:$0xff]   ;;  %v6001_v25 = vsel %vm279_vm1, %v5996_v4, %v6000_v11 }
 0x19a   : > { %8614 = vmatprep.subr.bf16.mxu1 %v9913_v32  ;;  %v2620_v39 = vrot.slane %v9993_v44, 2  ;;  %v2619_v13 = vsel %vm1227_vm3, %v2616_v38, %v2618_v34  ;;  %v9925_v38 = vld [vmem:[%s11921_s1 + $0x2b8] sm:$0xff]   ;;  %v6233_v44 = vrot.slane %v11445_v29, 1 }
 0x19c   : > { %9047 = vmatpush3.bf16.msra.mxu0 %v9910_v40  ;;  %v6008_v40 = vrot.slane %v6006_v61, 1  ;;  %v2621_v62 = vsel %vm1227_vm3, %v2618_v34, %v2620_v39  ;;  %v9926_v34 = vld [vmem:[%s10068_s10 + $0x10] sm:$0xff]  }
 0x19d   : > { %9048 = vmatprep.subr.bf16.mxu0 %v9914_v12  ;;  %8615 = vmatpush3.bf16.msra.mxu1 %v9913_v32  ;;  %v9922_v32 = vld [vmem:[%s11921_s1 + $0x2b0] sm:$0xff]  }
 0x19e   : > { %8597 = vmatmul.mubr.bf16.gmra.mrb[8].mxu1 %v2615_v50  ;;  %8616 = vmatprep.subr.bf16.mxu1 %v9916_v55  ;;  %v6009_v27 = vsel %vm279_vm1, %v6004_v3, %v6008_v40  ;;  %v2622_v50 = vrot.slane %v11408_v57, 2  ;;  %v9933_v57 = vld [vmem:[%s11921_s1 + $0x2c0] sm:$0xff]   ;;  %v9928_v3 = vld [vmem:[%s10068_s10 + $0x18] sm:$0xff]  }
 0x19f   : > { %9029 = vmatmul.mubr.bf16.gmra.mrb[8].mxu0 %v5985_v60  ;;  %8600 = vmatprep.mubr.bf16.mxu1 %v2617_v26  ;;  %v6012_v60 = vor.u32 %v6010_v48, %v6008_v40 }
 0x1a0   : > { %9049 = vmatpush3.bf16.msra.mxu0 %v9914_v12  ;;  %9032 = vmatprep.mubr.bf16.mxu0 %v5993_v36  ;;  %v6014_v12 = vshll.u32 %v11577_v35, 16  ;;  %v2623_v53 = vsel %vm1227_vm3, %v2620_v39, %v2622_v50  ;;  %v9931_v39 = vld [vmem:[%s10068_s10 + $0x20] sm:$0xff]  }
 0x1a1   : > { %8617 = vmatpush3.bf16.msra.mxu1 %v9916_v55  ;;  %9050 = vmatprep.subr.bf16.mxu0 %v9918_v31  ;;  %v11600_v55 = vcombine.low %v6209_v22, %v11404_v17 }
 0x1a2   : > { %8618 = vmatprep.subr.bf16.mxu1 %v9919_v49  ;;  %v6016_v26 = vrot.slane %v6014_v12, 1  ;;  %v6239_v12 = vrot.slane %v11482_v19, 1 }
 0x1a3   : > { %v6230_v36 = vrot.slane %v11600_v55, 1 }
 0x1a4   : > { %9051 = vmatpush3.bf16.msra.mxu0 %v9918_v31  ;;  %v6231_v31 = vrot.slane %v11427_v41, 1  ;;  %v6017_v11 = vsel %vm279_vm1, %v6012_v60, %v6016_v26  ;;  %v9937_v26 = vld [vmem:[%s11921_s1 + $0x5d8] sm:$0xff]  }
 0x1a5   : > { %8619 = vmatpush3.bf16.msra.mxu1 %v9919_v49  ;;  %9052 = vmatprep.subr.bf16.mxu0 %v9920_v20  ;;  %v9929_v49 = vld [vmem:[%s11921_s1 + $0x5c0] sm:$0xff]  }
 0x1a6   : > { %8601 = vmatmul.mubr.bf16.gmra.mrb[12].mxu1 %v2619_v13  ;;  %8620 = vmatprep.subr.bf16.mxu1 %v9922_v32  ;;  %v6232_v4 = vsel %vm727_vm0, %v6230_v36, %v6231_v31  ;;  %v6234_v40 = vsel %vm727_vm0, %v6231_v31, %v6233_v44  ;;  %v9935_v13 = vld [vmem:[%s11921_s1 + $0x2c8] sm:$0xff]   ;;  %v9940_v36 = vld [vmem:[%s11921_s1 + $0x2d8] sm:$0xff]   ;;  %v6241_v31 = vrot.slane %v11502_v46, 1 }
 0x1a7   : > { %9033 = vmatmul.mubr.bf16.gmra.mrb[12].mxu0 %v6001_v25  ;;  %8604 = vmatprep.mubr.bf16.mxu1 %v2621_v62  ;;  %v6237_v25 = vrot.slane %v11472_v52, 1  ;;  %v9934_v62 = vld [vmem:[%s11921_s1 + $0x5d0] sm:$0xff]  }
 0x1a8   : > { %9036 = vmatprep.mubr.bf16.mxu0 %v6009_v27  ;;  %9053 = vmatpush3.bf16.msra.mxu0 %v9920_v20  ;;  %v6235_v20 = vrot.slane %v11454_v10, 1  ;;  %v9932_v27 = vld [vmem:[%s10068_s10 + $0x28] sm:$0xff]  }
 0x1a9   : > { %8621 = vmatpush3.bf16.msra.mxu1 %v9922_v32  ;;  %9054 = vmatprep.subr.bf16.mxu0 %v9924_v30  ;;  %v9930_v32 = vld [vmem:[%s11921_s1 + $0x5c8] sm:$0xff]   ;;  %v6240_v60 = vsel %vm727_vm0, %v6237_v25, %v6239_v12 }
 0x1aa   : > { %8622 = vmatprep.subr.bf16.mxu1 %v9925_v38  ;;  %v6236_v22 = vsel %vm727_vm0, %v6233_v44, %v6235_v20  ;;  %v6238_v50 = vsel %vm727_vm0, %v6235_v20, %v6237_v25  ;;  %v6242_v44 = vsel %vm727_vm0, %v6239_v12, %v6241_v31  ;;  %v9994_v20 = vld [vmem:[%s10068_s10 + $0x14] sm:$0xf]  ;;  %v6464_v12 = vshrl.u32 %v11600_v55, 16 }
 0x1ac   : > { %9055 = vmatpush3.bf16.msra.mxu0 %v9924_v30  ;;  %v9939_v30 = vld [vmem:[%s11921_s1 + $0x2d0] sm:$0xff]  }
 0x1ad   : > { %8623 = vmatpush3.bf16.msra.mxu1 %v9925_v38  ;;  %9076 = vmatprep.subr.bf16.mxu0 %v9929_v49  ;;  %v9936_v38 = vld [vmem:[%s10068_s10 + $0x30] sm:$0xff]  }
 0x1ae   : > { %8605 = vmatmul.mubr.bf16.gmra.mrb[16].mxu1 %v2623_v53  ;;  %8644 = vmatprep.subr.bf16.mxu1 %v9933_v57  ;;  %v3093_v53 = vld [vmem:[%s10068_s10 + $0x10] sm:$0xf] }
 0x1af   : > { %9037 = vmatmul.mubr.bf16.gmra.mrb[16].mxu0 %v6017_v11  ;;  %8624 = vmatprep.mubr.bf16.mxu1 %v9926_v34  ;;  %v9938_v34 = vld [vmem:[%s10068_s10 + $0x38] sm:$0xff]   ;;  %v9944_v11 = vld [vmem:[%s11921_s1 + $0x2e0] sm:$0xff]  }
 0x1b0   : > { %9056 = vmatprep.mubr.bf16.mxu0 %v6232_v4  ;;  %v9942_v4 = vld [vmem:[%s10068_s10 + $0x40] sm:$0xff]  }
 0x1b6   : > { %8625 = vmatmul.mubr.bf16.vlgmr.msra.gmra.mrb[0].mxu1 %v9928_v3  ;;  %v7413_v3 = vcombine.low %v3093_v53, %v9994_v20  ;;  %v11982_v20 = vshll.u32 %v10087_v16, 16 }
 0x1b7   : > { %9057 = vmatmul.mubr.bf16.vlgmr.msra.gmra.mrb[0].mxu0 %v6234_v40  ;;  %8628 = vmatprep.mubr.bf16.mxu1 %v9931_v39  ;;  %v9945_v40 = vld [vmem:[%s11921_s1 + $0x5e8] sm:$0xff]  }
 0x1b8   : > { %9077 = vmatpush3.bf16.msra.mxu0 %v9929_v49  ;;  %9060 = vmatprep.mubr.bf16.mxu0 %v6236_v22  ;;  %v9941_v49 = vld [vmem:[%s11921_s1 + $0x5e0] sm:$0xff]   ;;  %v6245_v22 = vrot.slane %v11538_v18, 1  ;;  %v3187_v25 = vshll.u32 %v7413_v3, 16 }
 0x1b9   : > { %9078 = vmatprep.subr.bf16.mxu0 %v9930_v32  ;;  %8645 = vmatpush3.bf16.msra.mxu1 %v9933_v57  ;;  %v6243_v57 = vrot.slane %v11515_v47, 1 }
 0x1ba   : > { %8646 = vmatprep.subr.bf16.mxu1 %v9935_v13 }
 0x1bb   : > { %v6244_v39 = vsel %vm727_vm0, %v6241_v31, %v6243_v57  ;;  %v3189_v31 = vrot.slane %v3187_v25, 1  ;;  %v6476_v25 = vrot.slane %v5950_v43, 2 }
 0x1bc   : > { %9079 = vmatpush3.bf16.msra.mxu0 %v9930_v32  ;;  %v9946_v32 = vld [vmem:[%s11921_s1 + $0x2e8] sm:$0xff]  }
 0x1bd   : > { %9080 = vmatprep.subr.bf16.mxu0 %v9934_v62  ;;  %8647 = vmatpush3.bf16.msra.mxu1 %v9935_v13  ;;  %v6247_v13 = vrot.slane %v11551_v1, 1 }
 0x1be   : > { %8629 = vmatmul.mubr.bf16.gmra.mrb[4].mxu1 %v9932_v27  ;;  %8648 = vmatprep.subr.bf16.mxu1 %v9939_v30  ;;  %v6467_v27 = vshll.u32 %v11600_v55, 16  ;;  %v9951_v55 = vld [vmem:[%s11921_s1 + $0x5f8] sm:$0xff]  }
 0x1bf   : > { %9061 = vmatmul.mubr.bf16.gmra.mrb[4].mxu0 %v6238_v50  ;;  %8632 = vmatprep.mubr.bf16.mxu1 %v9936_v38  ;;  %v9950_v38 = vld [vmem:[%s11921_s1 + $0x2f0] sm:$0xff]  }
 0x1c0   : > { %9081 = vmatpush3.bf16.msra.mxu0 %v9934_v62  ;;  %9064 = vmatprep.mubr.bf16.mxu0 %v6240_v60  ;;  %v9947_v62 = vld [vmem:[%s11921_s1 + $0x5f0] sm:$0xff]   ;;  %v6246_v60 = vsel %vm727_vm0, %v6243_v57, %v6245_v22  ;;  %v6469_v53 = vrot.slane %v6467_v27, 2  ;;  %v9952_v57 = vld [vmem:[%s11921_s1 + $0x2f8] sm:$0xff]   ;;  %v6480_v27 = vrot.slane %v5958_v23, 2 }
 0x1c1   : > { %9082 = vmatprep.subr.bf16.mxu0 %v9937_v26  ;;  %8649 = vmatpush3.bf16.msra.mxu1 %v9939_v30  ;;  %v9943_v30 = vld [vmem:[%s10068_s10 + $0x48] sm:$0xff]   ;;  %v9948_v50 = vld [vmem:[%s10068_s10 + $0x50] sm:$0xff]  }
 0x1c2   : > { %8650 = vmatprep.subr.bf16.mxu1 %v9940_v36 }
 0x1c4   : > { %9083 = vmatpush3.bf16.msra.mxu0 %v9937_v26  ;;  %v6248_v26 = vsel %vm727_vm0, %v6245_v22, %v6247_v13 }
 0x1c5   : > { %9084 = vmatprep.subr.bf16.mxu0 %v9941_v49  ;;  %8651 = vmatpush3.bf16.msra.mxu1 %v9940_v36  ;;  %v3185_v36 = vshrl.u32 %v7413_v3, 16 }
 0x1c6   : > { %8633 = vmatmul.mubr.bf16.gmra.mrb[8].mxu1 %v9938_v34  ;;  %8652 = vmatprep.subr.bf16.mxu1 %v9944_v11  ;;  %v6471_v34 = vrot.slane %v5946_v9, 1  ;;  %v3194_v9 = vrot.slane %v11982_v20, 1  ;;  %v11989_v20 = vshrl.u32 %v10157_v58, 16 }
 0x1c7   : > { %9065 = vmatmul.mubr.bf16.gmra.mrb[8].mxu0 %v6242_v44  ;;  %8636 = vmatprep.mubr.bf16.mxu1 %v9942_v4  ;;  %v6249_v4 = vrot.slane %v11577_v35, 1  ;;  %v3190_v44 = vor.u32 %v3189_v31, %v3185_v36 }
 0x1c8   : > { %9085 = vmatpush3.bf16.msra.mxu0 %v9941_v49  ;;  %9068 = vmatprep.mubr.bf16.mxu0 %v6244_v39  ;;  %v6466_v49 = vrot.slane %v6464_v12, 1  ;;  %v9954_v39 = vld [vmem:[%s11921_s1 + $0x600] sm:$0xff]   ;;  %v6479_v12 = vrot.slane %v5962_v28, 1  ;;  %v11986_v28 = vshll.u32 %v10130_v42, 16 }
 0x1c9   : > { %8653 = vmatpush3.bf16.msra.mxu1 %v9944_v11  ;;  %9086 = vmatprep.subr.bf16.mxu0 %v9945_v40  ;;  %v6472_v11 = vrot.slane %v5942_v14, 2  ;;  %v6250_v22 = vsel %vm727_vm0, %v6247_v13, %v6249_v4  ;;  %v3195_v35 = vsel %vm279_vm1, %v3190_v44, %v3194_v9 }
 0x1ca   : > { %8654 = vmatprep.subr.bf16.mxu1 %v9946_v32  ;;  %v6470_v14 = vor.u32 %v6469_v53, %v6466_v49  ;;  %v6481_v36 = vor.u32 %v6480_v27, %v6479_v12  ;;  %v6484_v49 = vrot.slane %v5966_v59, 2  ;;  %v11988_v59 = vshrl.u32 %v10130_v42, 16 }
 0x1cb   : > { %v6473_v3 = vor.u32 %v6472_v11, %v6471_v34  ;;  %v6487_v34 = vrot.slane %v5978_v8, 1  ;;  %v6488_v11 = vrot.slane %v5974_v5, 2  ;;  %v11990_v8 = vshll.u32 %v10172_v2, 16  ;;  %v9956_v5 = vld [vmem:[%s11921_s1 + $0x610] sm:$0xff]  }
 0x1cc   : > { %9087 = vmatpush3.bf16.msra.mxu0 %v9945_v40  ;;  %v9949_v40 = vld [vmem:[%s10068_s10 + $0x58] sm:$0xff]  }
 0x1cd   : > { %8655 = vmatpush3.bf16.msra.mxu1 %v9946_v32  ;;  %9088 = vmatprep.subr.bf16.mxu0 %v9947_v62  ;;  %v6475_v32 = vrot.slane %v5954_v63, 1  ;;  %v11983_v63 = vshll.u32 %v10122_v37, 16 }
 0x1ce   : > { %8637 = vmatmul.mubr.bf16.gmra.mrb[12].mxu1 %v9943_v30  ;;  %8656 = vmatprep.subr.bf16.mxu1 %v9950_v38  ;;  %v11984_v30 = vshrl.u32 %v10087_v16, 16  ;;  %v6483_v16 = vrot.slane %v5970_v7, 1 }
 0x1cf   : > { %9069 = vmatmul.mubr.bf16.gmra.mrb[12].mxu0 %v6246_v60  ;;  %8640 = vmatprep.mubr.bf16.mxu1 %v9948_v50  ;;  %v3202_v13 = vrot.slane %v11983_v63, 1  ;;  %v6477_v43 = vor.u32 %v6476_v25, %v6475_v32  ;;  %v11985_v50 = vshrl.u32 %v10122_v37, 16  ;;  %v9955_v37 = vld [vmem:[%s11921_s1 + $0x608] sm:$0xff]   ;;  %v6495_v25 = vrot.slane %v5994_v24, 1 }
 0x1d0   : > { %9072 = vmatprep.mubr.bf16.mxu0 %v6248_v26  ;;  %9089 = vmatpush3.bf16.msra.mxu0 %v9947_v62  ;;  %v6474_v62 = vsel %vm961_vm2, %v6470_v14, %v6473_v3  ;;  %v3210_v26 = vrot.slane %v11986_v28, 1  ;;  %v6485_v44 = vor.u32 %v6484_v49, %v6483_v16  ;;  %v3226_v14 = vrot.slane %v11990_v8, 1 }
 0x1d1   : > { %8657 = vmatpush3.bf16.msra.mxu1 %v9950_v38  ;;  %9090 = vmatprep.subr.bf16.mxu0 %v9951_v55  ;;  %v3198_v38 = vor.u32 %v11984_v30, %v3194_v9  ;;  %v3206_v60 = vor.u32 %v11985_v50, %v3202_v13  ;;  %v6478_v31 = vsel %vm961_vm2, %v6473_v3, %v6477_v43  ;;  %v11994_v30 = vshll.u32 %v10214_v33, 16 }
 0x1d2   : > { %8658 = vmatprep.subr.bf16.mxu1 %v9952_v57  ;;  %v6482_v53 = vsel %vm961_vm2, %v6477_v43, %v6481_v36  ;;  %v3214_v7 = vor.u32 %v11988_v59, %v3210_v26  ;;  %v6489_v3 = vor.u32 %v6488_v11, %v6487_v34  ;;  %v6499_v50 = vrot.slane %v6002_v15, 1  ;;  %v6707_v59 = vld [vmem:[%s10068_s10 + $0x20] sm:$0xc] }
 0x1d3   : > { %v3203_v23 = vsel %vm279_vm1, %v3198_v38, %v3202_v13  ;;  %v11993_v13 = vshrl.u32 %v10199_v21, 16  ;;  %v9958_v38 = vld [vmem:[%s11921_s1 + $0x620] sm:$0xff]   ;;  %v6503_v15 = vrot.slane %v6010_v48, 1  ;;  %v11996_v16 = vshrl.u32 %v10214_v33, 16  ;;  %v9960_v33 = vld [vmem:[%s11921_s1 + $0x630] sm:$0xff]  }
 0x1d4   : > { %9091 = vmatpush3.bf16.msra.mxu0 %v9951_v55  ;;  %v3211_v55 = vsel %vm279_vm1, %v3206_v60, %v3210_v26  ;;  %v11780_v26 = vld [vmem:[%s10068_s10 + $0x70] ss:$0 sps:$4 sm:$0x33]   ;;  %v11997_v48 = vshrl.u32 %v10238_v51, 16 }
 0x1d5   : > { %8659 = vmatpush3.bf16.msra.mxu1 %v9952_v57  ;;  %9112 = vmatprep.subr.bf16.mxu0 %v9954_v39  ;;  %v11987_v57 = vshll.u32 %v10157_v58, 16  ;;  %v6491_v58 = vrot.slane %v5986_v56, 1  ;;  %v11991_v56 = vshll.u32 %v10199_v21, 16  ;;  %v6500_v21 = vrot.slane %v5998_v54, 2 }
 0x1d6   : > { %8641 = vmatmul.mubr.bf16.gmra.mrb[16].mxu1 %v9949_v40  ;;  %9148 = vmatprep.subr.bf16.mxu1 %v9954_v39  ;;  %v6486_v40 = vsel %vm961_vm2, %v6481_v36, %v6485_v44  ;;  %v6504_v54 = vrot.slane %v6006_v61, 2  ;;  %v11998_v61 = vshll.u32 %v10258_v6, 16  ;;  %v6508_v11 = vshrl.u32 %v11780_v26, 16 }
 0x1d7   : > { %9073 = vmatmul.mubr.bf16.gmra.mrb[16].mxu0 %v6250_v22  ;;  %8660 = vmatprep.mubr.bf16.mxu1 %v3195_v35  ;;  %v3218_v4 = vrot.slane %v11987_v57, 1  ;;  %v6492_v22 = vrot.slane %v5982_v0, 2  ;;  %v9957_v35 = vld [vmem:[%s11921_s1 + $0x618] sm:$0xff]   ;;  %v3234_v12 = vrot.slane %v11991_v56, 1  ;;  %v11992_v0 = vshrl.u32 %v10172_v2, 16 }
 0x1d8   : > { %9092 = vmatprep.mubr.bf16.mxu0 %v6474_v62  ;;  %v6496_v62 = vrot.slane %v5990_v45, 2  ;;  %v3242_v45 = vrot.slane %v11994_v30, 1  ;;  %v3258_v34 = vrot.slane %v11998_v61, 1  ;;  %v6511_v57 = vshll.u32 %v11780_v26, 16 }
 0x1d9   : > { %v3222_v9 = vor.u32 %v11989_v20, %v3218_v4  ;;  %v3219_v42 = vsel %vm279_vm1, %v3214_v7, %v3218_v4  ;;  %v3230_v27 = vor.u32 %v11992_v0, %v3226_v14  ;;  %v6493_v63 = vor.u32 %v6492_v22, %v6491_v58 }
 0x1da   : > { %v3238_v24 = vor.u32 %v11993_v13, %v3234_v12  ;;  %v6497_v43 = vor.u32 %v6496_v62, %v6495_v25  ;;  %v3246_v49 = vor.u32 %v11996_v16, %v3242_v45  ;;  %v6505_v4 = vor.u32 %v6504_v54, %v6503_v15 }
 0x1db   : > { %v3227_v32 = vsel %vm279_vm1, %v3222_v9, %v3226_v14  ;;  %v3235_v2 = vsel %vm279_vm1, %v3230_v27, %v3234_v12  ;;  %v6494_v60 = vsel %vm961_vm2, %v6489_v3, %v6493_v63  ;;  %v6510_v8 = vrot.slane %v6508_v11, 1 }
 0x1dc   : > { %v3243_v28 = vsel %vm279_vm1, %v3238_v24, %v3242_v45  ;;  %v6498_v36 = vsel %vm961_vm2, %v6493_v63, %v6497_v43  ;;  %v6513_v14 = vrot.slane %v6511_v57, 2  ;;  %v6733_v0 = vrot.slane %v11454_v10, 2 }
 0x1de   : > { %8661 = vmatmul.mubr.bf16.vlgmr.msra.gmra.mrb[0].mxu1 %v3203_v23  ;;  %v9959_v23 = vld [vmem:[%s11921_s1 + $0x628] sm:$0xff]   ;;  %v6514_v22 = vor.u32 %v6513_v14, %v6510_v8 }
 0x1df   : > { %9093 = vmatmul.mubr.bf16.vlgmr.msra.gmra.mrb[0].mxu0 %v6478_v31  ;;  %8664 = vmatprep.mubr.bf16.mxu1 %v3211_v55  ;;  %v11995_v31 = vshll.u32 %v10238_v51, 16  ;;  %v9995_v51 = vld [vmem:[%s10068_s10 + $0x60] ss:$0 sps:$4 sm:$0x11]  }
 0x1e0   : > { %9113 = vmatpush3.bf16.msra.mxu0 %v9954_v39  ;;  %9096 = vmatprep.mubr.bf16.mxu0 %v6482_v53  ;;  %v6515_v56 = vsel %vm961_vm2, %v6505_v4, %v6514_v22 }
 0x1e1   : > { %9114 = vmatprep.subr.bf16.mxu0 %v9955_v37  ;;  %9156 = vmatpush3.bf16.msra.mxu1 %v9954_v39  ;;  %v6490_v39 = vsel %vm961_vm2, %v6485_v44, %v6489_v3  ;;  %v3250_v55 = vrot.slane %v11995_v31, 1  ;;  %v3264_v44 = vshll.u32 %v9995_v51, 16  ;;  %v9962_v3 = vld [vmem:[%s11921_s1 + $0x638] sm:$0xff]  }
 0x1e2   : > { %9149 = vmatprep.subr.bf16.mxu1 %v9955_v37 }
 0x1e3   : > { %v3254_v53 = vor.u32 %v11997_v48, %v3250_v55  ;;  %v3251_v7 = vsel %vm279_vm1, %v3246_v49, %v3250_v55  ;;  %v3266_v58 = vrot.slane %v3264_v44, 1 }
 0x1e4   : > { %9115 = vmatpush3.bf16.msra.mxu0 %v9955_v37 }
 0x1e5   : > { %9116 = vmatprep.subr.bf16.mxu0 %v9956_v5  ;;  %9157 = vmatpush3.bf16.msra.mxu1 %v9955_v37  ;;  %v6501_v37 = vor.u32 %v6500_v21, %v6499_v50  ;;  %v3259_v9 = vsel %vm279_vm1, %v3254_v53, %v3258_v34 }
 0x1e6   : > { %8665 = vmatmul.mubr.bf16.gmra.mrb[4].mxu1 %v3219_v42  ;;  %9150 = vmatprep.subr.bf16.mxu1 %v9956_v5  ;;  %v7786_v42 = vcombine.low %v6707_v59, %v11404_v17  ;;  %v6729_v17 = vrot.slane %v11427_v41, 2  ;;  %v6745_v41 = vrot.slane %v11551_v1, 2  ;;  %v6737_v1 = vrot.slane %v11482_v19, 2 }
 0x1e7   : > { %9097 = vmatmul.mubr.bf16.gmra.mrb[4].mxu0 %v6486_v40  ;;  %8668 = vmatprep.mubr.bf16.mxu1 %v3227_v32  ;;  %v6502_v20 = vsel %vm961_vm2, %v6497_v43, %v6501_v37  ;;  %v11999_v40 = vshrl.u32 %v10258_v6, 16 }
 0x1e8   : > { %9117 = vmatpush3.bf16.msra.mxu0 %v9956_v5  ;;  %9100 = vmatprep.mubr.bf16.mxu0 %v6490_v39  ;;  %v6739_v39 = vrot.slane %v11502_v46, 2  ;;  %v6728_v25 = vrot.slane %v7786_v42, 2  ;;  %v6743_v46 = vrot.slane %v11538_v18, 2  ;;  %v6747_v18 = vrot.slane %v11780_v26, 2 }
 0x1e9   : > { %9118 = vmatprep.subr.bf16.mxu0 %v9957_v35  ;;  %9158 = vmatpush3.bf16.msra.mxu1 %v9956_v5  ;;  %v6506_v5 = vsel %vm961_vm2, %v6501_v37, %v6505_v4  ;;  %v3262_v32 = vor.u32 %v11999_v40, %v3258_v34 }
 0x1ea   : > { %9151 = vmatprep.subr.bf16.mxu1 %v9957_v35  ;;  %v6730_v12 = vsel %vm1227_vm3, %v6728_v25, %v6729_v17  ;;  %v6746_v13 = vsel %vm1227_vm3, %v6743_v46, %v6745_v41  ;;  %v6748_v10 = vsel %vm1227_vm3, %v6745_v41, %v6747_v18 }
 0x1eb   : > { %v3267_v62 = vsel %vm279_vm1, %v3262_v32, %v3266_v58 }
 0x1ec   : > { %9119 = vmatpush3.bf16.msra.mxu0 %v9957_v35 }
 0x1ed   : > { %9120 = vmatprep.subr.bf16.mxu0 %v9958_v38  ;;  %9159 = vmatpush3.bf16.msra.mxu1 %v9957_v35  ;;  %v6741_v35 = vrot.slane %v11515_v47, 2  ;;  %v6731_v47 = vrot.slane %v11445_v29, 2  ;;  %v6735_v29 = vrot.slane %v11472_v52, 2 }
 0x1ee   : > { %8669 = vmatmul.mubr.bf16.gmra.mrb[8].mxu1 %v3235_v2  ;;  %9152 = vmatprep.subr.bf16.mxu1 %v9958_v38 }
 0x1ef   : > { %9101 = vmatmul.mubr.bf16.gmra.mrb[8].mxu0 %v6494_v60  ;;  %8672 = vmatprep.mubr.bf16.mxu1 %v3243_v28  ;;  %v6742_v6 = vsel %vm1227_vm3, %v6739_v39, %v6741_v35  ;;  %v6744_v27 = vsel %vm1227_vm3, %v6741_v35, %v6743_v46  ;;  %v6732_v63 = vsel %vm1227_vm3, %v6729_v17, %v6731_v47 }
 0x1f0   : > { %9121 = vmatpush3.bf16.msra.mxu0 %v9958_v38  ;;  %9104 = vmatprep.mubr.bf16.mxu0 %v6498_v36  ;;  %v6734_v24 = vsel %vm1227_vm3, %v6731_v47, %v6733_v0  ;;  %v6736_v30 = vsel %vm1227_vm3, %v6733_v0, %v6735_v29  ;;  %v6738_v45 = vsel %vm1227_vm3, %v6735_v29, %v6737_v1 }
 0x1f1   : > { %9160 = vmatpush3.bf16.msra.mxu1 %v9958_v38  ;;  %9122 = vmatprep.subr.bf16.mxu0 %v9959_v23  ;;  %v6740_v38 = vsel %vm1227_vm3, %v6737_v1, %v6739_v39 }
 0x1f2   : > { %9153 = vmatprep.subr.bf16.mxu1 %v9959_v23 }
 0x1f4   : > { %9123 = vmatpush3.bf16.msra.mxu0 %v9959_v23 }
 0x1f5   : > { %9161 = vmatpush3.bf16.msra.mxu1 %v9959_v23  ;;  %9124 = vmatprep.subr.bf16.mxu0 %v9960_v33 }
 0x1f6   : > { %8673 = vmatmul.mubr.bf16.gmra.mrb[12].mxu1 %v3251_v7  ;;  %9154 = vmatprep.subr.bf16.mxu1 %v9960_v33 }
 0x1f7   : > { %9105 = vmatmul.mubr.bf16.gmra.mrb[12].mxu0 %v6502_v20  ;;  %8676 = vmatprep.mubr.bf16.mxu1 %v3259_v9 }
 0x1f8   : > { %9108 = vmatprep.mubr.bf16.mxu0 %v6506_v5  ;;  %9125 = vmatpush3.bf16.msra.mxu0 %v9960_v33 }
 0x1f9   : > { %9162 = vmatpush3.bf16.msra.mxu1 %v9960_v33  ;;  %9126 = vmatprep.subr.bf16.mxu0 %v9962_v3 }
 0x1fa   : > { %9155 = vmatprep.subr.bf16.mxu1 %v9962_v3 }
 0x1fc   : > { %9127 = vmatpush3.bf16.msra.mxu0 %v9962_v3 }
 0x1fd   : > { %9163 = vmatpush3.bf16.msra.mxu1 %v9962_v3 }
 0x1fe   : > { %8677 = vmatmul.mubr.bf16.gmra.mrb[16].mxu1 %v3267_v62  ;;  %v11856_v62 = vld [vmem:[%s11922_s2] ss:$0 sm:$0xff] }
 0x1ff   : > { %9109 = vmatmul.mubr.bf16.gmra.mrb[16].mxu0 %v6515_v56  ;;  %9140 = vmatprep.mubr.bf16.mxu1 %v6742_v6 }
 0x200   : > { %9128 = vmatprep.mubr.bf16.mxu0 %v6730_v12 }
 0x206   : > { %9141 = vmatmul.mubr.bf16.vlgmr.msra.gmra.mrb[20].mxu1 %v6744_v27 }
 0x207   : > { %9129 = vmatmul.mubr.bf16.vlgmr.msra.gmra.mrb[0].mxu0 %v6732_v63  ;;  %9144 = vmatprep.mubr.bf16.mxu1 %v6746_v13 }
 0x208   : > { %9132 = vmatprep.mubr.bf16.mxu0 %v6734_v24 }
 0x20e   : > { %9145 = vmatmul.mubr.bf16.gmra.mrb[24].mxu1 %v6748_v10 }
 0x20f   : > { %9133 = vmatmul.mubr.bf16.gmra.mrb[4].mxu0 %v6736_v30 }
 0x210   : > { %9136 = vmatprep.mubr.bf16.mxu0 %v6738_v45 }
 0x217   : > { %9137 = vmatmul.mubr.bf16.gmra.mrb[8].mxu0 %v6740_v38 }
 0x2b1   : > { %v8662_v43 = vpop.f32.mrb[0].mxu1 }
 0x2b2   : > { %v3360_v2 = vpop.f32.mrb[1].mxu1 }
 0x2b3   : > { %v8663_v50 = vpop.f32.mrb[2].mxu1 }
 0x2b4   : > { %v3363_v21 = vpop.f32.mrb[3].mxu1 }
 0x2b9   : > { %v11837_v60 = vpop.f32.mrb[4].mxu1 }
 0x2ba   : > { %v11839_v52 = vpop.f32.mrb[5].mxu1 }
 0x2bb   : > { %v11841_v19 = vpop.f32.mrb[6].mxu1 }
 0x2bc   : > { %v11843_v28 = vpop.f32.mrb[7].mxu1 }
 0x2c1   : > { %v11845_v26 = vpop.f32.mrb[8].mxu1 }
 0x2c2   : > { %v11847_v36 = vpop.f32.mrb[9].mxu1 }
 0x2c3   : > { %v11849_v23 = vpop.f32.mrb[10].mxu1 }
 0x2c4   : > { %v11851_v15 = vpop.f32.mrb[11].mxu1 }
 0x2c9   : > { %v8674_v54 = vpop.f32.mrb[12].mxu1 }
 0x2ca   : > { %v9106_v31 = vpop.f32.mrb[12].mxu0  ;;  %v3408_v55 = vpop.f32.mrb[13].mxu1 }
 0x2cb   : > { %v9176_v16 = vadd.f32 %v9106_v31, %v8674_v54  ;;  %v6656_v49 = vpop.f32.mrb[13].mxu0  ;;  %v8675_v37 = vpop.f32.mrb[14].mxu1 }
 0x2cc   : > { %v9178_v48 = vadd.f32 %v6656_v49, %v3408_v55  ;;  %v9107_v53 = vpop.f32.mrb[14].mxu0  ;;  %v3411_v61 = vpop.f32.mrb[15].mxu1 }
 0x2cd   : > { %v9180_v34 = vadd.f32 %v9107_v53, %v8675_v37  ;;  %v6659_v11 = vpop.f32.mrb[15].mxu0 }
 0x2ce   : > { %v9182_v57 = vadd.f32 %v6659_v11, %v3411_v61 }
 0x2d1   : > { %v8678_v33 = vpop.f32.mrb[16].mxu1 }
 0x2d2   : > { %v9110_v4 = vpop.f32.mrb[16].mxu0  ;;  %v3424_v59 = vpop.f32.mrb[17].mxu1 }
 0x2d3   : > { %v9184_v7 = vadd.f32 %v9110_v4, %v8678_v33  ;;  %v6672_v51 = vpop.f32.mrb[17].mxu0  ;;  %v8679_v44 = vpop.f32.mrb[18].mxu1 }
 0x2d4   : > { %v9186_v20 = vadd.f32 %v6672_v51, %v3424_v59  ;;  %v9111_v9 = vpop.f32.mrb[18].mxu0  ;;  %v3427_v8 = vpop.f32.mrb[19].mxu1 }
 0x2d5   : > { %v9188_v14 = vadd.f32 %v9111_v9, %v8679_v44  ;;  %v6675_v5 = vpop.f32.mrb[19].mxu0 }
 0x2d6   : > { %v9190_v3 = vadd.f32 %v6675_v5, %v3427_v8 }
 0x2d9   : > { %v9142_v42 = vpop.f32.mrb[20].mxu1 }
 0x2da   : > { %v9130_v40 = vpop.f32.mrb[0].mxu0  ;;  %v9177_v32 = vadd.f32 %v9176_v16, %v9142_v42  ;;  %v6889_v58 = vpop.f32.mrb[21].mxu1 }
 0x2db   : > { %v9164_v22 = vadd.f32 %v9130_v40, %v8662_v43  ;;  %v6841_v39 = vpop.f32.mrb[1].mxu0  ;;  %v9179_v35 = vadd.f32 %v9178_v48, %v6889_v58  ;;  %v9143_v25 = vpop.f32.mrb[22].mxu1 }
 0x2dc   : > { %v9165_v17 = vadd.f32 %v6841_v39, %v3360_v2  ;;  %v9131_v56 = vpop.f32.mrb[2].mxu0  ;;  %v9181_v6 = vadd.f32 %v9180_v34, %v9143_v25  ;;  %v6892_v12 = vpop.f32.mrb[23].mxu1 }
 0x2dd   : > { %v6974_v46 = vmax.f32 %v9179_v35, %v9177_v32  ;;  %v9166_v47 = vadd.f32 %v9131_v56, %v8663_v50  ;;  %v6844_v41 = vpop.f32.mrb[3].mxu0  ;;  %v9183_v0 = vadd.f32 %v9182_v57, %v6892_v12 }
 0x2de   : > { %v6941_v27 = vmax.f32 %v9165_v17, %v9164_v22  ;;  %v9167_v63 = vadd.f32 %v6844_v41, %v3363_v21 }
 0x2df   : > { %v6976_v13 = vadd.f32 %v11856_v62, %v6974_v46  ;;  %v6975_v24 = vmax.f32 %v9183_v0, %v9181_v6  ;;  %v7024_v6 = vld [vmem:[%s11878_s11] sm:$0x7] }
 0x2e0   : > { %v6949_v18 = vadd.f32 %v11856_v62, %v6941_v27  ;;  %v6942_v29 = vmax.f32 %v9167_v63, %v9166_v47 }
 0x2e1   : > { %v6978_v1 = vmax.f32 %v6976_v13, 0.0  ;;  %v6977_v10 = vadd.f32 %v11856_v62, %v6975_v24  ;;  %v9146_v30 = vpop.f32.mrb[24].mxu1 }
 0x2e2   : > { %v6951_v45 = vmax.f32 %v6949_v18, 0.0  ;;  %v6950_v38 = vadd.f32 %v11856_v62, %v6942_v29  ;;  %v9134_v43 = vpop.f32.mrb[4].mxu0  ;;  %v9185_v2 = vadd.f32 %v9184_v7, %v9146_v30  ;;  %v6905_v50 = vpop.f32.mrb[25].mxu1 }
 0x2e3   : > { %6981 = vst.msk [vmem:[#allocation2 + $0x30] sm:$0xff] %vm6953_vm4, %v6978_v1  ;;  %v6979_v21 = vmax.f32 %v6977_v10, 0.0  ;;  %v9168_v54 = vadd.f32 %v9134_v43, %v11837_v60  ;;  %v6857_v31 = vpop.f32.mrb[5].mxu0  ;;  %v9187_v55 = vadd.f32 %v9186_v20, %v6905_v50  ;;  %v9147_v16 = vpop.f32.mrb[26].mxu1  ;;  %v7036_v1 = vld [vmem:[%s11878_s11 + $0x10] sm:$0x7] }
 0x2e4   : > { %6954 = vst.msk [vmem:[#allocation2] sm:$0xff] %vm6953_vm4, %v6951_v45  ;;  %v6952_v49 = vmax.f32 %v6950_v38, 0.0  ;;  %v9169_v37 = vadd.f32 %v6857_v31, %v11839_v52  ;;  %v9135_v48 = vpop.f32.mrb[6].mxu0  ;;  %v9189_v53 = vadd.f32 %v9188_v14, %v9147_v16  ;;  %v6908_v61 = vpop.f32.mrb[27].mxu1  ;;  %v7030_v16 = vld [vmem:[%s11878_s11 + $0x8] sm:$0x7] }
 0x2e5   : > { %6982 = vst.msk [vmem:[#allocation2 + $0x38] sm:$0xff] %vm6953_vm4, %v6979_v21  ;;  %v6983_v34 = vmax.f32 %v9187_v55, %v9185_v2  ;;  %v9170_v11 = vadd.f32 %v9135_v48, %v11841_v19  ;;  %v6860_v57 = vpop.f32.mrb[7].mxu0  ;;  %v9191_v33 = vadd.f32 %v9190_v3, %v6908_v61  ;;  %v7027_v2 = vld [vmem:[%s11878_s11 + $0x4] sm:$0x7] }
 0x2e6   : > { %6955 = vst.msk [vmem:[#allocation2 + $0x8] sm:$0xff] %vm6953_vm4, %v6952_v49  ;;  %v6956_v60 = vmax.f32 %v9169_v37, %v9168_v54  ;;  %v9171_v4 = vadd.f32 %v6860_v57, %v11843_v28 }
 0x2e7   : > { %v6985_v59 = vadd.f32 %v11856_v62, %v6983_v34  ;;  %v6984_v7 = vmax.f32 %v9191_v33, %v9189_v53 }
 0x2e8   : > { %v6958_v52 = vadd.f32 %v11856_v62, %v6956_v60  ;;  %v6957_v51 = vmax.f32 %v9171_v4, %v9170_v11 }
 0x2e9   : > { %v6987_v44 = vmax.f32 %v6985_v59, 0.0  ;;  %v6986_v20 = vadd.f32 %v11856_v62, %v6984_v7 }
 0x2ea   : > { %v6960_v9 = vmax.f32 %v6958_v52, 0.0  ;;  %v6959_v19 = vadd.f32 %v11856_v62, %v6957_v51  ;;  %v9138_v8 = vpop.f32.mrb[8].mxu0 }
 0x2eb   : > { %6990 = vst.msk [vmem:[#allocation2 + $0x40] sm:$0xff] %vm6953_vm4, %v6987_v44  ;;  %v6988_v28 = vmax.f32 %v6986_v20, 0.0  ;;  %v9172_v14 = vadd.f32 %v9138_v8, %v11845_v26  ;;  %v6873_v5 = vpop.f32.mrb[9].mxu0  ;;  %v7033_v26 = vld [vmem:[%s11878_s11 + $0xc] sm:$0x7] }
 0x2ec   : > { %v6998_v3 = vld [vmem:[#allocation2 + $0x30] ss:$2 sm:$0x1f]  ;;  %v7008_v42 = vld [vmem:[#allocation2 + $0x31] ss:$2 sm:$0x1f]  ;;  %v9173_v40 = vadd.f32 %v6873_v5, %v11847_v36 }
 0x2ed   : > { %6963 = vst.msk [vmem:[#allocation2 + $0x10] sm:$0xff] %vm6953_vm4, %v6960_v9  ;;  %v6992_v32 = vld [vmem:[#allocation2] ss:$2 sm:$0x1f]  ;;  %v7014_v22 = vmax.f32 %v6998_v3, %v7008_v42  ;;  %6991 = vst.msk [vmem:[#allocation2 + $0x48] sm:$0xff] %vm6953_vm4, %v6988_v28  ;;  %v6961_v25 = vmax.f32 %v6959_v19, 0.0 }
 0x2ee   : > { %v7002_v58 = vld [vmem:[#allocation2 + $0x1] ss:$2 sm:$0x1f]  ;;  %v6965_v17 = vmax.f32 %v9173_v40, %v9172_v14  ;;  %v9139_v56 = vpop.f32.mrb[10].mxu0 }
 0x2ef   : > { %v7011_v39 = vmax.f32 %v6992_v32, %v7002_v58  ;;  %v7019_v12 = vpack.c.bf16 %v7014_v22, %v7014_v22  ;;  %v9174_v36 = vadd.f32 %v9139_v56, %v11849_v23  ;;  %v6876_v46 = vpop.f32.mrb[11].mxu0  ;;  %6964 = vst.msk [vmem:[#allocation2 + $0x18] sm:$0xff] %vm6953_vm4, %v6961_v25 }
 0x2f0   : > { %v6967_v41 = vadd.f32 %v11856_v62, %v6965_v17  ;;  %v9175_v0 = vadd.f32 %v6876_v46, %v11851_v15 }
 0x2f1   : > { %v7016_v47 = vpack.c.bf16 %v7011_v39, %v7011_v39  ;;  %v7034_v27 = vsel %vm11886_vm7, %v7019_v12, %v7033_v26 }
 0x2f2   : > { %7035 = vst [vmem:[%s11878_s11 + $0xc] sm:$0x7] %v7034_v27  ;;  %v6969_v13 = vmax.f32 %v6967_v41, 0.0  ;;  %v6966_v24 = vmax.f32 %v9175_v0, %v9174_v36 }
 0x2f3   : > { %v7025_v63 = vsel %vm11886_vm7, %v7016_v47, %v7024_v6 }
 0x2f4   : > { %7026 = vst [vmem:[%s11878_s11] sm:$0x7] %v7025_v63  ;;  %v7000_v23 = vld [vmem:[#allocation2 + $0x40] ss:$2 sm:$0x1f]  ;;  %6972 = vst.msk [vmem:[#allocation2 + $0x20] sm:$0xff] %vm6953_vm4, %v6969_v13  ;;  %v6968_v29 = vadd.f32 %v11856_v62, %v6966_v24 }
 0x2f5   : > { %v7010_v18 = vld [vmem:[#allocation2 + $0x41] ss:$2 sm:$0x1f] }
 0x2f6   : > { %v7015_v15 = vmax.f32 %v7000_v23, %v7010_v18  ;;  %v6970_v10 = vmax.f32 %v6968_v29, 0.0  ;;  %v6994_v30 = vld [vmem:[#allocation2 + $0x10] ss:$2 sm:$0x1f] }
 0x2f7   : > { %v7004_v45 = vld [vmem:[#allocation2 + $0x11] ss:$2 sm:$0x1f] }
 0x2f8   : > { %v7020_v38 = vpack.c.bf16 %v7015_v15, %v7015_v15  ;;  %v7012_v43 = vmax.f32 %v6994_v30, %v7004_v45  ;;  %6973 = vst.msk [vmem:[#allocation2 + $0x28] sm:$0xff] %vm6953_vm4, %v6970_v10 }
 0x2fa   : > { %v7037_v50 = vsel %vm11886_vm7, %v7020_v38, %v7036_v1  ;;  %v7017_v21 = vpack.c.bf16 %v7012_v43, %v7012_v43 }
 0x2fb   : > { %7038 = vst [vmem:[%s11878_s11 + $0x10] sm:$0x7] %v7037_v50 }
 0x2fc   : > { %v7028_v62 = vsel %vm11886_vm7, %v7017_v21, %v7027_v2 }
 0x2fd   : > { %7029 = vst [vmem:[%s11878_s11 + $0x4] sm:$0x7] %v7028_v62 }
 0x2ff   : > { %v6996_v54 = vld [vmem:[#allocation2 + $0x20] ss:$2 sm:$0x1f]  ;;  %v7006_v31 = vld [vmem:[#allocation2 + $0x21] ss:$2 sm:$0x1f] }
 0x300   : > { %v7013_v55 = vmax.f32 %v6996_v54, %v7006_v31 }
 0x302   : > { %v7018_v49 = vpack.c.bf16 %v7013_v55, %v7013_v55 }
 0x304   : > { %v7031_v37 = vsel %vm11886_vm7, %v7018_v49, %v7030_v16 }
 0x305   : > { %7032 = vst [vmem:[%s11878_s11 + $0x8] sm:$0x7] %v7031_v37 }
 0x306 PF: > { %s13_s12 = sadd.s32 1, %s10002_s12  }
 0x307   : > { %p10_p4 = scmp.ge.s32.totalorder %s13_s12, 4  }
 0x309   :  { %12 = sbr.rel (!%p10_p4) target bundleno = 1 (0x1), region = 99 }

</bundles_post_ra>
